<compile_context>
chip_gen: v7x
topology: tpu7x:2x2x1
jax: 0.10.0
libtpu: 0.0.40
codegen_flags: <defaults>
</compile_context>

<pallas_src>
import functools

import jax
import jax.numpy as jnp
from jax.experimental import pallas as pl
from jax.experimental.pallas import tpu as pltpu


# ----------------------------------------------------------------------------
# Helpers
# ----------------------------------------------------------------------------
def _largest_tile(total, max_tile, align=128):
    """Largest multiple of `align` that divides `total` and is <= max_tile."""
    cand = (max_tile // align) * align
    while cand >= align:
        if total % cand == 0:
            return cand
        cand -= align
    return total


# ----------------------------------------------------------------------------
# Kernel 1: fused 3x3 conv (pad=1, stride 1 or 2) + bias + LeakyReLU(0.1)
# ----------------------------------------------------------------------------
def _conv3x3_leaky_kernel(x_ref, w_ref, b_ref, o_ref, col_ref, *,
                          stride, Ho, Wo, Hps, cin, neg_slope):
    # x_ref : (1, s*s*Hps, Wps, Cin) f32  -- phase-decomposed padded input
    # w_ref : (9*Cin, tn)            bf16 -- (kh, kw, cin)-major rows
    # b_ref : (1, tn)                f32
    # o_ref : (1, Ho*Wo, tn)         f32
    # col_ref: (Ho*Wo, 9*Cin)        f32 VMEM scratch (im2col built on-chip)
    for dy in range(3):
        for dx in range(3):
            tap = dy * 3 + dx
            ph = (dy % stride) * stride + (dx % stride)   # phase plane
            oy = dy // stride
            ox = dx // stride
            base = ph * Hps + oy
            for i in range(Ho):                            # static, unrolled
                col_ref[i * Wo:(i + 1) * Wo,
                        tap * cin:(tap + 1) * cin] = x_ref[0, base + i,
                                                           ox:ox + Wo, :]
    acc = jnp.dot(col_ref[...].astype(jnp.bfloat16), w_ref[...],
                  preferred_element_type=jnp.float32)
    acc = acc + b_ref[...]
    acc = jnp.where(acc > 0, acc, neg_slope * acc)         # LeakyReLU in f32
    o_ref[0] = acc


def conv3x3_leaky(x, w2d, b2d, *, stride, neg_slope=0.1):
    """Fused Conv2d(3x3, padding=1) + bias + LeakyReLU.

    x: (N, H, W, Cin) f32 NHWC.  w2d: (9*Cin, Cout) bf16.  b2d: (1, Cout) f32.
    Returns (N, Ho, Wo, Cout) f32.
    """
    N, H, W, Cin = x.shape
    Cout = w2d.shape[1]
    assert w2d.shape[0] == 9 * Cin
    Ho = (H + 2 - 3) // stride + 1
    Wo = (W + 2 - 3) // stride + 1

    xpad = jnp.pad(x, ((0, 0), (1, 1), (1, 1), (0, 0)))
    if stride == 1:
        phases = xpad                                      # (N, Hp, Wp, C)
    else:
        Hp, Wp = H + 2, W + 2
        assert Hp % stride == 0 and Wp % stride == 0
        # space-to-depth: 1x data movement (vs 9x for HBM im2col)
        phases = jnp.concatenate(
            [xpad[:, a::stride, b::stride, :]
             for a in range(stride) for b in range(stride)], axis=1)

    PH, Wps = phases.shape[1], phases.shape[2]
    Hps = PH // (stride * stride)
    M = Ho * Wo
    tn = Cout if Cout <= 256 else 256
    assert Cout % tn == 0

    kernel = functools.partial(_conv3x3_leaky_kernel, stride=stride, Ho=Ho,
                               Wo=Wo, Hps=Hps, cin=Cin, neg_slope=neg_slope)
    out = pl.pallas_call(
        kernel,
        out_shape=jax.ShapeDtypeStruct((N, M, Cout), jnp.float32),
        grid=(N, Cout // tn),
        in_specs=[
            pl.BlockSpec((1, PH, Wps, Cin), lambda bi, j: (bi, 0, 0, 0)),
            pl.BlockSpec((9 * Cin, tn), lambda bi, j: (0, j)),
            pl.BlockSpec((1, tn), lambda bi, j: (0, j)),
        ],
        out_specs=pl.BlockSpec((1, M, tn), lambda bi, j: (bi, 0, j)),
        scratch_shapes=[pltpu.VMEM((M, 9 * Cin), jnp.float32)],
        compiler_params=pltpu.CompilerParams(
            dimension_semantics=("parallel", "parallel")),
    )(phases, w2d, b2d)
    return out.reshape(N, Ho, Wo, Cout)


# ----------------------------------------------------------------------------
# Kernel 2: fused Linear(F,H) -> LeakyReLU -> Dropout(eval) -> Linear(H,Npad)
# ----------------------------------------------------------------------------
def _fc_head_kernel(feat_ref, w1_ref, b1_ref, w2_ref, b2_ref, o_ref, h_acc, *,
                    neg_slope):
    k = pl.program_id(0)

    @pl.when(k == 0)
    def _init():
        h_acc[...] = jnp.zeros_like(h_acc)

    h_acc[...] += jnp.dot(feat_ref[...], w1_ref[...],
                          preferred_element_type=jnp.float32)

    @pl.when(k == pl.num_programs(0) - 1)
    def _finalize():
        h = h_acc[...] + b1_ref[...]
        h = jnp.where(h > 0, h, neg_slope * h)             # LeakyReLU in f32
        # TODO(synk): Dropout(0.5) is identity in eval mode; training-mode
        # random masking is not implemented here.
        out = jnp.dot(h.astype(jnp.bfloat16), w2_ref[...],
                      preferred_element_type=jnp.float32)
        o_ref[...] = out + b2_ref[...]


def fc_head(feat, w1, b1, w2, b2, *, neg_slope=0.1):
    """feat: (N, F) bf16; w1: (F, H) bf16; b1: (1, H) f32;
    w2: (H, Npad) bf16; b2: (1, Npad) f32.  Returns (N, Npad) f32."""
    N, F = feat.shape
    H = w1.shape[1]
    Np = w2.shape[1]
    Bp = ((N + 7) // 8) * 8                    # pad batch to 8 sublanes
    feat_p = jnp.pad(feat, ((0, Bp - N), (0, 0)))
    tk = _largest_tile(F, 1024)

    out = pl.pallas_call(
        functools.partial(_fc_head_kernel, neg_slope=neg_slope),
        out_shape=jax.ShapeDtypeStruct((Bp, Np), jnp.float32),
        grid=(F // tk,),
        in_specs=[
            pl.BlockSpec((Bp, tk), lambda k: (0, k)),
            pl.BlockSpec((tk, H), lambda k: (k, 0)),
            pl.BlockSpec((1, H), lambda k: (0, 0)),
            pl.BlockSpec((H, Np), lambda k: (0, 0)),
            pl.BlockSpec((1, Np), lambda k: (0, 0)),
        ],
        out_specs=pl.BlockSpec((Bp, Np), lambda k: (0, 0)),
        scratch_shapes=[pltpu.VMEM((Bp, H), jnp.float32)],
        compiler_params=pltpu.CompilerParams(
            dimension_semantics=("arbitrary",)),
    )(feat_p, w1, b1, w2, b2)
    return out[:N]


# ----------------------------------------------------------------------------
# Parameters (deterministic, synthetic) + kernel-ready preparation.
# ----------------------------------------------------------------------------
def init_params(key, channels, hidden, out_features):
    ks = jax.random.split(key, 12)

    def w_init(k, shape, fan_in):
        return jax.random.normal(k, shape, jnp.float32) / jnp.sqrt(fan_in)

    params = {}
    for li in range(4):
        params[f"conv{li}_w"] = w_init(ks[2 * li], (3, 3, channels, channels),
                                       9 * channels)
        params[f"conv{li}_b"] = 0.01 * jax.random.normal(
            ks[2 * li + 1], (channels,), jnp.float32)
    # fc1 rows are in NHWC-flatten (h, w, c) order.  For pretrained torch
    # weights (NCHW flatten) this is a one-time row permutation at load time.
    params["fc1_w"] = w_init(ks[8], (channels * 7 * 7, hidden), channels * 49)
    params["fc1_b"] = 0.01 * jax.random.normal(ks[9], (hidden,), jnp.float32)
    params["fc2_w"] = w_init(ks[10], (hidden, out_features), hidden)
    params["fc2_b"] = 0.01 * jax.random.normal(ks[11], (out_features,),
                                               jnp.float32)
    return params


def prepare_params(params):
    """One-time (outside jit) cast / reshape / pad to kernel-ready layouts."""
    prep = {}
    for li in range(4):
        w = params[f"conv{li}_w"]                          # (3, 3, Cin, Cout)
        cin, cout = w.shape[2], w.shape[3]
        prep[f"conv{li}_w"] = w.reshape(9 * cin, cout).astype(jnp.bfloat16)
        prep[f"conv{li}_b"] = params[f"conv{li}_b"].reshape(1, cout)
    prep["fc1_w"] = params["fc1_w"].astype(jnp.bfloat16)
    prep["fc1_b"] = params["fc1_b"].reshape(1, -1).astype(jnp.float32)
    w2, b2 = params["fc2_w"], params["fc2_b"]
    nout = w2.shape[1]
    npad = ((nout + 127) // 128) * 128                     # 1470 -> 1536
    prep["fc2_w"] = jnp.pad(w2, ((0, 0), (0, npad - nout))).astype(jnp.bfloat16)
    prep["fc2_b"] = jnp.pad(b2, (0, npad - nout)).reshape(1, npad)
    return prep


# ----------------------------------------------------------------------------
# Forward pass (mirrors YOLO.forward).
# ----------------------------------------------------------------------------
def yolo_forward(x_nchw, p):
    # TODO(synk): `pretrained_network` is an external constructor argument with
    # no definition in the module; it is treated as identity here.
    x = jnp.transpose(x_nchw, (0, 2, 3, 1)).astype(jnp.float32)   # NCHW->NHWC
    N = x.shape[0]

    for li, stride in enumerate((1, 2, 1, 1)):             # pad=1 each layer
        x = conv3x3_leaky(x, p[f"conv{li}_w"], p[f"conv{li}_b"], stride=stride)

    # Flatten; fc1's rows were laid out in this NHWC order at parameter-setup
    # time, so no runtime NHWC->NCHW permute is needed.
    feat = x.reshape(N, -1).astype(jnp.bfloat16)

    out = fc_head(feat, p["fc1_w"], p["fc1_b"], p["fc2_w"], p["fc2_b"])
    out = out[:, :7 * 7 * 30]                              # drop lane padding
    return out.reshape(-1, 7, 7, 30)


# ----------------------------------------------------------------------------
if __name__ == "__main__":
    BATCH = 2
    CHANNELS = 128       # scaled-down stand-in for 1024 (keeps lanes dense)
    HIDDEN = 128         # scaled-down stand-in for 4096
    OUT_FEATURES = 1470  # 7 * 7 * 30, fixed by the model's reshape
    SPATIAL = 14         # backbone output size implied by 50176 = C * 7 * 7

    key = jax.random.PRNGKey(0)
    pkey, xkey = jax.random.split(key)
    params = init_params(pkey, CHANNELS, HIDDEN, OUT_FEATURES)
    prep = prepare_params(params)

    x = jax.random.normal(xkey, (BATCH, CHANNELS, SPATIAL, SPATIAL),
                          jnp.float32)

    fwd = jax.jit(yolo_forward)
    out = jax.block_until_ready(fwd(x, prep))

    assert out.shape == (BATCH, 7, 7, 30), out.shape
    assert out.dtype == jnp.float32
    assert bool(jnp.all(jnp.isfinite(out)))
    print("KERNEL_OK")
</pallas_src>

<mosaic_0001>
module attributes {stable_mosaic.version = 11 : i64} {
  func.func @_conv3x3_leaky_kernel(%arg0: i32, %arg1: i32, %arg2: memref<1x16x16x128xf32, #tpu.memory_space<vmem>>, %arg3: memref<1152x128xbf16, #tpu.memory_space<vmem>>, %arg4: memref<1x128xf32, #tpu.memory_space<vmem>>, %arg5: memref<1x196x128xf32, #tpu.memory_space<vmem>>, %arg6: memref<196x1152xf32, #tpu.memory_space<vmem>>) attributes {dimension_semantics = [#tpu.dimension_semantics<parallel>, #tpu.dimension_semantics<parallel>], iteration_bounds = array<i64: 2, 1>, scalar_prefetch = 0 : i64, scratch_operands = 1 : i64, tpu.core_type = #tpu.core_type<tc>, window_params = [{transform_indices = @transform_0, window_bounds = array<i64: 1, 16, 16, 128>}, {transform_indices = @transform_1, window_bounds = array<i64: 1152, 128>}, {transform_indices = @transform_2, window_bounds = array<i64: 1, 128>}, {transform_indices = @transform_3, window_bounds = array<i64: 1, 196, 128>}]} {
    %c0 = arith.constant 0 : index
    %c0_0 = arith.constant 0 : index
    %c0_1 = arith.constant 0 : index
    %c0_2 = arith.constant 0 : index
    %0 = vector.load %arg2[%c0, %c0_0, %c0_1, %c0_2] : memref<1x16x16x128xf32, #tpu.memory_space<vmem>>, vector<1x1x14x128xf32>
    %1 = vector.shape_cast %0 : vector<1x1x14x128xf32> to vector<14x128xf32>
    %c0_3 = arith.constant 0 : index
    %c0_4 = arith.constant 0 : index
    %2 = vector.load %arg6[%c0_3, %c0_4] : memref<196x1152xf32, #tpu.memory_space<vmem>>, vector<14x128xf32>
    tpu.vector_store %arg6[%c0_3, %c0_4], %1 {strides = array<i32>} : memref<196x1152xf32, #tpu.memory_space<vmem>>, vector<14x128xf32>,
    %c0_5 = arith.constant 0 : index
    %c1 = arith.constant 1 : index
    %c0_6 = arith.constant 0 : index
    %c0_7 = arith.constant 0 : index
    %3 = vector.load %arg2[%c0_5, %c1, %c0_6, %c0_7] : memref<1x16x16x128xf32, #tpu.memory_space<vmem>>, vector<1x1x14x128xf32>
    %4 = vector.shape_cast %3 : vector<1x1x14x128xf32> to vector<14x128xf32>
    %c14 = arith.constant 14 : index
    %c0_8 = arith.constant 0 : index
    %5 = vector.load %arg6[%c14, %c0_8] : memref<196x1152xf32, #tpu.memory_space<vmem>>, vector<14x128xf32>
    tpu.vector_store %arg6[%c14, %c0_8], %4 {strides = array<i32>} : memref<196x1152xf32, #tpu.memory_space<vmem>>, vector<14x128xf32>,
    %c0_9 = arith.constant 0 : index
    %c2 = arith.constant 2 : index
    %c0_10 = arith.constant 0 : index
    %c0_11 = arith.constant 0 : index
    %6 = vector.load %arg2[%c0_9, %c2, %c0_10, %c0_11] : memref<1x16x16x128xf32, #tpu.memory_space<vmem>>, vector<1x1x14x128xf32>
    %7 = vector.shape_cast %6 : vector<1x1x14x128xf32> to vector<14x128xf32>
    %c28 = arith.constant 28 : index
    %c0_12 = arith.constant 0 : index
    %8 = vector.load %arg6[%c28, %c0_12] : memref<196x1152xf32, #tpu.memory_space<vmem>>, vector<14x128xf32>
    tpu.vector_store %arg6[%c28, %c0_12], %7 {strides = array<i32>} : memref<196x1152xf32, #tpu.memory_space<vmem>>, vector<14x128xf32>,
    %c0_13 = arith.constant 0 : index
    %c3 = arith.constant 3 : index
    %c0_14 = arith.constant 0 : index
    %c0_15 = arith.constant 0 : index
    %9 = vector.load %arg2[%c0_13, %c3, %c0_14, %c0_15] : memref<1x16x16x128xf32, #tpu.memory_space<vmem>>, vector<1x1x14x128xf32>
    %10 = vector.shape_cast %9 : vector<1x1x14x128xf32> to vector<14x128xf32>
    %c42 = arith.constant 42 : index
    %c0_16 = arith.constant 0 : index
    %11 = vector.load %arg6[%c42, %c0_16] : memref<196x1152xf32, #tpu.memory_space<vmem>>, vector<14x128xf32>
    tpu.vector_store %arg6[%c42, %c0_16], %10 {strides = array<i32>} : memref<196x1152xf32, #tpu.memory_space<vmem>>, vector<14x128xf32>,
    %c0_17 = arith.constant 0 : index
    %c4 = arith.constant 4 : index
    %c0_18 = arith.constant 0 : index
    %c0_19 = arith.constant 0 : index
    %12 = vector.load %arg2[%c0_17, %c4, %c0_18, %c0_19] : memref<1x16x16x128xf32, #tpu.memory_space<vmem>>, vector<1x1x14x128xf32>
    %13 = vector.shape_cast %12 : vector<1x1x14x128xf32> to vector<14x128xf32>
    %c56 = arith.constant 56 : index
    %c0_20 = arith.constant 0 : index
    %14 = vector.load %arg6[%c56, %c0_20] : memref<196x1152xf32, #tpu.memory_space<vmem>>, vector<14x128xf32>
    tpu.vector_store %arg6[%c56, %c0_20], %13 {strides = array<i32>} : memref<196x1152xf32, #tpu.memory_space<vmem>>, vector<14x128xf32>,
    %c0_21 = arith.constant 0 : index
    %c5 = arith.constant 5 : index
    %c0_22 = arith.constant 0 : index
    %c0_23 = arith.constant 0 : index
    %15 = vector.load %arg2[%c0_21, %c5, %c0_22, %c0_23] : memref<1x16x16x128xf32, #tpu.memory_space<vmem>>, vector<1x1x14x128xf32>
    %16 = vector.shape_cast %15 : vector<1x1x14x128xf32> to vector<14x128xf32>
    %c70 = arith.constant 70 : index
    %c0_24 = arith.constant 0 : index
    %17 = vector.load %arg6[%c70, %c0_24] : memref<196x1152xf32, #tpu.memory_space<vmem>>, vector<14x128xf32>
    tpu.vector_store %arg6[%c70, %c0_24], %16 {strides = array<i32>} : memref<196x1152xf32, #tpu.memory_space<vmem>>, vector<14x128xf32>,
    %c0_25 = arith.constant 0 : index
    %c6 = arith.constant 6 : index
    %c0_26 = arith.constant 0 : index
    %c0_27 = arith.constant 0 : index
    %18 = vector.load %arg2[%c0_25, %c6, %c0_26, %c0_27] : memref<1x16x16x128xf32, #tpu.memory_space<vmem>>, vector<1x1x14x128xf32>
    %19 = vector.shape_cast %18 : vector<1x1x14x128xf32> to vector<14x128xf32>
    %c84 = arith.constant 84 : index
    %c0_28 = arith.constant 0 : index
    %20 = vector.load %arg6[%c84, %c0_28] : memref<196x1152xf32, #tpu.memory_space<vmem>>, vector<14x128xf32>
    tpu.vector_store %arg6[%c84, %c0_28], %19 {strides = array<i32>} : memref<196x1152xf32, #tpu.memory_space<vmem>>, vector<14x128xf32>,
    %c0_29 = arith.constant 0 : index
    %c7 = arith.constant 7 : index
    %c0_30 = arith.constant 0 : index
    %c0_31 = arith.constant 0 : index
    %21 = vector.load %arg2[%c0_29, %c7, %c0_30, %c0_31] : memref<1x16x16x128xf32, #tpu.memory_space<vmem>>, vector<1x1x14x128xf32>
    %22 = vector.shape_cast %21 : vector<1x1x14x128xf32> to vector<14x128xf32>
    %c98 = arith.constant 98 : index
    %c0_32 = arith.constant 0 : index
    %23 = vector.load %arg6[%c98, %c0_32] : memref<196x1152xf32, #tpu.memory_space<vmem>>, vector<14x128xf32>
    tpu.vector_store %arg6[%c98, %c0_32], %22 {strides = array<i32>} : memref<196x1152xf32, #tpu.memory_space<vmem>>, vector<14x128xf32>,
    %c0_33 = arith.constant 0 : index
    %c8 = arith.constant 8 : index
    %c0_34 = arith.constant 0 : index
    %c0_35 = arith.constant 0 : index
    %24 = vector.load %arg2[%c0_33, %c8, %c0_34, %c0_35] : memref<1x16x16x128xf32, #tpu.memory_space<vmem>>, vector<1x1x14x128xf32>
    %25 = vector.shape_cast %24 : vector<1x1x14x128xf32> to vector<14x128xf32>
    %c112 = arith.constant 112 : index
    %c0_36 = arith.constant 0 : index
    %26 = vector.load %arg6[%c112, %c0_36] : memref<196x1152xf32, #tpu.memory_space<vmem>>, vector<14x128xf32>
    tpu.vector_store %arg6[%c112, %c0_36], %25 {strides = array<i32>} : memref<196x1152xf32, #tpu.memory_space<vmem>>, vector<14x128xf32>,
    %c0_37 = arith.constant 0 : index
    %c9 = arith.constant 9 : index
    %c0_38 = arith.constant 0 : index
    %c0_39 = arith.constant 0 : index
    %27 = vector.load %arg2[%c0_37, %c9, %c0_38, %c0_39] : memref<1x16x16x128xf32, #tpu.memory_space<vmem>>, vector<1x1x14x128xf32>
    %28 = vector.shape_cast %27 : vector<1x1x14x128xf32> to vector<14x128xf32>
    %c126 = arith.constant 126 : index
    %c0_40 = arith.constant 0 : index
    %29 = vector.load %arg6[%c126, %c0_40] : memref<196x1152xf32, #tpu.memory_space<vmem>>, vector<14x128xf32>
    tpu.vector_store %arg6[%c126, %c0_40], %28 {strides = array<i32>} : memref<196x1152xf32, #tpu.memory_space<vmem>>, vector<14x128xf32>,
    %c0_41 = arith.constant 0 : index
    %c10 = arith.constant 10 : index
    %c0_42 = arith.constant 0 : index
    %c0_43 = arith.constant 0 : index
    %30 = vector.load %arg2[%c0_41, %c10, %c0_42, %c0_43] : memref<1x16x16x128xf32, #tpu.memory_space<vmem>>, vector<1x1x14x128xf32>
    %31 = vector.shape_cast %30 : vector<1x1x14x128xf32> to vector<14x128xf32>
    %c140 = arith.constant 140 : index
    %c0_44 = arith.constant 0 : index
    %32 = vector.load %arg6[%c140, %c0_44] : memref<196x1152xf32, #tpu.memory_space<vmem>>, vector<14x128xf32>
    tpu.vector_store %arg6[%c140, %c0_44], %31 {strides = array<i32>} : memref<196x1152xf32, #tpu.memory_space<vmem>>, vector<14x128xf32>,
    %c0_45 = arith.constant 0 : index
    %c11 = arith.constant 11 : index
    %c0_46 = arith.constant 0 : index
    %c0_47 = arith.constant 0 : index
    %33 = vector.load %arg2[%c0_45, %c11, %c0_46, %c0_47] : memref<1x16x16x128xf32, #tpu.memory_space<vmem>>, vector<1x1x14x128xf32>
    %34 = vector.shape_cast %33 : vector<1x1x14x128xf32> to vector<14x128xf32>
    %c154 = arith.constant 154 : index
    %c0_48 = arith.constant 0 : index
    %35 = vector.load %arg6[%c154, %c0_48] : memref<196x1152xf32, #tpu.memory_space<vmem>>, vector<14x128xf32>
    tpu.vector_store %arg6[%c154, %c0_48], %34 {strides = array<i32>} : memref<196x1152xf32, #tpu.memory_space<vmem>>, vector<14x128xf32>,
    %c0_49 = arith.constant 0 : index
    %c12 = arith.constant 12 : index
    %c0_50 = arith.constant 0 : index
    %c0_51 = arith.constant 0 : index
    %36 = vector.load %arg2[%c0_49, %c12, %c0_50, %c0_51] : memref<1x16x16x128xf32, #tpu.memory_space<vmem>>, vector<1x1x14x128xf32>
    %37 = vector.shape_cast %36 : vector<1x1x14x128xf32> to vector<14x128xf32>
    %c168 = arith.constant 168 : index
    %c0_52 = arith.constant 0 : index
    %38 = vector.load %arg6[%c168, %c0_52] : memref<196x1152xf32, #tpu.memory_space<vmem>>, vector<14x128xf32>
    tpu.vector_store %arg6[%c168, %c0_52], %37 {strides = array<i32>} : memref<196x1152xf32, #tpu.memory_space<vmem>>, vector<14x128xf32>,
    %c0_53 = arith.constant 0 : index
    %c13 = arith.constant 13 : index
    %c0_54 = arith.constant 0 : index
    %c0_55 = arith.constant 0 : index
    %39 = vector.load %arg2[%c0_53, %c13, %c0_54, %c0_55] : memref<1x16x16x128xf32, #tpu.memory_space<vmem>>, vector<1x1x14x128xf32>
    %40 = vector.shape_cast %39 : vector<1x1x14x128xf32> to vector<14x128xf32>
    %c182 = arith.constant 182 : index
    %c0_56 = arith.constant 0 : index
    %41 = vector.load %arg6[%c182, %c0_56] : memref<196x1152xf32, #tpu.memory_space<vmem>>, vector<14x128xf32>
    tpu.vector_store %arg6[%c182, %c0_56], %40 {strides = array<i32>} : memref<196x1152xf32, #tpu.memory_space<vmem>>, vector<14x128xf32>,
    %c0_57 = arith.constant 0 : index
    %c0_58 = arith.constant 0 : index
    %c1_59 = arith.constant 1 : index
    %c0_60 = arith.constant 0 : index
    %42 = vector.load %arg2[%c0_57, %c0_58, %c1_59, %c0_60] : memref<1x16x16x128xf32, #tpu.memory_space<vmem>>, vector<1x1x14x128xf32>
    %43 = vector.shape_cast %42 : vector<1x1x14x128xf32> to vector<14x128xf32>
    %c0_61 = arith.constant 0 : index
    %c128 = arith.constant 128 : index
    %44 = vector.load %arg6[%c0_61, %c128] : memref<196x1152xf32, #tpu.memory_space<vmem>>, vector<14x128xf32>
    tpu.vector_store %arg6[%c0_61, %c128], %43 {strides = array<i32>} : memref<196x1152xf32, #tpu.memory_space<vmem>>, vector<14x128xf32>,
    %c0_62 = arith.constant 0 : index
    %c1_63 = arith.constant 1 : index
    %c1_64 = arith.constant 1 : index
    %c0_65 = arith.constant 0 : index
    %45 = vector.load %arg2[%c0_62, %c1_63, %c1_64, %c0_65] : memref<1x16x16x128xf32, #tpu.memory_space<vmem>>, vector<1x1x14x128xf32>
    %46 = vector.shape_cast %45 : vector<1x1x14x128xf32> to vector<14x128xf32>
    %c14_66 = arith.constant 14 : index
    %c128_67 = arith.constant 128 : index
    %47 = vector.load %arg6[%c14_66, %c128_67] : memref<196x1152xf32, #tpu.memory_space<vmem>>, vector<14x128xf32>
    tpu.vector_store %arg6[%c14_66, %c128_67], %46 {strides = array<i32>} : memref<196x1152xf32, #tpu.memory_space<vmem>>, vector<14x128xf32>,
    %c0_68 = arith.constant 0 : index
    %c2_69 = arith.constant 2 : index
    %c1_70 = arith.constant 1 : index
    %c0_71 = arith.constant 0 : index
    %48 = vector.load %arg2[%c0_68, %c2_69, %c1_70, %c0_71] : memref<1x16x16x128xf32, #tpu.memory_space<vmem>>, vector<1x1x14x128xf32>
    %49 = vector.shape_cast %48 : vector<1x1x14x128xf32> to vector<14x128xf32>
    %c28_72 = arith.constant 28 : index
    %c128_73 = arith.constant 128 : index
    %50 = vector.load %arg6[%c28_72, %c128_73] : memref<196x1152xf32, #tpu.memory_space<vmem>>, vector<14x128xf32>
    tpu.vector_store %arg6[%c28_72, %c128_73], %49 {strides = array<i32>} : memref<196x1152xf32, #tpu.memory_space<vmem>>, vector<14x128xf32>,
    %c0_74 = arith.constant 0 : index
    %c3_75 = arith.constant 3 : index
    %c1_76 = arith.constant 1 : index
    %c0_77 = arith.constant 0 : index
    %51 = vector.load %arg2[%c0_74, %c3_75, %c1_76, %c0_77] : memref<1x16x16x128xf32, #tpu.memory_space<vmem>>, vector<1x1x14x128xf32>
    %52 = vector.shape_cast %51 : vector<1x1x14x128xf32> to vector<14x128xf32>
    %c42_78 = arith.constant 42 : index
    %c128_79 = arith.constant 128 : index
    %53 = vector.load %arg6[%c42_78, %c128_79] : memref<196x1152xf32, #tpu.memory_space<vmem>>, vector<14x128xf32>
    tpu.vector_store %arg6[%c42_78, %c128_79], %52 {strides = array<i32>} : memref<196x1152xf32, #tpu.memory_space<vmem>>, vector<14x128xf32>,
    %c0_80 = arith.constant 0 : index
    %c4_81 = arith.constant 4 : index
    %c1_82 = arith.constant 1 : index
    %c0_83 = arith.constant 0 : index
    %54 = vector.load %arg2[%c0_80, %c4_81, %c1_82, %c0_83] : memref<1x16x16x128xf32, #tpu.memory_space<vmem>>, vector<1x1x14x128xf32>
    %55 = vector.shape_cast %54 : vector<1x1x14x128xf32> to vector<14x128xf32>
    %c56_84 = arith.constant 56 : index
    %c128_85 = arith.constant 128 : index
    %56 = vector.load %arg6[%c56_84, %c128_85] : memref<196x1152xf32, #tpu.memory_space<vmem>>, vector<14x128xf32>
    tpu.vector_store %arg6[%c56_84, %c128_85], %55 {strides = array<i32>} : memref<196x1152xf32, #tpu.memory_space<vmem>>, vector<14x128xf32>,
    %c0_86 = arith.constant 0 : index
    %c5_87 = arith.constant 5 : index
    %c1_88 = arith.constant 1 : index
    %c0_89 = arith.constant 0 : index
    %57 = vector.load %arg2[%c0_86, %c5_87, %c1_88, %c0_89] : memref<1x16x16x128xf32, #tpu.memory_space<vmem>>, vector<1x1x14x128xf32>
    %58 = vector.shape_cast %57 : vector<1x1x14x128xf32> to vector<14x128xf32>
    %c70_90 = arith.constant 70 : index
    %c128_91 = arith.constant 128 : index
    %59 = vector.load %arg6[%c70_90, %c128_91] : memref<196x1152xf32, #tpu.memory_space<vmem>>, vector<14x128xf32>
    tpu.vector_store %arg6[%c70_90, %c128_91], %58 {strides = array<i32>} : memref<196x1152xf32, #tpu.memory_space<vmem>>, vector<14x128xf32>,
    %c0_92 = arith.constant 0 : index
    %c6_93 = arith.constant 6 : index
    %c1_94 = arith.constant 1 : index
    %c0_95 = arith.constant 0 : index
    %60 = vector.load %arg2[%c0_92, %c6_93, %c1_94, %c0_95] : memref<1x16x16x128xf32, #tpu.memory_space<vmem>>, vector<1x1x14x128xf32>
    %61 = vector.shape_cast %60 : vector<1x1x14x128xf32> to vector<14x128xf32>
    %c84_96 = arith.constant 84 : index
    %c128_97 = arith.constant 128 : index
    %62 = vector.load %arg6[%c84_96, %c128_97] : memref<196x1152xf32, #tpu.memory_space<vmem>>, vector<14x128xf32>
    tpu.vector_store %arg6[%c84_96, %c128_97], %61 {strides = array<i32>} : memref<196x1152xf32, #tpu.memory_space<vmem>>, vector<14x128xf32>,
    %c0_98 = arith.constant 0 : index
    %c7_99 = arith.constant 7 : index
    %c1_100 = arith.constant 1 : index
    %c0_101 = arith.constant 0 : index
    %63 = vector.load %arg2[%c0_98, %c7_99, %c1_100, %c0_101] : memref<1x16x16x128xf32, #tpu.memory_space<vmem>>, vector<1x1x14x128xf32>
    %64 = vector.shape_cast %63 : vector<1x1x14x128xf32> to vector<14x128xf32>
    %c98_102 = arith.constant 98 : index
    %c128_103 = arith.constant 128 : index
    %65 = vector.load %arg6[%c98_102, %c128_103] : memref<196x1152xf32, #tpu.memory_space<vmem>>, vector<14x128xf32>
    tpu.vector_store %arg6[%c98_102, %c128_103], %64 {strides = array<i32>} : memref<196x1152xf32, #tpu.memory_space<vmem>>, vector<14x128xf32>,
    %c0_104 = arith.constant 0 : index
    %c8_105 = arith.constant 8 : index
    %c1_106 = arith.constant 1 : index
    %c0_107 = arith.constant 0 : index
    %66 = vector.load %arg2[%c0_104, %c8_105, %c1_106, %c0_107] : memref<1x16x16x128xf32, #tpu.memory_space<vmem>>, vector<1x1x14x128xf32>
    %67 = vector.shape_cast %66 : vector<1x1x14x128xf32> to vector<14x128xf32>
    %c112_108 = arith.constant 112 : index
    %c128_109 = arith.constant 128 : index
    %68 = vector.load %arg6[%c112_108, %c128_109] : memref<196x1152xf32, #tpu.memory_space<vmem>>, vector<14x128xf32>
    tpu.vector_store %arg6[%c112_108, %c128_109], %67 {strides = array<i32>} : memref<196x1152xf32, #tpu.memory_space<vmem>>, vector<14x128xf32>,
    %c0_110 = arith.constant 0 : index
    %c9_111 = arith.constant 9 : index
    %c1_112 = arith.constant 1 : index
    %c0_113 = arith.constant 0 : index
    %69 = vector.load %arg2[%c0_110, %c9_111, %c1_112, %c0_113] : memref<1x16x16x128xf32, #tpu.memory_space<vmem>>, vector<1x1x14x128xf32>
    %70 = vector.shape_cast %69 : vector<1x1x14x128xf32> to vector<14x128xf32>
    %c126_114 = arith.constant 126 : index
    %c128_115 = arith.constant 128 : index
    %71 = vector.load %arg6[%c126_114, %c128_115] : memref<196x1152xf32, #tpu.memory_space<vmem>>, vector<14x128xf32>
    tpu.vector_store %arg6[%c126_114, %c128_115], %70 {strides = array<i32>} : memref<196x1152xf32, #tpu.memory_space<vmem>>, vector<14x128xf32>,
    %c0_116 = arith.constant 0 : index
    %c10_117 = arith.constant 10 : index
    %c1_118 = arith.constant 1 : index
    %c0_119 = arith.constant 0 : index
    %72 = vector.load %arg2[%c0_116, %c10_117, %c1_118, %c0_119] : memref<1x16x16x128xf32, #tpu.memory_space<vmem>>, vector<1x1x14x128xf32>
    %73 = vector.shape_cast %72 : vector<1x1x14x128xf32> to vector<14x128xf32>
    %c140_120 = arith.constant 140 : index
    %c128_121 = arith.constant 128 : index
    %74 = vector.load %arg6[%c140_120, %c128_121] : memref<196x1152xf32, #tpu.memory_space<vmem>>, vector<14x128xf32>
    tpu.vector_store %arg6[%c140_120, %c128_121], %73 {strides = array<i32>} : memref<196x1152xf32, #tpu.memory_space<vmem>>, vector<14x128xf32>,
    %c0_122 = arith.constant 0 : index
    %c11_123 = arith.constant 11 : index
    %c1_124 = arith.constant 1 : index
    %c0_125 = arith.constant 0 : index
    %75 = vector.load %arg2[%c0_122, %c11_123, %c1_124, %c0_125] : memref<1x16x16x128xf32, #tpu.memory_space<vmem>>, vector<1x1x14x128xf32>
    %76 = vector.shape_cast %75 : vector<1x1x14x128xf32> to vector<14x128xf32>
    %c154_126 = arith.constant 154 : index
    %c128_127 = arith.constant 128 : index
    %77 = vector.load %arg6[%c154_126, %c128_127] : memref<196x1152xf32, #tpu.memory_space<vmem>>, vector<14x128xf32>
    tpu.vector_store %arg6[%c154_126, %c128_127], %76 {strides = array<i32>} : memref<196x1152xf32, #tpu.memory_space<vmem>>, vector<14x128xf32>,
    %c0_128 = arith.constant 0 : index
    %c12_129 = arith.constant 12 : index
    %c1_130 = arith.constant 1 : index
    %c0_131 = arith.constant 0 : index
    %78 = vector.load %arg2[%c0_128, %c12_129, %c1_130, %c0_131] : memref<1x16x16x128xf32, #tpu.memory_space<vmem>>, vector<1x1x14x128xf32>
    %79 = vector.shape_cast %78 : vector<1x1x14x128xf32> to vector<14x128xf32>
    %c168_132 = arith.constant 168 : index
    %c128_133 = arith.constant 128 : index
    %80 = vector.load %arg6[%c168_132, %c128_133] : memref<196x1152xf32, #tpu.memory_space<vmem>>, vector<14x128xf32>
    tpu.vector_store %arg6[%c168_132, %c128_133], %79 {strides = array<i32>} : memref<196x1152xf32, #tpu.memory_space<vmem>>, vector<14x128xf32>,
    %c0_134 = arith.constant 0 : index
    %c13_135 = arith.constant 13 : index
    %c1_136 = arith.constant 1 : index
    %c0_137 = arith.constant 0 : index
    %81 = vector.load %arg2[%c0_134, %c13_135, %c1_136, %c0_137] : memref<1x16x16x128xf32, #tpu.memory_space<vmem>>, vector<1x1x14x128xf32>
    %82 = vector.shape_cast %81 : vector<1x1x14x128xf32> to vector<14x128xf32>
    %c182_138 = arith.constant 182 : index
    %c128_139 = arith.constant 128 : index
    %83 = vector.load %arg6[%c182_138, %c128_139] : memref<196x1152xf32, #tpu.memory_space<vmem>>, vector<14x128xf32>
    tpu.vector_store %arg6[%c182_138, %c128_139], %82 {strides = array<i32>} : memref<196x1152xf32, #tpu.memory_space<vmem>>, vector<14x128xf32>,
    %c0_140 = arith.constant 0 : index
    %c0_141 = arith.constant 0 : index
    %c2_142 = arith.constant 2 : index
    %c0_143 = arith.constant 0 : index
    %84 = vector.load %arg2[%c0_140, %c0_141, %c2_142, %c0_143] : memref<1x16x16x128xf32, #tpu.memory_space<vmem>>, vector<1x1x14x128xf32>
    %85 = vector.shape_cast %84 : vector<1x1x14x128xf32> to vector<14x128xf32>
    %c0_144 = arith.constant 0 : index
    %c256 = arith.constant 256 : index
    %86 = vector.load %arg6[%c0_144, %c256] : memref<196x1152xf32, #tpu.memory_space<vmem>>, vector<14x128xf32>
    tpu.vector_store %arg6[%c0_144, %c256], %85 {strides = array<i32>} : memref<196x1152xf32, #tpu.memory_space<vmem>>, vector<14x128xf32>,
    %c0_145 = arith.constant 0 : index
    %c1_146 = arith.constant 1 : index
    %c2_147 = arith.constant 2 : index
    %c0_148 = arith.constant 0 : index
    %87 = vector.load %arg2[%c0_145, %c1_146, %c2_147, %c0_148] : memref<1x16x16x128xf32, #tpu.memory_space<vmem>>, vector<1x1x14x128xf32>
    %88 = vector.shape_cast %87 : vector<1x1x14x128xf32> to vector<14x128xf32>
    %c14_149 = arith.constant 14 : index
    %c256_150 = arith.constant 256 : index
    %89 = vector.load %arg6[%c14_149, %c256_150] : memref<196x1152xf32, #tpu.memory_space<vmem>>, vector<14x128xf32>
    tpu.vector_store %arg6[%c14_149, %c256_150], %88 {strides = array<i32>} : memref<196x1152xf32, #tpu.memory_space<vmem>>, vector<14x128xf32>,
    %c0_151 = arith.constant 0 : index
    %c2_152 = arith.constant 2 : index
    %c2_153 = arith.constant 2 : index
    %c0_154 = arith.constant 0 : index
    %90 = vector.load %arg2[%c0_151, %c2_152, %c2_153, %c0_154] : memref<1x16x16x128xf32, #tpu.memory_space<vmem>>, vector<1x1x14x128xf32>
    %91 = vector.shape_cast %90 : vector<1x1x14x128xf32> to vector<14x128xf32>
    %c28_155 = arith.constant 28 : index
    %c256_156 = arith.constant 256 : index
    %92 = vector.load %arg6[%c28_155, %c256_156] : memref<196x1152xf32, #tpu.memory_space<vmem>>, vector<14x128xf32>
    tpu.vector_store %arg6[%c28_155, %c256_156], %91 {strides = array<i32>} : memref<196x1152xf32, #tpu.memory_space<vmem>>, vector<14x128xf32>,
    %c0_157 = arith.constant 0 : index
    %c3_158 = arith.constant 3 : index
    %c2_159 = arith.constant 2 : index
    %c0_160 = arith.constant 0 : index
    %93 = vector.load %arg2[%c0_157, %c3_158, %c2_159, %c0_160] : memref<1x16x16x128xf32, #tpu.memory_space<vmem>>, vector<1x1x14x128xf32>
    %94 = vector.shape_cast %93 : vector<1x1x14x128xf32> to vector<14x128xf32>
    %c42_161 = arith.constant 42 : index
    %c256_162 = arith.constant 256 : index
    %95 = vector.load %arg6[%c42_161, %c256_162] : memref<196x1152xf32, #tpu.memory_space<vmem>>, vector<14x128xf32>
    tpu.vector_store %arg6[%c42_161, %c256_162], %94 {strides = array<i32>} : memref<196x1152xf32, #tpu.memory_space<vmem>>, vector<14x128xf32>,
    %c0_163 = arith.constant 0 : index
    %c4_164 = arith.constant 4 : index
    %c2_165 = arith.constant 2 : index
    %c0_166 = arith.constant 0 : index
    %96 = vector.load %arg2[%c0_163, %c4_164, %c2_165, %c0_166] : memref<1x16x16x128xf32, #tpu.memory_space<vmem>>, vector<1x1x14x128xf32>
    %97 = vector.shape_cast %96 : vector<1x1x14x128xf32> to vector<14x128xf32>
    %c56_167 = arith.constant 56 : index
    %c256_168 = arith.constant 256 : index
    %98 = vector.load %arg6[%c56_167, %c256_168] : memref<196x1152xf32, #tpu.memory_space<vmem>>, vector<14x128xf32>
    tpu.vector_store %arg6[%c56_167, %c256_168], %97 {strides = array<i32>} : memref<196x1152xf32, #tpu.memory_space<vmem>>, vector<14x128xf32>,
    %c0_169 = arith.constant 0 : index
    %c5_170 = arith.constant 5 : index
    %c2_171 = arith.constant 2 : index
    %c0_172 = arith.constant 0 : index
    %99 = vector.load %arg2[%c0_169, %c5_170, %c2_171, %c0_172] : memref<1x16x16x128xf32, #tpu.memory_space<vmem>>, vector<1x1x14x128xf32>
    %100 = vector.shape_cast %99 : vector<1x1x14x128xf32> to vector<14x128xf32>
    %c70_173 = arith.constant 70 : index
    %c256_174 = arith.constant 256 : index
    %101 = vector.load %arg6[%c70_173, %c256_174] : memref<196x1152xf32, #tpu.memory_space<vmem>>, vector<14x128xf32>
    tpu.vector_store %arg6[%c70_173, %c256_174], %100 {strides = array<i32>} : memref<196x1152xf32, #tpu.memory_space<vmem>>, vector<14x128xf32>,
    %c0_175 = arith.constant 0 : index
    %c6_176 = arith.constant 6 : index
    %c2_177 = arith.constant 2 : index
    %c0_178 = arith.constant 0 : index
    %102 = vector.load %arg2[%c0_175, %c6_176, %c2_177, %c0_178] : memref<1x16x16x128xf32, #tpu.memory_space<vmem>>, vector<1x1x14x128xf32>
    %103 = vector.shape_cast %102 : vector<1x1x14x128xf32> to vector<14x128xf32>
    %c84_179 = arith.constant 84 : index
    %c256_180 = arith.constant 256 : index
    %104 = vector.load %arg6[%c84_179, %c256_180] : memref<196x1152xf32, #tpu.memory_space<vmem>>, vector<14x128xf32>
    tpu.vector_store %arg6[%c84_179, %c256_180], %103 {strides = array<i32>} : memref<196x1152xf32, #tpu.memory_space<vmem>>, vector<14x128xf32>,
    %c0_181 = arith.constant 0 : index
    %c7_182 = arith.constant 7 : index
    %c2_183 = arith.constant 2 : index
    %c0_184 = arith.constant 0 : index
    %105 = vector.load %arg2[%c0_181, %c7_182, %c2_183, %c0_184] : memref<1x16x16x128xf32, #tpu.memory_space<vmem>>, vector<1x1x14x128xf32>
    %106 = vector.shape_cast %105 : vector<1x1x14x128xf32> to vector<14x128xf32>
    %c98_185 = arith.constant 98 : index
    %c256_186 = arith.constant 256 : index
    %107 = vector.load %arg6[%c98_185, %c256_186] : memref<196x1152xf32, #tpu.memory_space<vmem>>, vector<14x128xf32>
    tpu.vector_store %arg6[%c98_185, %c256_186], %106 {strides = array<i32>} : memref<196x1152xf32, #tpu.memory_space<vmem>>, vector<14x128xf32>,
    %c0_187 = arith.constant 0 : index
    %c8_188 = arith.constant 8 : index
    %c2_189 = arith.constant 2 : index
    %c0_190 = arith.constant 0 : index
    %108 = vector.load %arg2[%c0_187, %c8_188, %c2_189, %c0_190] : memref<1x16x16x128xf32, #tpu.memory_space<vmem>>, vector<1x1x14x128xf32>
    %109 = vector.shape_cast %108 : vector<1x1x14x128xf32> to vector<14x128xf32>
    %c112_191 = arith.constant 112 : index
    %c256_192 = arith.constant 256 : index
    %110 = vector.load %arg6[%c112_191, %c256_192] : memref<196x1152xf32, #tpu.memory_space<vmem>>, vector<14x128xf32>
    tpu.vector_store %arg6[%c112_191, %c256_192], %109 {strides = array<i32>} : memref<196x1152xf32, #tpu.memory_space<vmem>>, vector<14x128xf32>,
    %c0_193 = arith.constant 0 : index
    %c9_194 = arith.constant 9 : index
    %c2_195 = arith.constant 2 : index
    %c0_196 = arith.constant 0 : index
    %111 = vector.load %arg2[%c0_193, %c9_194, %c2_195, %c0_196] : memref<1x16x16x128xf32, #tpu.memory_space<vmem>>, vector<1x1x14x128xf32>
    %112 = vector.shape_cast %111 : vector<1x1x14x128xf32> to vector<14x128xf32>
    %c126_197 = arith.constant 126 : index
    %c256_198 = arith.constant 256 : index
    %113 = vector.load %arg6[%c126_197, %c256_198] : memref<196x1152xf32, #tpu.memory_space<vmem>>, vector<14x128xf32>
    tpu.vector_store %arg6[%c126_197, %c256_198], %112 {strides = array<i32>} : memref<196x1152xf32, #tpu.memory_space<vmem>>, vector<14x128xf32>,
    %c0_199 = arith.constant 0 : index
    %c10_200 = arith.constant 10 : index
    %c2_201 = arith.constant 2 : index
    %c0_202 = arith.constant 0 : index
    %114 = vector.load %arg2[%c0_199, %c10_200, %c2_201, %c0_202] : memref<1x16x16x128xf32, #tpu.memory_space<vmem>>, vector<1x1x14x128xf32>
    %115 = vector.shape_cast %114 : vector<1x1x14x128xf32> to vector<14x128xf32>
    %c140_203 = arith.constant 140 : index
    %c256_204 = arith.constant 256 : index
    %116 = vector.load %arg6[%c140_203, %c256_204] : memref<196x1152xf32, #tpu.memory_space<vmem>>, vector<14x128xf32>
    tpu.vector_store %arg6[%c140_203, %c256_204], %115 {strides = array<i32>} : memref<196x1152xf32, #tpu.memory_space<vmem>>, vector<14x128xf32>,
    %c0_205 = arith.constant 0 : index
    %c11_206 = arith.constant 11 : index
    %c2_207 = arith.constant 2 : index
    %c0_208 = arith.constant 0 : index
    %117 = vector.load %arg2[%c0_205, %c11_206, %c2_207, %c0_208] : memref<1x16x16x128xf32, #tpu.memory_space<vmem>>, vector<1x1x14x128xf32>
    %118 = vector.shape_cast %117 : vector<1x1x14x128xf32> to vector<14x128xf32>
    %c154_209 = arith.constant 154 : index
    %c256_210 = arith.constant 256 : index
    %119 = vector.load %arg6[%c154_209, %c256_210] : memref<196x1152xf32, #tpu.memory_space<vmem>>, vector<14x128xf32>
    tpu.vector_store %arg6[%c154_209, %c256_210], %118 {strides = array<i32>} : memref<196x1152xf32, #tpu.memory_space<vmem>>, vector<14x128xf32>,
    %c0_211 = arith.constant 0 : index
    %c12_212 = arith.constant 12 : index
    %c2_213 = arith.constant 2 : index
    %c0_214 = arith.constant 0 : index
    %120 = vector.load %arg2[%c0_211, %c12_212, %c2_213, %c0_214] : memref<1x16x16x128xf32, #tpu.memory_space<vmem>>, vector<1x1x14x128xf32>
    %121 = vector.shape_cast %120 : vector<1x1x14x128xf32> to vector<14x128xf32>
    %c168_215 = arith.constant 168 : index
    %c256_216 = arith.constant 256 : index
    %122 = vector.load %arg6[%c168_215, %c256_216] : memref<196x1152xf32, #tpu.memory_space<vmem>>, vector<14x128xf32>
    tpu.vector_store %arg6[%c168_215, %c256_216], %121 {strides = array<i32>} : memref<196x1152xf32, #tpu.memory_space<vmem>>, vector<14x128xf32>,
    %c0_217 = arith.constant 0 : index
    %c13_218 = arith.constant 13 : index
    %c2_219 = arith.constant 2 : index
    %c0_220 = arith.constant 0 : index
    %123 = vector.load %arg2[%c0_217, %c13_218, %c2_219, %c0_220] : memref<1x16x16x128xf32, #tpu.memory_space<vmem>>, vector<1x1x14x128xf32>
    %124 = vector.shape_cast %123 : vector<1x1x14x128xf32> to vector<14x128xf32>
    %c182_221 = arith.constant 182 : index
    %c256_222 = arith.constant 256 : index
    %125 = vector.load %arg6[%c182_221, %c256_222] : memref<196x1152xf32, #tpu.memory_space<vmem>>, vector<14x128xf32>
    tpu.vector_store %arg6[%c182_221, %c256_222], %124 {strides = array<i32>} : memref<196x1152xf32, #tpu.memory_space<vmem>>, vector<14x128xf32>,
    %c0_223 = arith.constant 0 : index
    %c1_224 = arith.constant 1 : index
    %c0_225 = arith.constant 0 : index
    %c0_226 = arith.constant 0 : index
    %126 = vector.load %arg2[%c0_223, %c1_224, %c0_225, %c0_226] : memref<1x16x16x128xf32, #tpu.memory_space<vmem>>, vector<1x1x14x128xf32>
    %127 = vector.shape_cast %126 : vector<1x1x14x128xf32> to vector<14x128xf32>
    %c0_227 = arith.constant 0 : index
    %c384 = arith.constant 384 : index
    %128 = vector.load %arg6[%c0_227, %c384] : memref<196x1152xf32, #tpu.memory_space<vmem>>, vector<14x128xf32>
    tpu.vector_store %arg6[%c0_227, %c384], %127 {strides = array<i32>} : memref<196x1152xf32, #tpu.memory_space<vmem>>, vector<14x128xf32>,
    %c0_228 = arith.constant 0 : index
    %c2_229 = arith.constant 2 : index
    %c0_230 = arith.constant 0 : index
    %c0_231 = arith.constant 0 : index
    %129 = vector.load %arg2[%c0_228, %c2_229, %c0_230, %c0_231] : memref<1x16x16x128xf32, #tpu.memory_space<vmem>>, vector<1x1x14x128xf32>
    %130 = vector.shape_cast %129 : vector<1x1x14x128xf32> to vector<14x128xf32>
    %c14_232 = arith.constant 14 : index
    %c384_233 = arith.constant 384 : index
    %131 = vector.load %arg6[%c14_232, %c384_233] : memref<196x1152xf32, #tpu.memory_space<vmem>>, vector<14x128xf32>
    tpu.vector_store %arg6[%c14_232, %c384_233], %130 {strides = array<i32>} : memref<196x1152xf32, #tpu.memory_space<vmem>>, vector<14x128xf32>,
    %c0_234 = arith.constant 0 : index
    %c3_235 = arith.constant 3 : index
    %c0_236 = arith.constant 0 : index
    %c0_237 = arith.constant 0 : index
    %132 = vector.load %arg2[%c0_234, %c3_235, %c0_236, %c0_237] : memref<1x16x16x128xf32, #tpu.memory_space<vmem>>, vector<1x1x14x128xf32>
    %133 = vector.shape_cast %132 : vector<1x1x14x128xf32> to vector<14x128xf32>
    %c28_238 = arith.constant 28 : index
    %c384_239 = arith.constant 384 : index
    %134 = vector.load %arg6[%c28_238, %c384_239] : memref<196x1152xf32, #tpu.memory_space<vmem>>, vector<14x128xf32>
    tpu.vector_store %arg6[%c28_238, %c384_239], %133 {strides = array<i32>} : memref<196x1152xf32, #tpu.memory_space<vmem>>, vector<14x128xf32>,
    %c0_240 = arith.constant 0 : index
    %c4_241 = arith.constant 4 : index
    %c0_242 = arith.constant 0 : index
    %c0_243 = arith.constant 0 : index
    %135 = vector.load %arg2[%c0_240, %c4_241, %c0_242, %c0_243] : memref<1x16x16x128xf32, #tpu.memory_space<vmem>>, vector<1x1x14x128xf32>
    %136 = vector.shape_cast %135 : vector<1x1x14x128xf32> to vector<14x128xf32>
    %c42_244 = arith.constant 42 : index
    %c384_245 = arith.constant 384 : index
    %137 = vector.load %arg6[%c42_244, %c384_245] : memref<196x1152xf32, #tpu.memory_space<vmem>>, vector<14x128xf32>
    tpu.vector_store %arg6[%c42_244, %c384_245], %136 {strides = array<i32>} : memref<196x1152xf32, #tpu.memory_space<vmem>>, vector<14x128xf32>,
    %c0_246 = arith.constant 0 : index
    %c5_247 = arith.constant 5 : index
    %c0_248 = arith.constant 0 : index
    %c0_249 = arith.constant 0 : index
    %138 = vector.load %arg2[%c0_246, %c5_247, %c0_248, %c0_249] : memref<1x16x16x128xf32, #tpu.memory_space<vmem>>, vector<1x1x14x128xf32>
    %139 = vector.shape_cast %138 : vector<1x1x14x128xf32> to vector<14x128xf32>
    %c56_250 = arith.constant 56 : index
    %c384_251 = arith.constant 384 : index
    %140 = vector.load %arg6[%c56_250, %c384_251] : memref<196x1152xf32, #tpu.memory_space<vmem>>, vector<14x128xf32>
    tpu.vector_store %arg6[%c56_250, %c384_251], %139 {strides = array<i32>} : memref<196x1152xf32, #tpu.memory_space<vmem>>, vector<14x128xf32>,
    %c0_252 = arith.constant 0 : index
    %c6_253 = arith.constant 6 : index
    %c0_254 = arith.constant 0 : index
    %c0_255 = arith.constant 0 : index
    %141 = vector.load %arg2[%c0_252, %c6_253, %c0_254, %c0_255] : memref<1x16x16x128xf32, #tpu.memory_space<vmem>>, vector<1x1x14x128xf32>
    %142 = vector.shape_cast %141 : vector<1x1x14x128xf32> to vector<14x128xf32>
    %c70_256 = arith.constant 70 : index
    %c384_257 = arith.constant 384 : index
    %143 = vector.load %arg6[%c70_256, %c384_257] : memref<196x1152xf32, #tpu.memory_space<vmem>>, vector<14x128xf32>
    tpu.vector_store %arg6[%c70_256, %c384_257], %142 {strides = array<i32>} : memref<196x1152xf32, #tpu.memory_space<vmem>>, vector<14x128xf32>,
    %c0_258 = arith.constant 0 : index
    %c7_259 = arith.constant 7 : index
    %c0_260 = arith.constant 0 : index
    %c0_261 = arith.constant 0 : index
    %144 = vector.load %arg2[%c0_258, %c7_259, %c0_260, %c0_261] : memref<1x16x16x128xf32, #tpu.memory_space<vmem>>, vector<1x1x14x128xf32>
    %145 = vector.shape_cast %144 : vector<1x1x14x128xf32> to vector<14x128xf32>
    %c84_262 = arith.constant 84 : index
    %c384_263 = arith.constant 384 : index
    %146 = vector.load %arg6[%c84_262, %c384_263] : memref<196x1152xf32, #tpu.memory_space<vmem>>, vector<14x128xf32>
    tpu.vector_store %arg6[%c84_262, %c384_263], %145 {strides = array<i32>} : memref<196x1152xf32, #tpu.memory_space<vmem>>, vector<14x128xf32>,
    %c0_264 = arith.constant 0 : index
    %c8_265 = arith.constant 8 : index
    %c0_266 = arith.constant 0 : index
    %c0_267 = arith.constant 0 : index
    %147 = vector.load %arg2[%c0_264, %c8_265, %c0_266, %c0_267] : memref<1x16x16x128xf32, #tpu.memory_space<vmem>>, vector<1x1x14x128xf32>
    %148 = vector.shape_cast %147 : vector<1x1x14x128xf32> to vector<14x128xf32>
    %c98_268 = arith.constant 98 : index
    %c384_269 = arith.constant 384 : index
    %149 = vector.load %arg6[%c98_268, %c384_269] : memref<196x1152xf32, #tpu.memory_space<vmem>>, vector<14x128xf32>
    tpu.vector_store %arg6[%c98_268, %c384_269], %148 {strides = array<i32>} : memref<196x1152xf32, #tpu.memory_space<vmem>>, vector<14x128xf32>,
    %c0_270 = arith.constant 0 : index
    %c9_271 = arith.constant 9 : index
    %c0_272 = arith.constant 0 : index
    %c0_273 = arith.constant 0 : index
    %150 = vector.load %arg2[%c0_270, %c9_271, %c0_272, %c0_273] : memref<1x16x16x128xf32, #tpu.memory_space<vmem>>, vector<1x1x14x128xf32>
    %151 = vector.shape_cast %150 : vector<1x1x14x128xf32> to vector<14x128xf32>
    %c112_274 = arith.constant 112 : index
    %c384_275 = arith.constant 384 : index
    %152 = vector.load %arg6[%c112_274, %c384_275] : memref<196x1152xf32, #tpu.memory_space<vmem>>, vector<14x128xf32>
    tpu.vector_store %arg6[%c112_274, %c384_275], %151 {strides = array<i32>} : memref<196x1152xf32, #tpu.memory_space<vmem>>, vector<14x128xf32>,
    %c0_276 = arith.constant 0 : index
    %c10_277 = arith.constant 10 : index
    %c0_278 = arith.constant 0 : index
    %c0_279 = arith.constant 0 : index
    %153 = vector.load %arg2[%c0_276, %c10_277, %c0_278, %c0_279] : memref<1x16x16x128xf32, #tpu.memory_space<vmem>>, vector<1x1x14x128xf32>
    %154 = vector.shape_cast %153 : vector<1x1x14x128xf32> to vector<14x128xf32>
    %c126_280 = arith.constant 126 : index
    %c384_281 = arith.constant 384 : index
    %155 = vector.load %arg6[%c126_280, %c384_281] : memref<196x1152xf32, #tpu.memory_space<vmem>>, vector<14x128xf32>
    tpu.vector_store %arg6[%c126_280, %c384_281], %154 {strides = array<i32>} : memref<196x1152xf32, #tpu.memory_space<vmem>>, vector<14x128xf32>,
    %c0_282 = arith.constant 0 : index
    %c11_283 = arith.constant 11 : index
    %c0_284 = arith.constant 0 : index
    %c0_285 = arith.constant 0 : index
    %156 = vector.load %arg2[%c0_282, %c11_283, %c0_284, %c0_285] : memref<1x16x16x128xf32, #tpu.memory_space<vmem>>, vector<1x1x14x128xf32>
    %157 = vector.shape_cast %156 : vector<1x1x14x128xf32> to vector<14x128xf32>
    %c140_286 = arith.constant 140 : index
    %c384_287 = arith.constant 384 : index
    %158 = vector.load %arg6[%c140_286, %c384_287] : memref<196x1152xf32, #tpu.memory_space<vmem>>, vector<14x128xf32>
    tpu.vector_store %arg6[%c140_286, %c384_287], %157 {strides = array<i32>} : memref<196x1152xf32, #tpu.memory_space<vmem>>, vector<14x128xf32>,
    %c0_288 = arith.constant 0 : index
    %c12_289 = arith.constant 12 : index
    %c0_290 = arith.constant 0 : index
    %c0_291 = arith.constant 0 : index
    %159 = vector.load %arg2[%c0_288, %c12_289, %c0_290, %c0_291] : memref<1x16x16x128xf32, #tpu.memory_space<vmem>>, vector<1x1x14x128xf32>
    %160 = vector.shape_cast %159 : vector<1x1x14x128xf32> to vector<14x128xf32>
    %c154_292 = arith.constant 154 : index
    %c384_293 = arith.constant 384 : index
    %161 = vector.load %arg6[%c154_292, %c384_293] : memref<196x1152xf32, #tpu.memory_space<vmem>>, vector<14x128xf32>
    tpu.vector_store %arg6[%c154_292, %c384_293], %160 {strides = array<i32>} : memref<196x1152xf32, #tpu.memory_space<vmem>>, vector<14x128xf32>,
    %c0_294 = arith.constant 0 : index
    %c13_295 = arith.constant 13 : index
    %c0_296 = arith.constant 0 : index
    %c0_297 = arith.constant 0 : index
    %162 = vector.load %arg2[%c0_294, %c13_295, %c0_296, %c0_297] : memref<1x16x16x128xf32, #tpu.memory_space<vmem>>, vector<1x1x14x128xf32>
    %163 = vector.shape_cast %162 : vector<1x1x14x128xf32> to vector<14x128xf32>
    %c168_298 = arith.constant 168 : index
    %c384_299 = arith.constant 384 : index
    %164 = vector.load %arg6[%c168_298, %c384_299] : memref<196x1152xf32, #tpu.memory_space<vmem>>, vector<14x128xf32>
    tpu.vector_store %arg6[%c168_298, %c384_299], %163 {strides = array<i32>} : memref<196x1152xf32, #tpu.memory_space<vmem>>, vector<14x128xf32>,
    %c0_300 = arith.constant 0 : index
    %c14_301 = arith.constant 14 : index
    %c0_302 = arith.constant 0 : index
    %c0_303 = arith.constant 0 : index
    %165 = vector.load %arg2[%c0_300, %c14_301, %c0_302, %c0_303] : memref<1x16x16x128xf32, #tpu.memory_space<vmem>>, vector<1x1x14x128xf32>
    %166 = vector.shape_cast %165 : vector<1x1x14x128xf32> to vector<14x128xf32>
    %c182_304 = arith.constant 182 : index
    %c384_305 = arith.constant 384 : index
    %167 = vector.load %arg6[%c182_304, %c384_305] : memref<196x1152xf32, #tpu.memory_space<vmem>>, vector<14x128xf32>
    tpu.vector_store %arg6[%c182_304, %c384_305], %166 {strides = array<i32>} : memref<196x1152xf32, #tpu.memory_space<vmem>>, vector<14x128xf32>,
    %c0_306 = arith.constant 0 : index
    %c1_307 = arith.constant 1 : index
    %c1_308 = arith.constant 1 : index
    %c0_309 = arith.constant 0 : index
    %168 = vector.load %arg2[%c0_306, %c1_307, %c1_308, %c0_309] : memref<1x16x16x128xf32, #tpu.memory_space<vmem>>, vector<1x1x14x128xf32>
    %169 = vector.shape_cast %168 : vector<1x1x14x128xf32> to vector<14x128xf32>
    %c0_310 = arith.constant 0 : index
    %c512 = arith.constant 512 : index
    %170 = vector.load %arg6[%c0_310, %c512] : memref<196x1152xf32, #tpu.memory_space<vmem>>, vector<14x128xf32>
    tpu.vector_store %arg6[%c0_310, %c512], %169 {strides = array<i32>} : memref<196x1152xf32, #tpu.memory_space<vmem>>, vector<14x128xf32>,
    %c0_311 = arith.constant 0 : index
    %c2_312 = arith.constant 2 : index
    %c1_313 = arith.constant 1 : index
    %c0_314 = arith.constant 0 : index
    %171 = vector.load %arg2[%c0_311, %c2_312, %c1_313, %c0_314] : memref<1x16x16x128xf32, #tpu.memory_space<vmem>>, vector<1x1x14x128xf32>
    %172 = vector.shape_cast %171 : vector<1x1x14x128xf32> to vector<14x128xf32>
    %c14_315 = arith.constant 14 : index
    %c512_316 = arith.constant 512 : index
    %173 = vector.load %arg6[%c14_315, %c512_316] : memref<196x1152xf32, #tpu.memory_space<vmem>>, vector<14x128xf32>
    tpu.vector_store %arg6[%c14_315, %c512_316], %172 {strides = array<i32>} : memref<196x1152xf32, #tpu.memory_space<vmem>>, vector<14x128xf32>,
    %c0_317 = arith.constant 0 : index
    %c3_318 = arith.constant 3 : index
    %c1_319 = arith.constant 1 : index
    %c0_320 = arith.constant 0 : index
    %174 = vector.load %arg2[%c0_317, %c3_318, %c1_319, %c0_320] : memref<1x16x16x128xf32, #tpu.memory_space<vmem>>, vector<1x1x14x128xf32>
    %175 = vector.shape_cast %174 : vector<1x1x14x128xf32> to vector<14x128xf32>
    %c28_321 = arith.constant 28 : index
    %c512_322 = arith.constant 512 : index
    %176 = vector.load %arg6[%c28_321, %c512_322] : memref<196x1152xf32, #tpu.memory_space<vmem>>, vector<14x128xf32>
    tpu.vector_store %arg6[%c28_321, %c512_322], %175 {strides = array<i32>} : memref<196x1152xf32, #tpu.memory_space<vmem>>, vector<14x128xf32>,
    %c0_323 = arith.constant 0 : index
    %c4_324 = arith.constant 4 : index
    %c1_325 = arith.constant 1 : index
    %c0_326 = arith.constant 0 : index
    %177 = vector.load %arg2[%c0_323, %c4_324, %c1_325, %c0_326] : memref<1x16x16x128xf32, #tpu.memory_space<vmem>>, vector<1x1x14x128xf32>
    %178 = vector.shape_cast %177 : vector<1x1x14x128xf32> to vector<14x128xf32>
    %c42_327 = arith.constant 42 : index
    %c512_328 = arith.constant 512 : index
    %179 = vector.load %arg6[%c42_327, %c512_328] : memref<196x1152xf32, #tpu.memory_space<vmem>>, vector<14x128xf32>
    tpu.vector_store %arg6[%c42_327, %c512_328], %178 {strides = array<i32>} : memref<196x1152xf32, #tpu.memory_space<vmem>>, vector<14x128xf32>,
    %c0_329 = arith.constant 0 : index
    %c5_330 = arith.constant 5 : index
    %c1_331 = arith.constant 1 : index
    %c0_332 = arith.constant 0 : index
    %180 = vector.load %arg2[%c0_329, %c5_330, %c1_331, %c0_332] : memref<1x16x16x128xf32, #tpu.memory_space<vmem>>, vector<1x1x14x128xf32>
    %181 = vector.shape_cast %180 : vector<1x1x14x128xf32> to vector<14x128xf32>
    %c56_333 = arith.constant 56 : index
    %c512_334 = arith.constant 512 : index
    %182 = vector.load %arg6[%c56_333, %c512_334] : memref<196x1152xf32, #tpu.memory_space<vmem>>, vector<14x128xf32>
    tpu.vector_store %arg6[%c56_333, %c512_334], %181 {strides = array<i32>} : memref<196x1152xf32, #tpu.memory_space<vmem>>, vector<14x128xf32>,
    %c0_335 = arith.constant 0 : index
    %c6_336 = arith.constant 6 : index
    %c1_337 = arith.constant 1 : index
    %c0_338 = arith.constant 0 : index
    %183 = vector.load %arg2[%c0_335, %c6_336, %c1_337, %c0_338] : memref<1x16x16x128xf32, #tpu.memory_space<vmem>>, vector<1x1x14x128xf32>
    %184 = vector.shape_cast %183 : vector<1x1x14x128xf32> to vector<14x128xf32>
    %c70_339 = arith.constant 70 : index
    %c512_340 = arith.constant 512 : index
    %185 = vector.load %arg6[%c70_339, %c512_340] : memref<196x1152xf32, #tpu.memory_space<vmem>>, vector<14x128xf32>
    tpu.vector_store %arg6[%c70_339, %c512_340], %184 {strides = array<i32>} : memref<196x1152xf32, #tpu.memory_space<vmem>>, vector<14x128xf32>,
    %c0_341 = arith.constant 0 : index
    %c7_342 = arith.constant 7 : index
    %c1_343 = arith.constant 1 : index
    %c0_344 = arith.constant 0 : index
    %186 = vector.load %arg2[%c0_341, %c7_342, %c1_343, %c0_344] : memref<1x16x16x128xf32, #tpu.memory_space<vmem>>, vector<1x1x14x128xf32>
    %187 = vector.shape_cast %186 : vector<1x1x14x128xf32> to vector<14x128xf32>
    %c84_345 = arith.constant 84 : index
    %c512_346 = arith.constant 512 : index
    %188 = vector.load %arg6[%c84_345, %c512_346] : memref<196x1152xf32, #tpu.memory_space<vmem>>, vector<14x128xf32>
    tpu.vector_store %arg6[%c84_345, %c512_346], %187 {strides = array<i32>} : memref<196x1152xf32, #tpu.memory_space<vmem>>, vector<14x128xf32>,
    %c0_347 = arith.constant 0 : index
    %c8_348 = arith.constant 8 : index
    %c1_349 = arith.constant 1 : index
    %c0_350 = arith.constant 0 : index
    %189 = vector.load %arg2[%c0_347, %c8_348, %c1_349, %c0_350] : memref<1x16x16x128xf32, #tpu.memory_space<vmem>>, vector<1x1x14x128xf32>
    %190 = vector.shape_cast %189 : vector<1x1x14x128xf32> to vector<14x128xf32>
    %c98_351 = arith.constant 98 : index
    %c512_352 = arith.constant 512 : index
    %191 = vector.load %arg6[%c98_351, %c512_352] : memref<196x1152xf32, #tpu.memory_space<vmem>>, vector<14x128xf32>
    tpu.vector_store %arg6[%c98_351, %c512_352], %190 {strides = array<i32>} : memref<196x1152xf32, #tpu.memory_space<vmem>>, vector<14x128xf32>,
    %c0_353 = arith.constant 0 : index
    %c9_354 = arith.constant 9 : index
    %c1_355 = arith.constant 1 : index
    %c0_356 = arith.constant 0 : index
    %192 = vector.load %arg2[%c0_353, %c9_354, %c1_355, %c0_356] : memref<1x16x16x128xf32, #tpu.memory_space<vmem>>, vector<1x1x14x128xf32>
    %193 = vector.shape_cast %192 : vector<1x1x14x128xf32> to vector<14x128xf32>
    %c112_357 = arith.constant 112 : index
    %c512_358 = arith.constant 512 : index
    %194 = vector.load %arg6[%c112_357, %c512_358] : memref<196x1152xf32, #tpu.memory_space<vmem>>, vector<14x128xf32>
    tpu.vector_store %arg6[%c112_357, %c512_358], %193 {strides = array<i32>} : memref<196x1152xf32, #tpu.memory_space<vmem>>, vector<14x128xf32>,
    %c0_359 = arith.constant 0 : index
    %c10_360 = arith.constant 10 : index
    %c1_361 = arith.constant 1 : index
    %c0_362 = arith.constant 0 : index
    %195 = vector.load %arg2[%c0_359, %c10_360, %c1_361, %c0_362] : memref<1x16x16x128xf32, #tpu.memory_space<vmem>>, vector<1x1x14x128xf32>
    %196 = vector.shape_cast %195 : vector<1x1x14x128xf32> to vector<14x128xf32>
    %c126_363 = arith.constant 126 : index
    %c512_364 = arith.constant 512 : index
    %197 = vector.load %arg6[%c126_363, %c512_364] : memref<196x1152xf32, #tpu.memory_space<vmem>>, vector<14x128xf32>
    tpu.vector_store %arg6[%c126_363, %c512_364], %196 {strides = array<i32>} : memref<196x1152xf32, #tpu.memory_space<vmem>>, vector<14x128xf32>,
    %c0_365 = arith.constant 0 : index
    %c11_366 = arith.constant 11 : index
    %c1_367 = arith.constant 1 : index
    %c0_368 = arith.constant 0 : index
    %198 = vector.load %arg2[%c0_365, %c11_366, %c1_367, %c0_368] : memref<1x16x16x128xf32, #tpu.memory_space<vmem>>, vector<1x1x14x128xf32>
    %199 = vector.shape_cast %198 : vector<1x1x14x128xf32> to vector<14x128xf32>
    %c140_369 = arith.constant 140 : index
    %c512_370 = arith.constant 512 : index
    %200 = vector.load %arg6[%c140_369, %c512_370] : memref<196x1152xf32, #tpu.memory_space<vmem>>, vector<14x128xf32>
    tpu.vector_store %arg6[%c140_369, %c512_370], %199 {strides = array<i32>} : memref<196x1152xf32, #tpu.memory_space<vmem>>, vector<14x128xf32>,
    %c0_371 = arith.constant 0 : index
    %c12_372 = arith.constant 12 : index
    %c1_373 = arith.constant 1 : index
    %c0_374 = arith.constant 0 : index
    %201 = vector.load %arg2[%c0_371, %c12_372, %c1_373, %c0_374] : memref<1x16x16x128xf32, #tpu.memory_space<vmem>>, vector<1x1x14x128xf32>
    %202 = vector.shape_cast %201 : vector<1x1x14x128xf32> to vector<14x128xf32>
    %c154_375 = arith.constant 154 : index
    %c512_376 = arith.constant 512 : index
    %203 = vector.load %arg6[%c154_375, %c512_376] : memref<196x1152xf32, #tpu.memory_space<vmem>>, vector<14x128xf32>
    tpu.vector_store %arg6[%c154_375, %c512_376], %202 {strides = array<i32>} : memref<196x1152xf32, #tpu.memory_space<vmem>>, vector<14x128xf32>,
    %c0_377 = arith.constant 0 : index
    %c13_378 = arith.constant 13 : index
    %c1_379 = arith.constant 1 : index
    %c0_380 = arith.constant 0 : index
    %204 = vector.load %arg2[%c0_377, %c13_378, %c1_379, %c0_380] : memref<1x16x16x128xf32, #tpu.memory_space<vmem>>, vector<1x1x14x128xf32>
    %205 = vector.shape_cast %204 : vector<1x1x14x128xf32> to vector<14x128xf32>
    %c168_381 = arith.constant 168 : index
    %c512_382 = arith.constant 512 : index
    %206 = vector.load %arg6[%c168_381, %c512_382] : memref<196x1152xf32, #tpu.memory_space<vmem>>, vector<14x128xf32>
    tpu.vector_store %arg6[%c168_381, %c512_382], %205 {strides = array<i32>} : memref<196x1152xf32, #tpu.memory_space<vmem>>, vector<14x128xf32>,
    %c0_383 = arith.constant 0 : index
    %c14_384 = arith.constant 14 : index
    %c1_385 = arith.constant 1 : index
    %c0_386 = arith.constant 0 : index
    %207 = vector.load %arg2[%c0_383, %c14_384, %c1_385, %c0_386] : memref<1x16x16x128xf32, #tpu.memory_space<vmem>>, vector<1x1x14x128xf32>
    %208 = vector.shape_cast %207 : vector<1x1x14x128xf32> to vector<14x128xf32>
    %c182_387 = arith.constant 182 : index
    %c512_388 = arith.constant 512 : index
    %209 = vector.load %arg6[%c182_387, %c512_388] : memref<196x1152xf32, #tpu.memory_space<vmem>>, vector<14x128xf32>
    tpu.vector_store %arg6[%c182_387, %c512_388], %208 {strides = array<i32>} : memref<196x1152xf32, #tpu.memory_space<vmem>>, vector<14x128xf32>,
    %c0_389 = arith.constant 0 : index
    %c1_390 = arith.constant 1 : index
    %c2_391 = arith.constant 2 : index
    %c0_392 = arith.constant 0 : index
    %210 = vector.load %arg2[%c0_389, %c1_390, %c2_391, %c0_392] : memref<1x16x16x128xf32, #tpu.memory_space<vmem>>, vector<1x1x14x128xf32>
    %211 = vector.shape_cast %210 : vector<1x1x14x128xf32> to vector<14x128xf32>
    %c0_393 = arith.constant 0 : index
    %c640 = arith.constant 640 : index
    %212 = vector.load %arg6[%c0_393, %c640] : memref<196x1152xf32, #tpu.memory_space<vmem>>, vector<14x128xf32>
    tpu.vector_store %arg6[%c0_393, %c640], %211 {strides = array<i32>} : memref<196x1152xf32, #tpu.memory_space<vmem>>, vector<14x128xf32>,
    %c0_394 = arith.constant 0 : index
    %c2_395 = arith.constant 2 : index
    %c2_396 = arith.constant 2 : index
    %c0_397 = arith.constant 0 : index
    %213 = vector.load %arg2[%c0_394, %c2_395, %c2_396, %c0_397] : memref<1x16x16x128xf32, #tpu.memory_space<vmem>>, vector<1x1x14x128xf32>
    %214 = vector.shape_cast %213 : vector<1x1x14x128xf32> to vector<14x128xf32>
    %c14_398 = arith.constant 14 : index
    %c640_399 = arith.constant 640 : index
    %215 = vector.load %arg6[%c14_398, %c640_399] : memref<196x1152xf32, #tpu.memory_space<vmem>>, vector<14x128xf32>
    tpu.vector_store %arg6[%c14_398, %c640_399], %214 {strides = array<i32>} : memref<196x1152xf32, #tpu.memory_space<vmem>>, vector<14x128xf32>,
    %c0_400 = arith.constant 0 : index
    %c3_401 = arith.constant 3 : index
    %c2_402 = arith.constant 2 : index
    %c0_403 = arith.constant 0 : index
    %216 = vector.load %arg2[%c0_400, %c3_401, %c2_402, %c0_403] : memref<1x16x16x128xf32, #tpu.memory_space<vmem>>, vector<1x1x14x128xf32>
    %217 = vector.shape_cast %216 : vector<1x1x14x128xf32> to vector<14x128xf32>
    %c28_404 = arith.constant 28 : index
    %c640_405 = arith.constant 640 : index
    %218 = vector.load %arg6[%c28_404, %c640_405] : memref<196x1152xf32, #tpu.memory_space<vmem>>, vector<14x128xf32>
    tpu.vector_store %arg6[%c28_404, %c640_405], %217 {strides = array<i32>} : memref<196x1152xf32, #tpu.memory_space<vmem>>, vector<14x128xf32>,
    %c0_406 = arith.constant 0 : index
    %c4_407 = arith.constant 4 : index
    %c2_408 = arith.constant 2 : index
    %c0_409 = arith.constant 0 : index
    %219 = vector.load %arg2[%c0_406, %c4_407, %c2_408, %c0_409] : memref<1x16x16x128xf32, #tpu.memory_space<vmem>>, vector<1x1x14x128xf32>
    %220 = vector.shape_cast %219 : vector<1x1x14x128xf32> to vector<14x128xf32>
    %c42_410 = arith.constant 42 : index
    %c640_411 = arith.constant 640 : index
    %221 = vector.load %arg6[%c42_410, %c640_411] : memref<196x1152xf32, #tpu.memory_space<vmem>>, vector<14x128xf32>
    tpu.vector_store %arg6[%c42_410, %c640_411], %220 {strides = array<i32>} : memref<196x1152xf32, #tpu.memory_space<vmem>>, vector<14x128xf32>,
    %c0_412 = arith.constant 0 : index
    %c5_413 = arith.constant 5 : index
    %c2_414 = arith.constant 2 : index
    %c0_415 = arith.constant 0 : index
    %222 = vector.load %arg2[%c0_412, %c5_413, %c2_414, %c0_415] : memref<1x16x16x128xf32, #tpu.memory_space<vmem>>, vector<1x1x14x128xf32>
    %223 = vector.shape_cast %222 : vector<1x1x14x128xf32> to vector<14x128xf32>
    %c56_416 = arith.constant 56 : index
    %c640_417 = arith.constant 640 : index
    %224 = vector.load %arg6[%c56_416, %c640_417] : memref<196x1152xf32, #tpu.memory_space<vmem>>, vector<14x128xf32>
    tpu.vector_store %arg6[%c56_416, %c640_417], %223 {strides = array<i32>} : memref<196x1152xf32, #tpu.memory_space<vmem>>, vector<14x128xf32>,
    %c0_418 = arith.constant 0 : index
    %c6_419 = arith.constant 6 : index
    %c2_420 = arith.constant 2 : index
    %c0_421 = arith.constant 0 : index
    %225 = vector.load %arg2[%c0_418, %c6_419, %c2_420, %c0_421] : memref<1x16x16x128xf32, #tpu.memory_space<vmem>>, vector<1x1x14x128xf32>
    %226 = vector.shape_cast %225 : vector<1x1x14x128xf32> to vector<14x128xf32>
    %c70_422 = arith.constant 70 : index
    %c640_423 = arith.constant 640 : index
    %227 = vector.load %arg6[%c70_422, %c640_423] : memref<196x1152xf32, #tpu.memory_space<vmem>>, vector<14x128xf32>
    tpu.vector_store %arg6[%c70_422, %c640_423], %226 {strides = array<i32>} : memref<196x1152xf32, #tpu.memory_space<vmem>>, vector<14x128xf32>,
    %c0_424 = arith.constant 0 : index
    %c7_425 = arith.constant 7 : index
    %c2_426 = arith.constant 2 : index
    %c0_427 = arith.constant 0 : index
    %228 = vector.load %arg2[%c0_424, %c7_425, %c2_426, %c0_427] : memref<1x16x16x128xf32, #tpu.memory_space<vmem>>, vector<1x1x14x128xf32>
    %229 = vector.shape_cast %228 : vector<1x1x14x128xf32> to vector<14x128xf32>
    %c84_428 = arith.constant 84 : index
    %c640_429 = arith.constant 640 : index
    %230 = vector.load %arg6[%c84_428, %c640_429] : memref<196x1152xf32, #tpu.memory_space<vmem>>, vector<14x128xf32>
    tpu.vector_store %arg6[%c84_428, %c640_429], %229 {strides = array<i32>} : memref<196x1152xf32, #tpu.memory_space<vmem>>, vector<14x128xf32>,
    %c0_430 = arith.constant 0 : index
    %c8_431 = arith.constant 8 : index
    %c2_432 = arith.constant 2 : index
    %c0_433 = arith.constant 0 : index
    %231 = vector.load %arg2[%c0_430, %c8_431, %c2_432, %c0_433] : memref<1x16x16x128xf32, #tpu.memory_space<vmem>>, vector<1x1x14x128xf32>
    %232 = vector.shape_cast %231 : vector<1x1x14x128xf32> to vector<14x128xf32>
    %c98_434 = arith.constant 98 : index
    %c640_435 = arith.constant 640 : index
    %233 = vector.load %arg6[%c98_434, %c640_435] : memref<196x1152xf32, #tpu.memory_space<vmem>>, vector<14x128xf32>
    tpu.vector_store %arg6[%c98_434, %c640_435], %232 {strides = array<i32>} : memref<196x1152xf32, #tpu.memory_space<vmem>>, vector<14x128xf32>,
    %c0_436 = arith.constant 0 : index
    %c9_437 = arith.constant 9 : index
    %c2_438 = arith.constant 2 : index
    %c0_439 = arith.constant 0 : index
    %234 = vector.load %arg2[%c0_436, %c9_437, %c2_438, %c0_439] : memref<1x16x16x128xf32, #tpu.memory_space<vmem>>, vector<1x1x14x128xf32>
    %235 = vector.shape_cast %234 : vector<1x1x14x128xf32> to vector<14x128xf32>
    %c112_440 = arith.constant 112 : index
    %c640_441 = arith.constant 640 : index
    %236 = vector.load %arg6[%c112_440, %c640_441] : memref<196x1152xf32, #tpu.memory_space<vmem>>, vector<14x128xf32>
    tpu.vector_store %arg6[%c112_440, %c640_441], %235 {strides = array<i32>} : memref<196x1152xf32, #tpu.memory_space<vmem>>, vector<14x128xf32>,
    %c0_442 = arith.constant 0 : index
    %c10_443 = arith.constant 10 : index
    %c2_444 = arith.constant 2 : index
    %c0_445 = arith.constant 0 : index
    %237 = vector.load %arg2[%c0_442, %c10_443, %c2_444, %c0_445] : memref<1x16x16x128xf32, #tpu.memory_space<vmem>>, vector<1x1x14x128xf32>
    %238 = vector.shape_cast %237 : vector<1x1x14x128xf32> to vector<14x128xf32>
    %c126_446 = arith.constant 126 : index
    %c640_447 = arith.constant 640 : index
    %239 = vector.load %arg6[%c126_446, %c640_447] : memref<196x1152xf32, #tpu.memory_space<vmem>>, vector<14x128xf32>
    tpu.vector_store %arg6[%c126_446, %c640_447], %238 {strides = array<i32>} : memref<196x1152xf32, #tpu.memory_space<vmem>>, vector<14x128xf32>,
    %c0_448 = arith.constant 0 : index
    %c11_449 = arith.constant 11 : index
    %c2_450 = arith.constant 2 : index
    %c0_451 = arith.constant 0 : index
    %240 = vector.load %arg2[%c0_448, %c11_449, %c2_450, %c0_451] : memref<1x16x16x128xf32, #tpu.memory_space<vmem>>, vector<1x1x14x128xf32>
    %241 = vector.shape_cast %240 : vector<1x1x14x128xf32> to vector<14x128xf32>
    %c140_452 = arith.constant 140 : index
    %c640_453 = arith.constant 640 : index
    %242 = vector.load %arg6[%c140_452, %c640_453] : memref<196x1152xf32, #tpu.memory_space<vmem>>, vector<14x128xf32>
    tpu.vector_store %arg6[%c140_452, %c640_453], %241 {strides = array<i32>} : memref<196x1152xf32, #tpu.memory_space<vmem>>, vector<14x128xf32>,
    %c0_454 = arith.constant 0 : index
    %c12_455 = arith.constant 12 : index
    %c2_456 = arith.constant 2 : index
    %c0_457 = arith.constant 0 : index
    %243 = vector.load %arg2[%c0_454, %c12_455, %c2_456, %c0_457] : memref<1x16x16x128xf32, #tpu.memory_space<vmem>>, vector<1x1x14x128xf32>
    %244 = vector.shape_cast %243 : vector<1x1x14x128xf32> to vector<14x128xf32>
    %c154_458 = arith.constant 154 : index
    %c640_459 = arith.constant 640 : index
    %245 = vector.load %arg6[%c154_458, %c640_459] : memref<196x1152xf32, #tpu.memory_space<vmem>>, vector<14x128xf32>
    tpu.vector_store %arg6[%c154_458, %c640_459], %244 {strides = array<i32>} : memref<196x1152xf32, #tpu.memory_space<vmem>>, vector<14x128xf32>,
    %c0_460 = arith.constant 0 : index
    %c13_461 = arith.constant 13 : index
    %c2_462 = arith.constant 2 : index
    %c0_463 = arith.constant 0 : index
    %246 = vector.load %arg2[%c0_460, %c13_461, %c2_462, %c0_463] : memref<1x16x16x128xf32, #tpu.memory_space<vmem>>, vector<1x1x14x128xf32>
    %247 = vector.shape_cast %246 : vector<1x1x14x128xf32> to vector<14x128xf32>
    %c168_464 = arith.constant 168 : index
    %c640_465 = arith.constant 640 : index
    %248 = vector.load %arg6[%c168_464, %c640_465] : memref<196x1152xf32, #tpu.memory_space<vmem>>, vector<14x128xf32>
    tpu.vector_store %arg6[%c168_464, %c640_465], %247 {strides = array<i32>} : memref<196x1152xf32, #tpu.memory_space<vmem>>, vector<14x128xf32>,
    %c0_466 = arith.constant 0 : index
    %c14_467 = arith.constant 14 : index
    %c2_468 = arith.constant 2 : index
    %c0_469 = arith.constant 0 : index
    %249 = vector.load %arg2[%c0_466, %c14_467, %c2_468, %c0_469] : memref<1x16x16x128xf32, #tpu.memory_space<vmem>>, vector<1x1x14x128xf32>
    %250 = vector.shape_cast %249 : vector<1x1x14x128xf32> to vector<14x128xf32>
    %c182_470 = arith.constant 182 : index
    %c640_471 = arith.constant 640 : index
    %251 = vector.load %arg6[%c182_470, %c640_471] : memref<196x1152xf32, #tpu.memory_space<vmem>>, vector<14x128xf32>
    tpu.vector_store %arg6[%c182_470, %c640_471], %250 {strides = array<i32>} : memref<196x1152xf32, #tpu.memory_space<vmem>>, vector<14x128xf32>,
    %c0_472 = arith.constant 0 : index
    %c2_473 = arith.constant 2 : index
    %c0_474 = arith.constant 0 : index
    %c0_475 = arith.constant 0 : index
    %252 = vector.load %arg2[%c0_472, %c2_473, %c0_474, %c0_475] : memref<1x16x16x128xf32, #tpu.memory_space<vmem>>, vector<1x1x14x128xf32>
    %253 = vector.shape_cast %252 : vector<1x1x14x128xf32> to vector<14x128xf32>
    %c0_476 = arith.constant 0 : index
    %c768 = arith.constant 768 : index
    %254 = vector.load %arg6[%c0_476, %c768] : memref<196x1152xf32, #tpu.memory_space<vmem>>, vector<14x128xf32>
    tpu.vector_store %arg6[%c0_476, %c768], %253 {strides = array<i32>} : memref<196x1152xf32, #tpu.memory_space<vmem>>, vector<14x128xf32>,
    %c0_477 = arith.constant 0 : index
    %c3_478 = arith.constant 3 : index
    %c0_479 = arith.constant 0 : index
    %c0_480 = arith.constant 0 : index
    %255 = vector.load %arg2[%c0_477, %c3_478, %c0_479, %c0_480] : memref<1x16x16x128xf32, #tpu.memory_space<vmem>>, vector<1x1x14x128xf32>
    %256 = vector.shape_cast %255 : vector<1x1x14x128xf32> to vector<14x128xf32>
    %c14_481 = arith.constant 14 : index
    %c768_482 = arith.constant 768 : index
    %257 = vector.load %arg6[%c14_481, %c768_482] : memref<196x1152xf32, #tpu.memory_space<vmem>>, vector<14x128xf32>
    tpu.vector_store %arg6[%c14_481, %c768_482], %256 {strides = array<i32>} : memref<196x1152xf32, #tpu.memory_space<vmem>>, vector<14x128xf32>,
    %c0_483 = arith.constant 0 : index
    %c4_484 = arith.constant 4 : index
    %c0_485 = arith.constant 0 : index
    %c0_486 = arith.constant 0 : index
    %258 = vector.load %arg2[%c0_483, %c4_484, %c0_485, %c0_486] : memref<1x16x16x128xf32, #tpu.memory_space<vmem>>, vector<1x1x14x128xf32>
    %259 = vector.shape_cast %258 : vector<1x1x14x128xf32> to vector<14x128xf32>
    %c28_487 = arith.constant 28 : index
    %c768_488 = arith.constant 768 : index
    %260 = vector.load %arg6[%c28_487, %c768_488] : memref<196x1152xf32, #tpu.memory_space<vmem>>, vector<14x128xf32>
    tpu.vector_store %arg6[%c28_487, %c768_488], %259 {strides = array<i32>} : memref<196x1152xf32, #tpu.memory_space<vmem>>, vector<14x128xf32>,
    %c0_489 = arith.constant 0 : index
    %c5_490 = arith.constant 5 : index
    %c0_491 = arith.constant 0 : index
    %c0_492 = arith.constant 0 : index
    %261 = vector.load %arg2[%c0_489, %c5_490, %c0_491, %c0_492] : memref<1x16x16x128xf32, #tpu.memory_space<vmem>>, vector<1x1x14x128xf32>
    %262 = vector.shape_cast %261 : vector<1x1x14x128xf32> to vector<14x128xf32>
    %c42_493 = arith.constant 42 : index
    %c768_494 = arith.constant 768 : index
    %263 = vector.load %arg6[%c42_493, %c768_494] : memref<196x1152xf32, #tpu.memory_space<vmem>>, vector<14x128xf32>
    tpu.vector_store %arg6[%c42_493, %c768_494], %262 {strides = array<i32>} : memref<196x1152xf32, #tpu.memory_space<vmem>>, vector<14x128xf32>,
    %c0_495 = arith.constant 0 : index
    %c6_496 = arith.constant 6 : index
    %c0_497 = arith.constant 0 : index
    %c0_498 = arith.constant 0 : index
    %264 = vector.load %arg2[%c0_495, %c6_496, %c0_497, %c0_498] : memref<1x16x16x128xf32, #tpu.memory_space<vmem>>, vector<1x1x14x128xf32>
    %265 = vector.shape_cast %264 : vector<1x1x14x128xf32> to vector<14x128xf32>
    %c56_499 = arith.constant 56 : index
    %c768_500 = arith.constant 768 : index
    %266 = vector.load %arg6[%c56_499, %c768_500] : memref<196x1152xf32, #tpu.memory_space<vmem>>, vector<14x128xf32>
    tpu.vector_store %arg6[%c56_499, %c768_500], %265 {strides = array<i32>} : memref<196x1152xf32, #tpu.memory_space<vmem>>, vector<14x128xf32>,
    %c0_501 = arith.constant 0 : index
    %c7_502 = arith.constant 7 : index
    %c0_503 = arith.constant 0 : index
    %c0_504 = arith.constant 0 : index
    %267 = vector.load %arg2[%c0_501, %c7_502, %c0_503, %c0_504] : memref<1x16x16x128xf32, #tpu.memory_space<vmem>>, vector<1x1x14x128xf32>
    %268 = vector.shape_cast %267 : vector<1x1x14x128xf32> to vector<14x128xf32>
    %c70_505 = arith.constant 70 : index
    %c768_506 = arith.constant 768 : index
    %269 = vector.load %arg6[%c70_505, %c768_506] : memref<196x1152xf32, #tpu.memory_space<vmem>>, vector<14x128xf32>
    tpu.vector_store %arg6[%c70_505, %c768_506], %268 {strides = array<i32>} : memref<196x1152xf32, #tpu.memory_space<vmem>>, vector<14x128xf32>,
    %c0_507 = arith.constant 0 : index
    %c8_508 = arith.constant 8 : index
    %c0_509 = arith.constant 0 : index
    %c0_510 = arith.constant 0 : index
    %270 = vector.load %arg2[%c0_507, %c8_508, %c0_509, %c0_510] : memref<1x16x16x128xf32, #tpu.memory_space<vmem>>, vector<1x1x14x128xf32>
    %271 = vector.shape_cast %270 : vector<1x1x14x128xf32> to vector<14x128xf32>
    %c84_511 = arith.constant 84 : index
    %c768_512 = arith.constant 768 : index
    %272 = vector.load %arg6[%c84_511, %c768_512] : memref<196x1152xf32, #tpu.memory_space<vmem>>, vector<14x128xf32>
    tpu.vector_store %arg6[%c84_511, %c768_512], %271 {strides = array<i32>} : memref<196x1152xf32, #tpu.memory_space<vmem>>, vector<14x128xf32>,
    %c0_513 = arith.constant 0 : index
    %c9_514 = arith.constant 9 : index
    %c0_515 = arith.constant 0 : index
    %c0_516 = arith.constant 0 : index
    %273 = vector.load %arg2[%c0_513, %c9_514, %c0_515, %c0_516] : memref<1x16x16x128xf32, #tpu.memory_space<vmem>>, vector<1x1x14x128xf32>
    %274 = vector.shape_cast %273 : vector<1x1x14x128xf32> to vector<14x128xf32>
    %c98_517 = arith.constant 98 : index
    %c768_518 = arith.constant 768 : index
    %275 = vector.load %arg6[%c98_517, %c768_518] : memref<196x1152xf32, #tpu.memory_space<vmem>>, vector<14x128xf32>
    tpu.vector_store %arg6[%c98_517, %c768_518], %274 {strides = array<i32>} : memref<196x1152xf32, #tpu.memory_space<vmem>>, vector<14x128xf32>,
    %c0_519 = arith.constant 0 : index
    %c10_520 = arith.constant 10 : index
    %c0_521 = arith.constant 0 : index
    %c0_522 = arith.constant 0 : index
    %276 = vector.load %arg2[%c0_519, %c10_520, %c0_521, %c0_522] : memref<1x16x16x128xf32, #tpu.memory_space<vmem>>, vector<1x1x14x128xf32>
    %277 = vector.shape_cast %276 : vector<1x1x14x128xf32> to vector<14x128xf32>
    %c112_523 = arith.constant 112 : index
    %c768_524 = arith.constant 768 : index
    %278 = vector.load %arg6[%c112_523, %c768_524] : memref<196x1152xf32, #tpu.memory_space<vmem>>, vector<14x128xf32>
    tpu.vector_store %arg6[%c112_523, %c768_524], %277 {strides = array<i32>} : memref<196x1152xf32, #tpu.memory_space<vmem>>, vector<14x128xf32>,
    %c0_525 = arith.constant 0 : index
    %c11_526 = arith.constant 11 : index
    %c0_527 = arith.constant 0 : index
    %c0_528 = arith.constant 0 : index
    %279 = vector.load %arg2[%c0_525, %c11_526, %c0_527, %c0_528] : memref<1x16x16x128xf32, #tpu.memory_space<vmem>>, vector<1x1x14x128xf32>
    %280 = vector.shape_cast %279 : vector<1x1x14x128xf32> to vector<14x128xf32>
    %c126_529 = arith.constant 126 : index
    %c768_530 = arith.constant 768 : index
    %281 = vector.load %arg6[%c126_529, %c768_530] : memref<196x1152xf32, #tpu.memory_space<vmem>>, vector<14x128xf32>
    tpu.vector_store %arg6[%c126_529, %c768_530], %280 {strides = array<i32>} : memref<196x1152xf32, #tpu.memory_space<vmem>>, vector<14x128xf32>,
    %c0_531 = arith.constant 0 : index
    %c12_532 = arith.constant 12 : index
    %c0_533 = arith.constant 0 : index
    %c0_534 = arith.constant 0 : index
    %282 = vector.load %arg2[%c0_531, %c12_532, %c0_533, %c0_534] : memref<1x16x16x128xf32, #tpu.memory_space<vmem>>, vector<1x1x14x128xf32>
    %283 = vector.shape_cast %282 : vector<1x1x14x128xf32> to vector<14x128xf32>
    %c140_535 = arith.constant 140 : index
    %c768_536 = arith.constant 768 : index
    %284 = vector.load %arg6[%c140_535, %c768_536] : memref<196x1152xf32, #tpu.memory_space<vmem>>, vector<14x128xf32>
    tpu.vector_store %arg6[%c140_535, %c768_536], %283 {strides = array<i32>} : memref<196x1152xf32, #tpu.memory_space<vmem>>, vector<14x128xf32>,
    %c0_537 = arith.constant 0 : index
    %c13_538 = arith.constant 13 : index
    %c0_539 = arith.constant 0 : index
    %c0_540 = arith.constant 0 : index
    %285 = vector.load %arg2[%c0_537, %c13_538, %c0_539, %c0_540] : memref<1x16x16x128xf32, #tpu.memory_space<vmem>>, vector<1x1x14x128xf32>
    %286 = vector.shape_cast %285 : vector<1x1x14x128xf32> to vector<14x128xf32>
    %c154_541 = arith.constant 154 : index
    %c768_542 = arith.constant 768 : index
    %287 = vector.load %arg6[%c154_541, %c768_542] : memref<196x1152xf32, #tpu.memory_space<vmem>>, vector<14x128xf32>
    tpu.vector_store %arg6[%c154_541, %c768_542], %286 {strides = array<i32>} : memref<196x1152xf32, #tpu.memory_space<vmem>>, vector<14x128xf32>,
    %c0_543 = arith.constant 0 : index
    %c14_544 = arith.constant 14 : index
    %c0_545 = arith.constant 0 : index
    %c0_546 = arith.constant 0 : index
    %288 = vector.load %arg2[%c0_543, %c14_544, %c0_545, %c0_546] : memref<1x16x16x128xf32, #tpu.memory_space<vmem>>, vector<1x1x14x128xf32>
    %289 = vector.shape_cast %288 : vector<1x1x14x128xf32> to vector<14x128xf32>
    %c168_547 = arith.constant 168 : index
    %c768_548 = arith.constant 768 : index
    %290 = vector.load %arg6[%c168_547, %c768_548] : memref<196x1152xf32, #tpu.memory_space<vmem>>, vector<14x128xf32>
    tpu.vector_store %arg6[%c168_547, %c768_548], %289 {strides = array<i32>} : memref<196x1152xf32, #tpu.memory_space<vmem>>, vector<14x128xf32>,
    %c0_549 = arith.constant 0 : index
    %c15 = arith.constant 15 : index
    %c0_550 = arith.constant 0 : index
    %c0_551 = arith.constant 0 : index
    %291 = vector.load %arg2[%c0_549, %c15, %c0_550, %c0_551] : memref<1x16x16x128xf32, #tpu.memory_space<vmem>>, vector<1x1x14x128xf32>
    %292 = vector.shape_cast %291 : vector<1x1x14x128xf32> to vector<14x128xf32>
    %c182_552 = arith.constant 182 : index
    %c768_553 = arith.constant 768 : index
    %293 = vector.load %arg6[%c182_552, %c768_553] : memref<196x1152xf32, #tpu.memory_space<vmem>>, vector<14x128xf32>
    tpu.vector_store %arg6[%c182_552, %c768_553], %292 {strides = array<i32>} : memref<196x1152xf32, #tpu.memory_space<vmem>>, vector<14x128xf32>,
    %c0_554 = arith.constant 0 : index
    %c2_555 = arith.constant 2 : index
    %c1_556 = arith.constant 1 : index
    %c0_557 = arith.constant 0 : index
    %294 = vector.load %arg2[%c0_554, %c2_555, %c1_556, %c0_557] : memref<1x16x16x128xf32, #tpu.memory_space<vmem>>, vector<1x1x14x128xf32>
    %295 = vector.shape_cast %294 : vector<1x1x14x128xf32> to vector<14x128xf32>
    %c0_558 = arith.constant 0 : index
    %c896 = arith.constant 896 : index
    %296 = vector.load %arg6[%c0_558, %c896] : memref<196x1152xf32, #tpu.memory_space<vmem>>, vector<14x128xf32>
    tpu.vector_store %arg6[%c0_558, %c896], %295 {strides = array<i32>} : memref<196x1152xf32, #tpu.memory_space<vmem>>, vector<14x128xf32>,
    %c0_559 = arith.constant 0 : index
    %c3_560 = arith.constant 3 : index
    %c1_561 = arith.constant 1 : index
    %c0_562 = arith.constant 0 : index
    %297 = vector.load %arg2[%c0_559, %c3_560, %c1_561, %c0_562] : memref<1x16x16x128xf32, #tpu.memory_space<vmem>>, vector<1x1x14x128xf32>
    %298 = vector.shape_cast %297 : vector<1x1x14x128xf32> to vector<14x128xf32>
    %c14_563 = arith.constant 14 : index
    %c896_564 = arith.constant 896 : index
    %299 = vector.load %arg6[%c14_563, %c896_564] : memref<196x1152xf32, #tpu.memory_space<vmem>>, vector<14x128xf32>
    tpu.vector_store %arg6[%c14_563, %c896_564], %298 {strides = array<i32>} : memref<196x1152xf32, #tpu.memory_space<vmem>>, vector<14x128xf32>,
    %c0_565 = arith.constant 0 : index
    %c4_566 = arith.constant 4 : index
    %c1_567 = arith.constant 1 : index
    %c0_568 = arith.constant 0 : index
    %300 = vector.load %arg2[%c0_565, %c4_566, %c1_567, %c0_568] : memref<1x16x16x128xf32, #tpu.memory_space<vmem>>, vector<1x1x14x128xf32>
    %301 = vector.shape_cast %300 : vector<1x1x14x128xf32> to vector<14x128xf32>
    %c28_569 = arith.constant 28 : index
    %c896_570 = arith.constant 896 : index
    %302 = vector.load %arg6[%c28_569, %c896_570] : memref<196x1152xf32, #tpu.memory_space<vmem>>, vector<14x128xf32>
    tpu.vector_store %arg6[%c28_569, %c896_570], %301 {strides = array<i32>} : memref<196x1152xf32, #tpu.memory_space<vmem>>, vector<14x128xf32>,
    %c0_571 = arith.constant 0 : index
    %c5_572 = arith.constant 5 : index
    %c1_573 = arith.constant 1 : index
    %c0_574 = arith.constant 0 : index
    %303 = vector.load %arg2[%c0_571, %c5_572, %c1_573, %c0_574] : memref<1x16x16x128xf32, #tpu.memory_space<vmem>>, vector<1x1x14x128xf32>
    %304 = vector.shape_cast %303 : vector<1x1x14x128xf32> to vector<14x128xf32>
    %c42_575 = arith.constant 42 : index
    %c896_576 = arith.constant 896 : index
    %305 = vector.load %arg6[%c42_575, %c896_576] : memref<196x1152xf32, #tpu.memory_space<vmem>>, vector<14x128xf32>
    tpu.vector_store %arg6[%c42_575, %c896_576], %304 {strides = array<i32>} : memref<196x1152xf32, #tpu.memory_space<vmem>>, vector<14x128xf32>,
    %c0_577 = arith.constant 0 : index
    %c6_578 = arith.constant 6 : index
    %c1_579 = arith.constant 1 : index
    %c0_580 = arith.constant 0 : index
    %306 = vector.load %arg2[%c0_577, %c6_578, %c1_579, %c0_580] : memref<1x16x16x128xf32, #tpu.memory_space<vmem>>, vector<1x1x14x128xf32>
    %307 = vector.shape_cast %306 : vector<1x1x14x128xf32> to vector<14x128xf32>
    %c56_581 = arith.constant 56 : index
    %c896_582 = arith.constant 896 : index
    %308 = vector.load %arg6[%c56_581, %c896_582] : memref<196x1152xf32, #tpu.memory_space<vmem>>, vector<14x128xf32>
    tpu.vector_store %arg6[%c56_581, %c896_582], %307 {strides = array<i32>} : memref<196x1152xf32, #tpu.memory_space<vmem>>, vector<14x128xf32>,
    %c0_583 = arith.constant 0 : index
    %c7_584 = arith.constant 7 : index
    %c1_585 = arith.constant 1 : index
    %c0_586 = arith.constant 0 : index
    %309 = vector.load %arg2[%c0_583, %c7_584, %c1_585, %c0_586] : memref<1x16x16x128xf32, #tpu.memory_space<vmem>>, vector<1x1x14x128xf32>
    %310 = vector.shape_cast %309 : vector<1x1x14x128xf32> to vector<14x128xf32>
    %c70_587 = arith.constant 70 : index
    %c896_588 = arith.constant 896 : index
    %311 = vector.load %arg6[%c70_587, %c896_588] : memref<196x1152xf32, #tpu.memory_space<vmem>>, vector<14x128xf32>
    tpu.vector_store %arg6[%c70_587, %c896_588], %310 {strides = array<i32>} : memref<196x1152xf32, #tpu.memory_space<vmem>>, vector<14x128xf32>,
    %c0_589 = arith.constant 0 : index
    %c8_590 = arith.constant 8 : index
    %c1_591 = arith.constant 1 : index
    %c0_592 = arith.constant 0 : index
    %312 = vector.load %arg2[%c0_589, %c8_590, %c1_591, %c0_592] : memref<1x16x16x128xf32, #tpu.memory_space<vmem>>, vector<1x1x14x128xf32>
    %313 = vector.shape_cast %312 : vector<1x1x14x128xf32> to vector<14x128xf32>
    %c84_593 = arith.constant 84 : index
    %c896_594 = arith.constant 896 : index
    %314 = vector.load %arg6[%c84_593, %c896_594] : memref<196x1152xf32, #tpu.memory_space<vmem>>, vector<14x128xf32>
    tpu.vector_store %arg6[%c84_593, %c896_594], %313 {strides = array<i32>} : memref<196x1152xf32, #tpu.memory_space<vmem>>, vector<14x128xf32>,
    %c0_595 = arith.constant 0 : index
    %c9_596 = arith.constant 9 : index
    %c1_597 = arith.constant 1 : index
    %c0_598 = arith.constant 0 : index
    %315 = vector.load %arg2[%c0_595, %c9_596, %c1_597, %c0_598] : memref<1x16x16x128xf32, #tpu.memory_space<vmem>>, vector<1x1x14x128xf32>
    %316 = vector.shape_cast %315 : vector<1x1x14x128xf32> to vector<14x128xf32>
    %c98_599 = arith.constant 98 : index
    %c896_600 = arith.constant 896 : index
    %317 = vector.load %arg6[%c98_599, %c896_600] : memref<196x1152xf32, #tpu.memory_space<vmem>>, vector<14x128xf32>
    tpu.vector_store %arg6[%c98_599, %c896_600], %316 {strides = array<i32>} : memref<196x1152xf32, #tpu.memory_space<vmem>>, vector<14x128xf32>,
    %c0_601 = arith.constant 0 : index
    %c10_602 = arith.constant 10 : index
    %c1_603 = arith.constant 1 : index
    %c0_604 = arith.constant 0 : index
    %318 = vector.load %arg2[%c0_601, %c10_602, %c1_603, %c0_604] : memref<1x16x16x128xf32, #tpu.memory_space<vmem>>, vector<1x1x14x128xf32>
    %319 = vector.shape_cast %318 : vector<1x1x14x128xf32> to vector<14x128xf32>
    %c112_605 = arith.constant 112 : index
    %c896_606 = arith.constant 896 : index
    %320 = vector.load %arg6[%c112_605, %c896_606] : memref<196x1152xf32, #tpu.memory_space<vmem>>, vector<14x128xf32>
    tpu.vector_store %arg6[%c112_605, %c896_606], %319 {strides = array<i32>} : memref<196x1152xf32, #tpu.memory_space<vmem>>, vector<14x128xf32>,
    %c0_607 = arith.constant 0 : index
    %c11_608 = arith.constant 11 : index
    %c1_609 = arith.constant 1 : index
    %c0_610 = arith.constant 0 : index
    %321 = vector.load %arg2[%c0_607, %c11_608, %c1_609, %c0_610] : memref<1x16x16x128xf32, #tpu.memory_space<vmem>>, vector<1x1x14x128xf32>
    %322 = vector.shape_cast %321 : vector<1x1x14x128xf32> to vector<14x128xf32>
    %c126_611 = arith.constant 126 : index
    %c896_612 = arith.constant 896 : index
    %323 = vector.load %arg6[%c126_611, %c896_612] : memref<196x1152xf32, #tpu.memory_space<vmem>>, vector<14x128xf32>
    tpu.vector_store %arg6[%c126_611, %c896_612], %322 {strides = array<i32>} : memref<196x1152xf32, #tpu.memory_space<vmem>>, vector<14x128xf32>,
    %c0_613 = arith.constant 0 : index
    %c12_614 = arith.constant 12 : index
    %c1_615 = arith.constant 1 : index
    %c0_616 = arith.constant 0 : index
    %324 = vector.load %arg2[%c0_613, %c12_614, %c1_615, %c0_616] : memref<1x16x16x128xf32, #tpu.memory_space<vmem>>, vector<1x1x14x128xf32>
    %325 = vector.shape_cast %324 : vector<1x1x14x128xf32> to vector<14x128xf32>
    %c140_617 = arith.constant 140 : index
    %c896_618 = arith.constant 896 : index
    %326 = vector.load %arg6[%c140_617, %c896_618] : memref<196x1152xf32, #tpu.memory_space<vmem>>, vector<14x128xf32>
    tpu.vector_store %arg6[%c140_617, %c896_618], %325 {strides = array<i32>} : memref<196x1152xf32, #tpu.memory_space<vmem>>, vector<14x128xf32>,
    %c0_619 = arith.constant 0 : index
    %c13_620 = arith.constant 13 : index
    %c1_621 = arith.constant 1 : index
    %c0_622 = arith.constant 0 : index
    %327 = vector.load %arg2[%c0_619, %c13_620, %c1_621, %c0_622] : memref<1x16x16x128xf32, #tpu.memory_space<vmem>>, vector<1x1x14x128xf32>
    %328 = vector.shape_cast %327 : vector<1x1x14x128xf32> to vector<14x128xf32>
    %c154_623 = arith.constant 154 : index
    %c896_624 = arith.constant 896 : index
    %329 = vector.load %arg6[%c154_623, %c896_624] : memref<196x1152xf32, #tpu.memory_space<vmem>>, vector<14x128xf32>
    tpu.vector_store %arg6[%c154_623, %c896_624], %328 {strides = array<i32>} : memref<196x1152xf32, #tpu.memory_space<vmem>>, vector<14x128xf32>,
    %c0_625 = arith.constant 0 : index
    %c14_626 = arith.constant 14 : index
    %c1_627 = arith.constant 1 : index
    %c0_628 = arith.constant 0 : index
    %330 = vector.load %arg2[%c0_625, %c14_626, %c1_627, %c0_628] : memref<1x16x16x128xf32, #tpu.memory_space<vmem>>, vector<1x1x14x128xf32>
    %331 = vector.shape_cast %330 : vector<1x1x14x128xf32> to vector<14x128xf32>
    %c168_629 = arith.constant 168 : index
    %c896_630 = arith.constant 896 : index
    %332 = vector.load %arg6[%c168_629, %c896_630] : memref<196x1152xf32, #tpu.memory_space<vmem>>, vector<14x128xf32>
    tpu.vector_store %arg6[%c168_629, %c896_630], %331 {strides = array<i32>} : memref<196x1152xf32, #tpu.memory_space<vmem>>, vector<14x128xf32>,
    %c0_631 = arith.constant 0 : index
    %c15_632 = arith.constant 15 : index
    %c1_633 = arith.constant 1 : index
    %c0_634 = arith.constant 0 : index
    %333 = vector.load %arg2[%c0_631, %c15_632, %c1_633, %c0_634] : memref<1x16x16x128xf32, #tpu.memory_space<vmem>>, vector<1x1x14x128xf32>
    %334 = vector.shape_cast %333 : vector<1x1x14x128xf32> to vector<14x128xf32>
    %c182_635 = arith.constant 182 : index
    %c896_636 = arith.constant 896 : index
    %335 = vector.load %arg6[%c182_635, %c896_636] : memref<196x1152xf32, #tpu.memory_space<vmem>>, vector<14x128xf32>
    tpu.vector_store %arg6[%c182_635, %c896_636], %334 {strides = array<i32>} : memref<196x1152xf32, #tpu.memory_space<vmem>>, vector<14x128xf32>,
    %c0_637 = arith.constant 0 : index
    %c2_638 = arith.constant 2 : index
    %c2_639 = arith.constant 2 : index
    %c0_640 = arith.constant 0 : index
    %336 = vector.load %arg2[%c0_637, %c2_638, %c2_639, %c0_640] : memref<1x16x16x128xf32, #tpu.memory_space<vmem>>, vector<1x1x14x128xf32>
    %337 = vector.shape_cast %336 : vector<1x1x14x128xf32> to vector<14x128xf32>
    %c0_641 = arith.constant 0 : index
    %c1024 = arith.constant 1024 : index
    %338 = vector.load %arg6[%c0_641, %c1024] : memref<196x1152xf32, #tpu.memory_space<vmem>>, vector<14x128xf32>
    tpu.vector_store %arg6[%c0_641, %c1024], %337 {strides = array<i32>} : memref<196x1152xf32, #tpu.memory_space<vmem>>, vector<14x128xf32>,
    %c0_642 = arith.constant 0 : index
    %c3_643 = arith.constant 3 : index
    %c2_644 = arith.constant 2 : index
    %c0_645 = arith.constant 0 : index
    %339 = vector.load %arg2[%c0_642, %c3_643, %c2_644, %c0_645] : memref<1x16x16x128xf32, #tpu.memory_space<vmem>>, vector<1x1x14x128xf32>
    %340 = vector.shape_cast %339 : vector<1x1x14x128xf32> to vector<14x128xf32>
    %c14_646 = arith.constant 14 : index
    %c1024_647 = arith.constant 1024 : index
    %341 = vector.load %arg6[%c14_646, %c1024_647] : memref<196x1152xf32, #tpu.memory_space<vmem>>, vector<14x128xf32>
    tpu.vector_store %arg6[%c14_646, %c1024_647], %340 {strides = array<i32>} : memref<196x1152xf32, #tpu.memory_space<vmem>>, vector<14x128xf32>,
    %c0_648 = arith.constant 0 : index
    %c4_649 = arith.constant 4 : index
    %c2_650 = arith.constant 2 : index
    %c0_651 = arith.constant 0 : index
    %342 = vector.load %arg2[%c0_648, %c4_649, %c2_650, %c0_651] : memref<1x16x16x128xf32, #tpu.memory_space<vmem>>, vector<1x1x14x128xf32>
    %343 = vector.shape_cast %342 : vector<1x1x14x128xf32> to vector<14x128xf32>
    %c28_652 = arith.constant 28 : index
    %c1024_653 = arith.constant 1024 : index
    %344 = vector.load %arg6[%c28_652, %c1024_653] : memref<196x1152xf32, #tpu.memory_space<vmem>>, vector<14x128xf32>
    tpu.vector_store %arg6[%c28_652, %c1024_653], %343 {strides = array<i32>} : memref<196x1152xf32, #tpu.memory_space<vmem>>, vector<14x128xf32>,
    %c0_654 = arith.constant 0 : index
    %c5_655 = arith.constant 5 : index
    %c2_656 = arith.constant 2 : index
    %c0_657 = arith.constant 0 : index
    %345 = vector.load %arg2[%c0_654, %c5_655, %c2_656, %c0_657] : memref<1x16x16x128xf32, #tpu.memory_space<vmem>>, vector<1x1x14x128xf32>
    %346 = vector.shape_cast %345 : vector<1x1x14x128xf32> to vector<14x128xf32>
    %c42_658 = arith.constant 42 : index
    %c1024_659 = arith.constant 1024 : index
    %347 = vector.load %arg6[%c42_658, %c1024_659] : memref<196x1152xf32, #tpu.memory_space<vmem>>, vector<14x128xf32>
    tpu.vector_store %arg6[%c42_658, %c1024_659], %346 {strides = array<i32>} : memref<196x1152xf32, #tpu.memory_space<vmem>>, vector<14x128xf32>,
    %c0_660 = arith.constant 0 : index
    %c6_661 = arith.constant 6 : index
    %c2_662 = arith.constant 2 : index
    %c0_663 = arith.constant 0 : index
    %348 = vector.load %arg2[%c0_660, %c6_661, %c2_662, %c0_663] : memref<1x16x16x128xf32, #tpu.memory_space<vmem>>, vector<1x1x14x128xf32>
    %349 = vector.shape_cast %348 : vector<1x1x14x128xf32> to vector<14x128xf32>
    %c56_664 = arith.constant 56 : index
    %c1024_665 = arith.constant 1024 : index
    %350 = vector.load %arg6[%c56_664, %c1024_665] : memref<196x1152xf32, #tpu.memory_space<vmem>>, vector<14x128xf32>
    tpu.vector_store %arg6[%c56_664, %c1024_665], %349 {strides = array<i32>} : memref<196x1152xf32, #tpu.memory_space<vmem>>, vector<14x128xf32>,
    %c0_666 = arith.constant 0 : index
    %c7_667 = arith.constant 7 : index
    %c2_668 = arith.constant 2 : index
    %c0_669 = arith.constant 0 : index
    %351 = vector.load %arg2[%c0_666, %c7_667, %c2_668, %c0_669] : memref<1x16x16x128xf32, #tpu.memory_space<vmem>>, vector<1x1x14x128xf32>
    %352 = vector.shape_cast %351 : vector<1x1x14x128xf32> to vector<14x128xf32>
    %c70_670 = arith.constant 70 : index
    %c1024_671 = arith.constant 1024 : index
    %353 = vector.load %arg6[%c70_670, %c1024_671] : memref<196x1152xf32, #tpu.memory_space<vmem>>, vector<14x128xf32>
    tpu.vector_store %arg6[%c70_670, %c1024_671], %352 {strides = array<i32>} : memref<196x1152xf32, #tpu.memory_space<vmem>>, vector<14x128xf32>,
    %c0_672 = arith.constant 0 : index
    %c8_673 = arith.constant 8 : index
    %c2_674 = arith.constant 2 : index
    %c0_675 = arith.constant 0 : index
    %354 = vector.load %arg2[%c0_672, %c8_673, %c2_674, %c0_675] : memref<1x16x16x128xf32, #tpu.memory_space<vmem>>, vector<1x1x14x128xf32>
    %355 = vector.shape_cast %354 : vector<1x1x14x128xf32> to vector<14x128xf32>
    %c84_676 = arith.constant 84 : index
    %c1024_677 = arith.constant 1024 : index
    %356 = vector.load %arg6[%c84_676, %c1024_677] : memref<196x1152xf32, #tpu.memory_space<vmem>>, vector<14x128xf32>
    tpu.vector_store %arg6[%c84_676, %c1024_677], %355 {strides = array<i32>} : memref<196x1152xf32, #tpu.memory_space<vmem>>, vector<14x128xf32>,
    %c0_678 = arith.constant 0 : index
    %c9_679 = arith.constant 9 : index
    %c2_680 = arith.constant 2 : index
    %c0_681 = arith.constant 0 : index
    %357 = vector.load %arg2[%c0_678, %c9_679, %c2_680, %c0_681] : memref<1x16x16x128xf32, #tpu.memory_space<vmem>>, vector<1x1x14x128xf32>
    %358 = vector.shape_cast %357 : vector<1x1x14x128xf32> to vector<14x128xf32>
    %c98_682 = arith.constant 98 : index
    %c1024_683 = arith.constant 1024 : index
    %359 = vector.load %arg6[%c98_682, %c1024_683] : memref<196x1152xf32, #tpu.memory_space<vmem>>, vector<14x128xf32>
    tpu.vector_store %arg6[%c98_682, %c1024_683], %358 {strides = array<i32>} : memref<196x1152xf32, #tpu.memory_space<vmem>>, vector<14x128xf32>,
    %c0_684 = arith.constant 0 : index
    %c10_685 = arith.constant 10 : index
    %c2_686 = arith.constant 2 : index
    %c0_687 = arith.constant 0 : index
    %360 = vector.load %arg2[%c0_684, %c10_685, %c2_686, %c0_687] : memref<1x16x16x128xf32, #tpu.memory_space<vmem>>, vector<1x1x14x128xf32>
    %361 = vector.shape_cast %360 : vector<1x1x14x128xf32> to vector<14x128xf32>
    %c112_688 = arith.constant 112 : index
    %c1024_689 = arith.constant 1024 : index
    %362 = vector.load %arg6[%c112_688, %c1024_689] : memref<196x1152xf32, #tpu.memory_space<vmem>>, vector<14x128xf32>
    tpu.vector_store %arg6[%c112_688, %c1024_689], %361 {strides = array<i32>} : memref<196x1152xf32, #tpu.memory_space<vmem>>, vector<14x128xf32>,
    %c0_690 = arith.constant 0 : index
    %c11_691 = arith.constant 11 : index
    %c2_692 = arith.constant 2 : index
    %c0_693 = arith.constant 0 : index
    %363 = vector.load %arg2[%c0_690, %c11_691, %c2_692, %c0_693] : memref<1x16x16x128xf32, #tpu.memory_space<vmem>>, vector<1x1x14x128xf32>
    %364 = vector.shape_cast %363 : vector<1x1x14x128xf32> to vector<14x128xf32>
    %c126_694 = arith.constant 126 : index
    %c1024_695 = arith.constant 1024 : index
    %365 = vector.load %arg6[%c126_694, %c1024_695] : memref<196x1152xf32, #tpu.memory_space<vmem>>, vector<14x128xf32>
    tpu.vector_store %arg6[%c126_694, %c1024_695], %364 {strides = array<i32>} : memref<196x1152xf32, #tpu.memory_space<vmem>>, vector<14x128xf32>,
    %c0_696 = arith.constant 0 : index
    %c12_697 = arith.constant 12 : index
    %c2_698 = arith.constant 2 : index
    %c0_699 = arith.constant 0 : index
    %366 = vector.load %arg2[%c0_696, %c12_697, %c2_698, %c0_699] : memref<1x16x16x128xf32, #tpu.memory_space<vmem>>, vector<1x1x14x128xf32>
    %367 = vector.shape_cast %366 : vector<1x1x14x128xf32> to vector<14x128xf32>
    %c140_700 = arith.constant 140 : index
    %c1024_701 = arith.constant 1024 : index
    %368 = vector.load %arg6[%c140_700, %c1024_701] : memref<196x1152xf32, #tpu.memory_space<vmem>>, vector<14x128xf32>
    tpu.vector_store %arg6[%c140_700, %c1024_701], %367 {strides = array<i32>} : memref<196x1152xf32, #tpu.memory_space<vmem>>, vector<14x128xf32>,
    %c0_702 = arith.constant 0 : index
    %c13_703 = arith.constant 13 : index
    %c2_704 = arith.constant 2 : index
    %c0_705 = arith.constant 0 : index
    %369 = vector.load %arg2[%c0_702, %c13_703, %c2_704, %c0_705] : memref<1x16x16x128xf32, #tpu.memory_space<vmem>>, vector<1x1x14x128xf32>
    %370 = vector.shape_cast %369 : vector<1x1x14x128xf32> to vector<14x128xf32>
    %c154_706 = arith.constant 154 : index
    %c1024_707 = arith.constant 1024 : index
    %371 = vector.load %arg6[%c154_706, %c1024_707] : memref<196x1152xf32, #tpu.memory_space<vmem>>, vector<14x128xf32>
    tpu.vector_store %arg6[%c154_706, %c1024_707], %370 {strides = array<i32>} : memref<196x1152xf32, #tpu.memory_space<vmem>>, vector<14x128xf32>,
    %c0_708 = arith.constant 0 : index
    %c14_709 = arith.constant 14 : index
    %c2_710 = arith.constant 2 : index
    %c0_711 = arith.constant 0 : index
    %372 = vector.load %arg2[%c0_708, %c14_709, %c2_710, %c0_711] : memref<1x16x16x128xf32, #tpu.memory_space<vmem>>, vector<1x1x14x128xf32>
    %373 = vector.shape_cast %372 : vector<1x1x14x128xf32> to vector<14x128xf32>
    %c168_712 = arith.constant 168 : index
    %c1024_713 = arith.constant 1024 : index
    %374 = vector.load %arg6[%c168_712, %c1024_713] : memref<196x1152xf32, #tpu.memory_space<vmem>>, vector<14x128xf32>
    tpu.vector_store %arg6[%c168_712, %c1024_713], %373 {strides = array<i32>} : memref<196x1152xf32, #tpu.memory_space<vmem>>, vector<14x128xf32>,
    %c0_714 = arith.constant 0 : index
    %c15_715 = arith.constant 15 : index
    %c2_716 = arith.constant 2 : index
    %c0_717 = arith.constant 0 : index
    %375 = vector.load %arg2[%c0_714, %c15_715, %c2_716, %c0_717] : memref<1x16x16x128xf32, #tpu.memory_space<vmem>>, vector<1x1x14x128xf32>
    %376 = vector.shape_cast %375 : vector<1x1x14x128xf32> to vector<14x128xf32>
    %c182_718 = arith.constant 182 : index
    %c1024_719 = arith.constant 1024 : index
    %377 = vector.load %arg6[%c182_718, %c1024_719] : memref<196x1152xf32, #tpu.memory_space<vmem>>, vector<14x128xf32>
    tpu.vector_store %arg6[%c182_718, %c1024_719], %376 {strides = array<i32>} : memref<196x1152xf32, #tpu.memory_space<vmem>>, vector<14x128xf32>,
    %c0_720 = arith.constant 0 : index
    %c0_721 = arith.constant 0 : index
    %378 = vector.load %arg6[%c0_720, %c0_721] : memref<196x1152xf32, #tpu.memory_space<vmem>>, vector<196x1152xf32>
    %379 = arith.truncf %378 : vector<196x1152xf32> to vector<196x1152xbf16>
    %c0_722 = arith.constant 0 : index
    %c0_723 = arith.constant 0 : index
    %380 = vector.load %arg3[%c0_722, %c0_723] : memref<1152x128xbf16, #tpu.memory_space<vmem>>, vector<1152x128xbf16>
    %cst = arith.constant dense<0.000000e+00> : vector<196x128xf32>
    %381 = tpu.matmul %379, %380, %cst {dimension_numbers = #tpu.dot_dimension_numbers<[1], [0], [0], [1], [0, 0, 1, 1], [], []>} : vector<196x1152xbf16>, vector<1152x128xbf16>, vector<196x128xf32> -> vector<196x128xf32>
    %c0_724 = arith.constant 0 : index
    %c0_725 = arith.constant 0 : index
    %382 = vector.load %arg4[%c0_724, %c0_725] : memref<1x128xf32, #tpu.memory_space<vmem>>, vector<1x128xf32>
    %383 = vector.broadcast %382 : vector<1x128xf32> to vector<196x128xf32>
    %384 = arith.addf %381, %383 : vector<196x128xf32>
    %cst_726 = arith.constant 0.000000e+00 : f32
    %385 = vector.broadcast %cst_726 : f32 to vector<196x128xf32>
    %386 = arith.cmpf ogt, %384, %385 : vector<196x128xf32>
    %cst_727 = arith.constant 1.000000e-01 : f32
    %387 = vector.broadcast %cst_727 : f32 to vector<196x128xf32>
    %388 = arith.mulf %387, %384 : vector<196x128xf32>
    %389 = arith.select %386, %384, %388 : vector<196x128xi1>, vector<196x128xf32>
    %c0_728 = arith.constant 0 : index
    %c0_729 = arith.constant 0 : index
    %c0_730 = arith.constant 0 : index
    %390 = vector.load %arg5[%c0_728, %c0_729, %c0_730] : memref<1x196x128xf32, #tpu.memory_space<vmem>>, vector<1x196x128xf32>
    %391 = vector.shape_cast %390 : vector<1x196x128xf32> to vector<196x128xf32>
    %392 = vector.shape_cast %389 : vector<196x128xf32> to vector<1x196x128xf32>
    tpu.vector_store %arg5[%c0_728, %c0_729, %c0_730], %392 {strides = array<i32>} : memref<1x196x128xf32, #tpu.memory_space<vmem>>, vector<1x196x128xf32>,
    return
  }
  func.func @transform_0(%arg0: i32, %arg1: i32) -> (i32, i32, i32, i32) {
    %c0_i32 = arith.constant 0 : i32
    %c0_i32_0 = arith.constant 0 : i32
    %c0_i32_1 = arith.constant 0 : i32
    %c0_i32_2 = arith.constant 0 : i32
    return %arg0, %c0_i32, %c0_i32_0, %c0_i32_1 : i32, i32, i32, i32
  }
  func.func @transform_1(%arg0: i32, %arg1: i32) -> (i32, i32) {
    %c0_i32 = arith.constant 0 : i32
    %c0_i32_0 = arith.constant 0 : i32
    return %c0_i32, %arg1 : i32, i32
  }
  func.func @transform_2(%arg0: i32, %arg1: i32) -> (i32, i32) {
    %c0_i32 = arith.constant 0 : i32
    %c0_i32_0 = arith.constant 0 : i32
    return %c0_i32, %arg1 : i32, i32
  }
  func.func @transform_3(%arg0: i32, %arg1: i32) -> (i32, i32, i32) {
    %c0_i32 = arith.constant 0 : i32
    %c0_i32_0 = arith.constant 0 : i32
    return %arg0, %c0_i32, %arg1 : i32, i32, i32
  }
}

module attributes {stable_mosaic.version = 11 : i64} {
  func.func @_conv3x3_leaky_kernel(%arg0: i32, %arg1: i32, %arg2: memref<1x32x8x128xf32, #tpu.memory_space<vmem>>, %arg3: memref<1152x128xbf16, #tpu.memory_space<vmem>>, %arg4: memref<1x128xf32, #tpu.memory_space<vmem>>, %arg5: memref<1x49x128xf32, #tpu.memory_space<vmem>>, %arg6: memref<49x1152xf32, #tpu.memory_space<vmem>>) attributes {dimension_semantics = [#tpu.dimension_semantics<parallel>, #tpu.dimension_semantics<parallel>], iteration_bounds = array<i64: 2, 1>, scalar_prefetch = 0 : i64, scratch_operands = 1 : i64, tpu.core_type = #tpu.core_type<tc>, window_params = [{transform_indices = @transform_0, window_bounds = array<i64: 1, 32, 8, 128>}, {transform_indices = @transform_1, window_bounds = array<i64: 1152, 128>}, {transform_indices = @transform_2, window_bounds = array<i64: 1, 128>}, {transform_indices = @transform_3, window_bounds = array<i64: 1, 49, 128>}]} {
    %c0 = arith.constant 0 : index
    %c0_0 = arith.constant 0 : index
    %c0_1 = arith.constant 0 : index
    %c0_2 = arith.constant 0 : index
    %0 = vector.load %arg2[%c0, %c0_0, %c0_1, %c0_2] : memref<1x32x8x128xf32, #tpu.memory_space<vmem>>, vector<1x1x7x128xf32>
    %1 = vector.shape_cast %0 : vector<1x1x7x128xf32> to vector<7x128xf32>
    %c0_3 = arith.constant 0 : index
    %c0_4 = arith.constant 0 : index
    %2 = vector.load %arg6[%c0_3, %c0_4] : memref<49x1152xf32, #tpu.memory_space<vmem>>, vector<7x128xf32>
    tpu.vector_store %arg6[%c0_3, %c0_4], %1 {strides = array<i32>} : memref<49x1152xf32, #tpu.memory_space<vmem>>, vector<7x128xf32>,
    %c0_5 = arith.constant 0 : index
    %c1 = arith.constant 1 : index
    %c0_6 = arith.constant 0 : index
    %c0_7 = arith.constant 0 : index
    %3 = vector.load %arg2[%c0_5, %c1, %c0_6, %c0_7] : memref<1x32x8x128xf32, #tpu.memory_space<vmem>>, vector<1x1x7x128xf32>
    %4 = vector.shape_cast %3 : vector<1x1x7x128xf32> to vector<7x128xf32>
    %c7 = arith.constant 7 : index
    %c0_8 = arith.constant 0 : index
    %5 = vector.load %arg6[%c7, %c0_8] : memref<49x1152xf32, #tpu.memory_space<vmem>>, vector<7x128xf32>
    tpu.vector_store %arg6[%c7, %c0_8], %4 {strides = array<i32>} : memref<49x1152xf32, #tpu.memory_space<vmem>>, vector<7x128xf32>,
    %c0_9 = arith.constant 0 : index
    %c2 = arith.constant 2 : index
    %c0_10 = arith.constant 0 : index
    %c0_11 = arith.constant 0 : index
    %6 = vector.load %arg2[%c0_9, %c2, %c0_10, %c0_11] : memref<1x32x8x128xf32, #tpu.memory_space<vmem>>, vector<1x1x7x128xf32>
    %7 = vector.shape_cast %6 : vector<1x1x7x128xf32> to vector<7x128xf32>
    %c14 = arith.constant 14 : index
    %c0_12 = arith.constant 0 : index
    %8 = vector.load %arg6[%c14, %c0_12] : memref<49x1152xf32, #tpu.memory_space<vmem>>, vector<7x128xf32>
    tpu.vector_store %arg6[%c14, %c0_12], %7 {strides = array<i32>} : memref<49x1152xf32, #tpu.memory_space<vmem>>, vector<7x128xf32>,
    %c0_13 = arith.constant 0 : index
    %c3 = arith.constant 3 : index
    %c0_14 = arith.constant 0 : index
    %c0_15 = arith.constant 0 : index
    %9 = vector.load %arg2[%c0_13, %c3, %c0_14, %c0_15] : memref<1x32x8x128xf32, #tpu.memory_space<vmem>>, vector<1x1x7x128xf32>
    %10 = vector.shape_cast %9 : vector<1x1x7x128xf32> to vector<7x128xf32>
    %c21 = arith.constant 21 : index
    %c0_16 = arith.constant 0 : index
    %11 = vector.load %arg6[%c21, %c0_16] : memref<49x1152xf32, #tpu.memory_space<vmem>>, vector<7x128xf32>
    tpu.vector_store %arg6[%c21, %c0_16], %10 {strides = array<i32>} : memref<49x1152xf32, #tpu.memory_space<vmem>>, vector<7x128xf32>,
    %c0_17 = arith.constant 0 : index
    %c4 = arith.constant 4 : index
    %c0_18 = arith.constant 0 : index
    %c0_19 = arith.constant 0 : index
    %12 = vector.load %arg2[%c0_17, %c4, %c0_18, %c0_19] : memref<1x32x8x128xf32, #tpu.memory_space<vmem>>, vector<1x1x7x128xf32>
    %13 = vector.shape_cast %12 : vector<1x1x7x128xf32> to vector<7x128xf32>
    %c28 = arith.constant 28 : index
    %c0_20 = arith.constant 0 : index
    %14 = vector.load %arg6[%c28, %c0_20] : memref<49x1152xf32, #tpu.memory_space<vmem>>, vector<7x128xf32>
    tpu.vector_store %arg6[%c28, %c0_20], %13 {strides = array<i32>} : memref<49x1152xf32, #tpu.memory_space<vmem>>, vector<7x128xf32>,
    %c0_21 = arith.constant 0 : index
    %c5 = arith.constant 5 : index
    %c0_22 = arith.constant 0 : index
    %c0_23 = arith.constant 0 : index
    %15 = vector.load %arg2[%c0_21, %c5, %c0_22, %c0_23] : memref<1x32x8x128xf32, #tpu.memory_space<vmem>>, vector<1x1x7x128xf32>
    %16 = vector.shape_cast %15 : vector<1x1x7x128xf32> to vector<7x128xf32>
    %c35 = arith.constant 35 : index
    %c0_24 = arith.constant 0 : index
    %17 = vector.load %arg6[%c35, %c0_24] : memref<49x1152xf32, #tpu.memory_space<vmem>>, vector<7x128xf32>
    tpu.vector_store %arg6[%c35, %c0_24], %16 {strides = array<i32>} : memref<49x1152xf32, #tpu.memory_space<vmem>>, vector<7x128xf32>,
    %c0_25 = arith.constant 0 : index
    %c6 = arith.constant 6 : index
    %c0_26 = arith.constant 0 : index
    %c0_27 = arith.constant 0 : index
    %18 = vector.load %arg2[%c0_25, %c6, %c0_26, %c0_27] : memref<1x32x8x128xf32, #tpu.memory_space<vmem>>, vector<1x1x7x128xf32>
    %19 = vector.shape_cast %18 : vector<1x1x7x128xf32> to vector<7x128xf32>
    %c42 = arith.constant 42 : index
    %c0_28 = arith.constant 0 : index
    %20 = vector.load %arg6[%c42, %c0_28] : memref<49x1152xf32, #tpu.memory_space<vmem>>, vector<7x128xf32>
    tpu.vector_store %arg6[%c42, %c0_28], %19 {strides = array<i32>} : memref<49x1152xf32, #tpu.memory_space<vmem>>, vector<7x128xf32>,
    %c0_29 = arith.constant 0 : index
    %c8 = arith.constant 8 : index
    %c0_30 = arith.constant 0 : index
    %c0_31 = arith.constant 0 : index
    %21 = vector.load %arg2[%c0_29, %c8, %c0_30, %c0_31] : memref<1x32x8x128xf32, #tpu.memory_space<vmem>>, vector<1x1x7x128xf32>
    %22 = vector.shape_cast %21 : vector<1x1x7x128xf32> to vector<7x128xf32>
    %c0_32 = arith.constant 0 : index
    %c128 = arith.constant 128 : index
    %23 = vector.load %arg6[%c0_32, %c128] : memref<49x1152xf32, #tpu.memory_space<vmem>>, vector<7x128xf32>
    tpu.vector_store %arg6[%c0_32, %c128], %22 {strides = array<i32>} : memref<49x1152xf32, #tpu.memory_space<vmem>>, vector<7x128xf32>,
    %c0_33 = arith.constant 0 : index
    %c9 = arith.constant 9 : index
    %c0_34 = arith.constant 0 : index
    %c0_35 = arith.constant 0 : index
    %24 = vector.load %arg2[%c0_33, %c9, %c0_34, %c0_35] : memref<1x32x8x128xf32, #tpu.memory_space<vmem>>, vector<1x1x7x128xf32>
    %25 = vector.shape_cast %24 : vector<1x1x7x128xf32> to vector<7x128xf32>
    %c7_36 = arith.constant 7 : index
    %c128_37 = arith.constant 128 : index
    %26 = vector.load %arg6[%c7_36, %c128_37] : memref<49x1152xf32, #tpu.memory_space<vmem>>, vector<7x128xf32>
    tpu.vector_store %arg6[%c7_36, %c128_37], %25 {strides = array<i32>} : memref<49x1152xf32, #tpu.memory_space<vmem>>, vector<7x128xf32>,
    %c0_38 = arith.constant 0 : index
    %c10 = arith.constant 10 : index
    %c0_39 = arith.constant 0 : index
    %c0_40 = arith.constant 0 : index
    %27 = vector.load %arg2[%c0_38, %c10, %c0_39, %c0_40] : memref<1x32x8x128xf32, #tpu.memory_space<vmem>>, vector<1x1x7x128xf32>
    %28 = vector.shape_cast %27 : vector<1x1x7x128xf32> to vector<7x128xf32>
    %c14_41 = arith.constant 14 : index
    %c128_42 = arith.constant 128 : index
    %29 = vector.load %arg6[%c14_41, %c128_42] : memref<49x1152xf32, #tpu.memory_space<vmem>>, vector<7x128xf32>
    tpu.vector_store %arg6[%c14_41, %c128_42], %28 {strides = array<i32>} : memref<49x1152xf32, #tpu.memory_space<vmem>>, vector<7x128xf32>,
    %c0_43 = arith.constant 0 : index
    %c11 = arith.constant 11 : index
    %c0_44 = arith.constant 0 : index
    %c0_45 = arith.constant 0 : index
    %30 = vector.load %arg2[%c0_43, %c11, %c0_44, %c0_45] : memref<1x32x8x128xf32, #tpu.memory_space<vmem>>, vector<1x1x7x128xf32>
    %31 = vector.shape_cast %30 : vector<1x1x7x128xf32> to vector<7x128xf32>
    %c21_46 = arith.constant 21 : index
    %c128_47 = arith.constant 128 : index
    %32 = vector.load %arg6[%c21_46, %c128_47] : memref<49x1152xf32, #tpu.memory_space<vmem>>, vector<7x128xf32>
    tpu.vector_store %arg6[%c21_46, %c128_47], %31 {strides = array<i32>} : memref<49x1152xf32, #tpu.memory_space<vmem>>, vector<7x128xf32>,
    %c0_48 = arith.constant 0 : index
    %c12 = arith.constant 12 : index
    %c0_49 = arith.constant 0 : index
    %c0_50 = arith.constant 0 : index
    %33 = vector.load %arg2[%c0_48, %c12, %c0_49, %c0_50] : memref<1x32x8x128xf32, #tpu.memory_space<vmem>>, vector<1x1x7x128xf32>
    %34 = vector.shape_cast %33 : vector<1x1x7x128xf32> to vector<7x128xf32>
    %c28_51 = arith.constant 28 : index
    %c128_52 = arith.constant 128 : index
    %35 = vector.load %arg6[%c28_51, %c128_52] : memref<49x1152xf32, #tpu.memory_space<vmem>>, vector<7x128xf32>
    tpu.vector_store %arg6[%c28_51, %c128_52], %34 {strides = array<i32>} : memref<49x1152xf32, #tpu.memory_space<vmem>>, vector<7x128xf32>,
    %c0_53 = arith.constant 0 : index
    %c13 = arith.constant 13 : index
    %c0_54 = arith.constant 0 : index
    %c0_55 = arith.constant 0 : index
    %36 = vector.load %arg2[%c0_53, %c13, %c0_54, %c0_55] : memref<1x32x8x128xf32, #tpu.memory_space<vmem>>, vector<1x1x7x128xf32>
    %37 = vector.shape_cast %36 : vector<1x1x7x128xf32> to vector<7x128xf32>
    %c35_56 = arith.constant 35 : index
    %c128_57 = arith.constant 128 : index
    %38 = vector.load %arg6[%c35_56, %c128_57] : memref<49x1152xf32, #tpu.memory_space<vmem>>, vector<7x128xf32>
    tpu.vector_store %arg6[%c35_56, %c128_57], %37 {strides = array<i32>} : memref<49x1152xf32, #tpu.memory_space<vmem>>, vector<7x128xf32>,
    %c0_58 = arith.constant 0 : index
    %c14_59 = arith.constant 14 : index
    %c0_60 = arith.constant 0 : index
    %c0_61 = arith.constant 0 : index
    %39 = vector.load %arg2[%c0_58, %c14_59, %c0_60, %c0_61] : memref<1x32x8x128xf32, #tpu.memory_space<vmem>>, vector<1x1x7x128xf32>
    %40 = vector.shape_cast %39 : vector<1x1x7x128xf32> to vector<7x128xf32>
    %c42_62 = arith.constant 42 : index
    %c128_63 = arith.constant 128 : index
    %41 = vector.load %arg6[%c42_62, %c128_63] : memref<49x1152xf32, #tpu.memory_space<vmem>>, vector<7x128xf32>
    tpu.vector_store %arg6[%c42_62, %c128_63], %40 {strides = array<i32>} : memref<49x1152xf32, #tpu.memory_space<vmem>>, vector<7x128xf32>,
    %c0_64 = arith.constant 0 : index
    %c0_65 = arith.constant 0 : index
    %c1_66 = arith.constant 1 : index
    %c0_67 = arith.constant 0 : index
    %42 = vector.load %arg2[%c0_64, %c0_65, %c1_66, %c0_67] : memref<1x32x8x128xf32, #tpu.memory_space<vmem>>, vector<1x1x7x128xf32>
    %43 = vector.shape_cast %42 : vector<1x1x7x128xf32> to vector<7x128xf32>
    %c0_68 = arith.constant 0 : index
    %c256 = arith.constant 256 : index
    %44 = vector.load %arg6[%c0_68, %c256] : memref<49x1152xf32, #tpu.memory_space<vmem>>, vector<7x128xf32>
    tpu.vector_store %arg6[%c0_68, %c256], %43 {strides = array<i32>} : memref<49x1152xf32, #tpu.memory_space<vmem>>, vector<7x128xf32>,
    %c0_69 = arith.constant 0 : index
    %c1_70 = arith.constant 1 : index
    %c1_71 = arith.constant 1 : index
    %c0_72 = arith.constant 0 : index
    %45 = vector.load %arg2[%c0_69, %c1_70, %c1_71, %c0_72] : memref<1x32x8x128xf32, #tpu.memory_space<vmem>>, vector<1x1x7x128xf32>
    %46 = vector.shape_cast %45 : vector<1x1x7x128xf32> to vector<7x128xf32>
    %c7_73 = arith.constant 7 : index
    %c256_74 = arith.constant 256 : index
    %47 = vector.load %arg6[%c7_73, %c256_74] : memref<49x1152xf32, #tpu.memory_space<vmem>>, vector<7x128xf32>
    tpu.vector_store %arg6[%c7_73, %c256_74], %46 {strides = array<i32>} : memref<49x1152xf32, #tpu.memory_space<vmem>>, vector<7x128xf32>,
    %c0_75 = arith.constant 0 : index
    %c2_76 = arith.constant 2 : index
    %c1_77 = arith.constant 1 : index
    %c0_78 = arith.constant 0 : index
    %48 = vector.load %arg2[%c0_75, %c2_76, %c1_77, %c0_78] : memref<1x32x8x128xf32, #tpu.memory_space<vmem>>, vector<1x1x7x128xf32>
    %49 = vector.shape_cast %48 : vector<1x1x7x128xf32> to vector<7x128xf32>
    %c14_79 = arith.constant 14 : index
    %c256_80 = arith.constant 256 : index
    %50 = vector.load %arg6[%c14_79, %c256_80] : memref<49x1152xf32, #tpu.memory_space<vmem>>, vector<7x128xf32>
    tpu.vector_store %arg6[%c14_79, %c256_80], %49 {strides = array<i32>} : memref<49x1152xf32, #tpu.memory_space<vmem>>, vector<7x128xf32>,
    %c0_81 = arith.constant 0 : index
    %c3_82 = arith.constant 3 : index
    %c1_83 = arith.constant 1 : index
    %c0_84 = arith.constant 0 : index
    %51 = vector.load %arg2[%c0_81, %c3_82, %c1_83, %c0_84] : memref<1x32x8x128xf32, #tpu.memory_space<vmem>>, vector<1x1x7x128xf32>
    %52 = vector.shape_cast %51 : vector<1x1x7x128xf32> to vector<7x128xf32>
    %c21_85 = arith.constant 21 : index
    %c256_86 = arith.constant 256 : index
    %53 = vector.load %arg6[%c21_85, %c256_86] : memref<49x1152xf32, #tpu.memory_space<vmem>>, vector<7x128xf32>
    tpu.vector_store %arg6[%c21_85, %c256_86], %52 {strides = array<i32>} : memref<49x1152xf32, #tpu.memory_space<vmem>>, vector<7x128xf32>,
    %c0_87 = arith.constant 0 : index
    %c4_88 = arith.constant 4 : index
    %c1_89 = arith.constant 1 : index
    %c0_90 = arith.constant 0 : index
    %54 = vector.load %arg2[%c0_87, %c4_88, %c1_89, %c0_90] : memref<1x32x8x128xf32, #tpu.memory_space<vmem>>, vector<1x1x7x128xf32>
    %55 = vector.shape_cast %54 : vector<1x1x7x128xf32> to vector<7x128xf32>
    %c28_91 = arith.constant 28 : index
    %c256_92 = arith.constant 256 : index
    %56 = vector.load %arg6[%c28_91, %c256_92] : memref<49x1152xf32, #tpu.memory_space<vmem>>, vector<7x128xf32>
    tpu.vector_store %arg6[%c28_91, %c256_92], %55 {strides = array<i32>} : memref<49x1152xf32, #tpu.memory_space<vmem>>, vector<7x128xf32>,
    %c0_93 = arith.constant 0 : index
    %c5_94 = arith.constant 5 : index
    %c1_95 = arith.constant 1 : index
    %c0_96 = arith.constant 0 : index
    %57 = vector.load %arg2[%c0_93, %c5_94, %c1_95, %c0_96] : memref<1x32x8x128xf32, #tpu.memory_space<vmem>>, vector<1x1x7x128xf32>
    %58 = vector.shape_cast %57 : vector<1x1x7x128xf32> to vector<7x128xf32>
    %c35_97 = arith.constant 35 : index
    %c256_98 = arith.constant 256 : index
    %59 = vector.load %arg6[%c35_97, %c256_98] : memref<49x1152xf32, #tpu.memory_space<vmem>>, vector<7x128xf32>
    tpu.vector_store %arg6[%c35_97, %c256_98], %58 {strides = array<i32>} : memref<49x1152xf32, #tpu.memory_space<vmem>>, vector<7x128xf32>,
    %c0_99 = arith.constant 0 : index
    %c6_100 = arith.constant 6 : index
    %c1_101 = arith.constant 1 : index
    %c0_102 = arith.constant 0 : index
    %60 = vector.load %arg2[%c0_99, %c6_100, %c1_101, %c0_102] : memref<1x32x8x128xf32, #tpu.memory_space<vmem>>, vector<1x1x7x128xf32>
    %61 = vector.shape_cast %60 : vector<1x1x7x128xf32> to vector<7x128xf32>
    %c42_103 = arith.constant 42 : index
    %c256_104 = arith.constant 256 : index
    %62 = vector.load %arg6[%c42_103, %c256_104] : memref<49x1152xf32, #tpu.memory_space<vmem>>, vector<7x128xf32>
    tpu.vector_store %arg6[%c42_103, %c256_104], %61 {strides = array<i32>} : memref<49x1152xf32, #tpu.memory_space<vmem>>, vector<7x128xf32>,
    %c0_105 = arith.constant 0 : index
    %c16 = arith.constant 16 : index
    %c0_106 = arith.constant 0 : index
    %c0_107 = arith.constant 0 : index
    %63 = vector.load %arg2[%c0_105, %c16, %c0_106, %c0_107] : memref<1x32x8x128xf32, #tpu.memory_space<vmem>>, vector<1x1x7x128xf32>
    %64 = vector.shape_cast %63 : vector<1x1x7x128xf32> to vector<7x128xf32>
    %c0_108 = arith.constant 0 : index
    %c384 = arith.constant 384 : index
    %65 = vector.load %arg6[%c0_108, %c384] : memref<49x1152xf32, #tpu.memory_space<vmem>>, vector<7x128xf32>
    tpu.vector_store %arg6[%c0_108, %c384], %64 {strides = array<i32>} : memref<49x1152xf32, #tpu.memory_space<vmem>>, vector<7x128xf32>,
    %c0_109 = arith.constant 0 : index
    %c17 = arith.constant 17 : index
    %c0_110 = arith.constant 0 : index
    %c0_111 = arith.constant 0 : index
    %66 = vector.load %arg2[%c0_109, %c17, %c0_110, %c0_111] : memref<1x32x8x128xf32, #tpu.memory_space<vmem>>, vector<1x1x7x128xf32>
    %67 = vector.shape_cast %66 : vector<1x1x7x128xf32> to vector<7x128xf32>
    %c7_112 = arith.constant 7 : index
    %c384_113 = arith.constant 384 : index
    %68 = vector.load %arg6[%c7_112, %c384_113] : memref<49x1152xf32, #tpu.memory_space<vmem>>, vector<7x128xf32>
    tpu.vector_store %arg6[%c7_112, %c384_113], %67 {strides = array<i32>} : memref<49x1152xf32, #tpu.memory_space<vmem>>, vector<7x128xf32>,
    %c0_114 = arith.constant 0 : index
    %c18 = arith.constant 18 : index
    %c0_115 = arith.constant 0 : index
    %c0_116 = arith.constant 0 : index
    %69 = vector.load %arg2[%c0_114, %c18, %c0_115, %c0_116] : memref<1x32x8x128xf32, #tpu.memory_space<vmem>>, vector<1x1x7x128xf32>
    %70 = vector.shape_cast %69 : vector<1x1x7x128xf32> to vector<7x128xf32>
    %c14_117 = arith.constant 14 : index
    %c384_118 = arith.constant 384 : index
    %71 = vector.load %arg6[%c14_117, %c384_118] : memref<49x1152xf32, #tpu.memory_space<vmem>>, vector<7x128xf32>
    tpu.vector_store %arg6[%c14_117, %c384_118], %70 {strides = array<i32>} : memref<49x1152xf32, #tpu.memory_space<vmem>>, vector<7x128xf32>,
    %c0_119 = arith.constant 0 : index
    %c19 = arith.constant 19 : index
    %c0_120 = arith.constant 0 : index
    %c0_121 = arith.constant 0 : index
    %72 = vector.load %arg2[%c0_119, %c19, %c0_120, %c0_121] : memref<1x32x8x128xf32, #tpu.memory_space<vmem>>, vector<1x1x7x128xf32>
    %73 = vector.shape_cast %72 : vector<1x1x7x128xf32> to vector<7x128xf32>
    %c21_122 = arith.constant 21 : index
    %c384_123 = arith.constant 384 : index
    %74 = vector.load %arg6[%c21_122, %c384_123] : memref<49x1152xf32, #tpu.memory_space<vmem>>, vector<7x128xf32>
    tpu.vector_store %arg6[%c21_122, %c384_123], %73 {strides = array<i32>} : memref<49x1152xf32, #tpu.memory_space<vmem>>, vector<7x128xf32>,
    %c0_124 = arith.constant 0 : index
    %c20 = arith.constant 20 : index
    %c0_125 = arith.constant 0 : index
    %c0_126 = arith.constant 0 : index
    %75 = vector.load %arg2[%c0_124, %c20, %c0_125, %c0_126] : memref<1x32x8x128xf32, #tpu.memory_space<vmem>>, vector<1x1x7x128xf32>
    %76 = vector.shape_cast %75 : vector<1x1x7x128xf32> to vector<7x128xf32>
    %c28_127 = arith.constant 28 : index
    %c384_128 = arith.constant 384 : index
    %77 = vector.load %arg6[%c28_127, %c384_128] : memref<49x1152xf32, #tpu.memory_space<vmem>>, vector<7x128xf32>
    tpu.vector_store %arg6[%c28_127, %c384_128], %76 {strides = array<i32>} : memref<49x1152xf32, #tpu.memory_space<vmem>>, vector<7x128xf32>,
    %c0_129 = arith.constant 0 : index
    %c21_130 = arith.constant 21 : index
    %c0_131 = arith.constant 0 : index
    %c0_132 = arith.constant 0 : index
    %78 = vector.load %arg2[%c0_129, %c21_130, %c0_131, %c0_132] : memref<1x32x8x128xf32, #tpu.memory_space<vmem>>, vector<1x1x7x128xf32>
    %79 = vector.shape_cast %78 : vector<1x1x7x128xf32> to vector<7x128xf32>
    %c35_133 = arith.constant 35 : index
    %c384_134 = arith.constant 384 : index
    %80 = vector.load %arg6[%c35_133, %c384_134] : memref<49x1152xf32, #tpu.memory_space<vmem>>, vector<7x128xf32>
    tpu.vector_store %arg6[%c35_133, %c384_134], %79 {strides = array<i32>} : memref<49x1152xf32, #tpu.memory_space<vmem>>, vector<7x128xf32>,
    %c0_135 = arith.constant 0 : index
    %c22 = arith.constant 22 : index
    %c0_136 = arith.constant 0 : index
    %c0_137 = arith.constant 0 : index
    %81 = vector.load %arg2[%c0_135, %c22, %c0_136, %c0_137] : memref<1x32x8x128xf32, #tpu.memory_space<vmem>>, vector<1x1x7x128xf32>
    %82 = vector.shape_cast %81 : vector<1x1x7x128xf32> to vector<7x128xf32>
    %c42_138 = arith.constant 42 : index
    %c384_139 = arith.constant 384 : index
    %83 = vector.load %arg6[%c42_138, %c384_139] : memref<49x1152xf32, #tpu.memory_space<vmem>>, vector<7x128xf32>
    tpu.vector_store %arg6[%c42_138, %c384_139], %82 {strides = array<i32>} : memref<49x1152xf32, #tpu.memory_space<vmem>>, vector<7x128xf32>,
    %c0_140 = arith.constant 0 : index
    %c24 = arith.constant 24 : index
    %c0_141 = arith.constant 0 : index
    %c0_142 = arith.constant 0 : index
    %84 = vector.load %arg2[%c0_140, %c24, %c0_141, %c0_142] : memref<1x32x8x128xf32, #tpu.memory_space<vmem>>, vector<1x1x7x128xf32>
    %85 = vector.shape_cast %84 : vector<1x1x7x128xf32> to vector<7x128xf32>
    %c0_143 = arith.constant 0 : index
    %c512 = arith.constant 512 : index
    %86 = vector.load %arg6[%c0_143, %c512] : memref<49x1152xf32, #tpu.memory_space<vmem>>, vector<7x128xf32>
    tpu.vector_store %arg6[%c0_143, %c512], %85 {strides = array<i32>} : memref<49x1152xf32, #tpu.memory_space<vmem>>, vector<7x128xf32>,
    %c0_144 = arith.constant 0 : index
    %c25 = arith.constant 25 : index
    %c0_145 = arith.constant 0 : index
    %c0_146 = arith.constant 0 : index
    %87 = vector.load %arg2[%c0_144, %c25, %c0_145, %c0_146] : memref<1x32x8x128xf32, #tpu.memory_space<vmem>>, vector<1x1x7x128xf32>
    %88 = vector.shape_cast %87 : vector<1x1x7x128xf32> to vector<7x128xf32>
    %c7_147 = arith.constant 7 : index
    %c512_148 = arith.constant 512 : index
    %89 = vector.load %arg6[%c7_147, %c512_148] : memref<49x1152xf32, #tpu.memory_space<vmem>>, vector<7x128xf32>
    tpu.vector_store %arg6[%c7_147, %c512_148], %88 {strides = array<i32>} : memref<49x1152xf32, #tpu.memory_space<vmem>>, vector<7x128xf32>,
    %c0_149 = arith.constant 0 : index
    %c26 = arith.constant 26 : index
    %c0_150 = arith.constant 0 : index
    %c0_151 = arith.constant 0 : index
    %90 = vector.load %arg2[%c0_149, %c26, %c0_150, %c0_151] : memref<1x32x8x128xf32, #tpu.memory_space<vmem>>, vector<1x1x7x128xf32>
    %91 = vector.shape_cast %90 : vector<1x1x7x128xf32> to vector<7x128xf32>
    %c14_152 = arith.constant 14 : index
    %c512_153 = arith.constant 512 : index
    %92 = vector.load %arg6[%c14_152, %c512_153] : memref<49x1152xf32, #tpu.memory_space<vmem>>, vector<7x128xf32>
    tpu.vector_store %arg6[%c14_152, %c512_153], %91 {strides = array<i32>} : memref<49x1152xf32, #tpu.memory_space<vmem>>, vector<7x128xf32>,
    %c0_154 = arith.constant 0 : index
    %c27 = arith.constant 27 : index
    %c0_155 = arith.constant 0 : index
    %c0_156 = arith.constant 0 : index
    %93 = vector.load %arg2[%c0_154, %c27, %c0_155, %c0_156] : memref<1x32x8x128xf32, #tpu.memory_space<vmem>>, vector<1x1x7x128xf32>
    %94 = vector.shape_cast %93 : vector<1x1x7x128xf32> to vector<7x128xf32>
    %c21_157 = arith.constant 21 : index
    %c512_158 = arith.constant 512 : index
    %95 = vector.load %arg6[%c21_157, %c512_158] : memref<49x1152xf32, #tpu.memory_space<vmem>>, vector<7x128xf32>
    tpu.vector_store %arg6[%c21_157, %c512_158], %94 {strides = array<i32>} : memref<49x1152xf32, #tpu.memory_space<vmem>>, vector<7x128xf32>,
    %c0_159 = arith.constant 0 : index
    %c28_160 = arith.constant 28 : index
    %c0_161 = arith.constant 0 : index
    %c0_162 = arith.constant 0 : index
    %96 = vector.load %arg2[%c0_159, %c28_160, %c0_161, %c0_162] : memref<1x32x8x128xf32, #tpu.memory_space<vmem>>, vector<1x1x7x128xf32>
    %97 = vector.shape_cast %96 : vector<1x1x7x128xf32> to vector<7x128xf32>
    %c28_163 = arith.constant 28 : index
    %c512_164 = arith.constant 512 : index
    %98 = vector.load %arg6[%c28_163, %c512_164] : memref<49x1152xf32, #tpu.memory_space<vmem>>, vector<7x128xf32>
    tpu.vector_store %arg6[%c28_163, %c512_164], %97 {strides = array<i32>} : memref<49x1152xf32, #tpu.memory_space<vmem>>, vector<7x128xf32>,
    %c0_165 = arith.constant 0 : index
    %c29 = arith.constant 29 : index
    %c0_166 = arith.constant 0 : index
    %c0_167 = arith.constant 0 : index
    %99 = vector.load %arg2[%c0_165, %c29, %c0_166, %c0_167] : memref<1x32x8x128xf32, #tpu.memory_space<vmem>>, vector<1x1x7x128xf32>
    %100 = vector.shape_cast %99 : vector<1x1x7x128xf32> to vector<7x128xf32>
    %c35_168 = arith.constant 35 : index
    %c512_169 = arith.constant 512 : index
    %101 = vector.load %arg6[%c35_168, %c512_169] : memref<49x1152xf32, #tpu.memory_space<vmem>>, vector<7x128xf32>
    tpu.vector_store %arg6[%c35_168, %c512_169], %100 {strides = array<i32>} : memref<49x1152xf32, #tpu.memory_space<vmem>>, vector<7x128xf32>,
    %c0_170 = arith.constant 0 : index
    %c30 = arith.constant 30 : index
    %c0_171 = arith.constant 0 : index
    %c0_172 = arith.constant 0 : index
    %102 = vector.load %arg2[%c0_170, %c30, %c0_171, %c0_172] : memref<1x32x8x128xf32, #tpu.memory_space<vmem>>, vector<1x1x7x128xf32>
    %103 = vector.shape_cast %102 : vector<1x1x7x128xf32> to vector<7x128xf32>
    %c42_173 = arith.constant 42 : index
    %c512_174 = arith.constant 512 : index
    %104 = vector.load %arg6[%c42_173, %c512_174] : memref<49x1152xf32, #tpu.memory_space<vmem>>, vector<7x128xf32>
    tpu.vector_store %arg6[%c42_173, %c512_174], %103 {strides = array<i32>} : memref<49x1152xf32, #tpu.memory_space<vmem>>, vector<7x128xf32>,
    %c0_175 = arith.constant 0 : index
    %c16_176 = arith.constant 16 : index
    %c1_177 = arith.constant 1 : index
    %c0_178 = arith.constant 0 : index
    %105 = vector.load %arg2[%c0_175, %c16_176, %c1_177, %c0_178] : memref<1x32x8x128xf32, #tpu.memory_space<vmem>>, vector<1x1x7x128xf32>
    %106 = vector.shape_cast %105 : vector<1x1x7x128xf32> to vector<7x128xf32>
    %c0_179 = arith.constant 0 : index
    %c640 = arith.constant 640 : index
    %107 = vector.load %arg6[%c0_179, %c640] : memref<49x1152xf32, #tpu.memory_space<vmem>>, vector<7x128xf32>
    tpu.vector_store %arg6[%c0_179, %c640], %106 {strides = array<i32>} : memref<49x1152xf32, #tpu.memory_space<vmem>>, vector<7x128xf32>,
    %c0_180 = arith.constant 0 : index
    %c17_181 = arith.constant 17 : index
    %c1_182 = arith.constant 1 : index
    %c0_183 = arith.constant 0 : index
    %108 = vector.load %arg2[%c0_180, %c17_181, %c1_182, %c0_183] : memref<1x32x8x128xf32, #tpu.memory_space<vmem>>, vector<1x1x7x128xf32>
    %109 = vector.shape_cast %108 : vector<1x1x7x128xf32> to vector<7x128xf32>
    %c7_184 = arith.constant 7 : index
    %c640_185 = arith.constant 640 : index
    %110 = vector.load %arg6[%c7_184, %c640_185] : memref<49x1152xf32, #tpu.memory_space<vmem>>, vector<7x128xf32>
    tpu.vector_store %arg6[%c7_184, %c640_185], %109 {strides = array<i32>} : memref<49x1152xf32, #tpu.memory_space<vmem>>, vector<7x128xf32>,
    %c0_186 = arith.constant 0 : index
    %c18_187 = arith.constant 18 : index
    %c1_188 = arith.constant 1 : index
    %c0_189 = arith.constant 0 : index
    %111 = vector.load %arg2[%c0_186, %c18_187, %c1_188, %c0_189] : memref<1x32x8x128xf32, #tpu.memory_space<vmem>>, vector<1x1x7x128xf32>
    %112 = vector.shape_cast %111 : vector<1x1x7x128xf32> to vector<7x128xf32>
    %c14_190 = arith.constant 14 : index
    %c640_191 = arith.constant 640 : index
    %113 = vector.load %arg6[%c14_190, %c640_191] : memref<49x1152xf32, #tpu.memory_space<vmem>>, vector<7x128xf32>
    tpu.vector_store %arg6[%c14_190, %c640_191], %112 {strides = array<i32>} : memref<49x1152xf32, #tpu.memory_space<vmem>>, vector<7x128xf32>,
    %c0_192 = arith.constant 0 : index
    %c19_193 = arith.constant 19 : index
    %c1_194 = arith.constant 1 : index
    %c0_195 = arith.constant 0 : index
    %114 = vector.load %arg2[%c0_192, %c19_193, %c1_194, %c0_195] : memref<1x32x8x128xf32, #tpu.memory_space<vmem>>, vector<1x1x7x128xf32>
    %115 = vector.shape_cast %114 : vector<1x1x7x128xf32> to vector<7x128xf32>
    %c21_196 = arith.constant 21 : index
    %c640_197 = arith.constant 640 : index
    %116 = vector.load %arg6[%c21_196, %c640_197] : memref<49x1152xf32, #tpu.memory_space<vmem>>, vector<7x128xf32>
    tpu.vector_store %arg6[%c21_196, %c640_197], %115 {strides = array<i32>} : memref<49x1152xf32, #tpu.memory_space<vmem>>, vector<7x128xf32>,
    %c0_198 = arith.constant 0 : index
    %c20_199 = arith.constant 20 : index
    %c1_200 = arith.constant 1 : index
    %c0_201 = arith.constant 0 : index
    %117 = vector.load %arg2[%c0_198, %c20_199, %c1_200, %c0_201] : memref<1x32x8x128xf32, #tpu.memory_space<vmem>>, vector<1x1x7x128xf32>
    %118 = vector.shape_cast %117 : vector<1x1x7x128xf32> to vector<7x128xf32>
    %c28_202 = arith.constant 28 : index
    %c640_203 = arith.constant 640 : index
    %119 = vector.load %arg6[%c28_202, %c640_203] : memref<49x1152xf32, #tpu.memory_space<vmem>>, vector<7x128xf32>
    tpu.vector_store %arg6[%c28_202, %c640_203], %118 {strides = array<i32>} : memref<49x1152xf32, #tpu.memory_space<vmem>>, vector<7x128xf32>,
    %c0_204 = arith.constant 0 : index
    %c21_205 = arith.constant 21 : index
    %c1_206 = arith.constant 1 : index
    %c0_207 = arith.constant 0 : index
    %120 = vector.load %arg2[%c0_204, %c21_205, %c1_206, %c0_207] : memref<1x32x8x128xf32, #tpu.memory_space<vmem>>, vector<1x1x7x128xf32>
    %121 = vector.shape_cast %120 : vector<1x1x7x128xf32> to vector<7x128xf32>
    %c35_208 = arith.constant 35 : index
    %c640_209 = arith.constant 640 : index
    %122 = vector.load %arg6[%c35_208, %c640_209] : memref<49x1152xf32, #tpu.memory_space<vmem>>, vector<7x128xf32>
    tpu.vector_store %arg6[%c35_208, %c640_209], %121 {strides = array<i32>} : memref<49x1152xf32, #tpu.memory_space<vmem>>, vector<7x128xf32>,
    %c0_210 = arith.constant 0 : index
    %c22_211 = arith.constant 22 : index
    %c1_212 = arith.constant 1 : index
    %c0_213 = arith.constant 0 : index
    %123 = vector.load %arg2[%c0_210, %c22_211, %c1_212, %c0_213] : memref<1x32x8x128xf32, #tpu.memory_space<vmem>>, vector<1x1x7x128xf32>
    %124 = vector.shape_cast %123 : vector<1x1x7x128xf32> to vector<7x128xf32>
    %c42_214 = arith.constant 42 : index
    %c640_215 = arith.constant 640 : index
    %125 = vector.load %arg6[%c42_214, %c640_215] : memref<49x1152xf32, #tpu.memory_space<vmem>>, vector<7x128xf32>
    tpu.vector_store %arg6[%c42_214, %c640_215], %124 {strides = array<i32>} : memref<49x1152xf32, #tpu.memory_space<vmem>>, vector<7x128xf32>,
    %c0_216 = arith.constant 0 : index
    %c1_217 = arith.constant 1 : index
    %c0_218 = arith.constant 0 : index
    %c0_219 = arith.constant 0 : index
    %126 = vector.load %arg2[%c0_216, %c1_217, %c0_218, %c0_219] : memref<1x32x8x128xf32, #tpu.memory_space<vmem>>, vector<1x1x7x128xf32>
    %127 = vector.shape_cast %126 : vector<1x1x7x128xf32> to vector<7x128xf32>
    %c0_220 = arith.constant 0 : index
    %c768 = arith.constant 768 : index
    %128 = vector.load %arg6[%c0_220, %c768] : memref<49x1152xf32, #tpu.memory_space<vmem>>, vector<7x128xf32>
    tpu.vector_store %arg6[%c0_220, %c768], %127 {strides = array<i32>} : memref<49x1152xf32, #tpu.memory_space<vmem>>, vector<7x128xf32>,
    %c0_221 = arith.constant 0 : index
    %c2_222 = arith.constant 2 : index
    %c0_223 = arith.constant 0 : index
    %c0_224 = arith.constant 0 : index
    %129 = vector.load %arg2[%c0_221, %c2_222, %c0_223, %c0_224] : memref<1x32x8x128xf32, #tpu.memory_space<vmem>>, vector<1x1x7x128xf32>
    %130 = vector.shape_cast %129 : vector<1x1x7x128xf32> to vector<7x128xf32>
    %c7_225 = arith.constant 7 : index
    %c768_226 = arith.constant 768 : index
    %131 = vector.load %arg6[%c7_225, %c768_226] : memref<49x1152xf32, #tpu.memory_space<vmem>>, vector<7x128xf32>
    tpu.vector_store %arg6[%c7_225, %c768_226], %130 {strides = array<i32>} : memref<49x1152xf32, #tpu.memory_space<vmem>>, vector<7x128xf32>,
    %c0_227 = arith.constant 0 : index
    %c3_228 = arith.constant 3 : index
    %c0_229 = arith.constant 0 : index
    %c0_230 = arith.constant 0 : index
    %132 = vector.load %arg2[%c0_227, %c3_228, %c0_229, %c0_230] : memref<1x32x8x128xf32, #tpu.memory_space<vmem>>, vector<1x1x7x128xf32>
    %133 = vector.shape_cast %132 : vector<1x1x7x128xf32> to vector<7x128xf32>
    %c14_231 = arith.constant 14 : index
    %c768_232 = arith.constant 768 : index
    %134 = vector.load %arg6[%c14_231, %c768_232] : memref<49x1152xf32, #tpu.memory_space<vmem>>, vector<7x128xf32>
    tpu.vector_store %arg6[%c14_231, %c768_232], %133 {strides = array<i32>} : memref<49x1152xf32, #tpu.memory_space<vmem>>, vector<7x128xf32>,
    %c0_233 = arith.constant 0 : index
    %c4_234 = arith.constant 4 : index
    %c0_235 = arith.constant 0 : index
    %c0_236 = arith.constant 0 : index
    %135 = vector.load %arg2[%c0_233, %c4_234, %c0_235, %c0_236] : memref<1x32x8x128xf32, #tpu.memory_space<vmem>>, vector<1x1x7x128xf32>
    %136 = vector.shape_cast %135 : vector<1x1x7x128xf32> to vector<7x128xf32>
    %c21_237 = arith.constant 21 : index
    %c768_238 = arith.constant 768 : index
    %137 = vector.load %arg6[%c21_237, %c768_238] : memref<49x1152xf32, #tpu.memory_space<vmem>>, vector<7x128xf32>
    tpu.vector_store %arg6[%c21_237, %c768_238], %136 {strides = array<i32>} : memref<49x1152xf32, #tpu.memory_space<vmem>>, vector<7x128xf32>,
    %c0_239 = arith.constant 0 : index
    %c5_240 = arith.constant 5 : index
    %c0_241 = arith.constant 0 : index
    %c0_242 = arith.constant 0 : index
    %138 = vector.load %arg2[%c0_239, %c5_240, %c0_241, %c0_242] : memref<1x32x8x128xf32, #tpu.memory_space<vmem>>, vector<1x1x7x128xf32>
    %139 = vector.shape_cast %138 : vector<1x1x7x128xf32> to vector<7x128xf32>
    %c28_243 = arith.constant 28 : index
    %c768_244 = arith.constant 768 : index
    %140 = vector.load %arg6[%c28_243, %c768_244] : memref<49x1152xf32, #tpu.memory_space<vmem>>, vector<7x128xf32>
    tpu.vector_store %arg6[%c28_243, %c768_244], %139 {strides = array<i32>} : memref<49x1152xf32, #tpu.memory_space<vmem>>, vector<7x128xf32>,
    %c0_245 = arith.constant 0 : index
    %c6_246 = arith.constant 6 : index
    %c0_247 = arith.constant 0 : index
    %c0_248 = arith.constant 0 : index
    %141 = vector.load %arg2[%c0_245, %c6_246, %c0_247, %c0_248] : memref<1x32x8x128xf32, #tpu.memory_space<vmem>>, vector<1x1x7x128xf32>
    %142 = vector.shape_cast %141 : vector<1x1x7x128xf32> to vector<7x128xf32>
    %c35_249 = arith.constant 35 : index
    %c768_250 = arith.constant 768 : index
    %143 = vector.load %arg6[%c35_249, %c768_250] : memref<49x1152xf32, #tpu.memory_space<vmem>>, vector<7x128xf32>
    tpu.vector_store %arg6[%c35_249, %c768_250], %142 {strides = array<i32>} : memref<49x1152xf32, #tpu.memory_space<vmem>>, vector<7x128xf32>,
    %c0_251 = arith.constant 0 : index
    %c7_252 = arith.constant 7 : index
    %c0_253 = arith.constant 0 : index
    %c0_254 = arith.constant 0 : index
    %144 = vector.load %arg2[%c0_251, %c7_252, %c0_253, %c0_254] : memref<1x32x8x128xf32, #tpu.memory_space<vmem>>, vector<1x1x7x128xf32>
    %145 = vector.shape_cast %144 : vector<1x1x7x128xf32> to vector<7x128xf32>
    %c42_255 = arith.constant 42 : index
    %c768_256 = arith.constant 768 : index
    %146 = vector.load %arg6[%c42_255, %c768_256] : memref<49x1152xf32, #tpu.memory_space<vmem>>, vector<7x128xf32>
    tpu.vector_store %arg6[%c42_255, %c768_256], %145 {strides = array<i32>} : memref<49x1152xf32, #tpu.memory_space<vmem>>, vector<7x128xf32>,
    %c0_257 = arith.constant 0 : index
    %c9_258 = arith.constant 9 : index
    %c0_259 = arith.constant 0 : index
    %c0_260 = arith.constant 0 : index
    %147 = vector.load %arg2[%c0_257, %c9_258, %c0_259, %c0_260] : memref<1x32x8x128xf32, #tpu.memory_space<vmem>>, vector<1x1x7x128xf32>
    %148 = vector.shape_cast %147 : vector<1x1x7x128xf32> to vector<7x128xf32>
    %c0_261 = arith.constant 0 : index
    %c896 = arith.constant 896 : index
    %149 = vector.load %arg6[%c0_261, %c896] : memref<49x1152xf32, #tpu.memory_space<vmem>>, vector<7x128xf32>
    tpu.vector_store %arg6[%c0_261, %c896], %148 {strides = array<i32>} : memref<49x1152xf32, #tpu.memory_space<vmem>>, vector<7x128xf32>,
    %c0_262 = arith.constant 0 : index
    %c10_263 = arith.constant 10 : index
    %c0_264 = arith.constant 0 : index
    %c0_265 = arith.constant 0 : index
    %150 = vector.load %arg2[%c0_262, %c10_263, %c0_264, %c0_265] : memref<1x32x8x128xf32, #tpu.memory_space<vmem>>, vector<1x1x7x128xf32>
    %151 = vector.shape_cast %150 : vector<1x1x7x128xf32> to vector<7x128xf32>
    %c7_266 = arith.constant 7 : index
    %c896_267 = arith.constant 896 : index
    %152 = vector.load %arg6[%c7_266, %c896_267] : memref<49x1152xf32, #tpu.memory_space<vmem>>, vector<7x128xf32>
    tpu.vector_store %arg6[%c7_266, %c896_267], %151 {strides = array<i32>} : memref<49x1152xf32, #tpu.memory_space<vmem>>, vector<7x128xf32>,
    %c0_268 = arith.constant 0 : index
    %c11_269 = arith.constant 11 : index
    %c0_270 = arith.constant 0 : index
    %c0_271 = arith.constant 0 : index
    %153 = vector.load %arg2[%c0_268, %c11_269, %c0_270, %c0_271] : memref<1x32x8x128xf32, #tpu.memory_space<vmem>>, vector<1x1x7x128xf32>
    %154 = vector.shape_cast %153 : vector<1x1x7x128xf32> to vector<7x128xf32>
    %c14_272 = arith.constant 14 : index
    %c896_273 = arith.constant 896 : index
    %155 = vector.load %arg6[%c14_272, %c896_273] : memref<49x1152xf32, #tpu.memory_space<vmem>>, vector<7x128xf32>
    tpu.vector_store %arg6[%c14_272, %c896_273], %154 {strides = array<i32>} : memref<49x1152xf32, #tpu.memory_space<vmem>>, vector<7x128xf32>,
    %c0_274 = arith.constant 0 : index
    %c12_275 = arith.constant 12 : index
    %c0_276 = arith.constant 0 : index
    %c0_277 = arith.constant 0 : index
    %156 = vector.load %arg2[%c0_274, %c12_275, %c0_276, %c0_277] : memref<1x32x8x128xf32, #tpu.memory_space<vmem>>, vector<1x1x7x128xf32>
    %157 = vector.shape_cast %156 : vector<1x1x7x128xf32> to vector<7x128xf32>
    %c21_278 = arith.constant 21 : index
    %c896_279 = arith.constant 896 : index
    %158 = vector.load %arg6[%c21_278, %c896_279] : memref<49x1152xf32, #tpu.memory_space<vmem>>, vector<7x128xf32>
    tpu.vector_store %arg6[%c21_278, %c896_279], %157 {strides = array<i32>} : memref<49x1152xf32, #tpu.memory_space<vmem>>, vector<7x128xf32>,
    %c0_280 = arith.constant 0 : index
    %c13_281 = arith.constant 13 : index
    %c0_282 = arith.constant 0 : index
    %c0_283 = arith.constant 0 : index
    %159 = vector.load %arg2[%c0_280, %c13_281, %c0_282, %c0_283] : memref<1x32x8x128xf32, #tpu.memory_space<vmem>>, vector<1x1x7x128xf32>
    %160 = vector.shape_cast %159 : vector<1x1x7x128xf32> to vector<7x128xf32>
    %c28_284 = arith.constant 28 : index
    %c896_285 = arith.constant 896 : index
    %161 = vector.load %arg6[%c28_284, %c896_285] : memref<49x1152xf32, #tpu.memory_space<vmem>>, vector<7x128xf32>
    tpu.vector_store %arg6[%c28_284, %c896_285], %160 {strides = array<i32>} : memref<49x1152xf32, #tpu.memory_space<vmem>>, vector<7x128xf32>,
    %c0_286 = arith.constant 0 : index
    %c14_287 = arith.constant 14 : index
    %c0_288 = arith.constant 0 : index
    %c0_289 = arith.constant 0 : index
    %162 = vector.load %arg2[%c0_286, %c14_287, %c0_288, %c0_289] : memref<1x32x8x128xf32, #tpu.memory_space<vmem>>, vector<1x1x7x128xf32>
    %163 = vector.shape_cast %162 : vector<1x1x7x128xf32> to vector<7x128xf32>
    %c35_290 = arith.constant 35 : index
    %c896_291 = arith.constant 896 : index
    %164 = vector.load %arg6[%c35_290, %c896_291] : memref<49x1152xf32, #tpu.memory_space<vmem>>, vector<7x128xf32>
    tpu.vector_store %arg6[%c35_290, %c896_291], %163 {strides = array<i32>} : memref<49x1152xf32, #tpu.memory_space<vmem>>, vector<7x128xf32>,
    %c0_292 = arith.constant 0 : index
    %c15 = arith.constant 15 : index
    %c0_293 = arith.constant 0 : index
    %c0_294 = arith.constant 0 : index
    %165 = vector.load %arg2[%c0_292, %c15, %c0_293, %c0_294] : memref<1x32x8x128xf32, #tpu.memory_space<vmem>>, vector<1x1x7x128xf32>
    %166 = vector.shape_cast %165 : vector<1x1x7x128xf32> to vector<7x128xf32>
    %c42_295 = arith.constant 42 : index
    %c896_296 = arith.constant 896 : index
    %167 = vector.load %arg6[%c42_295, %c896_296] : memref<49x1152xf32, #tpu.memory_space<vmem>>, vector<7x128xf32>
    tpu.vector_store %arg6[%c42_295, %c896_296], %166 {strides = array<i32>} : memref<49x1152xf32, #tpu.memory_space<vmem>>, vector<7x128xf32>,
    %c0_297 = arith.constant 0 : index
    %c1_298 = arith.constant 1 : index
    %c1_299 = arith.constant 1 : index
    %c0_300 = arith.constant 0 : index
    %168 = vector.load %arg2[%c0_297, %c1_298, %c1_299, %c0_300] : memref<1x32x8x128xf32, #tpu.memory_space<vmem>>, vector<1x1x7x128xf32>
    %169 = vector.shape_cast %168 : vector<1x1x7x128xf32> to vector<7x128xf32>
    %c0_301 = arith.constant 0 : index
    %c1024 = arith.constant 1024 : index
    %170 = vector.load %arg6[%c0_301, %c1024] : memref<49x1152xf32, #tpu.memory_space<vmem>>, vector<7x128xf32>
    tpu.vector_store %arg6[%c0_301, %c1024], %169 {strides = array<i32>} : memref<49x1152xf32, #tpu.memory_space<vmem>>, vector<7x128xf32>,
    %c0_302 = arith.constant 0 : index
    %c2_303 = arith.constant 2 : index
    %c1_304 = arith.constant 1 : index
    %c0_305 = arith.constant 0 : index
    %171 = vector.load %arg2[%c0_302, %c2_303, %c1_304, %c0_305] : memref<1x32x8x128xf32, #tpu.memory_space<vmem>>, vector<1x1x7x128xf32>
    %172 = vector.shape_cast %171 : vector<1x1x7x128xf32> to vector<7x128xf32>
    %c7_306 = arith.constant 7 : index
    %c1024_307 = arith.constant 1024 : index
    %173 = vector.load %arg6[%c7_306, %c1024_307] : memref<49x1152xf32, #tpu.memory_space<vmem>>, vector<7x128xf32>
    tpu.vector_store %arg6[%c7_306, %c1024_307], %172 {strides = array<i32>} : memref<49x1152xf32, #tpu.memory_space<vmem>>, vector<7x128xf32>,
    %c0_308 = arith.constant 0 : index
    %c3_309 = arith.constant 3 : index
    %c1_310 = arith.constant 1 : index
    %c0_311 = arith.constant 0 : index
    %174 = vector.load %arg2[%c0_308, %c3_309, %c1_310, %c0_311] : memref<1x32x8x128xf32, #tpu.memory_space<vmem>>, vector<1x1x7x128xf32>
    %175 = vector.shape_cast %174 : vector<1x1x7x128xf32> to vector<7x128xf32>
    %c14_312 = arith.constant 14 : index
    %c1024_313 = arith.constant 1024 : index
    %176 = vector.load %arg6[%c14_312, %c1024_313] : memref<49x1152xf32, #tpu.memory_space<vmem>>, vector<7x128xf32>
    tpu.vector_store %arg6[%c14_312, %c1024_313], %175 {strides = array<i32>} : memref<49x1152xf32, #tpu.memory_space<vmem>>, vector<7x128xf32>,
    %c0_314 = arith.constant 0 : index
    %c4_315 = arith.constant 4 : index
    %c1_316 = arith.constant 1 : index
    %c0_317 = arith.constant 0 : index
    %177 = vector.load %arg2[%c0_314, %c4_315, %c1_316, %c0_317] : memref<1x32x8x128xf32, #tpu.memory_space<vmem>>, vector<1x1x7x128xf32>
    %178 = vector.shape_cast %177 : vector<1x1x7x128xf32> to vector<7x128xf32>
    %c21_318 = arith.constant 21 : index
    %c1024_319 = arith.constant 1024 : index
    %179 = vector.load %arg6[%c21_318, %c1024_319] : memref<49x1152xf32, #tpu.memory_space<vmem>>, vector<7x128xf32>
    tpu.vector_store %arg6[%c21_318, %c1024_319], %178 {strides = array<i32>} : memref<49x1152xf32, #tpu.memory_space<vmem>>, vector<7x128xf32>,
    %c0_320 = arith.constant 0 : index
    %c5_321 = arith.constant 5 : index
    %c1_322 = arith.constant 1 : index
    %c0_323 = arith.constant 0 : index
    %180 = vector.load %arg2[%c0_320, %c5_321, %c1_322, %c0_323] : memref<1x32x8x128xf32, #tpu.memory_space<vmem>>, vector<1x1x7x128xf32>
    %181 = vector.shape_cast %180 : vector<1x1x7x128xf32> to vector<7x128xf32>
    %c28_324 = arith.constant 28 : index
    %c1024_325 = arith.constant 1024 : index
    %182 = vector.load %arg6[%c28_324, %c1024_325] : memref<49x1152xf32, #tpu.memory_space<vmem>>, vector<7x128xf32>
    tpu.vector_store %arg6[%c28_324, %c1024_325], %181 {strides = array<i32>} : memref<49x1152xf32, #tpu.memory_space<vmem>>, vector<7x128xf32>,
    %c0_326 = arith.constant 0 : index
    %c6_327 = arith.constant 6 : index
    %c1_328 = arith.constant 1 : index
    %c0_329 = arith.constant 0 : index
    %183 = vector.load %arg2[%c0_326, %c6_327, %c1_328, %c0_329] : memref<1x32x8x128xf32, #tpu.memory_space<vmem>>, vector<1x1x7x128xf32>
    %184 = vector.shape_cast %183 : vector<1x1x7x128xf32> to vector<7x128xf32>
    %c35_330 = arith.constant 35 : index
    %c1024_331 = arith.constant 1024 : index
    %185 = vector.load %arg6[%c35_330, %c1024_331] : memref<49x1152xf32, #tpu.memory_space<vmem>>, vector<7x128xf32>
    tpu.vector_store %arg6[%c35_330, %c1024_331], %184 {strides = array<i32>} : memref<49x1152xf32, #tpu.memory_space<vmem>>, vector<7x128xf32>,
    %c0_332 = arith.constant 0 : index
    %c7_333 = arith.constant 7 : index
    %c1_334 = arith.constant 1 : index
    %c0_335 = arith.constant 0 : index
    %186 = vector.load %arg2[%c0_332, %c7_333, %c1_334, %c0_335] : memref<1x32x8x128xf32, #tpu.memory_space<vmem>>, vector<1x1x7x128xf32>
    %187 = vector.shape_cast %186 : vector<1x1x7x128xf32> to vector<7x128xf32>
    %c42_336 = arith.constant 42 : index
    %c1024_337 = arith.constant 1024 : index
    %188 = vector.load %arg6[%c42_336, %c1024_337] : memref<49x1152xf32, #tpu.memory_space<vmem>>, vector<7x128xf32>
    tpu.vector_store %arg6[%c42_336, %c1024_337], %187 {strides = array<i32>} : memref<49x1152xf32, #tpu.memory_space<vmem>>, vector<7x128xf32>,
    %c0_338 = arith.constant 0 : index
    %c0_339 = arith.constant 0 : index
    %189 = vector.load %arg6[%c0_338, %c0_339] : memref<49x1152xf32, #tpu.memory_space<vmem>>, vector<49x1152xf32>
    %190 = arith.truncf %189 : vector<49x1152xf32> to vector<49x1152xbf16>
    %c0_340 = arith.constant 0 : index
    %c0_341 = arith.constant 0 : index
    %191 = vector.load %arg3[%c0_340, %c0_341] : memref<1152x128xbf16, #tpu.memory_space<vmem>>, vector<1152x128xbf16>
    %cst = arith.constant dense<0.000000e+00> : vector<49x128xf32>
    %192 = tpu.matmul %190, %191, %cst {dimension_numbers = #tpu.dot_dimension_numbers<[1], [0], [0], [1], [0, 0, 1, 1], [], []>} : vector<49x1152xbf16>, vector<1152x128xbf16>, vector<49x128xf32> -> vector<49x128xf32>
    %c0_342 = arith.constant 0 : index
    %c0_343 = arith.constant 0 : index
    %193 = vector.load %arg4[%c0_342, %c0_343] : memref<1x128xf32, #tpu.memory_space<vmem>>, vector<1x128xf32>
    %194 = vector.broadcast %193 : vector<1x128xf32> to vector<49x128xf32>
    %195 = arith.addf %192, %194 : vector<49x128xf32>
    %cst_344 = arith.constant 0.000000e+00 : f32
    %196 = vector.broadcast %cst_344 : f32 to vector<49x128xf32>
    %197 = arith.cmpf ogt, %195, %196 : vector<49x128xf32>
    %cst_345 = arith.constant 1.000000e-01 : f32
    %198 = vector.broadcast %cst_345 : f32 to vector<49x128xf32>
    %199 = arith.mulf %198, %195 : vector<49x128xf32>
    %200 = arith.select %197, %195, %199 : vector<49x128xi1>, vector<49x128xf32>
    %c0_346 = arith.constant 0 : index
    %c0_347 = arith.constant 0 : index
    %c0_348 = arith.constant 0 : index
    %201 = vector.load %arg5[%c0_346, %c0_347, %c0_348] : memref<1x49x128xf32, #tpu.memory_space<vmem>>, vector<1x49x128xf32>
    %202 = vector.shape_cast %201 : vector<1x49x128xf32> to vector<49x128xf32>
    %203 = vector.shape_cast %200 : vector<49x128xf32> to vector<1x49x128xf32>
    tpu.vector_store %arg5[%c0_346, %c0_347, %c0_348], %203 {strides = array<i32>} : memref<1x49x128xf32, #tpu.memory_space<vmem>>, vector<1x49x128xf32>,
    return
  }
  func.func @transform_0(%arg0: i32, %arg1: i32) -> (i32, i32, i32, i32) {
    %c0_i32 = arith.constant 0 : i32
    %c0_i32_0 = arith.constant 0 : i32
    %c0_i32_1 = arith.constant 0 : i32
    %c0_i32_2 = arith.constant 0 : i32
    return %arg0, %c0_i32, %c0_i32_0, %c0_i32_1 : i32, i32, i32, i32
  }
  func.func @transform_1(%arg0: i32, %arg1: i32) -> (i32, i32) {
    %c0_i32 = arith.constant 0 : i32
    %c0_i32_0 = arith.constant 0 : i32
    return %c0_i32, %arg1 : i32, i32
  }
  func.func @transform_2(%arg0: i32, %arg1: i32) -> (i32, i32) {
    %c0_i32 = arith.constant 0 : i32
    %c0_i32_0 = arith.constant 0 : i32
    return %c0_i32, %arg1 : i32, i32
  }
  func.func @transform_3(%arg0: i32, %arg1: i32) -> (i32, i32, i32) {
    %c0_i32 = arith.constant 0 : i32
    %c0_i32_0 = arith.constant 0 : i32
    return %arg0, %c0_i32, %arg1 : i32, i32, i32
  }
}

module attributes {stable_mosaic.version = 11 : i64} {
  func.func @_conv3x3_leaky_kernel(%arg0: i32, %arg1: i32, %arg2: memref<1x9x9x128xf32, #tpu.memory_space<vmem>>, %arg3: memref<1152x128xbf16, #tpu.memory_space<vmem>>, %arg4: memref<1x128xf32, #tpu.memory_space<vmem>>, %arg5: memref<1x49x128xf32, #tpu.memory_space<vmem>>, %arg6: memref<49x1152xf32, #tpu.memory_space<vmem>>) attributes {dimension_semantics = [#tpu.dimension_semantics<parallel>, #tpu.dimension_semantics<parallel>], iteration_bounds = array<i64: 2, 1>, scalar_prefetch = 0 : i64, scratch_operands = 1 : i64, tpu.core_type = #tpu.core_type<tc>, window_params = [{transform_indices = @transform_0, window_bounds = array<i64: 1, 9, 9, 128>}, {transform_indices = @transform_1, window_bounds = array<i64: 1152, 128>}, {transform_indices = @transform_2, window_bounds = array<i64: 1, 128>}, {transform_indices = @transform_3, window_bounds = array<i64: 1, 49, 128>}]} {
    %c0 = arith.constant 0 : index
    %c0_0 = arith.constant 0 : index
    %c0_1 = arith.constant 0 : index
    %c0_2 = arith.constant 0 : index
    %0 = vector.load %arg2[%c0, %c0_0, %c0_1, %c0_2] : memref<1x9x9x128xf32, #tpu.memory_space<vmem>>, vector<1x1x7x128xf32>
    %1 = vector.shape_cast %0 : vector<1x1x7x128xf32> to vector<7x128xf32>
    %c0_3 = arith.constant 0 : index
    %c0_4 = arith.constant 0 : index
    %2 = vector.load %arg6[%c0_3, %c0_4] : memref<49x1152xf32, #tpu.memory_space<vmem>>, vector<7x128xf32>
    tpu.vector_store %arg6[%c0_3, %c0_4], %1 {strides = array<i32>} : memref<49x1152xf32, #tpu.memory_space<vmem>>, vector<7x128xf32>,
    %c0_5 = arith.constant 0 : index
    %c1 = arith.constant 1 : index
    %c0_6 = arith.constant 0 : index
    %c0_7 = arith.constant 0 : index
    %3 = vector.load %arg2[%c0_5, %c1, %c0_6, %c0_7] : memref<1x9x9x128xf32, #tpu.memory_space<vmem>>, vector<1x1x7x128xf32>
    %4 = vector.shape_cast %3 : vector<1x1x7x128xf32> to vector<7x128xf32>
    %c7 = arith.constant 7 : index
    %c0_8 = arith.constant 0 : index
    %5 = vector.load %arg6[%c7, %c0_8] : memref<49x1152xf32, #tpu.memory_space<vmem>>, vector<7x128xf32>
    tpu.vector_store %arg6[%c7, %c0_8], %4 {strides = array<i32>} : memref<49x1152xf32, #tpu.memory_space<vmem>>, vector<7x128xf32>,
    %c0_9 = arith.constant 0 : index
    %c2 = arith.constant 2 : index
    %c0_10 = arith.constant 0 : index
    %c0_11 = arith.constant 0 : index
    %6 = vector.load %arg2[%c0_9, %c2, %c0_10, %c0_11] : memref<1x9x9x128xf32, #tpu.memory_space<vmem>>, vector<1x1x7x128xf32>
    %7 = vector.shape_cast %6 : vector<1x1x7x128xf32> to vector<7x128xf32>
    %c14 = arith.constant 14 : index
    %c0_12 = arith.constant 0 : index
    %8 = vector.load %arg6[%c14, %c0_12] : memref<49x1152xf32, #tpu.memory_space<vmem>>, vector<7x128xf32>
    tpu.vector_store %arg6[%c14, %c0_12], %7 {strides = array<i32>} : memref<49x1152xf32, #tpu.memory_space<vmem>>, vector<7x128xf32>,
    %c0_13 = arith.constant 0 : index
    %c3 = arith.constant 3 : index
    %c0_14 = arith.constant 0 : index
    %c0_15 = arith.constant 0 : index
    %9 = vector.load %arg2[%c0_13, %c3, %c0_14, %c0_15] : memref<1x9x9x128xf32, #tpu.memory_space<vmem>>, vector<1x1x7x128xf32>
    %10 = vector.shape_cast %9 : vector<1x1x7x128xf32> to vector<7x128xf32>
    %c21 = arith.constant 21 : index
    %c0_16 = arith.constant 0 : index
    %11 = vector.load %arg6[%c21, %c0_16] : memref<49x1152xf32, #tpu.memory_space<vmem>>, vector<7x128xf32>
    tpu.vector_store %arg6[%c21, %c0_16], %10 {strides = array<i32>} : memref<49x1152xf32, #tpu.memory_space<vmem>>, vector<7x128xf32>,
    %c0_17 = arith.constant 0 : index
    %c4 = arith.constant 4 : index
    %c0_18 = arith.constant 0 : index
    %c0_19 = arith.constant 0 : index
    %12 = vector.load %arg2[%c0_17, %c4, %c0_18, %c0_19] : memref<1x9x9x128xf32, #tpu.memory_space<vmem>>, vector<1x1x7x128xf32>
    %13 = vector.shape_cast %12 : vector<1x1x7x128xf32> to vector<7x128xf32>
    %c28 = arith.constant 28 : index
    %c0_20 = arith.constant 0 : index
    %14 = vector.load %arg6[%c28, %c0_20] : memref<49x1152xf32, #tpu.memory_space<vmem>>, vector<7x128xf32>
    tpu.vector_store %arg6[%c28, %c0_20], %13 {strides = array<i32>} : memref<49x1152xf32, #tpu.memory_space<vmem>>, vector<7x128xf32>,
    %c0_21 = arith.constant 0 : index
    %c5 = arith.constant 5 : index
    %c0_22 = arith.constant 0 : index
    %c0_23 = arith.constant 0 : index
    %15 = vector.load %arg2[%c0_21, %c5, %c0_22, %c0_23] : memref<1x9x9x128xf32, #tpu.memory_space<vmem>>, vector<1x1x7x128xf32>
    %16 = vector.shape_cast %15 : vector<1x1x7x128xf32> to vector<7x128xf32>
    %c35 = arith.constant 35 : index
    %c0_24 = arith.constant 0 : index
    %17 = vector.load %arg6[%c35, %c0_24] : memref<49x1152xf32, #tpu.memory_space<vmem>>, vector<7x128xf32>
    tpu.vector_store %arg6[%c35, %c0_24], %16 {strides = array<i32>} : memref<49x1152xf32, #tpu.memory_space<vmem>>, vector<7x128xf32>,
    %c0_25 = arith.constant 0 : index
    %c6 = arith.constant 6 : index
    %c0_26 = arith.constant 0 : index
    %c0_27 = arith.constant 0 : index
    %18 = vector.load %arg2[%c0_25, %c6, %c0_26, %c0_27] : memref<1x9x9x128xf32, #tpu.memory_space<vmem>>, vector<1x1x7x128xf32>
    %19 = vector.shape_cast %18 : vector<1x1x7x128xf32> to vector<7x128xf32>
    %c42 = arith.constant 42 : index
    %c0_28 = arith.constant 0 : index
    %20 = vector.load %arg6[%c42, %c0_28] : memref<49x1152xf32, #tpu.memory_space<vmem>>, vector<7x128xf32>
    tpu.vector_store %arg6[%c42, %c0_28], %19 {strides = array<i32>} : memref<49x1152xf32, #tpu.memory_space<vmem>>, vector<7x128xf32>,
    %c0_29 = arith.constant 0 : index
    %c0_30 = arith.constant 0 : index
    %c1_31 = arith.constant 1 : index
    %c0_32 = arith.constant 0 : index
    %21 = vector.load %arg2[%c0_29, %c0_30, %c1_31, %c0_32] : memref<1x9x9x128xf32, #tpu.memory_space<vmem>>, vector<1x1x7x128xf32>
    %22 = vector.shape_cast %21 : vector<1x1x7x128xf32> to vector<7x128xf32>
    %c0_33 = arith.constant 0 : index
    %c128 = arith.constant 128 : index
    %23 = vector.load %arg6[%c0_33, %c128] : memref<49x1152xf32, #tpu.memory_space<vmem>>, vector<7x128xf32>
    tpu.vector_store %arg6[%c0_33, %c128], %22 {strides = array<i32>} : memref<49x1152xf32, #tpu.memory_space<vmem>>, vector<7x128xf32>,
    %c0_34 = arith.constant 0 : index
    %c1_35 = arith.constant 1 : index
    %c1_36 = arith.constant 1 : index
    %c0_37 = arith.constant 0 : index
    %24 = vector.load %arg2[%c0_34, %c1_35, %c1_36, %c0_37] : memref<1x9x9x128xf32, #tpu.memory_space<vmem>>, vector<1x1x7x128xf32>
    %25 = vector.shape_cast %24 : vector<1x1x7x128xf32> to vector<7x128xf32>
    %c7_38 = arith.constant 7 : index
    %c128_39 = arith.constant 128 : index
    %26 = vector.load %arg6[%c7_38, %c128_39] : memref<49x1152xf32, #tpu.memory_space<vmem>>, vector<7x128xf32>
    tpu.vector_store %arg6[%c7_38, %c128_39], %25 {strides = array<i32>} : memref<49x1152xf32, #tpu.memory_space<vmem>>, vector<7x128xf32>,
    %c0_40 = arith.constant 0 : index
    %c2_41 = arith.constant 2 : index
    %c1_42 = arith.constant 1 : index
    %c0_43 = arith.constant 0 : index
    %27 = vector.load %arg2[%c0_40, %c2_41, %c1_42, %c0_43] : memref<1x9x9x128xf32, #tpu.memory_space<vmem>>, vector<1x1x7x128xf32>
    %28 = vector.shape_cast %27 : vector<1x1x7x128xf32> to vector<7x128xf32>
    %c14_44 = arith.constant 14 : index
    %c128_45 = arith.constant 128 : index
    %29 = vector.load %arg6[%c14_44, %c128_45] : memref<49x1152xf32, #tpu.memory_space<vmem>>, vector<7x128xf32>
    tpu.vector_store %arg6[%c14_44, %c128_45], %28 {strides = array<i32>} : memref<49x1152xf32, #tpu.memory_space<vmem>>, vector<7x128xf32>,
    %c0_46 = arith.constant 0 : index
    %c3_47 = arith.constant 3 : index
    %c1_48 = arith.constant 1 : index
    %c0_49 = arith.constant 0 : index
    %30 = vector.load %arg2[%c0_46, %c3_47, %c1_48, %c0_49] : memref<1x9x9x128xf32, #tpu.memory_space<vmem>>, vector<1x1x7x128xf32>
    %31 = vector.shape_cast %30 : vector<1x1x7x128xf32> to vector<7x128xf32>
    %c21_50 = arith.constant 21 : index
    %c128_51 = arith.constant 128 : index
    %32 = vector.load %arg6[%c21_50, %c128_51] : memref<49x1152xf32, #tpu.memory_space<vmem>>, vector<7x128xf32>
    tpu.vector_store %arg6[%c21_50, %c128_51], %31 {strides = array<i32>} : memref<49x1152xf32, #tpu.memory_space<vmem>>, vector<7x128xf32>,
    %c0_52 = arith.constant 0 : index
    %c4_53 = arith.constant 4 : index
    %c1_54 = arith.constant 1 : index
    %c0_55 = arith.constant 0 : index
    %33 = vector.load %arg2[%c0_52, %c4_53, %c1_54, %c0_55] : memref<1x9x9x128xf32, #tpu.memory_space<vmem>>, vector<1x1x7x128xf32>
    %34 = vector.shape_cast %33 : vector<1x1x7x128xf32> to vector<7x128xf32>
    %c28_56 = arith.constant 28 : index
    %c128_57 = arith.constant 128 : index
    %35 = vector.load %arg6[%c28_56, %c128_57] : memref<49x1152xf32, #tpu.memory_space<vmem>>, vector<7x128xf32>
    tpu.vector_store %arg6[%c28_56, %c128_57], %34 {strides = array<i32>} : memref<49x1152xf32, #tpu.memory_space<vmem>>, vector<7x128xf32>,
    %c0_58 = arith.constant 0 : index
    %c5_59 = arith.constant 5 : index
    %c1_60 = arith.constant 1 : index
    %c0_61 = arith.constant 0 : index
    %36 = vector.load %arg2[%c0_58, %c5_59, %c1_60, %c0_61] : memref<1x9x9x128xf32, #tpu.memory_space<vmem>>, vector<1x1x7x128xf32>
    %37 = vector.shape_cast %36 : vector<1x1x7x128xf32> to vector<7x128xf32>
    %c35_62 = arith.constant 35 : index
    %c128_63 = arith.constant 128 : index
    %38 = vector.load %arg6[%c35_62, %c128_63] : memref<49x1152xf32, #tpu.memory_space<vmem>>, vector<7x128xf32>
    tpu.vector_store %arg6[%c35_62, %c128_63], %37 {strides = array<i32>} : memref<49x1152xf32, #tpu.memory_space<vmem>>, vector<7x128xf32>,
    %c0_64 = arith.constant 0 : index
    %c6_65 = arith.constant 6 : index
    %c1_66 = arith.constant 1 : index
    %c0_67 = arith.constant 0 : index
    %39 = vector.load %arg2[%c0_64, %c6_65, %c1_66, %c0_67] : memref<1x9x9x128xf32, #tpu.memory_space<vmem>>, vector<1x1x7x128xf32>
    %40 = vector.shape_cast %39 : vector<1x1x7x128xf32> to vector<7x128xf32>
    %c42_68 = arith.constant 42 : index
    %c128_69 = arith.constant 128 : index
    %41 = vector.load %arg6[%c42_68, %c128_69] : memref<49x1152xf32, #tpu.memory_space<vmem>>, vector<7x128xf32>
    tpu.vector_store %arg6[%c42_68, %c128_69], %40 {strides = array<i32>} : memref<49x1152xf32, #tpu.memory_space<vmem>>, vector<7x128xf32>,
    %c0_70 = arith.constant 0 : index
    %c0_71 = arith.constant 0 : index
    %c2_72 = arith.constant 2 : index
    %c0_73 = arith.constant 0 : index
    %42 = vector.load %arg2[%c0_70, %c0_71, %c2_72, %c0_73] : memref<1x9x9x128xf32, #tpu.memory_space<vmem>>, vector<1x1x7x128xf32>
    %43 = vector.shape_cast %42 : vector<1x1x7x128xf32> to vector<7x128xf32>
    %c0_74 = arith.constant 0 : index
    %c256 = arith.constant 256 : index
    %44 = vector.load %arg6[%c0_74, %c256] : memref<49x1152xf32, #tpu.memory_space<vmem>>, vector<7x128xf32>
    tpu.vector_store %arg6[%c0_74, %c256], %43 {strides = array<i32>} : memref<49x1152xf32, #tpu.memory_space<vmem>>, vector<7x128xf32>,
    %c0_75 = arith.constant 0 : index
    %c1_76 = arith.constant 1 : index
    %c2_77 = arith.constant 2 : index
    %c0_78 = arith.constant 0 : index
    %45 = vector.load %arg2[%c0_75, %c1_76, %c2_77, %c0_78] : memref<1x9x9x128xf32, #tpu.memory_space<vmem>>, vector<1x1x7x128xf32>
    %46 = vector.shape_cast %45 : vector<1x1x7x128xf32> to vector<7x128xf32>
    %c7_79 = arith.constant 7 : index
    %c256_80 = arith.constant 256 : index
    %47 = vector.load %arg6[%c7_79, %c256_80] : memref<49x1152xf32, #tpu.memory_space<vmem>>, vector<7x128xf32>
    tpu.vector_store %arg6[%c7_79, %c256_80], %46 {strides = array<i32>} : memref<49x1152xf32, #tpu.memory_space<vmem>>, vector<7x128xf32>,
    %c0_81 = arith.constant 0 : index
    %c2_82 = arith.constant 2 : index
    %c2_83 = arith.constant 2 : index
    %c0_84 = arith.constant 0 : index
    %48 = vector.load %arg2[%c0_81, %c2_82, %c2_83, %c0_84] : memref<1x9x9x128xf32, #tpu.memory_space<vmem>>, vector<1x1x7x128xf32>
    %49 = vector.shape_cast %48 : vector<1x1x7x128xf32> to vector<7x128xf32>
    %c14_85 = arith.constant 14 : index
    %c256_86 = arith.constant 256 : index
    %50 = vector.load %arg6[%c14_85, %c256_86] : memref<49x1152xf32, #tpu.memory_space<vmem>>, vector<7x128xf32>
    tpu.vector_store %arg6[%c14_85, %c256_86], %49 {strides = array<i32>} : memref<49x1152xf32, #tpu.memory_space<vmem>>, vector<7x128xf32>,
    %c0_87 = arith.constant 0 : index
    %c3_88 = arith.constant 3 : index
    %c2_89 = arith.constant 2 : index
    %c0_90 = arith.constant 0 : index
    %51 = vector.load %arg2[%c0_87, %c3_88, %c2_89, %c0_90] : memref<1x9x9x128xf32, #tpu.memory_space<vmem>>, vector<1x1x7x128xf32>
    %52 = vector.shape_cast %51 : vector<1x1x7x128xf32> to vector<7x128xf32>
    %c21_91 = arith.constant 21 : index
    %c256_92 = arith.constant 256 : index
    %53 = vector.load %arg6[%c21_91, %c256_92] : memref<49x1152xf32, #tpu.memory_space<vmem>>, vector<7x128xf32>
    tpu.vector_store %arg6[%c21_91, %c256_92], %52 {strides = array<i32>} : memref<49x1152xf32, #tpu.memory_space<vmem>>, vector<7x128xf32>,
    %c0_93 = arith.constant 0 : index
    %c4_94 = arith.constant 4 : index
    %c2_95 = arith.constant 2 : index
    %c0_96 = arith.constant 0 : index
    %54 = vector.load %arg2[%c0_93, %c4_94, %c2_95, %c0_96] : memref<1x9x9x128xf32, #tpu.memory_space<vmem>>, vector<1x1x7x128xf32>
    %55 = vector.shape_cast %54 : vector<1x1x7x128xf32> to vector<7x128xf32>
    %c28_97 = arith.constant 28 : index
    %c256_98 = arith.constant 256 : index
    %56 = vector.load %arg6[%c28_97, %c256_98] : memref<49x1152xf32, #tpu.memory_space<vmem>>, vector<7x128xf32>
    tpu.vector_store %arg6[%c28_97, %c256_98], %55 {strides = array<i32>} : memref<49x1152xf32, #tpu.memory_space<vmem>>, vector<7x128xf32>,
    %c0_99 = arith.constant 0 : index
    %c5_100 = arith.constant 5 : index
    %c2_101 = arith.constant 2 : index
    %c0_102 = arith.constant 0 : index
    %57 = vector.load %arg2[%c0_99, %c5_100, %c2_101, %c0_102] : memref<1x9x9x128xf32, #tpu.memory_space<vmem>>, vector<1x1x7x128xf32>
    %58 = vector.shape_cast %57 : vector<1x1x7x128xf32> to vector<7x128xf32>
    %c35_103 = arith.constant 35 : index
    %c256_104 = arith.constant 256 : index
    %59 = vector.load %arg6[%c35_103, %c256_104] : memref<49x1152xf32, #tpu.memory_space<vmem>>, vector<7x128xf32>
    tpu.vector_store %arg6[%c35_103, %c256_104], %58 {strides = array<i32>} : memref<49x1152xf32, #tpu.memory_space<vmem>>, vector<7x128xf32>,
    %c0_105 = arith.constant 0 : index
    %c6_106 = arith.constant 6 : index
    %c2_107 = arith.constant 2 : index
    %c0_108 = arith.constant 0 : index
    %60 = vector.load %arg2[%c0_105, %c6_106, %c2_107, %c0_108] : memref<1x9x9x128xf32, #tpu.memory_space<vmem>>, vector<1x1x7x128xf32>
    %61 = vector.shape_cast %60 : vector<1x1x7x128xf32> to vector<7x128xf32>
    %c42_109 = arith.constant 42 : index
    %c256_110 = arith.constant 256 : index
    %62 = vector.load %arg6[%c42_109, %c256_110] : memref<49x1152xf32, #tpu.memory_space<vmem>>, vector<7x128xf32>
    tpu.vector_store %arg6[%c42_109, %c256_110], %61 {strides = array<i32>} : memref<49x1152xf32, #tpu.memory_space<vmem>>, vector<7x128xf32>,
    %c0_111 = arith.constant 0 : index
    %c1_112 = arith.constant 1 : index
    %c0_113 = arith.constant 0 : index
    %c0_114 = arith.constant 0 : index
    %63 = vector.load %arg2[%c0_111, %c1_112, %c0_113, %c0_114] : memref<1x9x9x128xf32, #tpu.memory_space<vmem>>, vector<1x1x7x128xf32>
    %64 = vector.shape_cast %63 : vector<1x1x7x128xf32> to vector<7x128xf32>
    %c0_115 = arith.constant 0 : index
    %c384 = arith.constant 384 : index
    %65 = vector.load %arg6[%c0_115, %c384] : memref<49x1152xf32, #tpu.memory_space<vmem>>, vector<7x128xf32>
    tpu.vector_store %arg6[%c0_115, %c384], %64 {strides = array<i32>} : memref<49x1152xf32, #tpu.memory_space<vmem>>, vector<7x128xf32>,
    %c0_116 = arith.constant 0 : index
    %c2_117 = arith.constant 2 : index
    %c0_118 = arith.constant 0 : index
    %c0_119 = arith.constant 0 : index
    %66 = vector.load %arg2[%c0_116, %c2_117, %c0_118, %c0_119] : memref<1x9x9x128xf32, #tpu.memory_space<vmem>>, vector<1x1x7x128xf32>
    %67 = vector.shape_cast %66 : vector<1x1x7x128xf32> to vector<7x128xf32>
    %c7_120 = arith.constant 7 : index
    %c384_121 = arith.constant 384 : index
    %68 = vector.load %arg6[%c7_120, %c384_121] : memref<49x1152xf32, #tpu.memory_space<vmem>>, vector<7x128xf32>
    tpu.vector_store %arg6[%c7_120, %c384_121], %67 {strides = array<i32>} : memref<49x1152xf32, #tpu.memory_space<vmem>>, vector<7x128xf32>,
    %c0_122 = arith.constant 0 : index
    %c3_123 = arith.constant 3 : index
    %c0_124 = arith.constant 0 : index
    %c0_125 = arith.constant 0 : index
    %69 = vector.load %arg2[%c0_122, %c3_123, %c0_124, %c0_125] : memref<1x9x9x128xf32, #tpu.memory_space<vmem>>, vector<1x1x7x128xf32>
    %70 = vector.shape_cast %69 : vector<1x1x7x128xf32> to vector<7x128xf32>
    %c14_126 = arith.constant 14 : index
    %c384_127 = arith.constant 384 : index
    %71 = vector.load %arg6[%c14_126, %c384_127] : memref<49x1152xf32, #tpu.memory_space<vmem>>, vector<7x128xf32>
    tpu.vector_store %arg6[%c14_126, %c384_127], %70 {strides = array<i32>} : memref<49x1152xf32, #tpu.memory_space<vmem>>, vector<7x128xf32>,
    %c0_128 = arith.constant 0 : index
    %c4_129 = arith.constant 4 : index
    %c0_130 = arith.constant 0 : index
    %c0_131 = arith.constant 0 : index
    %72 = vector.load %arg2[%c0_128, %c4_129, %c0_130, %c0_131] : memref<1x9x9x128xf32, #tpu.memory_space<vmem>>, vector<1x1x7x128xf32>
    %73 = vector.shape_cast %72 : vector<1x1x7x128xf32> to vector<7x128xf32>
    %c21_132 = arith.constant 21 : index
    %c384_133 = arith.constant 384 : index
    %74 = vector.load %arg6[%c21_132, %c384_133] : memref<49x1152xf32, #tpu.memory_space<vmem>>, vector<7x128xf32>
    tpu.vector_store %arg6[%c21_132, %c384_133], %73 {strides = array<i32>} : memref<49x1152xf32, #tpu.memory_space<vmem>>, vector<7x128xf32>,
    %c0_134 = arith.constant 0 : index
    %c5_135 = arith.constant 5 : index
    %c0_136 = arith.constant 0 : index
    %c0_137 = arith.constant 0 : index
    %75 = vector.load %arg2[%c0_134, %c5_135, %c0_136, %c0_137] : memref<1x9x9x128xf32, #tpu.memory_space<vmem>>, vector<1x1x7x128xf32>
    %76 = vector.shape_cast %75 : vector<1x1x7x128xf32> to vector<7x128xf32>
    %c28_138 = arith.constant 28 : index
    %c384_139 = arith.constant 384 : index
    %77 = vector.load %arg6[%c28_138, %c384_139] : memref<49x1152xf32, #tpu.memory_space<vmem>>, vector<7x128xf32>
    tpu.vector_store %arg6[%c28_138, %c384_139], %76 {strides = array<i32>} : memref<49x1152xf32, #tpu.memory_space<vmem>>, vector<7x128xf32>,
    %c0_140 = arith.constant 0 : index
    %c6_141 = arith.constant 6 : index
    %c0_142 = arith.constant 0 : index
    %c0_143 = arith.constant 0 : index
    %78 = vector.load %arg2[%c0_140, %c6_141, %c0_142, %c0_143] : memref<1x9x9x128xf32, #tpu.memory_space<vmem>>, vector<1x1x7x128xf32>
    %79 = vector.shape_cast %78 : vector<1x1x7x128xf32> to vector<7x128xf32>
    %c35_144 = arith.constant 35 : index
    %c384_145 = arith.constant 384 : index
    %80 = vector.load %arg6[%c35_144, %c384_145] : memref<49x1152xf32, #tpu.memory_space<vmem>>, vector<7x128xf32>
    tpu.vector_store %arg6[%c35_144, %c384_145], %79 {strides = array<i32>} : memref<49x1152xf32, #tpu.memory_space<vmem>>, vector<7x128xf32>,
    %c0_146 = arith.constant 0 : index
    %c7_147 = arith.constant 7 : index
    %c0_148 = arith.constant 0 : index
    %c0_149 = arith.constant 0 : index
    %81 = vector.load %arg2[%c0_146, %c7_147, %c0_148, %c0_149] : memref<1x9x9x128xf32, #tpu.memory_space<vmem>>, vector<1x1x7x128xf32>
    %82 = vector.shape_cast %81 : vector<1x1x7x128xf32> to vector<7x128xf32>
    %c42_150 = arith.constant 42 : index
    %c384_151 = arith.constant 384 : index
    %83 = vector.load %arg6[%c42_150, %c384_151] : memref<49x1152xf32, #tpu.memory_space<vmem>>, vector<7x128xf32>
    tpu.vector_store %arg6[%c42_150, %c384_151], %82 {strides = array<i32>} : memref<49x1152xf32, #tpu.memory_space<vmem>>, vector<7x128xf32>,
    %c0_152 = arith.constant 0 : index
    %c1_153 = arith.constant 1 : index
    %c1_154 = arith.constant 1 : index
    %c0_155 = arith.constant 0 : index
    %84 = vector.load %arg2[%c0_152, %c1_153, %c1_154, %c0_155] : memref<1x9x9x128xf32, #tpu.memory_space<vmem>>, vector<1x1x7x128xf32>
    %85 = vector.shape_cast %84 : vector<1x1x7x128xf32> to vector<7x128xf32>
    %c0_156 = arith.constant 0 : index
    %c512 = arith.constant 512 : index
    %86 = vector.load %arg6[%c0_156, %c512] : memref<49x1152xf32, #tpu.memory_space<vmem>>, vector<7x128xf32>
    tpu.vector_store %arg6[%c0_156, %c512], %85 {strides = array<i32>} : memref<49x1152xf32, #tpu.memory_space<vmem>>, vector<7x128xf32>,
    %c0_157 = arith.constant 0 : index
    %c2_158 = arith.constant 2 : index
    %c1_159 = arith.constant 1 : index
    %c0_160 = arith.constant 0 : index
    %87 = vector.load %arg2[%c0_157, %c2_158, %c1_159, %c0_160] : memref<1x9x9x128xf32, #tpu.memory_space<vmem>>, vector<1x1x7x128xf32>
    %88 = vector.shape_cast %87 : vector<1x1x7x128xf32> to vector<7x128xf32>
    %c7_161 = arith.constant 7 : index
    %c512_162 = arith.constant 512 : index
    %89 = vector.load %arg6[%c7_161, %c512_162] : memref<49x1152xf32, #tpu.memory_space<vmem>>, vector<7x128xf32>
    tpu.vector_store %arg6[%c7_161, %c512_162], %88 {strides = array<i32>} : memref<49x1152xf32, #tpu.memory_space<vmem>>, vector<7x128xf32>,
    %c0_163 = arith.constant 0 : index
    %c3_164 = arith.constant 3 : index
    %c1_165 = arith.constant 1 : index
    %c0_166 = arith.constant 0 : index
    %90 = vector.load %arg2[%c0_163, %c3_164, %c1_165, %c0_166] : memref<1x9x9x128xf32, #tpu.memory_space<vmem>>, vector<1x1x7x128xf32>
    %91 = vector.shape_cast %90 : vector<1x1x7x128xf32> to vector<7x128xf32>
    %c14_167 = arith.constant 14 : index
    %c512_168 = arith.constant 512 : index
    %92 = vector.load %arg6[%c14_167, %c512_168] : memref<49x1152xf32, #tpu.memory_space<vmem>>, vector<7x128xf32>
    tpu.vector_store %arg6[%c14_167, %c512_168], %91 {strides = array<i32>} : memref<49x1152xf32, #tpu.memory_space<vmem>>, vector<7x128xf32>,
    %c0_169 = arith.constant 0 : index
    %c4_170 = arith.constant 4 : index
    %c1_171 = arith.constant 1 : index
    %c0_172 = arith.constant 0 : index
    %93 = vector.load %arg2[%c0_169, %c4_170, %c1_171, %c0_172] : memref<1x9x9x128xf32, #tpu.memory_space<vmem>>, vector<1x1x7x128xf32>
    %94 = vector.shape_cast %93 : vector<1x1x7x128xf32> to vector<7x128xf32>
    %c21_173 = arith.constant 21 : index
    %c512_174 = arith.constant 512 : index
    %95 = vector.load %arg6[%c21_173, %c512_174] : memref<49x1152xf32, #tpu.memory_space<vmem>>, vector<7x128xf32>
    tpu.vector_store %arg6[%c21_173, %c512_174], %94 {strides = array<i32>} : memref<49x1152xf32, #tpu.memory_space<vmem>>, vector<7x128xf32>,
    %c0_175 = arith.constant 0 : index
    %c5_176 = arith.constant 5 : index
    %c1_177 = arith.constant 1 : index
    %c0_178 = arith.constant 0 : index
    %96 = vector.load %arg2[%c0_175, %c5_176, %c1_177, %c0_178] : memref<1x9x9x128xf32, #tpu.memory_space<vmem>>, vector<1x1x7x128xf32>
    %97 = vector.shape_cast %96 : vector<1x1x7x128xf32> to vector<7x128xf32>
    %c28_179 = arith.constant 28 : index
    %c512_180 = arith.constant 512 : index
    %98 = vector.load %arg6[%c28_179, %c512_180] : memref<49x1152xf32, #tpu.memory_space<vmem>>, vector<7x128xf32>
    tpu.vector_store %arg6[%c28_179, %c512_180], %97 {strides = array<i32>} : memref<49x1152xf32, #tpu.memory_space<vmem>>, vector<7x128xf32>,
    %c0_181 = arith.constant 0 : index
    %c6_182 = arith.constant 6 : index
    %c1_183 = arith.constant 1 : index
    %c0_184 = arith.constant 0 : index
    %99 = vector.load %arg2[%c0_181, %c6_182, %c1_183, %c0_184] : memref<1x9x9x128xf32, #tpu.memory_space<vmem>>, vector<1x1x7x128xf32>
    %100 = vector.shape_cast %99 : vector<1x1x7x128xf32> to vector<7x128xf32>
    %c35_185 = arith.constant 35 : index
    %c512_186 = arith.constant 512 : index
    %101 = vector.load %arg6[%c35_185, %c512_186] : memref<49x1152xf32, #tpu.memory_space<vmem>>, vector<7x128xf32>
    tpu.vector_store %arg6[%c35_185, %c512_186], %100 {strides = array<i32>} : memref<49x1152xf32, #tpu.memory_space<vmem>>, vector<7x128xf32>,
    %c0_187 = arith.constant 0 : index
    %c7_188 = arith.constant 7 : index
    %c1_189 = arith.constant 1 : index
    %c0_190 = arith.constant 0 : index
    %102 = vector.load %arg2[%c0_187, %c7_188, %c1_189, %c0_190] : memref<1x9x9x128xf32, #tpu.memory_space<vmem>>, vector<1x1x7x128xf32>
    %103 = vector.shape_cast %102 : vector<1x1x7x128xf32> to vector<7x128xf32>
    %c42_191 = arith.constant 42 : index
    %c512_192 = arith.constant 512 : index
    %104 = vector.load %arg6[%c42_191, %c512_192] : memref<49x1152xf32, #tpu.memory_space<vmem>>, vector<7x128xf32>
    tpu.vector_store %arg6[%c42_191, %c512_192], %103 {strides = array<i32>} : memref<49x1152xf32, #tpu.memory_space<vmem>>, vector<7x128xf32>,
    %c0_193 = arith.constant 0 : index
    %c1_194 = arith.constant 1 : index
    %c2_195 = arith.constant 2 : index
    %c0_196 = arith.constant 0 : index
    %105 = vector.load %arg2[%c0_193, %c1_194, %c2_195, %c0_196] : memref<1x9x9x128xf32, #tpu.memory_space<vmem>>, vector<1x1x7x128xf32>
    %106 = vector.shape_cast %105 : vector<1x1x7x128xf32> to vector<7x128xf32>
    %c0_197 = arith.constant 0 : index
    %c640 = arith.constant 640 : index
    %107 = vector.load %arg6[%c0_197, %c640] : memref<49x1152xf32, #tpu.memory_space<vmem>>, vector<7x128xf32>
    tpu.vector_store %arg6[%c0_197, %c640], %106 {strides = array<i32>} : memref<49x1152xf32, #tpu.memory_space<vmem>>, vector<7x128xf32>,
    %c0_198 = arith.constant 0 : index
    %c2_199 = arith.constant 2 : index
    %c2_200 = arith.constant 2 : index
    %c0_201 = arith.constant 0 : index
    %108 = vector.load %arg2[%c0_198, %c2_199, %c2_200, %c0_201] : memref<1x9x9x128xf32, #tpu.memory_space<vmem>>, vector<1x1x7x128xf32>
    %109 = vector.shape_cast %108 : vector<1x1x7x128xf32> to vector<7x128xf32>
    %c7_202 = arith.constant 7 : index
    %c640_203 = arith.constant 640 : index
    %110 = vector.load %arg6[%c7_202, %c640_203] : memref<49x1152xf32, #tpu.memory_space<vmem>>, vector<7x128xf32>
    tpu.vector_store %arg6[%c7_202, %c640_203], %109 {strides = array<i32>} : memref<49x1152xf32, #tpu.memory_space<vmem>>, vector<7x128xf32>,
    %c0_204 = arith.constant 0 : index
    %c3_205 = arith.constant 3 : index
    %c2_206 = arith.constant 2 : index
    %c0_207 = arith.constant 0 : index
    %111 = vector.load %arg2[%c0_204, %c3_205, %c2_206, %c0_207] : memref<1x9x9x128xf32, #tpu.memory_space<vmem>>, vector<1x1x7x128xf32>
    %112 = vector.shape_cast %111 : vector<1x1x7x128xf32> to vector<7x128xf32>
    %c14_208 = arith.constant 14 : index
    %c640_209 = arith.constant 640 : index
    %113 = vector.load %arg6[%c14_208, %c640_209] : memref<49x1152xf32, #tpu.memory_space<vmem>>, vector<7x128xf32>
    tpu.vector_store %arg6[%c14_208, %c640_209], %112 {strides = array<i32>} : memref<49x1152xf32, #tpu.memory_space<vmem>>, vector<7x128xf32>,
    %c0_210 = arith.constant 0 : index
    %c4_211 = arith.constant 4 : index
    %c2_212 = arith.constant 2 : index
    %c0_213 = arith.constant 0 : index
    %114 = vector.load %arg2[%c0_210, %c4_211, %c2_212, %c0_213] : memref<1x9x9x128xf32, #tpu.memory_space<vmem>>, vector<1x1x7x128xf32>
    %115 = vector.shape_cast %114 : vector<1x1x7x128xf32> to vector<7x128xf32>
    %c21_214 = arith.constant 21 : index
    %c640_215 = arith.constant 640 : index
    %116 = vector.load %arg6[%c21_214, %c640_215] : memref<49x1152xf32, #tpu.memory_space<vmem>>, vector<7x128xf32>
    tpu.vector_store %arg6[%c21_214, %c640_215], %115 {strides = array<i32>} : memref<49x1152xf32, #tpu.memory_space<vmem>>, vector<7x128xf32>,
    %c0_216 = arith.constant 0 : index
    %c5_217 = arith.constant 5 : index
    %c2_218 = arith.constant 2 : index
    %c0_219 = arith.constant 0 : index
    %117 = vector.load %arg2[%c0_216, %c5_217, %c2_218, %c0_219] : memref<1x9x9x128xf32, #tpu.memory_space<vmem>>, vector<1x1x7x128xf32>
    %118 = vector.shape_cast %117 : vector<1x1x7x128xf32> to vector<7x128xf32>
    %c28_220 = arith.constant 28 : index
    %c640_221 = arith.constant 640 : index
    %119 = vector.load %arg6[%c28_220, %c640_221] : memref<49x1152xf32, #tpu.memory_space<vmem>>, vector<7x128xf32>
    tpu.vector_store %arg6[%c28_220, %c640_221], %118 {strides = array<i32>} : memref<49x1152xf32, #tpu.memory_space<vmem>>, vector<7x128xf32>,
    %c0_222 = arith.constant 0 : index
    %c6_223 = arith.constant 6 : index
    %c2_224 = arith.constant 2 : index
    %c0_225 = arith.constant 0 : index
    %120 = vector.load %arg2[%c0_222, %c6_223, %c2_224, %c0_225] : memref<1x9x9x128xf32, #tpu.memory_space<vmem>>, vector<1x1x7x128xf32>
    %121 = vector.shape_cast %120 : vector<1x1x7x128xf32> to vector<7x128xf32>
    %c35_226 = arith.constant 35 : index
    %c640_227 = arith.constant 640 : index
    %122 = vector.load %arg6[%c35_226, %c640_227] : memref<49x1152xf32, #tpu.memory_space<vmem>>, vector<7x128xf32>
    tpu.vector_store %arg6[%c35_226, %c640_227], %121 {strides = array<i32>} : memref<49x1152xf32, #tpu.memory_space<vmem>>, vector<7x128xf32>,
    %c0_228 = arith.constant 0 : index
    %c7_229 = arith.constant 7 : index
    %c2_230 = arith.constant 2 : index
    %c0_231 = arith.constant 0 : index
    %123 = vector.load %arg2[%c0_228, %c7_229, %c2_230, %c0_231] : memref<1x9x9x128xf32, #tpu.memory_space<vmem>>, vector<1x1x7x128xf32>
    %124 = vector.shape_cast %123 : vector<1x1x7x128xf32> to vector<7x128xf32>
    %c42_232 = arith.constant 42 : index
    %c640_233 = arith.constant 640 : index
    %125 = vector.load %arg6[%c42_232, %c640_233] : memref<49x1152xf32, #tpu.memory_space<vmem>>, vector<7x128xf32>
    tpu.vector_store %arg6[%c42_232, %c640_233], %124 {strides = array<i32>} : memref<49x1152xf32, #tpu.memory_space<vmem>>, vector<7x128xf32>,
    %c0_234 = arith.constant 0 : index
    %c2_235 = arith.constant 2 : index
    %c0_236 = arith.constant 0 : index
    %c0_237 = arith.constant 0 : index
    %126 = vector.load %arg2[%c0_234, %c2_235, %c0_236, %c0_237] : memref<1x9x9x128xf32, #tpu.memory_space<vmem>>, vector<1x1x7x128xf32>
    %127 = vector.shape_cast %126 : vector<1x1x7x128xf32> to vector<7x128xf32>
    %c0_238 = arith.constant 0 : index
    %c768 = arith.constant 768 : index
    %128 = vector.load %arg6[%c0_238, %c768] : memref<49x1152xf32, #tpu.memory_space<vmem>>, vector<7x128xf32>
    tpu.vector_store %arg6[%c0_238, %c768], %127 {strides = array<i32>} : memref<49x1152xf32, #tpu.memory_space<vmem>>, vector<7x128xf32>,
    %c0_239 = arith.constant 0 : index
    %c3_240 = arith.constant 3 : index
    %c0_241 = arith.constant 0 : index
    %c0_242 = arith.constant 0 : index
    %129 = vector.load %arg2[%c0_239, %c3_240, %c0_241, %c0_242] : memref<1x9x9x128xf32, #tpu.memory_space<vmem>>, vector<1x1x7x128xf32>
    %130 = vector.shape_cast %129 : vector<1x1x7x128xf32> to vector<7x128xf32>
    %c7_243 = arith.constant 7 : index
    %c768_244 = arith.constant 768 : index
    %131 = vector.load %arg6[%c7_243, %c768_244] : memref<49x1152xf32, #tpu.memory_space<vmem>>, vector<7x128xf32>
    tpu.vector_store %arg6[%c7_243, %c768_244], %130 {strides = array<i32>} : memref<49x1152xf32, #tpu.memory_space<vmem>>, vector<7x128xf32>,
    %c0_245 = arith.constant 0 : index
    %c4_246 = arith.constant 4 : index
    %c0_247 = arith.constant 0 : index
    %c0_248 = arith.constant 0 : index
    %132 = vector.load %arg2[%c0_245, %c4_246, %c0_247, %c0_248] : memref<1x9x9x128xf32, #tpu.memory_space<vmem>>, vector<1x1x7x128xf32>
    %133 = vector.shape_cast %132 : vector<1x1x7x128xf32> to vector<7x128xf32>
    %c14_249 = arith.constant 14 : index
    %c768_250 = arith.constant 768 : index
    %134 = vector.load %arg6[%c14_249, %c768_250] : memref<49x1152xf32, #tpu.memory_space<vmem>>, vector<7x128xf32>
    tpu.vector_store %arg6[%c14_249, %c768_250], %133 {strides = array<i32>} : memref<49x1152xf32, #tpu.memory_space<vmem>>, vector<7x128xf32>,
    %c0_251 = arith.constant 0 : index
    %c5_252 = arith.constant 5 : index
    %c0_253 = arith.constant 0 : index
    %c0_254 = arith.constant 0 : index
    %135 = vector.load %arg2[%c0_251, %c5_252, %c0_253, %c0_254] : memref<1x9x9x128xf32, #tpu.memory_space<vmem>>, vector<1x1x7x128xf32>
    %136 = vector.shape_cast %135 : vector<1x1x7x128xf32> to vector<7x128xf32>
    %c21_255 = arith.constant 21 : index
    %c768_256 = arith.constant 768 : index
    %137 = vector.load %arg6[%c21_255, %c768_256] : memref<49x1152xf32, #tpu.memory_space<vmem>>, vector<7x128xf32>
    tpu.vector_store %arg6[%c21_255, %c768_256], %136 {strides = array<i32>} : memref<49x1152xf32, #tpu.memory_space<vmem>>, vector<7x128xf32>,
    %c0_257 = arith.constant 0 : index
    %c6_258 = arith.constant 6 : index
    %c0_259 = arith.constant 0 : index
    %c0_260 = arith.constant 0 : index
    %138 = vector.load %arg2[%c0_257, %c6_258, %c0_259, %c0_260] : memref<1x9x9x128xf32, #tpu.memory_space<vmem>>, vector<1x1x7x128xf32>
    %139 = vector.shape_cast %138 : vector<1x1x7x128xf32> to vector<7x128xf32>
    %c28_261 = arith.constant 28 : index
    %c768_262 = arith.constant 768 : index
    %140 = vector.load %arg6[%c28_261, %c768_262] : memref<49x1152xf32, #tpu.memory_space<vmem>>, vector<7x128xf32>
    tpu.vector_store %arg6[%c28_261, %c768_262], %139 {strides = array<i32>} : memref<49x1152xf32, #tpu.memory_space<vmem>>, vector<7x128xf32>,
    %c0_263 = arith.constant 0 : index
    %c7_264 = arith.constant 7 : index
    %c0_265 = arith.constant 0 : index
    %c0_266 = arith.constant 0 : index
    %141 = vector.load %arg2[%c0_263, %c7_264, %c0_265, %c0_266] : memref<1x9x9x128xf32, #tpu.memory_space<vmem>>, vector<1x1x7x128xf32>
    %142 = vector.shape_cast %141 : vector<1x1x7x128xf32> to vector<7x128xf32>
    %c35_267 = arith.constant 35 : index
    %c768_268 = arith.constant 768 : index
    %143 = vector.load %arg6[%c35_267, %c768_268] : memref<49x1152xf32, #tpu.memory_space<vmem>>, vector<7x128xf32>
    tpu.vector_store %arg6[%c35_267, %c768_268], %142 {strides = array<i32>} : memref<49x1152xf32, #tpu.memory_space<vmem>>, vector<7x128xf32>,
    %c0_269 = arith.constant 0 : index
    %c8 = arith.constant 8 : index
    %c0_270 = arith.constant 0 : index
    %c0_271 = arith.constant 0 : index
    %144 = vector.load %arg2[%c0_269, %c8, %c0_270, %c0_271] : memref<1x9x9x128xf32, #tpu.memory_space<vmem>>, vector<1x1x7x128xf32>
    %145 = vector.shape_cast %144 : vector<1x1x7x128xf32> to vector<7x128xf32>
    %c42_272 = arith.constant 42 : index
    %c768_273 = arith.constant 768 : index
    %146 = vector.load %arg6[%c42_272, %c768_273] : memref<49x1152xf32, #tpu.memory_space<vmem>>, vector<7x128xf32>
    tpu.vector_store %arg6[%c42_272, %c768_273], %145 {strides = array<i32>} : memref<49x1152xf32, #tpu.memory_space<vmem>>, vector<7x128xf32>,
    %c0_274 = arith.constant 0 : index
    %c2_275 = arith.constant 2 : index
    %c1_276 = arith.constant 1 : index
    %c0_277 = arith.constant 0 : index
    %147 = vector.load %arg2[%c0_274, %c2_275, %c1_276, %c0_277] : memref<1x9x9x128xf32, #tpu.memory_space<vmem>>, vector<1x1x7x128xf32>
    %148 = vector.shape_cast %147 : vector<1x1x7x128xf32> to vector<7x128xf32>
    %c0_278 = arith.constant 0 : index
    %c896 = arith.constant 896 : index
    %149 = vector.load %arg6[%c0_278, %c896] : memref<49x1152xf32, #tpu.memory_space<vmem>>, vector<7x128xf32>
    tpu.vector_store %arg6[%c0_278, %c896], %148 {strides = array<i32>} : memref<49x1152xf32, #tpu.memory_space<vmem>>, vector<7x128xf32>,
    %c0_279 = arith.constant 0 : index
    %c3_280 = arith.constant 3 : index
    %c1_281 = arith.constant 1 : index
    %c0_282 = arith.constant 0 : index
    %150 = vector.load %arg2[%c0_279, %c3_280, %c1_281, %c0_282] : memref<1x9x9x128xf32, #tpu.memory_space<vmem>>, vector<1x1x7x128xf32>
    %151 = vector.shape_cast %150 : vector<1x1x7x128xf32> to vector<7x128xf32>
    %c7_283 = arith.constant 7 : index
    %c896_284 = arith.constant 896 : index
    %152 = vector.load %arg6[%c7_283, %c896_284] : memref<49x1152xf32, #tpu.memory_space<vmem>>, vector<7x128xf32>
    tpu.vector_store %arg6[%c7_283, %c896_284], %151 {strides = array<i32>} : memref<49x1152xf32, #tpu.memory_space<vmem>>, vector<7x128xf32>,
    %c0_285 = arith.constant 0 : index
    %c4_286 = arith.constant 4 : index
    %c1_287 = arith.constant 1 : index
    %c0_288 = arith.constant 0 : index
    %153 = vector.load %arg2[%c0_285, %c4_286, %c1_287, %c0_288] : memref<1x9x9x128xf32, #tpu.memory_space<vmem>>, vector<1x1x7x128xf32>
    %154 = vector.shape_cast %153 : vector<1x1x7x128xf32> to vector<7x128xf32>
    %c14_289 = arith.constant 14 : index
    %c896_290 = arith.constant 896 : index
    %155 = vector.load %arg6[%c14_289, %c896_290] : memref<49x1152xf32, #tpu.memory_space<vmem>>, vector<7x128xf32>
    tpu.vector_store %arg6[%c14_289, %c896_290], %154 {strides = array<i32>} : memref<49x1152xf32, #tpu.memory_space<vmem>>, vector<7x128xf32>,
    %c0_291 = arith.constant 0 : index
    %c5_292 = arith.constant 5 : index
    %c1_293 = arith.constant 1 : index
    %c0_294 = arith.constant 0 : index
    %156 = vector.load %arg2[%c0_291, %c5_292, %c1_293, %c0_294] : memref<1x9x9x128xf32, #tpu.memory_space<vmem>>, vector<1x1x7x128xf32>
    %157 = vector.shape_cast %156 : vector<1x1x7x128xf32> to vector<7x128xf32>
    %c21_295 = arith.constant 21 : index
    %c896_296 = arith.constant 896 : index
    %158 = vector.load %arg6[%c21_295, %c896_296] : memref<49x1152xf32, #tpu.memory_space<vmem>>, vector<7x128xf32>
    tpu.vector_store %arg6[%c21_295, %c896_296], %157 {strides = array<i32>} : memref<49x1152xf32, #tpu.memory_space<vmem>>, vector<7x128xf32>,
    %c0_297 = arith.constant 0 : index
    %c6_298 = arith.constant 6 : index
    %c1_299 = arith.constant 1 : index
    %c0_300 = arith.constant 0 : index
    %159 = vector.load %arg2[%c0_297, %c6_298, %c1_299, %c0_300] : memref<1x9x9x128xf32, #tpu.memory_space<vmem>>, vector<1x1x7x128xf32>
    %160 = vector.shape_cast %159 : vector<1x1x7x128xf32> to vector<7x128xf32>
    %c28_301 = arith.constant 28 : index
    %c896_302 = arith.constant 896 : index
    %161 = vector.load %arg6[%c28_301, %c896_302] : memref<49x1152xf32, #tpu.memory_space<vmem>>, vector<7x128xf32>
    tpu.vector_store %arg6[%c28_301, %c896_302], %160 {strides = array<i32>} : memref<49x1152xf32, #tpu.memory_space<vmem>>, vector<7x128xf32>,
    %c0_303 = arith.constant 0 : index
    %c7_304 = arith.constant 7 : index
    %c1_305 = arith.constant 1 : index
    %c0_306 = arith.constant 0 : index
    %162 = vector.load %arg2[%c0_303, %c7_304, %c1_305, %c0_306] : memref<1x9x9x128xf32, #tpu.memory_space<vmem>>, vector<1x1x7x128xf32>
    %163 = vector.shape_cast %162 : vector<1x1x7x128xf32> to vector<7x128xf32>
    %c35_307 = arith.constant 35 : index
    %c896_308 = arith.constant 896 : index
    %164 = vector.load %arg6[%c35_307, %c896_308] : memref<49x1152xf32, #tpu.memory_space<vmem>>, vector<7x128xf32>
    tpu.vector_store %arg6[%c35_307, %c896_308], %163 {strides = array<i32>} : memref<49x1152xf32, #tpu.memory_space<vmem>>, vector<7x128xf32>,
    %c0_309 = arith.constant 0 : index
    %c8_310 = arith.constant 8 : index
    %c1_311 = arith.constant 1 : index
    %c0_312 = arith.constant 0 : index
    %165 = vector.load %arg2[%c0_309, %c8_310, %c1_311, %c0_312] : memref<1x9x9x128xf32, #tpu.memory_space<vmem>>, vector<1x1x7x128xf32>
    %166 = vector.shape_cast %165 : vector<1x1x7x128xf32> to vector<7x128xf32>
    %c42_313 = arith.constant 42 : index
    %c896_314 = arith.constant 896 : index
    %167 = vector.load %arg6[%c42_313, %c896_314] : memref<49x1152xf32, #tpu.memory_space<vmem>>, vector<7x128xf32>
    tpu.vector_store %arg6[%c42_313, %c896_314], %166 {strides = array<i32>} : memref<49x1152xf32, #tpu.memory_space<vmem>>, vector<7x128xf32>,
    %c0_315 = arith.constant 0 : index
    %c2_316 = arith.constant 2 : index
    %c2_317 = arith.constant 2 : index
    %c0_318 = arith.constant 0 : index
    %168 = vector.load %arg2[%c0_315, %c2_316, %c2_317, %c0_318] : memref<1x9x9x128xf32, #tpu.memory_space<vmem>>, vector<1x1x7x128xf32>
    %169 = vector.shape_cast %168 : vector<1x1x7x128xf32> to vector<7x128xf32>
    %c0_319 = arith.constant 0 : index
    %c1024 = arith.constant 1024 : index
    %170 = vector.load %arg6[%c0_319, %c1024] : memref<49x1152xf32, #tpu.memory_space<vmem>>, vector<7x128xf32>
    tpu.vector_store %arg6[%c0_319, %c1024], %169 {strides = array<i32>} : memref<49x1152xf32, #tpu.memory_space<vmem>>, vector<7x128xf32>,
    %c0_320 = arith.constant 0 : index
    %c3_321 = arith.constant 3 : index
    %c2_322 = arith.constant 2 : index
    %c0_323 = arith.constant 0 : index
    %171 = vector.load %arg2[%c0_320, %c3_321, %c2_322, %c0_323] : memref<1x9x9x128xf32, #tpu.memory_space<vmem>>, vector<1x1x7x128xf32>
    %172 = vector.shape_cast %171 : vector<1x1x7x128xf32> to vector<7x128xf32>
    %c7_324 = arith.constant 7 : index
    %c1024_325 = arith.constant 1024 : index
    %173 = vector.load %arg6[%c7_324, %c1024_325] : memref<49x1152xf32, #tpu.memory_space<vmem>>, vector<7x128xf32>
    tpu.vector_store %arg6[%c7_324, %c1024_325], %172 {strides = array<i32>} : memref<49x1152xf32, #tpu.memory_space<vmem>>, vector<7x128xf32>,
    %c0_326 = arith.constant 0 : index
    %c4_327 = arith.constant 4 : index
    %c2_328 = arith.constant 2 : index
    %c0_329 = arith.constant 0 : index
    %174 = vector.load %arg2[%c0_326, %c4_327, %c2_328, %c0_329] : memref<1x9x9x128xf32, #tpu.memory_space<vmem>>, vector<1x1x7x128xf32>
    %175 = vector.shape_cast %174 : vector<1x1x7x128xf32> to vector<7x128xf32>
    %c14_330 = arith.constant 14 : index
    %c1024_331 = arith.constant 1024 : index
    %176 = vector.load %arg6[%c14_330, %c1024_331] : memref<49x1152xf32, #tpu.memory_space<vmem>>, vector<7x128xf32>
    tpu.vector_store %arg6[%c14_330, %c1024_331], %175 {strides = array<i32>} : memref<49x1152xf32, #tpu.memory_space<vmem>>, vector<7x128xf32>,
    %c0_332 = arith.constant 0 : index
    %c5_333 = arith.constant 5 : index
    %c2_334 = arith.constant 2 : index
    %c0_335 = arith.constant 0 : index
    %177 = vector.load %arg2[%c0_332, %c5_333, %c2_334, %c0_335] : memref<1x9x9x128xf32, #tpu.memory_space<vmem>>, vector<1x1x7x128xf32>
    %178 = vector.shape_cast %177 : vector<1x1x7x128xf32> to vector<7x128xf32>
    %c21_336 = arith.constant 21 : index
    %c1024_337 = arith.constant 1024 : index
    %179 = vector.load %arg6[%c21_336, %c1024_337] : memref<49x1152xf32, #tpu.memory_space<vmem>>, vector<7x128xf32>
    tpu.vector_store %arg6[%c21_336, %c1024_337], %178 {strides = array<i32>} : memref<49x1152xf32, #tpu.memory_space<vmem>>, vector<7x128xf32>,
    %c0_338 = arith.constant 0 : index
    %c6_339 = arith.constant 6 : index
    %c2_340 = arith.constant 2 : index
    %c0_341 = arith.constant 0 : index
    %180 = vector.load %arg2[%c0_338, %c6_339, %c2_340, %c0_341] : memref<1x9x9x128xf32, #tpu.memory_space<vmem>>, vector<1x1x7x128xf32>
    %181 = vector.shape_cast %180 : vector<1x1x7x128xf32> to vector<7x128xf32>
    %c28_342 = arith.constant 28 : index
    %c1024_343 = arith.constant 1024 : index
    %182 = vector.load %arg6[%c28_342, %c1024_343] : memref<49x1152xf32, #tpu.memory_space<vmem>>, vector<7x128xf32>
    tpu.vector_store %arg6[%c28_342, %c1024_343], %181 {strides = array<i32>} : memref<49x1152xf32, #tpu.memory_space<vmem>>, vector<7x128xf32>,
    %c0_344 = arith.constant 0 : index
    %c7_345 = arith.constant 7 : index
    %c2_346 = arith.constant 2 : index
    %c0_347 = arith.constant 0 : index
    %183 = vector.load %arg2[%c0_344, %c7_345, %c2_346, %c0_347] : memref<1x9x9x128xf32, #tpu.memory_space<vmem>>, vector<1x1x7x128xf32>
    %184 = vector.shape_cast %183 : vector<1x1x7x128xf32> to vector<7x128xf32>
    %c35_348 = arith.constant 35 : index
    %c1024_349 = arith.constant 1024 : index
    %185 = vector.load %arg6[%c35_348, %c1024_349] : memref<49x1152xf32, #tpu.memory_space<vmem>>, vector<7x128xf32>
    tpu.vector_store %arg6[%c35_348, %c1024_349], %184 {strides = array<i32>} : memref<49x1152xf32, #tpu.memory_space<vmem>>, vector<7x128xf32>,
    %c0_350 = arith.constant 0 : index
    %c8_351 = arith.constant 8 : index
    %c2_352 = arith.constant 2 : index
    %c0_353 = arith.constant 0 : index
    %186 = vector.load %arg2[%c0_350, %c8_351, %c2_352, %c0_353] : memref<1x9x9x128xf32, #tpu.memory_space<vmem>>, vector<1x1x7x128xf32>
    %187 = vector.shape_cast %186 : vector<1x1x7x128xf32> to vector<7x128xf32>
    %c42_354 = arith.constant 42 : index
    %c1024_355 = arith.constant 1024 : index
    %188 = vector.load %arg6[%c42_354, %c1024_355] : memref<49x1152xf32, #tpu.memory_space<vmem>>, vector<7x128xf32>
    tpu.vector_store %arg6[%c42_354, %c1024_355], %187 {strides = array<i32>} : memref<49x1152xf32, #tpu.memory_space<vmem>>, vector<7x128xf32>,
    %c0_356 = arith.constant 0 : index
    %c0_357 = arith.constant 0 : index
    %189 = vector.load %arg6[%c0_356, %c0_357] : memref<49x1152xf32, #tpu.memory_space<vmem>>, vector<49x1152xf32>
    %190 = arith.truncf %189 : vector<49x1152xf32> to vector<49x1152xbf16>
    %c0_358 = arith.constant 0 : index
    %c0_359 = arith.constant 0 : index
    %191 = vector.load %arg3[%c0_358, %c0_359] : memref<1152x128xbf16, #tpu.memory_space<vmem>>, vector<1152x128xbf16>
    %cst = arith.constant dense<0.000000e+00> : vector<49x128xf32>
    %192 = tpu.matmul %190, %191, %cst {dimension_numbers = #tpu.dot_dimension_numbers<[1], [0], [0], [1], [0, 0, 1, 1], [], []>} : vector<49x1152xbf16>, vector<1152x128xbf16>, vector<49x128xf32> -> vector<49x128xf32>
    %c0_360 = arith.constant 0 : index
    %c0_361 = arith.constant 0 : index
    %193 = vector.load %arg4[%c0_360, %c0_361] : memref<1x128xf32, #tpu.memory_space<vmem>>, vector<1x128xf32>
    %194 = vector.broadcast %193 : vector<1x128xf32> to vector<49x128xf32>
    %195 = arith.addf %192, %194 : vector<49x128xf32>
    %cst_362 = arith.constant 0.000000e+00 : f32
    %196 = vector.broadcast %cst_362 : f32 to vector<49x128xf32>
    %197 = arith.cmpf ogt, %195, %196 : vector<49x128xf32>
    %cst_363 = arith.constant 1.000000e-01 : f32
    %198 = vector.broadcast %cst_363 : f32 to vector<49x128xf32>
    %199 = arith.mulf %198, %195 : vector<49x128xf32>
    %200 = arith.select %197, %195, %199 : vector<49x128xi1>, vector<49x128xf32>
    %c0_364 = arith.constant 0 : index
    %c0_365 = arith.constant 0 : index
    %c0_366 = arith.constant 0 : index
    %201 = vector.load %arg5[%c0_364, %c0_365, %c0_366] : memref<1x49x128xf32, #tpu.memory_space<vmem>>, vector<1x49x128xf32>
    %202 = vector.shape_cast %201 : vector<1x49x128xf32> to vector<49x128xf32>
    %203 = vector.shape_cast %200 : vector<49x128xf32> to vector<1x49x128xf32>
    tpu.vector_store %arg5[%c0_364, %c0_365, %c0_366], %203 {strides = array<i32>} : memref<1x49x128xf32, #tpu.memory_space<vmem>>, vector<1x49x128xf32>,
    return
  }
  func.func @transform_0(%arg0: i32, %arg1: i32) -> (i32, i32, i32, i32) {
    %c0_i32 = arith.constant 0 : i32
    %c0_i32_0 = arith.constant 0 : i32
    %c0_i32_1 = arith.constant 0 : i32
    %c0_i32_2 = arith.constant 0 : i32
    return %arg0, %c0_i32, %c0_i32_0, %c0_i32_1 : i32, i32, i32, i32
  }
  func.func @transform_1(%arg0: i32, %arg1: i32) -> (i32, i32) {
    %c0_i32 = arith.constant 0 : i32
    %c0_i32_0 = arith.constant 0 : i32
    return %c0_i32, %arg1 : i32, i32
  }
  func.func @transform_2(%arg0: i32, %arg1: i32) -> (i32, i32) {
    %c0_i32 = arith.constant 0 : i32
    %c0_i32_0 = arith.constant 0 : i32
    return %c0_i32, %arg1 : i32, i32
  }
  func.func @transform_3(%arg0: i32, %arg1: i32) -> (i32, i32, i32) {
    %c0_i32 = arith.constant 0 : i32
    %c0_i32_0 = arith.constant 0 : i32
    return %arg0, %c0_i32, %arg1 : i32, i32, i32
  }
}

module attributes {stable_mosaic.version = 11 : i64} {
  func.func @_fc_head_kernel(%arg0: i32, %arg1: memref<8x896xbf16, #tpu.memory_space<vmem>>, %arg2: memref<896x128xbf16, #tpu.memory_space<vmem>>, %arg3: memref<1x128xf32, #tpu.memory_space<vmem>>, %arg4: memref<128x1536xbf16, #tpu.memory_space<vmem>>, %arg5: memref<1x1536xf32, #tpu.memory_space<vmem>>, %arg6: memref<8x1536xf32, #tpu.memory_space<vmem>>, %arg7: memref<8x128xf32, #tpu.memory_space<vmem>>) attributes {dimension_semantics = [#tpu.dimension_semantics<arbitrary>], iteration_bounds = array<i64: 7>, scalar_prefetch = 0 : i64, scratch_operands = 1 : i64, tpu.core_type = #tpu.core_type<tc>, window_params = [{transform_indices = @transform_0, window_bounds = array<i64: 8, 896>}, {transform_indices = @transform_1, window_bounds = array<i64: 896, 128>}, {pipeline_mode = #tpu.pipeline_mode<synchronous>, transform_indices = @transform_2, window_bounds = array<i64: 1, 128>}, {pipeline_mode = #tpu.pipeline_mode<synchronous>, transform_indices = @transform_3, window_bounds = array<i64: 128, 1536>}, {pipeline_mode = #tpu.pipeline_mode<synchronous>, transform_indices = @transform_4, window_bounds = array<i64: 1, 1536>}, {pipeline_mode = #tpu.pipeline_mode<synchronous>, transform_indices = @transform_5, window_bounds = array<i64: 8, 1536>}]} {
    %c0_i32 = arith.constant 0 : i32
    %0 = arith.cmpi eq, %arg0, %c0_i32 : i32
    %1 = arith.extui %0 : i1 to i32
    %c0_i32_0 = arith.constant 0 : i32
    %2 = arith.cmpi ne, %1, %c0_i32_0 : i32
    scf.if %2 {
      %cst_9 = arith.constant 0.000000e+00 : f32
      %12 = vector.broadcast %cst_9 : f32 to vector<8x128xf32>
      %c0_10 = arith.constant 0 : index
      %c0_11 = arith.constant 0 : index
      %13 = vector.load %arg7[%c0_10, %c0_11] : memref<8x128xf32, #tpu.memory_space<vmem>>, vector<8x128xf32>
      tpu.vector_store %arg7[%c0_10, %c0_11], %12 {strides = array<i32>} : memref<8x128xf32, #tpu.memory_space<vmem>>, vector<8x128xf32>,
    } else {
    }
    %c0 = arith.constant 0 : index
    %c0_1 = arith.constant 0 : index
    %3 = vector.load %arg7[%c0, %c0_1] : memref<8x128xf32, #tpu.memory_space<vmem>>, vector<8x128xf32>
    %c0_2 = arith.constant 0 : index
    %c0_3 = arith.constant 0 : index
    %4 = vector.load %arg1[%c0_2, %c0_3] : memref<8x896xbf16, #tpu.memory_space<vmem>>, vector<8x896xbf16>
    %c0_4 = arith.constant 0 : index
    %c0_5 = arith.constant 0 : index
    %5 = vector.load %arg2[%c0_4, %c0_5] : memref<896x128xbf16, #tpu.memory_space<vmem>>, vector<896x128xbf16>
    %cst = arith.constant dense<0.000000e+00> : vector<8x128xf32>
    %6 = tpu.matmul %4, %5, %cst {dimension_numbers = #tpu.dot_dimension_numbers<[1], [0], [0], [1], [0, 0, 1, 1], [], []>} : vector<8x896xbf16>, vector<896x128xbf16>, vector<8x128xf32> -> vector<8x128xf32>
    %7 = arith.addf %3, %6 : vector<8x128xf32>
    %c0_6 = arith.constant 0 : index
    %c0_7 = arith.constant 0 : index
    %8 = vector.load %arg7[%c0_6, %c0_7] : memref<8x128xf32, #tpu.memory_space<vmem>>, vector<8x128xf32>
    tpu.vector_store %arg7[%c0_6, %c0_7], %7 {strides = array<i32>} : memref<8x128xf32, #tpu.memory_space<vmem>>, vector<8x128xf32>,
    %c6_i32 = arith.constant 6 : i32
    %9 = arith.cmpi eq, %arg0, %c6_i32 : i32
    %10 = arith.extui %9 : i1 to i32
    %c0_i32_8 = arith.constant 0 : i32
    %11 = arith.cmpi ne, %10, %c0_i32_8 : i32
    scf.if %11 {
      %c0_9 = arith.constant 0 : index
      %c0_10 = arith.constant 0 : index
      %12 = vector.load %arg7[%c0_9, %c0_10] : memref<8x128xf32, #tpu.memory_space<vmem>>, vector<8x128xf32>
      %c0_11 = arith.constant 0 : index
      %c0_12 = arith.constant 0 : index
      %13 = vector.load %arg3[%c0_11, %c0_12] : memref<1x128xf32, #tpu.memory_space<vmem>>, vector<1x128xf32>
      %14 = vector.broadcast %13 : vector<1x128xf32> to vector<8x128xf32>
      %15 = arith.addf %12, %14 : vector<8x128xf32>
      %cst_13 = arith.constant 0.000000e+00 : f32
      %16 = vector.broadcast %cst_13 : f32 to vector<8x128xf32>
      %17 = arith.cmpf ogt, %15, %16 : vector<8x128xf32>
      %cst_14 = arith.constant 1.000000e-01 : f32
      %18 = vector.broadcast %cst_14 : f32 to vector<8x128xf32>
      %19 = arith.mulf %18, %15 : vector<8x128xf32>
      %20 = arith.select %17, %15, %19 : vector<8x128xi1>, vector<8x128xf32>
      %21 = arith.truncf %20 : vector<8x128xf32> to vector<8x128xbf16>
      %c0_15 = arith.constant 0 : index
      %c0_16 = arith.constant 0 : index
      %22 = vector.load %arg4[%c0_15, %c0_16] : memref<128x1536xbf16, #tpu.memory_space<vmem>>, vector<128x1536xbf16>
      %cst_17 = arith.constant dense<0.000000e+00> : vector<8x1536xf32>
      %23 = tpu.matmul %21, %22, %cst_17 {dimension_numbers = #tpu.dot_dimension_numbers<[1], [0], [0], [1], [0, 0, 1, 1], [], []>} : vector<8x128xbf16>, vector<128x1536xbf16>, vector<8x1536xf32> -> vector<8x1536xf32>
      %c0_18 = arith.constant 0 : index
      %c0_19 = arith.constant 0 : index
      %24 = vector.load %arg5[%c0_18, %c0_19] : memref<1x1536xf32, #tpu.memory_space<vmem>>, vector<1x1536xf32>
      %25 = vector.broadcast %24 : vector<1x1536xf32> to vector<8x1536xf32>
      %26 = arith.addf %23, %25 : vector<8x1536xf32>
      %c0_20 = arith.constant 0 : index
      %c0_21 = arith.constant 0 : index
      %27 = vector.load %arg6[%c0_20, %c0_21] : memref<8x1536xf32, #tpu.memory_space<vmem>>, vector<8x1536xf32>
      tpu.vector_store %arg6[%c0_20, %c0_21], %26 {strides = array<i32>} : memref<8x1536xf32, #tpu.memory_space<vmem>>, vector<8x1536xf32>,
    } else {
    }
    return
  }
  func.func @transform_0(%arg0: i32) -> (i32, i32) {
    %c0_i32 = arith.constant 0 : i32
    %c0_i32_0 = arith.constant 0 : i32
    return %c0_i32, %arg0 : i32, i32
  }
  func.func @transform_1(%arg0: i32) -> (i32, i32) {
    %c0_i32 = arith.constant 0 : i32
    %c0_i32_0 = arith.constant 0 : i32
    return %arg0, %c0_i32 : i32, i32
  }
  func.func @transform_2(%arg0: i32) -> (i32, i32) {
    %c0_i32 = arith.constant 0 : i32
    %c0_i32_0 = arith.constant 0 : i32
    %c0_i32_1 = arith.constant 0 : i32
    return %c0_i32, %c0_i32_0 : i32, i32
  }
  func.func @transform_3(%arg0: i32) -> (i32, i32) {
    %c0_i32 = arith.constant 0 : i32
    %c0_i32_0 = arith.constant 0 : i32
    %c0_i32_1 = arith.constant 0 : i32
    return %c0_i32, %c0_i32_0 : i32, i32
  }
  func.func @transform_4(%arg0: i32) -> (i32, i32) {
    %c0_i32 = arith.constant 0 : i32
    %c0_i32_0 = arith.constant 0 : i32
    %c0_i32_1 = arith.constant 0 : i32
    return %c0_i32, %c0_i32_0 : i32, i32
  }
  func.func @transform_5(%arg0: i32) -> (i32, i32) {
    %c0_i32 = arith.constant 0 : i32
    %c0_i32_0 = arith.constant 0 : i32
    %c0_i32_1 = arith.constant 0 : i32
    return %c0_i32, %c0_i32_0 : i32, i32
  }
}

</mosaic_0001>

<bundles_post_ra>
// kernel: yolo_forward.6
= control target key start
LH: loop header
LB: loop body
LE: loop exit
PB: predicated region body
PF: predicated region fallthrough
CT: control target
= control target key end

     0   :  { %s2229_s12 = smov 0   ;;  %s2231_s13 = smov 0   ;;  %s2572_s0 = inlined_call_operand.vmem [shape: f32[2,32,8,128], index: 0, kind: input, shape index: {}]   ;;  %s2573_s1 = inlined_call_operand.vmem [shape: bf16[1152,128], index: 1, kind: input, shape index: {}]   ;;  %s2574_s2 = inlined_call_operand.vmem [shape: f32[1,128], index: 2, kind: input, shape index: {}]   ;;  %s2575_s3 = inlined_call_operand.vmem [shape: f32[2,49,128], index: 3, kind: output, shape index: {}]  }
   0x1   :  { %s2233_s14 = smov 0  }
   0x2 LB: > { %s25_s15 = sadd.s32 1, %s2203_s13  ;;  %p1735_p0 = scmp.ge.s32.totalorder %s2207_s14, 1  ;;  %s2207_s14 = sphi %s2233_s14, %s13_s14   ;;  %s2203_s13 = sphi %s2231_s13, %s2577_s13   ;;  %s2199_s12 = sphi %s2229_s12, %s2576_s12  }
   0x3   : > { %p27_p1 = scmp.ge.s32.totalorder %s25_s15, 2  ;;  %p168_p2 = scmp.lt.s32.totalorder %s2207_s14, 3 }
   0x5   : > { %s2579_s15 = smov (%p27_p1, %s25_s15), 0  ;;  %p169_p3 = pnand %p1735_p0, %p168_p2 }
   0x6   : > { %v2113_v0 = vld [vmem:[%s2573_s1 + $0x40] sm:$0xff] (!%p169_p3)   ;;  %v2117_v4 = vld [vmem:[%s2573_s1 + $0x48] sm:$0xff] (!%p169_p3)   ;;  %v2121_v8 = vld [vmem:[%s2573_s1 + $0x50] sm:$0xff] (!%p169_p3)   ;;  %p202_p4 = scmp.lt.s32.totalorder (!%p169_p3), %s2199_s12, 1 }
   0x7   : > { %172 = sbr.rel (%p169_p3) target bundleno = 341 (0x155), region = 32  ;;  %v2114_v1 = vld [vmem:[%s2573_s1 + $0xc0] sm:$0xff] (!%p169_p3)   ;;  %1876 = vmatprep.subr.bf16.mxu0 (!%p169_p3), %v2113_v0  ;;  %v2118_v5 = vld [vmem:[%s2573_s1 + $0xc8] sm:$0xff] (!%p169_p3)   ;;  %v2122_v9 = vld [vmem:[%s2573_s1 + $0xd0] sm:$0xff] (!%p169_p3)  }
   0x8   : > { %v2115_v2 = vld [vmem:[%s2573_s1] sm:$0xff] (!%p169_p3)   ;;  %1916 = vmatprep.subr.bf16.mxu1 (!%p169_p3), %v2114_v1  ;;  %v2119_v6 = vld [vmem:[%s2573_s1 + $0x8] sm:$0xff] (!%p169_p3)   ;;  %v2123_v10 = vld [vmem:[%s2573_s1 + $0x10] sm:$0xff] (!%p169_p3)  }
   0x9   : > { %v2116_v3 = vld [vmem:[%s2573_s1 + $0x80] sm:$0xff] (!%p169_p3)   ;;  %1877 = vmatpush3.bf16.msra.mxu0 (!%p169_p3), %v2115_v2  ;;  %v2120_v7 = vld [vmem:[%s2573_s1 + $0x88] sm:$0xff] (!%p169_p3)   ;;  %v2124_v11 = vld [vmem:[%s2573_s1 + $0x90] sm:$0xff] (!%p169_p3)  }
   0xa   : > { %1917 = vmatpush3.bf16.msra.mxu1 (!%p169_p3), %v2116_v3  ;;  %1878 = vmatprep.subr.bf16.mxu0 (!%p169_p3), %v2117_v4  ;;  %v2125_v12 = vld [vmem:[%s2573_s1 + $0x58] sm:$0xff] (!%p169_p3)   ;;  %v2129_v16 = vld [vmem:[%s2573_s1 + $0x60] sm:$0xff] (!%p169_p3)   ;;  %v2133_v20 = vld [vmem:[%s2573_s1 + $0x68] sm:$0xff] (!%p169_p3)  }
   0xb   : > { %1918 = vmatprep.subr.bf16.mxu1 (!%p169_p3), %v2118_v5  ;;  %v2126_v13 = vld [vmem:[%s2573_s1 + $0xd8] sm:$0xff] (!%p169_p3)   ;;  %v2130_v17 = vld [vmem:[%s2573_s1 + $0xe0] sm:$0xff] (!%p169_p3)   ;;  %v2134_v21 = vld [vmem:[%s2573_s1 + $0xe8] sm:$0xff] (!%p169_p3)  }
   0xc   : > { %v2127_v14 = vld [vmem:[%s2573_s1 + $0x18] sm:$0xff] (!%p169_p3)   ;;  %v2131_v18 = vld [vmem:[%s2573_s1 + $0x20] sm:$0xff] (!%p169_p3)   ;;  %v2135_v22 = vld [vmem:[%s2573_s1 + $0x28] sm:$0xff] (!%p169_p3)  }
   0xd   : > { %1879 = vmatpush3.bf16.msra.mxu0 (!%p169_p3), %v2119_v6  ;;  %v2128_v15 = vld [vmem:[%s2573_s1 + $0x98] sm:$0xff] (!%p169_p3)   ;;  %v2132_v19 = vld [vmem:[%s2573_s1 + $0xa0] sm:$0xff] (!%p169_p3)   ;;  %v2136_v23 = vld [vmem:[%s2573_s1 + $0xa8] sm:$0xff] (!%p169_p3)  }
   0xe   : > { %1919 = vmatpush3.bf16.msra.mxu1 %v2120_v7  ;;  %1880 = vmatprep.subr.bf16.mxu0 %v2121_v8  ;;  %s2581_s12 = smov (!%p202_p4, %s2199_s12), 1  ;;  %v2137_v24 = vld [vmem:[%s2573_s1 + $0x70] sm:$0xff]   ;;  %v2141_v28 = vld [vmem:[%s2573_s1 + $0x78] sm:$0xff]   ;;  %v2145_v42 = vld [vmem:[%s2573_s1 + $0x140] sm:$0xff]  }
   0xf   : > { %1920 = vmatprep.subr.bf16.mxu1 %v2122_v9  ;;  %v2138_v25 = vld [vmem:[%s2573_s1 + $0xf0] sm:$0xff]   ;;  %s1875_s24 = sshll.u32 %s2581_s12, 8  ;;  %v2142_v29 = vld [vmem:[%s2573_s1 + $0xf8] sm:$0xff]   ;;  %v2146_v46 = vld [vmem:[%s2573_s1 + $0x1c0] sm:$0xff]   ;;  %s2088_s30 = smul.u32 56, %s2581_s12 }
  0x10   : > { %v2139_v26 = vld [vmem:[%s2573_s1 + $0x30] sm:$0xff]   ;;  %s2347_s6 = scalar_lea.vmem %s2572_s0, %s1875_s24  ;;  %v2143_v30 = vld [vmem:[%s2573_s1 + $0x38] sm:$0xff]   ;;  %v2147_v58 = vld [vmem:[%s2573_s1 + $0x100] sm:$0xff]  }
  0x11   : > { %1881 = vmatpush3.bf16.msra.mxu0 %v2123_v10  ;;  %v2140_v27 = vld [vmem:[%s2573_s1 + $0xb0] sm:$0xff]   ;;  %v2144_v31 = vld [vmem:[%s2573_s1 + $0xb8] sm:$0xff]   ;;  %v1745_v32 = vld [vmem:[%s2347_s6 + $0x40] sm:$0x7f]  ;;  %s2553_s7 = scalar_lea.vmem %s2575_s3, %s2088_s30 }
  0x12   : > { %1921 = vmatpush3.bf16.msra.mxu1 %v2124_v11  ;;  %1882 = vmatprep.subr.bf16.mxu0 %v2125_v12  ;;  %v1746_v33 = vld [vmem:[%s2347_s6 + $0x48] sm:$0x7f]  ;;  %v1747_v34 = vld [vmem:[%s2347_s6 + $0x50] sm:$0x7f]  ;;  %269 = vst [vmem:[#allocation2 + $0x8] sm:$0x7f] %v1745_v32 }
  0x13   : > { %1922 = vmatprep.subr.bf16.mxu1 %v2126_v13  ;;  %v273_v35 = vrot.slane %v1746_v33, 1  ;;  %v280_v36 = vrot.slane %v1747_v34, 2  ;;  %v1758_v37 = vld [vmem:[%s2347_s6 + $0x80] sm:$0x7f]  ;;  %v1759_v38 = vld [vmem:[%s2347_s6 + $0x88] sm:$0x7f] }
  0x14   : > { %352 = vst [vmem:[#allocation2 + $0x18] sm:$0x7f] %v1758_v37  ;;  %v356_v39 = vrot.slane %v1759_v38, 1  ;;  %v1760_v40 = vld [vmem:[%s2347_s6 + $0x90] sm:$0x7f]  ;;  %v2149_v60 = vld [vmem:[%s2573_s1 + $0x148] sm:$0xff]  }
  0x15   : > { %1883 = vmatpush3.bf16.msra.mxu0 %v2127_v14  ;;  %v223_v41 = vld [vmem:[%s2347_s6] sm:$0x7f]  ;;  %275 = vst [vmem:[#allocation2 + $0x8] sm:$0x80] %v273_v35  ;;  %276 = vst [vmem:[#allocation2 + $0x50] sm:$0x3f] %v273_v35 }
  0x16   : > { %1923 = vmatpush3.bf16.msra.mxu1 %v2128_v15  ;;  %1884 = vmatprep.subr.bf16.mxu0 %v2129_v16  ;;  %282 = vst [vmem:[#allocation2 + $0x50] sm:$0xc0] %v280_v36  ;;  %283 = vst [vmem:[#allocation2 + $0x98] sm:$0x1f] %v280_v36  ;;  %v363_v43 = vrot.slane %v1760_v40, 2  ;;  %v2148_v0 = vld [vmem:[%s2573_s1 + $0x180] sm:$0xff]  }
  0x17   : > { %1924 = vmatprep.subr.bf16.mxu1 %v2130_v17  ;;  %224 = vst [vmem:[#allocation2] sm:$0x7f] %v223_v41  ;;  %v1739_v44 = vld [vmem:[%s2347_s6 + $0x8] sm:$0x7f]  ;;  %v1740_v45 = vld [vmem:[%s2347_s6 + $0x10] sm:$0x7f] }
  0x18   : > { %358 = vst [vmem:[#allocation2 + $0x18] sm:$0x80] %v356_v39  ;;  %359 = vst [vmem:[#allocation2 + $0x60] sm:$0x3f] %v356_v39  ;;  %v228_v47 = vrot.slane %v1739_v44, 1  ;;  %v235_v48 = vrot.slane %v1740_v45, 2 }
  0x19   : > { %1885 = vmatpush3.bf16.msra.mxu0 %v2131_v18  ;;  %v312_v49 = vld [vmem:[%s2347_s6 + $0x1] sm:$0x7f]  ;;  %v1752_v50 = vld [vmem:[%s2347_s6 + $0x9] sm:$0x7f]  ;;  %365 = vst [vmem:[#allocation2 + $0x60] sm:$0xc0] %v363_v43 }
  0x1a   : > { %1925 = vmatpush3.bf16.msra.mxu1 %v2132_v19  ;;  %1886 = vmatprep.subr.bf16.mxu0 %v2133_v20  ;;  %366 = vst [vmem:[#allocation2 + $0xa8] sm:$0x1f] %v363_v43  ;;  %313 = vst [vmem:[#allocation2 + $0x10] sm:$0x7f] %v312_v49  ;;  %v316_v51 = vrot.slane %v1752_v50, 1  ;;  %v2150_v3 = vld [vmem:[%s2573_s1 + $0x1c8] sm:$0xff]  }
  0x1b   : > { %1926 = vmatprep.subr.bf16.mxu1 %v2134_v21  ;;  %v1753_v52 = vld [vmem:[%s2347_s6 + $0x11] sm:$0x7f]  ;;  %230 = vst [vmem:[#allocation2] sm:$0x80] %v228_v47  ;;  %231 = vst [vmem:[#allocation2 + $0x48] sm:$0x3f] %v228_v47 }
  0x1c   : > { %237 = vst [vmem:[#allocation2 + $0x48] sm:$0xc0] %v235_v48  ;;  %238 = vst [vmem:[#allocation2 + $0x90] sm:$0x1f] %v235_v48  ;;  %v322_v53 = vrot.slane %v1753_v52, 2  ;;  %v595_v54 = vld [vmem:[#allocation2 + $0x8] sm:$0xff] }
  0x1d   : > { %1887 = vmatpush3.bf16.msra.mxu0 %v2135_v22  ;;  %318 = vst [vmem:[#allocation2 + $0x10] sm:$0x80] %v316_v51  ;;  %319 = vst [vmem:[#allocation2 + $0x58] sm:$0x3f] %v316_v51  ;;  %v604_v55 = vld [vmem:[#allocation2 + $0x50] sm:$0xff]  ;;  %v2151_v5 = vld [vmem:[%s2573_s1 + $0x108] sm:$0xff]  }
  0x1e   : > { %1927 = vmatpush3.bf16.msra.mxu1 %v2136_v23  ;;  %1888 = vmatprep.subr.bf16.mxu0 %v2137_v24  ;;  %324 = vst [vmem:[#allocation2 + $0x58] sm:$0xc0] %v322_v53  ;;  %325 = vst [vmem:[#allocation2 + $0xa0] sm:$0x1f] %v322_v53  ;;  %v658_v56 = vpack.c.bf16 %v604_v55, %v595_v54  ;;  %v1748_v6 = vld [vmem:[%s2347_s6 + $0x58] sm:$0x7f] }
  0x1f   : > { %1928 = vmatprep.subr.bf16.mxu1 %v2138_v25  ;;  %v597_v57 = vld [vmem:[#allocation2 + $0x18] sm:$0xff]  ;;  %v1749_v7 = vld [vmem:[%s2347_s6 + $0x60] sm:$0x7f]  ;;  %v287_v9 = vrot.slane %v1748_v6, 3  ;;  %v2152_v13 = vld [vmem:[%s2573_s1 + $0x188] sm:$0xff]  }
  0x20   : > { %v606_v59 = vld [vmem:[#allocation2 + $0x60] sm:$0xff]  ;;  %1308 = vmatprep.mubr.bf16.mxu0 %v658_v56  ;;  %v294_v10 = vrot.slane %v1749_v7, 4  ;;  %v1761_v11 = vld [vmem:[%s2347_s6 + $0x98] sm:$0x7f]  ;;  %v2153_v24 = vld [vmem:[%s2573_s1 + $0x150] sm:$0xff]  }
  0x21   : > { %1889 = vmatpush3.bf16.msra.mxu0 %v2139_v26  ;;  %v660_v61 = vpack.c.bf16 %v606_v59, %v597_v57  ;;  %v1762_v12 = vld [vmem:[%s2347_s6 + $0xa0] sm:$0x7f]  ;;  %v370_v14 = vrot.slane %v1761_v11, 3  ;;  %v1741_v16 = vld [vmem:[%s2347_s6 + $0x18] sm:$0x7f]  ;;  %v2154_v25 = vld [vmem:[%s2573_s1 + $0x1d0] sm:$0xff]  }
  0x22   : > { %1929 = vmatpush3.bf16.msra.mxu1 %v2140_v27  ;;  %1890 = vmatprep.subr.bf16.mxu0 %v2141_v28  ;;  %v594_v62 = vld [vmem:[#allocation2] sm:$0xff]  ;;  %v377_v15 = vrot.slane %v1762_v12, 4  ;;  %289 = vst [vmem:[#allocation2 + $0xe0] ss:$-68 sps:$4 sm:$0xef] %v287_v9   ;;  %v242_v18 = vrot.slane %v1741_v16, 3 }
  0x23   : > { %1930 = vmatprep.subr.bf16.mxu1 %v2142_v29  ;;  %v603_v63 = vld [vmem:[#allocation2 + $0x48] sm:$0xff]  ;;  %1372 = vmatprep.mubr.bf16.mxu1 %v660_v61  ;;  %v1742_v17 = vld [vmem:[%s2347_s6 + $0x20] sm:$0x7f]  ;;  %296 = vst [vmem:[#allocation2 + $0x128] ss:$-68 sps:$4 sm:$0xf7] %v294_v10  }
  0x24   : > { %v657_v1 = vpack.c.bf16 %v603_v63, %v594_v62  ;;  %v596_v2 = vld [vmem:[#allocation2 + $0x10] sm:$0xff]  ;;  %v249_v19 = vrot.slane %v1742_v17, 4  ;;  %v1754_v20 = vld [vmem:[%s2347_s6 + $0x19] sm:$0x7f]  ;;  %v1755_v21 = vld [vmem:[%s2347_s6 + $0x21] sm:$0x7f] }
  0x25   : > { %1891 = vmatpush3.bf16.msra.mxu0 %v2143_v30  ;;  %v605_v4 = vld [vmem:[#allocation2 + $0x58] sm:$0xff]  ;;  %372 = vst [vmem:[#allocation2 + $0xf0] ss:$-68 sps:$4 sm:$0xef] %v370_v14   ;;  %v328_v22 = vrot.slane %v1754_v20, 3  ;;  %v334_v23 = vrot.slane %v1755_v21, 4 }
  0x26   : > { %1931 = vmatpush3.bf16.msra.mxu1 %v2144_v31  ;;  %1956 = vmatprep.subr.bf16.mxu0 %v2145_v42  ;;  %v659_v8 = vpack.c.bf16 %v605_v4, %v596_v2  ;;  %379 = vst [vmem:[#allocation2 + $0x138] ss:$-68 sps:$4 sm:$0xf7] %v377_v15   ;;  %244 = vst [vmem:[#allocation2 + $0xd8] ss:$-68 sps:$4 sm:$0xef] %v242_v18  }
  0x27   : > { %1996 = vmatprep.subr.bf16.mxu1 %v2146_v46  ;;  %251 = vst [vmem:[#allocation2 + $0x120] ss:$-68 sps:$4 sm:$0xf7] %v249_v19   ;;  %330 = vst [vmem:[#allocation2 + $0xe8] ss:$-68 sps:$4 sm:$0xef] %v328_v22  }
  0x28   : > { %1309 = vmatmul.mubr.bf16.vlgmr.msra.gmra.mrb[0].mxu0 %v657_v1  ;;  %336 = vst [vmem:[#allocation2 + $0x130] ss:$-68 sps:$4 sm:$0xf7] %v334_v23   ;;  %v2155_v26 = vld [vmem:[%s2573_s1 + $0x110] sm:$0xff]   ;;  %v2157_v28 = vld [vmem:[%s2573_s1 + $0x158] sm:$0xff]   ;;  %v2161_v51 = vld [vmem:[%s2573_s1 + $0x160] sm:$0xff]  }
  0x29   : > { %1957 = vmatpush3.bf16.msra.mxu0 %v2147_v58  ;;  %1373 = vmatmul.mubr.bf16.vlgmr.msra.gmra.mrb[0].mxu1 %v659_v8  ;;  %v2156_v27 = vld [vmem:[%s2573_s1 + $0x190] sm:$0xff]   ;;  %v613_v29 = vld [vmem:[#allocation2 + $0x98] sm:$0xff]  ;;  %v1750_v44 = vld [vmem:[%s2347_s6 + $0x68] sm:$0x7f] }
  0x2a   : > { %1958 = vmatprep.subr.bf16.mxu0 %v2149_v60  ;;  %1997 = vmatpush3.bf16.msra.mxu1 %v2148_v0  ;;  %v622_v30 = vld [vmem:[#allocation2 + $0xe0] sm:$0xff]  ;;  %v2158_v31 = vld [vmem:[%s2573_s1 + $0x1d8] sm:$0xff]   ;;  %v1751_v45 = vld [vmem:[%s2347_s6 + $0x70] sm:$0x7f]  ;;  %v301_v47 = vrot.slane %v1750_v44, 5 }
  0x2b   : > { %1998 = vmatprep.subr.bf16.mxu1 %v2150_v3  ;;  %v667_v32 = vpack.c.bf16 %v622_v30, %v613_v29  ;;  %v2159_v41 = vld [vmem:[%s2573_s1 + $0x118] sm:$0xff]   ;;  %v1763_v46 = vld [vmem:[%s2347_s6 + $0xa8] sm:$0x7f]  ;;  %v308_v48 = vrot.slane %v1751_v45, 6  ;;  %v1764_v50 = vld [vmem:[%s2347_s6 + $0xb0] sm:$0x7f] }
  0x2c   : > { %v615_v33 = vld [vmem:[#allocation2 + $0xa8] sm:$0xff]  ;;  %v2160_v43 = vld [vmem:[%s2573_s1 + $0x198] sm:$0xff]   ;;  %v384_v49 = vrot.slane %v1763_v46, 5  ;;  %v391_v52 = vrot.slane %v1764_v50, 6  ;;  %v1744_v54 = vld [vmem:[%s2347_s6 + $0x30] sm:$0x7f] }
  0x2d   : > { %1959 = vmatpush3.bf16.msra.mxu0 %v2151_v5  ;;  %v624_v34 = vld [vmem:[#allocation2 + $0xf0] sm:$0xff]  ;;  %1316 = vmatprep.mubr.bf16.mxu0 %v667_v32  ;;  %v1743_v53 = vld [vmem:[%s2347_s6 + $0x28] sm:$0x7f]  ;;  %v2162_v55 = vld [vmem:[%s2573_s1 + $0x1e0] sm:$0xff]   ;;  %303 = vst [vmem:[#allocation2 + $0x128] sm:$0xf8] %v301_v47 }
  0x2e   : > { %1960 = vmatprep.subr.bf16.mxu0 %v2153_v24  ;;  %1999 = vmatpush3.bf16.msra.mxu1 %v2152_v13  ;;  %v669_v35 = vpack.c.bf16 %v624_v34, %v615_v33  ;;  %v612_v36 = vld [vmem:[#allocation2 + $0x90] sm:$0xff]  ;;  %v621_v37 = vld [vmem:[#allocation2 + $0xd8] sm:$0xff]  ;;  %v614_v39 = vld [vmem:[#allocation2 + $0xa0] sm:$0xff]  ;;  %304 = vst [vmem:[#allocation2 + $0x170] sm:$0x3] %v301_v47  ;;  %v256_v56 = vrot.slane %v1743_v53, 5 }
  0x2f   : > { %2000 = vmatprep.subr.bf16.mxu1 %v2154_v25  ;;  %v666_v38 = vpack.c.bf16 %v621_v37, %v612_v36  ;;  %v623_v40 = vld [vmem:[#allocation2 + $0xe8] sm:$0xff]  ;;  %310 = vst [vmem:[#allocation2 + $0x170] sm:$0xfc] %v308_v48  ;;  %311 = vst [vmem:[#allocation2 + $0x1b8] sm:$0x1] %v308_v48  ;;  %v263_v57 = vrot.slane %v1744_v54, 6 }
  0x30   : > { %1380 = vmatprep.mubr.bf16.mxu1 %v669_v35  ;;  %v668_v42 = vpack.c.bf16 %v623_v40, %v614_v39  ;;  %386 = vst [vmem:[#allocation2 + $0x138] sm:$0xf8] %v384_v49  ;;  %387 = vst [vmem:[#allocation2 + $0x180] sm:$0x3] %v384_v49  ;;  %v1756_v58 = vld [vmem:[%s2347_s6 + $0x29] sm:$0x7f] }
  0x31   : > { %1961 = vmatpush3.bf16.msra.mxu0 %v2155_v26  ;;  %v1757_v59 = vld [vmem:[%s2347_s6 + $0x31] sm:$0x7f]  ;;  %393 = vst [vmem:[#allocation2 + $0x180] sm:$0xfc] %v391_v52  ;;  %394 = vst [vmem:[#allocation2 + $0x1c8] sm:$0x1] %v391_v52 }
  0x32   : > { %1962 = vmatprep.subr.bf16.mxu0 %v2157_v28  ;;  %2001 = vmatpush3.bf16.msra.mxu1 %v2156_v27  ;;  %v340_v60 = vrot.slane %v1756_v58, 5  ;;  %v346_v61 = vrot.slane %v1757_v59, 6  ;;  %258 = vst [vmem:[#allocation2 + $0x120] sm:$0xf8] %v256_v56  ;;  %259 = vst [vmem:[#allocation2 + $0x168] sm:$0x3] %v256_v56 }
  0x33   : > { %2002 = vmatprep.subr.bf16.mxu1 %v2158_v31  ;;  %1317 = vmatmul.mubr.bf16.gmra.mrb[4].mxu0 %v666_v38  ;;  %265 = vst [vmem:[#allocation2 + $0x168] sm:$0xfc] %v263_v57  ;;  %266 = vst [vmem:[#allocation2 + $0x1b0] sm:$0x1] %v263_v57  ;;  %v2163_v62 = vld [vmem:[%s2573_s1 + $0x120] sm:$0xff]   ;;  %v2165_v0 = vld [vmem:[%s2573_s1 + $0x168] sm:$0xff]  }
  0x34   : > { %1381 = vmatmul.mubr.bf16.gmra.mrb[4].mxu1 %v668_v42  ;;  %342 = vst [vmem:[#allocation2 + $0x130] sm:$0xf8] %v340_v60  ;;  %343 = vst [vmem:[#allocation2 + $0x178] sm:$0x3] %v340_v60  ;;  %v2164_v63 = vld [vmem:[%s2573_s1 + $0x1a0] sm:$0xff]   ;;  %v2166_v1 = vld [vmem:[%s2573_s1 + $0x1e8] sm:$0xff]  }
  0x35   : > { %1963 = vmatpush3.bf16.msra.mxu0 %v2159_v41  ;;  %348 = vst [vmem:[#allocation2 + $0x178] sm:$0xfc] %v346_v61  ;;  %349 = vst [vmem:[#allocation2 + $0x1c0] sm:$0x1] %v346_v61  ;;  %v631_v2 = vld [vmem:[#allocation2 + $0x128] sm:$0xff]  ;;  %v2169_v22 = vld [vmem:[%s2573_s1 + $0x170] sm:$0xff]  }
  0x36   : > { %2003 = vmatpush3.bf16.msra.mxu1 %v2160_v43  ;;  %1964 = vmatprep.subr.bf16.mxu0 %v2161_v51  ;;  %v640_v3 = vld [vmem:[#allocation2 + $0x170] sm:$0xff]  ;;  %v2167_v7 = vld [vmem:[%s2573_s1 + $0x128] sm:$0xff]   ;;  %v649_v16 = vld [vmem:[#allocation2 + $0x1b8] sm:$0x1] }
  0x37   : > { %2004 = vmatprep.subr.bf16.mxu1 %v2162_v55  ;;  %v633_v4 = vld [vmem:[#allocation2 + $0x138] sm:$0xff]  ;;  %v676_v5 = vpack.c.bf16 %v640_v3, %v631_v2  ;;  %v2168_v15 = vld [vmem:[%s2573_s1 + $0x1a8] sm:$0xff]   ;;  %v685_v18 = vpack.c.bf16 %v649_v16, %v649_v16  ;;  %v2170_v23 = vld [vmem:[%s2573_s1 + $0x1f0] sm:$0xff]  }
  0x38   : > { %v642_v6 = vld [vmem:[#allocation2 + $0x180] sm:$0xff]  ;;  %v651_v17 = vld [vmem:[#allocation2 + $0x1c8] sm:$0x1]  ;;  %v2171_v24 = vld [vmem:[%s2573_s1 + $0x130] sm:$0xff]  }
  0x39   : > { %1965 = vmatpush3.bf16.msra.mxu0 %v2163_v62  ;;  %v678_v8 = vpack.c.bf16 %v642_v6, %v633_v4  ;;  %v630_v9 = vld [vmem:[#allocation2 + $0x120] sm:$0xff]  ;;  %1324 = vmatprep.mubr.bf16.mxu0 %v676_v5  ;;  %v687_v19 = vpack.c.bf16 %v651_v17, %v651_v17  ;;  %v2172_v26 = vld [vmem:[%s2573_s1 + $0x1b0] sm:$0xff]   ;;  %v2173_v28 = vld [vmem:[%s2573_s1 + $0x178] sm:$0xff]  }
  0x3a   : > { %2005 = vmatpush3.bf16.msra.mxu1 %v2164_v63  ;;  %1966 = vmatprep.subr.bf16.mxu0 %v2165_v0  ;;  %v639_v10 = vld [vmem:[#allocation2 + $0x168] sm:$0xff]  ;;  %v648_v20 = vld [vmem:[#allocation2 + $0x1b0] sm:$0x1]  ;;  %v2174_v29 = vld [vmem:[%s2573_s1 + $0x1f8] sm:$0xff]  }
  0x3b   : > { %2006 = vmatprep.subr.bf16.mxu1 %v2166_v1  ;;  %v675_v11 = vpack.c.bf16 %v639_v10, %v630_v9  ;;  %v632_v12 = vld [vmem:[#allocation2 + $0x130] sm:$0xff]  ;;  %1388 = vmatprep.mubr.bf16.mxu1 %v678_v8  ;;  %v684_v25 = vpack.c.bf16 %v648_v20, %v648_v20  ;;  %v2175_v30 = vld [vmem:[%s2573_s1 + $0x138] sm:$0xff]   ;;  %v1772_v32 = vld [vmem:[%s2347_s6 + $0x81] sm:$0x7f] }
  0x3c   : > { %v641_v13 = vld [vmem:[#allocation2 + $0x178] sm:$0xff]  ;;  %v650_v21 = vld [vmem:[#allocation2 + $0x1c0] sm:$0x1]  ;;  %441 = vst [vmem:[#allocation2 + $0x28] sm:$0x7f] %v1772_v32 }
  0x3d   : > { %1967 = vmatpush3.bf16.msra.mxu0 %v2167_v7  ;;  %v677_v14 = vpack.c.bf16 %v641_v13, %v632_v12  ;;  %v686_v27 = vpack.c.bf16 %v650_v21, %v650_v21  ;;  %v2176_v31 = vld [vmem:[%s2573_s1 + $0x1b8] sm:$0xff]   ;;  %v1773_v33 = vld [vmem:[%s2347_s6 + $0x89] sm:$0x7f]  ;;  %v1774_v34 = vld [vmem:[%s2347_s6 + $0x91] sm:$0x7f] }
  0x3e   : > { %1325 = vmatmul.mubr.bf16.gmra.mrb[8].mxu0 %v675_v11  ;;  %2007 = vmatpush3.bf16.msra.mxu1 %v2168_v15  ;;  %v1786_v35 = vld [vmem:[%s2347_s6 + $0x48] sm:$0x7f]  ;;  %v444_v36 = vrot.slane %v1773_v33, 1  ;;  %v450_v37 = vrot.slane %v1774_v34, 2  ;;  %v1787_v38 = vld [vmem:[%s2347_s6 + $0x50] sm:$0x7f] }
  0x3f   : > { %1389 = vmatmul.mubr.bf16.gmra.mrb[8].mxu1 %v677_v14  ;;  %1332 = vmatprep.mubr.bf16.mxu0 %v685_v18  ;;  %518 = vst [vmem:[#allocation2 + $0x38] sm:$0x7f] %v1786_v35  ;;  %v1788_v39 = vld [vmem:[%s2347_s6 + $0x58] sm:$0x7f]  ;;  %v521_v40 = vrot.slane %v1787_v38, 1  ;;  %v2492_v47 = vld [vmem:[%s2573_s1 + $0x200] sm:$0xff]  }
  0x40   : > { %1396 = vmatprep.mubr.bf16.mxu1 %v687_v19  ;;  %1968 = vmatprep.subr.bf16.mxu0 %v2169_v22  ;;  %v527_v41 = vrot.slane %v1788_v39, 2  ;;  %v1765_v42 = vld [vmem:[%s2347_s6 + $0xc0] sm:$0x7f]  ;;  %v1766_v43 = vld [vmem:[%s2347_s6 + $0xc8] sm:$0x7f] }
  0x41   : > { %2008 = vmatprep.subr.bf16.mxu1 %v2170_v23  ;;  %1969 = vmatpush3.bf16.msra.mxu0 %v2171_v24  ;;  %446 = vst [vmem:[#allocation2 + $0x28] sm:$0x80] %v444_v36  ;;  %447 = vst [vmem:[#allocation2 + $0x70] sm:$0x3f] %v444_v36  ;;  %v401_v44 = vrot.slane %v1766_v43, 1  ;;  %v2178_v13 = vld [vmem:[%s2573_s1 + $0x208] sm:$0xff]  }
  0x42   : > { %2009 = vmatpush3.bf16.msra.mxu1 %v2172_v26  ;;  %1970 = vmatprep.subr.bf16.mxu0 %v2173_v28  ;;  %452 = vst [vmem:[#allocation2 + $0x70] sm:$0xc0] %v450_v37  ;;  %453 = vst [vmem:[#allocation2 + $0xb8] sm:$0x1f] %v450_v37  ;;  %v1767_v45 = vld [vmem:[%s2347_s6 + $0xd0] sm:$0x7f] }
  0x43   : > { %2010 = vmatprep.subr.bf16.mxu1 %v2174_v29  ;;  %397 = vst [vmem:[#allocation2 + $0x20] sm:$0x7f] %v1765_v42  ;;  %v1779_v46 = vld [vmem:[%s2347_s6 + $0x8] sm:$0x7f]  ;;  %523 = vst [vmem:[#allocation2 + $0x38] sm:$0x80] %v521_v40 }
  0x44   : > { %524 = vst [vmem:[#allocation2 + $0x80] sm:$0x3f] %v521_v40  ;;  %529 = vst [vmem:[#allocation2 + $0x80] sm:$0xc0] %v527_v41  ;;  %v408_v48 = vrot.slane %v1767_v45, 2  ;;  %v2179_v23 = vld [vmem:[%s2573_s1 + $0x210] sm:$0xff]  }
  0x45   : > { %1971 = vmatpush3.bf16.msra.mxu0 %v2175_v30  ;;  %530 = vst [vmem:[#allocation2 + $0xc8] sm:$0x1f] %v527_v41  ;;  %479 = vst [vmem:[#allocation2 + $0x30] sm:$0x7f] %v1779_v46  ;;  %v1780_v49 = vld [vmem:[%s2347_s6 + $0x10] sm:$0x7f] }
  0x46   : > { %1333 = vmatmul.mubr.bf16.gmra.mrb[12].mxu0 %v684_v25  ;;  %2011 = vmatpush3.bf16.msra.mxu1 %v2176_v31  ;;  %v1781_v50 = vld [vmem:[%s2347_s6 + $0x18] sm:$0x7f]  ;;  %403 = vst [vmem:[#allocation2 + $0x20] sm:$0x80] %v401_v44  ;;  %404 = vst [vmem:[#allocation2 + $0x68] sm:$0x3f] %v401_v44 }
  0x47   : > { %1397 = vmatmul.mubr.bf16.gmra.mrb[12].mxu1 %v686_v27  ;;  %v482_v51 = vrot.slane %v1780_v49, 1  ;;  %v488_v52 = vrot.slane %v1781_v50, 2  ;;  %2048 = vmatprep.subr.bf16.mxu0 %v2492_v47  ;;  %410 = vst [vmem:[#allocation2 + $0x68] sm:$0xc0] %v408_v48  ;;  %411 = vst [vmem:[#allocation2 + $0xb0] sm:$0x1f] %v408_v48 }
  0x48   : > { %2072 = vmatprep.subr.bf16.mxu1 %v2492_v47  ;;  %v1775_v53 = vld [vmem:[%s2347_s6 + $0x99] sm:$0x7f]  ;;  %v1776_v55 = vld [vmem:[%s2347_s6 + $0xa1] sm:$0x7f]  ;;  %v1790_v59 = vld [vmem:[%s2347_s6 + $0x68] sm:$0x7f] }
  0x49   : > { %484 = vst [vmem:[#allocation2 + $0x30] sm:$0x80] %v482_v51  ;;  %485 = vst [vmem:[#allocation2 + $0x78] sm:$0x3f] %v482_v51  ;;  %v456_v54 = vrot.slane %v1775_v53, 3  ;;  %v462_v57 = vrot.slane %v1776_v55, 4 }
  0x4a   : > { %490 = vst [vmem:[#allocation2 + $0x78] sm:$0xc0] %v488_v52  ;;  %491 = vst [vmem:[#allocation2 + $0xc0] sm:$0x1f] %v488_v52  ;;  %v1789_v56 = vld [vmem:[%s2347_s6 + $0x60] sm:$0x7f] }
  0x4b   : > { %v533_v58 = vrot.slane %v1789_v56, 3  ;;  %v1768_v60 = vld [vmem:[%s2347_s6 + $0xd8] sm:$0x7f]  ;;  %458 = vst [vmem:[#allocation2 + $0x100] ss:$-68 sps:$4 sm:$0xef] %v456_v54  }
  0x4c   : > { %v539_v61 = vrot.slane %v1790_v59, 4  ;;  %v415_v62 = vrot.slane %v1768_v60, 3  ;;  %v1769_v63 = vld [vmem:[%s2347_s6 + $0xe0] sm:$0x7f]  ;;  %v599_v1 = vld [vmem:[#allocation2 + $0x28] sm:$0xff]  ;;  %v608_v2 = vld [vmem:[#allocation2 + $0x70] sm:$0xff] }
  0x4d   : > { %v1782_v0 = vld [vmem:[%s2347_s6 + $0x20] sm:$0x7f]  ;;  %464 = vst [vmem:[#allocation2 + $0x148] ss:$-68 sps:$4 sm:$0xf7] %v462_v57   ;;  %v422_v3 = vrot.slane %v1769_v63, 4  ;;  %v662_v6 = vpack.c.bf16 %v608_v2, %v599_v1 }
  0x4e   : > { %535 = vst [vmem:[#allocation2 + $0x110] ss:$-68 sps:$4 sm:$0xef] %v533_v58   ;;  %v494_v4 = vrot.slane %v1782_v0, 3  ;;  %v1783_v5 = vld [vmem:[%s2347_s6 + $0x28] sm:$0x7f] }
  0x4f   : > { %v601_v7 = vld [vmem:[#allocation2 + $0x38] sm:$0xff]  ;;  %v610_v8 = vld [vmem:[#allocation2 + $0x80] sm:$0xff]  ;;  %541 = vst [vmem:[#allocation2 + $0x158] ss:$-68 sps:$4 sm:$0xf7] %v539_v61   ;;  %v500_v9 = vrot.slane %v1783_v5, 4  ;;  %1436 = vmatprep.mubr.bf16.mxu0 %v662_v6 }
  0x50   : > { %417 = vst [vmem:[#allocation2 + $0xf8] ss:$-68 sps:$4 sm:$0xef] %v415_v62   ;;  %v664_v10 = vpack.c.bf16 %v610_v8, %v601_v7  ;;  %v598_v11 = vld [vmem:[#allocation2 + $0x20] sm:$0xff]  ;;  %v607_v12 = vld [vmem:[#allocation2 + $0x68] sm:$0xff]  ;;  %v600_v15 = vld [vmem:[#allocation2 + $0x30] sm:$0xff] }
  0x51   : > { %424 = vst [vmem:[#allocation2 + $0x140] ss:$-68 sps:$4 sm:$0xf7] %v422_v3   ;;  %496 = vst [vmem:[#allocation2 + $0x108] ss:$-68 sps:$4 sm:$0xef] %v494_v4   ;;  %v661_v14 = vpack.c.bf16 %v607_v12, %v598_v11 }
  0x52   : > { %502 = vst [vmem:[#allocation2 + $0x150] ss:$-68 sps:$4 sm:$0xf7] %v500_v9   ;;  %1500 = vmatprep.mubr.bf16.mxu1 %v664_v10  ;;  %v609_v16 = vld [vmem:[#allocation2 + $0x78] sm:$0xff]  ;;  %v1777_v17 = vld [vmem:[%s2347_s6 + $0xa9] sm:$0x7f] }
  0x53   : > { %v663_v18 = vpack.c.bf16 %v609_v16, %v600_v15  ;;  %v468_v19 = vrot.slane %v1777_v17, 5  ;;  %v1778_v20 = vld [vmem:[%s2347_s6 + $0xb1] sm:$0x7f]  ;;  %1437 = vmatmul.mubr.bf16.vlgmr.msra.gmra.mrb[16].mxu0 %v661_v14  ;;  %v617_v22 = vld [vmem:[#allocation2 + $0xb8] sm:$0xff]  ;;  %v1770_v30 = vld [vmem:[%s2347_s6 + $0xe8] sm:$0x7f] }
  0x54   : > { %v1791_v21 = vld [vmem:[%s2347_s6 + $0x70] sm:$0x7f]  ;;  %v474_v24 = vrot.slane %v1778_v20, 6  ;;  %v1792_v26 = vld [vmem:[%s2347_s6 + $0x78] sm:$0x7f]  ;;  %2049 = vmatpush3.bf16.msra.mxu0 %v2492_v47  ;;  %v626_v27 = vld [vmem:[#allocation2 + $0x100] sm:$0xff] }
  0x55   : > { %v545_v25 = vrot.slane %v1791_v21, 5  ;;  %1501 = vmatmul.mubr.bf16.vlgmr.msra.gmra.mrb[16].mxu1 %v663_v18  ;;  %v619_v28 = vld [vmem:[#allocation2 + $0xc8] sm:$0xff]  ;;  %470 = vst [vmem:[#allocation2 + $0x148] sm:$0xf8] %v468_v19  ;;  %471 = vst [vmem:[#allocation2 + $0x190] sm:$0x3] %v468_v19  ;;  %2050 = vmatprep.subr.bf16.mxu0 %v2178_v13  ;;  %v671_v31 = vpack.c.bf16 %v626_v27, %v617_v22 }
  0x56   : > { %v552_v29 = vrot.slane %v1792_v26, 6  ;;  %2080 = vmatpush3.bf16.msra.mxu1 %v2492_v47  ;;  %v628_v32 = vld [vmem:[#allocation2 + $0x110] sm:$0xff]  ;;  %476 = vst [vmem:[#allocation2 + $0x190] sm:$0xfc] %v474_v24  ;;  %477 = vst [vmem:[#allocation2 + $0x1d8] sm:$0x1] %v474_v24 }
  0x57   : > { %v616_v33 = vld [vmem:[#allocation2 + $0xb0] sm:$0xff]  ;;  %547 = vst [vmem:[#allocation2 + $0x158] sm:$0xf8] %v545_v25  ;;  %548 = vst [vmem:[#allocation2 + $0x1a0] sm:$0x3] %v545_v25  ;;  %v429_v34 = vrot.slane %v1770_v30, 5  ;;  %2073 = vmatprep.subr.bf16.mxu1 %v2178_v13  ;;  %v673_v36 = vpack.c.bf16 %v628_v32, %v619_v28  ;;  %1444 = vmatprep.mubr.bf16.mxu0 %v671_v31 }
  0x58   : > { %v1771_v35 = vld [vmem:[%s2347_s6 + $0xf0] sm:$0x7f]  ;;  %v625_v37 = vld [vmem:[#allocation2 + $0xf8] sm:$0xff]  ;;  %v618_v38 = vld [vmem:[#allocation2 + $0xc0] sm:$0xff]  ;;  %554 = vst [vmem:[#allocation2 + $0x1a0] sm:$0xfc] %v552_v29  ;;  %2051 = vmatpush3.bf16.msra.mxu0 %v2178_v13 }
  0x59   : > { %555 = vst [vmem:[#allocation2 + $0x1e8] sm:$0x1] %v552_v29  ;;  %v436_v39 = vrot.slane %v1771_v35, 6  ;;  %v1784_v40 = vld [vmem:[%s2347_s6 + $0x30] sm:$0x7f]  ;;  %v670_v41 = vpack.c.bf16 %v625_v37, %v616_v33  ;;  %v627_v42 = vld [vmem:[#allocation2 + $0x108] sm:$0xff]  ;;  %1508 = vmatprep.mubr.bf16.mxu1 %v673_v36  ;;  %2052 = vmatprep.subr.bf16.mxu0 %v2179_v23 }
  0x5a   : > { %431 = vst [vmem:[#allocation2 + $0x140] sm:$0xf8] %v429_v34  ;;  %432 = vst [vmem:[#allocation2 + $0x188] sm:$0x3] %v429_v34  ;;  %v506_v43 = vrot.slane %v1784_v40, 5  ;;  %v672_v45 = vpack.c.bf16 %v627_v42, %v618_v38  ;;  %v2180_v46 = vld [vmem:[%s2573_s1 + $0x218] sm:$0xff]   ;;  %2081 = vmatpush3.bf16.msra.mxu1 %v2178_v13 }
  0x5b   : > { %v1785_v44 = vld [vmem:[%s2347_s6 + $0x38] sm:$0x7f]  ;;  %438 = vst [vmem:[#allocation2 + $0x188] sm:$0xfc] %v436_v39  ;;  %439 = vst [vmem:[#allocation2 + $0x1d0] sm:$0x1] %v436_v39  ;;  %2074 = vmatprep.subr.bf16.mxu1 %v2179_v23  ;;  %1445 = vmatmul.mubr.bf16.gmra.mrb[20].mxu0 %v670_v41 }
  0x5c   : > { %v513_v47 = vrot.slane %v1785_v44, 6  ;;  %508 = vst [vmem:[#allocation2 + $0x150] sm:$0xf8] %v506_v43  ;;  %509 = vst [vmem:[#allocation2 + $0x198] sm:$0x3] %v506_v43  ;;  %v635_v48 = vld [vmem:[#allocation2 + $0x148] sm:$0xff]  ;;  %2053 = vmatpush3.bf16.msra.mxu0 %v2179_v23 }
  0x5d   : > { %v1793_v49 = vld [vmem:[%s2347_s6 + $0x9] sm:$0x7f]  ;;  %v1794_v50 = vld [vmem:[%s2347_s6 + $0x11] sm:$0x7f]  ;;  %1509 = vmatmul.mubr.bf16.gmra.mrb[20].mxu1 %v672_v45  ;;  %v2181_v53 = vld [vmem:[%s2573_s1 + $0x220] sm:$0xff]   ;;  %2054 = vmatprep.subr.bf16.mxu0 %v2180_v46 }
  0x5e   : > { %515 = vst [vmem:[#allocation2 + $0x198] sm:$0xfc] %v513_v47  ;;  %516 = vst [vmem:[#allocation2 + $0x1e0] sm:$0x1] %v513_v47  ;;  %v644_v51 = vld [vmem:[#allocation2 + $0x190] sm:$0xff]  ;;  %v637_v52 = vld [vmem:[#allocation2 + $0x158] sm:$0xff]  ;;  %2082 = vmatpush3.bf16.msra.mxu1 %v2179_v23 }
  0x5f   : > { %557 = vst [vmem:[#allocation2 + $0x40] sm:$0x7f] %v1793_v49  ;;  %v560_v54 = vrot.slane %v1794_v50, 1  ;;  %v680_v55 = vpack.c.bf16 %v644_v51, %v635_v48  ;;  %v646_v56 = vld [vmem:[#allocation2 + $0x1a0] sm:$0xff]  ;;  %v653_v57 = vld [vmem:[#allocation2 + $0x1d8] sm:$0x1]  ;;  %2075 = vmatprep.subr.bf16.mxu1 %v2180_v46 }
  0x60   : > { %v1795_v58 = vld [vmem:[%s2347_s6 + $0x19] sm:$0x7f]  ;;  %v682_v59 = vpack.c.bf16 %v646_v56, %v637_v52  ;;  %v1797_v62 = vld [vmem:[%s2347_s6 + $0x29] sm:$0x7f]  ;;  %v1798_v63 = vld [vmem:[%s2347_s6 + $0x31] sm:$0x7f]  ;;  %2055 = vmatpush3.bf16.msra.mxu0 %v2180_v46  ;;  %v689_v13 = vpack.c.bf16 %v653_v57, %v653_v57 }
  0x61   : > { %v634_v60 = vld [vmem:[#allocation2 + $0x140] sm:$0xff]  ;;  %562 = vst [vmem:[#allocation2 + $0x40] sm:$0x80] %v560_v54  ;;  %563 = vst [vmem:[#allocation2 + $0x88] sm:$0x3f] %v560_v54  ;;  %v566_v61 = vrot.slane %v1795_v58, 2  ;;  %1452 = vmatprep.mubr.bf16.mxu0 %v680_v55  ;;  %2056 = vmatprep.subr.bf16.mxu0 %v2181_v53 }
  0x62   : > { %v643_v0 = vld [vmem:[#allocation2 + $0x188] sm:$0xff]  ;;  %v578_v2 = vrot.slane %v1797_v62, 4  ;;  %v584_v3 = vrot.slane %v1798_v63, 5  ;;  %1516 = vmatprep.mubr.bf16.mxu1 %v682_v59  ;;  %v1799_v6 = vld [vmem:[%s2347_s6 + $0x39] sm:$0x7f]  ;;  %2083 = vmatpush3.bf16.msra.mxu1 %v2180_v46  ;;  %v2183_v17 = vld [vmem:[%s2573_s1 + $0x230] sm:$0xff]  }
  0x63   : > { %v655_v1 = vld [vmem:[#allocation2 + $0x1e8] sm:$0x1]  ;;  %v679_v4 = vpack.c.bf16 %v643_v0, %v634_v60  ;;  %v636_v5 = vld [vmem:[#allocation2 + $0x150] sm:$0xff]  ;;  %568 = vst [vmem:[#allocation2 + $0x88] sm:$0xc0] %v566_v61  ;;  %v590_v10 = vrot.slane %v1799_v6, 6  ;;  %2076 = vmatprep.subr.bf16.mxu1 %v2181_v53 }
  0x64   : > { %569 = vst [vmem:[#allocation2 + $0xd0] sm:$0x1f] %v566_v61  ;;  %v1796_v7 = vld [vmem:[%s2347_s6 + $0x21] sm:$0x7f]  ;;  %v2182_v9 = vld [vmem:[%s2573_s1 + $0x228] sm:$0xff]   ;;  %v691_v14 = vpack.c.bf16 %v655_v1, %v655_v1  ;;  %2057 = vmatpush3.bf16.msra.mxu0 %v2181_v53  ;;  %v2184_v23 = vld [vmem:[%s2573_s1 + $0x238] sm:$0xff]  }
  0x65   : > { %v645_v8 = vld [vmem:[#allocation2 + $0x198] sm:$0xff]  ;;  %580 = vst [vmem:[#allocation2 + $0x160] ss:$-68 sps:$4 sm:$0xf7] %v578_v2   ;;  %586 = vst [vmem:[#allocation2 + $0x160] sm:$0xf8] %v584_v3  ;;  %1453 = vmatmul.mubr.bf16.gmra.mrb[24].mxu0 %v679_v4  ;;  %2058 = vmatprep.subr.bf16.mxu0 %v2182_v9 }
  0x66   : > { %587 = vst [vmem:[#allocation2 + $0x1a8] sm:$0x3] %v584_v3  ;;  %v572_v11 = vrot.slane %v1796_v7, 3  ;;  %v681_v12 = vpack.c.bf16 %v645_v8, %v636_v5  ;;  %592 = vst [vmem:[#allocation2 + $0x1a8] sm:$0xfc] %v590_v10  ;;  %2084 = vmatpush3.bf16.msra.mxu1 %v2181_v53  ;;  %1460 = vmatprep.mubr.bf16.mxu0 %v689_v13 }
  0x67   : > { %593 = vst [vmem:[#allocation2 + $0x1f0] sm:$0x1] %v590_v10  ;;  %v652_v15 = vld [vmem:[#allocation2 + $0x1d0] sm:$0x1]  ;;  %v654_v16 = vld [vmem:[#allocation2 + $0x1e0] sm:$0x1]  ;;  %2077 = vmatprep.subr.bf16.mxu1 %v2182_v9 }
  0x68   : > { %574 = vst [vmem:[#allocation2 + $0x118] ss:$-68 sps:$4 sm:$0xef] %v572_v11   ;;  %1517 = vmatmul.mubr.bf16.gmra.mrb[24].mxu1 %v681_v12  ;;  %v688_v18 = vpack.c.bf16 %v652_v15, %v652_v15  ;;  %v602_v19 = vld [vmem:[#allocation2 + $0x40] sm:$0xff]  ;;  %2059 = vmatpush3.bf16.msra.mxu0 %v2182_v9  ;;  %v690_v21 = vpack.c.bf16 %v654_v16, %v654_v16 }
  0x69   : > { %1524 = vmatprep.mubr.bf16.mxu1 %v691_v14  ;;  %2060 = vmatprep.subr.bf16.mxu0 %v2183_v17  ;;  %v1800_v33 = vld [vmem:[%s2574_s2] ss:$0 sm:$0xff] }
  0x6a   : > { %v611_v20 = vld [vmem:[#allocation2 + $0x88] sm:$0xff]  ;;  %2085 = vmatpush3.bf16.msra.mxu1 %v2182_v9 }
  0x6b   : > { %2078 = vmatprep.subr.bf16.mxu1 %v2183_v17  ;;  %v665_v24 = vpack.c.bf16 %v611_v20, %v602_v19 }
  0x6c   : > { %v638_v22 = vld [vmem:[#allocation2 + $0x160] sm:$0xff]  ;;  %2061 = vmatpush3.bf16.msra.mxu0 %v2183_v17 }
  0x6d   : > { %v647_v25 = vld [vmem:[#allocation2 + $0x1a8] sm:$0xff]  ;;  %1461 = vmatmul.mubr.bf16.gmra.mrb[28].mxu0 %v688_v18  ;;  %2062 = vmatprep.subr.bf16.mxu0 %v2184_v23 }
  0x6e   : > { %v683_v26 = vpack.c.bf16 %v647_v25, %v638_v22  ;;  %2086 = vmatpush3.bf16.msra.mxu1 %v2183_v17  ;;  %v656_v29 = vld [vmem:[#allocation2 + $0x1f0] sm:$0x1]  ;;  %2064 = vmatprep.mubr.bf16.mxu0 %v665_v24 }
  0x6f   : > { %v620_v27 = vld [vmem:[#allocation2 + $0xd0] sm:$0xff]  ;;  %v629_v28 = vld [vmem:[#allocation2 + $0x118] sm:$0xff]  ;;  %2079 = vmatprep.subr.bf16.mxu1 %v2184_v23  ;;  %v692_v31 = vpack.c.bf16 %v656_v29, %v656_v29 }
  0x70   : > { %1525 = vmatmul.mubr.bf16.gmra.mrb[28].mxu1 %v690_v21  ;;  %v674_v30 = vpack.c.bf16 %v629_v28, %v620_v27  ;;  %2063 = vmatpush3.bf16.msra.mxu0 %v2184_v23 }
  0x71   : > { %2068 = vmatprep.mubr.bf16.mxu1 %v683_v26 }
  0x72   : > { %2087 = vmatpush3.bf16.msra.mxu1 %v2184_v23 }
  0x75   : > { %2065 = vmatmul.mubr.bf16.vlgmr.msra.gmra.mrb[32].mxu0 %v674_v30 }
  0x78   : > { %2069 = vmatmul.mubr.bf16.vlgmr.msra.gmra.mrb[32].mxu1 %v692_v31 }
  0xfb   : > { %v1892_v32 = vpop.f32.mrb[0].mxu0 }
  0xfc   : > { %v1893_v34 = vpop.f32.mrb[1].mxu0  ;;  %v1932_v35 = vpop.f32.mrb[0].mxu1 }
  0xfd   : > { %v1894_v36 = vadd.f32 %v1893_v34, %v1892_v32  ;;  %v1895_v37 = vpop.f32.mrb[2].mxu0  ;;  %v1933_v38 = vpop.f32.mrb[1].mxu1 }
  0xfe   : > { %v1896_v39 = vpop.f32.mrb[3].mxu0  ;;  %v1934_v41 = vadd.f32 %v1933_v38, %v1932_v35  ;;  %v1935_v42 = vpop.f32.mrb[2].mxu1 }
  0xff   : > { %v1311_v40 = vadd.f32 %v1894_v36, %v1800_v33  ;;  %v1897_v43 = vadd.f32 %v1896_v39, %v1895_v37  ;;  %v1936_v44 = vpop.f32.mrb[3].mxu1 }
 0x100   : > { %v1937_v47 = vadd.f32 %v1936_v44, %v1935_v42 }
 0x101   : > { %v1375_v45 = vadd.f32 %v1934_v41, %v1311_v40  ;;  %v1314_v46 = vadd.f32 %v1897_v43, %v1800_v33 }
 0x103   : > { %v1378_v48 = vadd.f32 %v1937_v47, %v1314_v46 }
 0x106   : > { %v1898_v49 = vpop.f32.mrb[4].mxu0 }
 0x107   : > { %v1938_v50 = vpop.f32.mrb[4].mxu1  ;;  %v1899_v51 = vpop.f32.mrb[5].mxu0 }
 0x108   : > { %v1900_v52 = vadd.f32 %v1899_v51, %v1898_v49  ;;  %v1939_v53 = vpop.f32.mrb[5].mxu1  ;;  %v1901_v54 = vpop.f32.mrb[6].mxu0 }
 0x109   : > { %v1940_v55 = vadd.f32 %v1939_v53, %v1938_v50  ;;  %v1941_v56 = vpop.f32.mrb[6].mxu1  ;;  %v1902_v57 = vpop.f32.mrb[7].mxu0 }
 0x10a   : > { %v1319_v58 = vadd.f32 %v1900_v52, %v1800_v33  ;;  %v1903_v59 = vadd.f32 %v1902_v57, %v1901_v54  ;;  %v1942_v60 = vpop.f32.mrb[7].mxu1 }
 0x10b   : > { %v1943_v61 = vadd.f32 %v1942_v60, %v1941_v56 }
 0x10c   : > { %v1383_v62 = vadd.f32 %v1940_v55, %v1319_v58  ;;  %v1322_v63 = vadd.f32 %v1903_v59, %v1800_v33 }
 0x10e   : > { %v1386_v0 = vadd.f32 %v1943_v61, %v1322_v63 }
 0x111   : > { %v1904_v1 = vpop.f32.mrb[8].mxu0 }
 0x112   : > { %v1944_v2 = vpop.f32.mrb[8].mxu1  ;;  %v1905_v3 = vpop.f32.mrb[9].mxu0 }
 0x113   : > { %v1906_v4 = vadd.f32 %v1905_v3, %v1904_v1  ;;  %v1945_v5 = vpop.f32.mrb[9].mxu1  ;;  %v1907_v6 = vpop.f32.mrb[10].mxu0 }
 0x114   : > { %v1946_v7 = vadd.f32 %v1945_v5, %v1944_v2  ;;  %v1947_v8 = vpop.f32.mrb[10].mxu1  ;;  %v1908_v9 = vpop.f32.mrb[11].mxu0 }
 0x115   : > { %v1327_v10 = vadd.f32 %v1906_v4, %v1800_v33  ;;  %v1909_v11 = vadd.f32 %v1908_v9, %v1907_v6  ;;  %v1948_v12 = vpop.f32.mrb[11].mxu1 }
 0x116   : > { %v1949_v13 = vadd.f32 %v1948_v12, %v1947_v8 }
 0x117   : > { %v1391_v14 = vadd.f32 %v1946_v7, %v1327_v10  ;;  %v1330_v15 = vadd.f32 %v1909_v11, %v1800_v33 }
 0x119   : > { %v1394_v16 = vadd.f32 %v1949_v13, %v1330_v15  ;;  %v1910_v17 = vpop.f32.mrb[12].mxu0 }
 0x11a   : > { %v1950_v18 = vpop.f32.mrb[12].mxu1  ;;  %v1911_v19 = vpop.f32.mrb[13].mxu0 }
 0x11b   : > { %v1912_v20 = vadd.f32 %v1911_v19, %v1910_v17  ;;  %v1951_v21 = vpop.f32.mrb[13].mxu1  ;;  %v1913_v22 = vpop.f32.mrb[14].mxu0 }
 0x11c   : > { %v1952_v23 = vadd.f32 %v1951_v21, %v1950_v18  ;;  %v1953_v24 = vpop.f32.mrb[14].mxu1  ;;  %v1914_v25 = vpop.f32.mrb[15].mxu0 }
 0x11d   : > { %v1335_v26 = vadd.f32 %v1912_v20, %v1800_v33  ;;  %v1954_v27 = vpop.f32.mrb[15].mxu1 }
 0x11f   : > { %v1399_v28 = vadd.f32 %v1952_v23, %v1335_v26 }
 0x126   : > { %v1972_v29 = vpop.f32.mrb[16].mxu0 }
 0x127   : > { %v1973_v31 = vpop.f32.mrb[17].mxu0 }
 0x128   : > { %v2012_v30 = vpop.f32.mrb[16].mxu1  ;;  %v1974_v32 = vadd.f32 %v1973_v31, %v1972_v29  ;;  %v1975_v35 = vpop.f32.mrb[18].mxu0 }
 0x129   : > { %v2013_v34 = vpop.f32.mrb[17].mxu1  ;;  %v1976_v38 = vpop.f32.mrb[19].mxu0 }
 0x12a   : > { %v2014_v36 = vadd.f32 %v2013_v34, %v2012_v30  ;;  %v2015_v37 = vpop.f32.mrb[18].mxu1  ;;  %v1439_v39 = vadd.f32 %v1974_v32, %v1375_v45  ;;  %v1977_v40 = vadd.f32 %v1976_v38, %v1975_v35 }
 0x12b   : > { %v2016_v41 = vpop.f32.mrb[19].mxu1 }
 0x12c   : > { %v2017_v42 = vadd.f32 %v2016_v41, %v2015_v37  ;;  %v1442_v43 = vadd.f32 %v1977_v40, %v1378_v48  ;;  %v1503_v44 = vadd.f32 %v2014_v36, %v1439_v39 }
 0x12e   : > { %v1978_v46 = vpop.f32.mrb[20].mxu0  ;;  %v2547_v47 = vadd.f32 %v2017_v42, %v1442_v43 }
 0x12f   : > { %v1979_v49 = vpop.f32.mrb[21].mxu0 }
 0x130   : > { %v2018_v33 = vpop.f32.mrb[20].mxu1  ;;  %v1980_v50 = vadd.f32 %v1979_v49, %v1978_v46  ;;  %v1981_v52 = vpop.f32.mrb[22].mxu0 }
 0x131   : > { %v2019_v51 = vpop.f32.mrb[21].mxu1  ;;  %v1982_v55 = vpop.f32.mrb[23].mxu0 }
 0x132   : > { %v2020_v53 = vadd.f32 %v2019_v51, %v2018_v33  ;;  %v2021_v54 = vpop.f32.mrb[22].mxu1  ;;  %v1447_v56 = vadd.f32 %v1980_v50, %v1383_v62  ;;  %v1983_v57 = vadd.f32 %v1982_v55, %v1981_v52 }
 0x133   : > { %v2022_v58 = vpop.f32.mrb[23].mxu1 }
 0x134   : > { %v2023_v45 = vadd.f32 %v2022_v58, %v2021_v54  ;;  %v1450_v59 = vadd.f32 %v1983_v57, %v1386_v0  ;;  %v1511_v60 = vadd.f32 %v2020_v53, %v1447_v56 }
 0x136   : > { %v1514_v48 = vadd.f32 %v2023_v45, %v1450_v59 }
 0x138   : > { %v1984_v61 = vpop.f32.mrb[24].mxu0 }
 0x139   : > { %v1985_v1 = vpop.f32.mrb[25].mxu0 }
 0x13a   : > { %v1986_v2 = vadd.f32 %v1985_v1, %v1984_v61  ;;  %v1987_v4 = vpop.f32.mrb[26].mxu0 }
 0x13b   : > { %v2024_v63 = vpop.f32.mrb[24].mxu1  ;;  %v1988_v7 = vpop.f32.mrb[27].mxu0 }
 0x13c   : > { %v2025_v3 = vpop.f32.mrb[25].mxu1  ;;  %v1455_v8 = vadd.f32 %v1986_v2, %v1391_v14  ;;  %v1989_v9 = vadd.f32 %v1988_v7, %v1987_v4 }
 0x13d   : > { %v2026_v5 = vadd.f32 %v2025_v3, %v2024_v63  ;;  %v2027_v6 = vpop.f32.mrb[26].mxu1 }
 0x13e   : > { %v2028_v10 = vpop.f32.mrb[27].mxu1  ;;  %v1458_v62 = vadd.f32 %v1989_v9, %v1394_v16 }
 0x13f   : > { %v2029_v11 = vadd.f32 %v2028_v10, %v2027_v6  ;;  %v1519_v12 = vadd.f32 %v2026_v5, %v1455_v8 }
 0x140   : > { %v1990_v13 = vpop.f32.mrb[28].mxu0 }
 0x141   : > { %v1522_v0 = vadd.f32 %v2029_v11, %v1458_v62  ;;  %v1991_v17 = vpop.f32.mrb[29].mxu0 }
 0x142   : > { %v1992_v18 = vadd.f32 %v1991_v17, %v1990_v13  ;;  %v1993_v20 = vpop.f32.mrb[30].mxu0 }
 0x143   : > { %v2030_v15 = vpop.f32.mrb[28].mxu1  ;;  %v1994_v23 = vpop.f32.mrb[31].mxu0 }
 0x144   : > { %v2031_v19 = vpop.f32.mrb[29].mxu1  ;;  %v1463_v24 = vadd.f32 %v1992_v18, %v1399_v28 }
 0x145   : > { %v2032_v21 = vadd.f32 %v2031_v19, %v2030_v15  ;;  %v2033_v22 = vpop.f32.mrb[30].mxu1 }
 0x146   : > { %v2034_v25 = vpop.f32.mrb[31].mxu1 }
 0x147   : > { %v1527_v26 = vadd.f32 %v2032_v21, %v1463_v24 }
 0x148   : > { %v2066_v14 = vpop.f32.mrb[32].mxu0 }
 0x149   : > { %v1575_v27 = vadd.f32 %v2066_v14, %v1511_v60  ;;  %v1566_v30 = vpop.f32.mrb[33].mxu0 }
 0x14a   : > { %v1567_v31 = vadd.f32 %v1566_v30, %v1503_v44  ;;  %v2067_v34 = vpop.f32.mrb[34].mxu0 }
 0x14b   : > { %v2070_v29 = vpop.f32.mrb[32].mxu1  ;;  %vm1598_vm0 = vcmp.gt.f32.partialorder %v1575_v27, 0.0  ;;  %v1605_v35 = vmul.f32 0.1, %v1575_v27  ;;  %v1578_v36 = vadd.f32 %v2067_v34, %v1514_v48  ;;  %v1569_v38 = vpop.f32.mrb[35].mxu0 }
 0x14c   : > { %v1591_v16 = vadd.f32 %v2070_v29, %v1527_v26  ;;  %v1582_v32 = vpop.f32.mrb[33].mxu1  ;;  %vm1596_vm2 = vcmp.gt.f32.partialorder %v1567_v31, 0.0  ;;  %v1603_v40 = vmul.f32 0.1, %v1567_v31  ;;  %v1570_v49 = vadd.f32 %v1569_v38, %v2547_v47 }
 0x14d   : > { %v1583_v28 = vadd.f32 %v1582_v32, %v1519_v12  ;;  %v2071_v37 = vpop.f32.mrb[34].mxu1  ;;  %v1612_v41 = vsel %vm1598_vm0, %v1575_v27, %v1605_v35  ;;  %vm1599_vm4 = vcmp.gt.f32.partialorder %v1578_v36, 0.0  ;;  %v1606_v33 = vmul.f32 0.1, %v1578_v36 }
 0x14e   : > { %vm1602_vm1 = vcmp.gt.f32.partialorder %v1591_v16, 0.0  ;;  %v1609_v39 = vmul.f32 0.1, %v1591_v16  ;;  %v1585_v43 = vpop.f32.mrb[35].mxu1  ;;  %1619 = vst [vmem:[%s2553_s7 + $0x10] sm:$0xff] %v1612_v41  ;;  %v1610_v46 = vsel %vm1596_vm2, %v1567_v31, %v1603_v40  ;;  %vm1597_vm5 = vcmp.gt.f32.partialorder %v1570_v49, 0.0 }
 0x14f   : > { %vm1600_vm3 = vcmp.gt.f32.partialorder %v1583_v28, 0.0  ;;  %v1607_v42 = vmul.f32 0.1, %v1583_v28  ;;  %1617 = vst [vmem:[%s2553_s7] sm:$0xff] %v1610_v46  ;;  %v1586_v51 = vadd.f32 %v1585_v43, %v1522_v0  ;;  %v1613_v52 = vsel %vm1599_vm4, %v1578_v36, %v1606_v33 }
 0x150   : > { %v1616_v44 = vsel %vm1602_vm1, %v1591_v16, %v1609_v39  ;;  %v1604_v53 = vmul.f32 0.1, %v1570_v49  ;;  %1620 = vst [vmem:[%s2553_s7 + $0x18] sm:$0xff] %v1613_v52 }
 0x151   : > { %1623 = vst [vmem:[%s2553_s7 + $0x30] sm:$0x1] %v1616_v44  ;;  %v1614_v50 = vsel %vm1600_vm3, %v1583_v28, %v1607_v42  ;;  %vm1601_vm6 = vcmp.gt.f32.partialorder %v1586_v51, 0.0  ;;  %v1608_v54 = vmul.f32 0.1, %v1586_v51 }
 0x152   : > { %1621 = vst [vmem:[%s2553_s7 + $0x20] sm:$0xff] %v1614_v50  ;;  %v1611_v55 = vsel %vm1597_vm5, %v1570_v49, %v1604_v53 }
 0x153   : > { %1618 = vst [vmem:[%s2553_s7 + $0x8] sm:$0xff] %v1611_v55  ;;  %v1615_v56 = vsel %vm1601_vm6, %v1586_v51, %v1608_v54 }
 0x154   : > { %1622 = vst [vmem:[%s2553_s7 + $0x28] sm:$0xff] %v1615_v56 }
 0x155 PF: > { %s13_s14 = sadd.s32 1, %s2207_s14   ;;  %s2576_s12 = smov %s2203_s13 }
 0x156   : > { %p10_p5 = scmp.ge.s32.totalorder %s13_s14, 4   ;;  %s2577_s13 = smov %s2579_s15 }
 0x158   :  { %12 = sbr.rel (!%p10_p5) target bundleno = 2 (0x2), region = 97 }

// kernel: yolo_forward.9
= control target key start
LH: loop header
LB: loop body
LE: loop exit
PB: predicated region body
PF: predicated region fallthrough
CT: control target
= control target key end

     0   :  { %s2361_s18 = smov 0   ;;  %s2795_s0 = inlined_call_operand.vmem [shape: bf16[8,6272], index: 0, kind: input, shape index: {}]   ;;  %s2796_s1 = inlined_call_operand.vmem [shape: bf16[6272,128], index: 1, kind: input, shape index: {}]   ;;  %s2797_s2 = inlined_call_operand.vmem [shape: f32[1,128], index: 2, kind: input, shape index: {}]   ;;  %s2798_s3 = inlined_call_operand.vmem [shape: bf16[128,1536], index: 3, kind: input, shape index: {}]   ;;  %s2799_s4 = inlined_call_operand.vmem [shape: f32[1,1536], index: 4, kind: input, shape index: {}]   ;;  %s2800_s5 = inlined_call_operand.vmem [shape: f32[8,1536], index: 5, kind: output, shape index: {}]  }
   0x1 LB: > { %s2367_s19 = sadd.s32 4294967295, %s2325_s18   ;;  %p1838_p0 = scmp.ge.s32.totalorder %s2325_s18, 1  ;;  %s2325_s18 = sphi %s2361_s18, %s15_s18  }
   0x2   : > { %p194_p1 = scmp.lt.s32.totalorder %s2325_s18, 8 }
   0x4   : > { %p195_p2 = pnand %p1838_p0, %p194_p1 }
   0x5   : > { %s222_s20 = smul.u32 (!%p195_p2), 7, %s2367_s19  ;;  %p1841_p5 = scmp.ne.s32.totalorder (!%p195_p2), %s2367_s19, 0 }
   0x6   : > { %198 = sbr.rel (%p195_p2) target bundleno = 605 (0x25d), region = 40 }
   0x7   : > { %s228_s21 = smul.u32 (!%p195_p2), 112, %s2367_s19  ;;  %p223_p3 = scmp.lt.s32.totalorder (!%p195_p2), %s222_s20, 48 }
   0x9   : > { %p229_p4 = scmp.lt.s32.totalorder (!%p195_p2), %s228_s21, 783 }
   0xd   : > { %s2802_s20 = smov (!%p223_p3, %s222_s20), 48  ;;  %s2804_s21 = smov (!%p229_p4, %s228_s21), 783 }
   0xe   : > { %s1839_s22 = sshll.u32 %s2802_s20, 2  ;;  %s1840_s26 = sshll.u32 %s2804_s21, 2  ;;  %v2327_v0 = vmov (!%p1841_p5), 0.0  }
   0xf   : > { %s2376_s25 = scalar_lea.vmem %s2795_s0, %s1839_s22  ;;  %s2381_s29 = scalar_lea.vmem %s2796_s1, %s1840_s26  ;;  %239 = vst [vmem:[#allocation2] sm:$0xff] (!%p1841_p5), %v2327_v0 }
  0x10   : > { %238 = sbr.rel (%p1841_p5) target bundleno = 23 (0x17), region = 44 }
  0x17 PF: > { %v2112_v1 = vld [vmem:[%s2381_s29 + $0x40] sm:$0xff]   ;;  %v2116_v5 = vld [vmem:[%s2381_s29 + $0x48] sm:$0xff]   ;;  %v2120_v9 = vld [vmem:[%s2381_s29 + $0x50] sm:$0xff]   ;;  %v2328_v41 = vmov 0.0   ;;  %vm2329_vm0 = vmmov 0   ;;  %p1905_p6 = scmp.ne.s32.totalorder %s2367_s19, 6 }
  0x18   : > { %v2113_v2 = vld [vmem:[%s2381_s29 + $0xc0] sm:$0xff]   ;;  %2005 = vmatprep.subr.bf16.mxu0 %v2112_v1  ;;  %v2117_v6 = vld [vmem:[%s2381_s29 + $0xc8] sm:$0xff]   ;;  %v2121_v10 = vld [vmem:[%s2381_s29 + $0xd0] sm:$0xff]  }
  0x19   : > { %v2114_v3 = vld [vmem:[%s2381_s29] sm:$0xff]   ;;  %2027 = vmatprep.subr.bf16.mxu1 %v2113_v2  ;;  %v2118_v7 = vld [vmem:[%s2381_s29 + $0x8] sm:$0xff]   ;;  %v2122_v11 = vld [vmem:[%s2381_s29 + $0x10] sm:$0xff]  }
  0x1a   : > { %v2115_v4 = vld [vmem:[%s2381_s29 + $0x80] sm:$0xff]   ;;  %2006 = vmatpush3.bf16.msra.mxu0 %v2114_v3  ;;  %v2119_v8 = vld [vmem:[%s2381_s29 + $0x88] sm:$0xff]   ;;  %v2123_v12 = vld [vmem:[%s2381_s29 + $0x90] sm:$0xff]  }
  0x1b   : > { %2028 = vmatpush3.bf16.msra.mxu1 %v2115_v4  ;;  %2007 = vmatprep.subr.bf16.mxu0 %v2116_v5  ;;  %v2124_v13 = vld [vmem:[%s2381_s29 + $0x58] sm:$0xff]   ;;  %v2128_v17 = vld [vmem:[%s2381_s29 + $0x60] sm:$0xff]   ;;  %v2132_v21 = vld [vmem:[%s2381_s29 + $0x68] sm:$0xff]  }
  0x1c   : > { %2029 = vmatprep.subr.bf16.mxu1 %v2117_v6  ;;  %v2125_v14 = vld [vmem:[%s2381_s29 + $0xd8] sm:$0xff]   ;;  %v2129_v18 = vld [vmem:[%s2381_s29 + $0xe0] sm:$0xff]   ;;  %v2133_v22 = vld [vmem:[%s2381_s29 + $0xe8] sm:$0xff]  }
  0x1d   : > { %v2126_v15 = vld [vmem:[%s2381_s29 + $0x18] sm:$0xff]   ;;  %v2130_v19 = vld [vmem:[%s2381_s29 + $0x20] sm:$0xff]   ;;  %v2134_v23 = vld [vmem:[%s2381_s29 + $0x28] sm:$0xff]  }
  0x1e   : > { %2008 = vmatpush3.bf16.msra.mxu0 %v2118_v7  ;;  %v2127_v16 = vld [vmem:[%s2381_s29 + $0x98] sm:$0xff]   ;;  %v2131_v20 = vld [vmem:[%s2381_s29 + $0xa0] sm:$0xff]   ;;  %v2135_v24 = vld [vmem:[%s2381_s29 + $0xa8] sm:$0xff]  }
  0x1f   : > { %2030 = vmatpush3.bf16.msra.mxu1 %v2119_v8  ;;  %2009 = vmatprep.subr.bf16.mxu0 %v2120_v9  ;;  %v2136_v25 = vld [vmem:[%s2381_s29 + $0x70] sm:$0xff]   ;;  %v2140_v29 = vld [vmem:[%s2381_s29 + $0x78] sm:$0xff]   ;;  %v241_v33 = vld [vmem:[%s2376_s25] sm:$0xff] }
  0x20   : > { %2031 = vmatprep.subr.bf16.mxu1 %v2121_v10  ;;  %v2137_v26 = vld [vmem:[%s2381_s29 + $0xf0] sm:$0xff]   ;;  %v2141_v30 = vld [vmem:[%s2381_s29 + $0xf8] sm:$0xff]   ;;  %v242_v34 = vld [vmem:[%s2376_s25 + $0x8] sm:$0xff]  ;;  %v1842_v35 = vcombine.low %v241_v33, %v241_v33  ;;  %v1843_v36 = vcombine.high %v241_v33, %v241_v33 }
  0x21   : > { %v2138_v27 = vld [vmem:[%s2381_s29 + $0x30] sm:$0xff]   ;;  %v2142_v31 = vld [vmem:[%s2381_s29 + $0x38] sm:$0xff]   ;;  %v1844_v37 = vcombine.low %v242_v34, %v242_v34  ;;  %v1845_v38 = vcombine.high %v242_v34, %v242_v34  ;;  %v2148_v39 = vld [vmem:[%s2381_s29 + $0x140] sm:$0xff]  }
  0x22   : > { %2010 = vmatpush3.bf16.msra.mxu0 %v2122_v11  ;;  %v2139_v28 = vld [vmem:[%s2381_s29 + $0xb0] sm:$0xff]   ;;  %v2143_v32 = vld [vmem:[%s2381_s29 + $0xb8] sm:$0xff]   ;;  %v2149_v40 = vld [vmem:[%s2381_s29 + $0x100] sm:$0xff]   ;;  %750 = vmatprep.mubr.bf16.mxu0 %v1843_v36 }
  0x23   : > { %2032 = vmatpush3.bf16.msra.mxu1 %v2123_v12  ;;  %2011 = vmatprep.subr.bf16.mxu0 %v2124_v13  ;;  %v2150_v42 = vld [vmem:[%s2381_s29 + $0x180] sm:$0xff]   ;;  %v2151_v43 = vld [vmem:[%s2381_s29 + $0x148] sm:$0xff]   ;;  %v2154_v46 = vld [vmem:[%s2381_s29 + $0x150] sm:$0xff]  }
  0x24   : > { %2033 = vmatprep.subr.bf16.mxu1 %v2125_v14  ;;  %790 = vmatprep.mubr.bf16.mxu1 %v1845_v38  ;;  %v2152_v44 = vld [vmem:[%s2381_s29 + $0x108] sm:$0xff]   ;;  %v2156_v47 = vld [vmem:[%s2381_s29 + $0x190] sm:$0xff]   ;;  %v2157_v49 = vld [vmem:[%s2381_s29 + $0x158] sm:$0xff]  }
  0x25   : > { %v2153_v45 = vld [vmem:[%s2381_s29 + $0x188] sm:$0xff]   ;;  %v2155_v48 = vld [vmem:[%s2381_s29 + $0x110] sm:$0xff]   ;;  %v2159_v50 = vld [vmem:[%s2381_s29 + $0x198] sm:$0xff]  }
  0x26   : > { %2012 = vmatpush3.bf16.msra.mxu0 %v2126_v15  ;;  %v2158_v51 = vld [vmem:[%s2381_s29 + $0x118] sm:$0xff]   ;;  %v2160_v52 = vld [vmem:[%s2381_s29 + $0x160] sm:$0xff]   ;;  %v2163_v55 = vld [vmem:[%s2381_s29 + $0x168] sm:$0xff]  }
  0x27   : > { %2034 = vmatpush3.bf16.msra.mxu1 %v2127_v16  ;;  %2013 = vmatprep.subr.bf16.mxu0 %v2128_v17  ;;  %v2162_v53 = vld [vmem:[%s2381_s29 + $0x1a0] sm:$0xff]   ;;  %v2165_v56 = vld [vmem:[%s2381_s29 + $0x1a8] sm:$0xff]   ;;  %v2166_v58 = vld [vmem:[%s2381_s29 + $0x170] sm:$0xff]  }
  0x28   : > { %2035 = vmatprep.subr.bf16.mxu1 %v2129_v18  ;;  %v2161_v54 = vld [vmem:[%s2381_s29 + $0x120] sm:$0xff]   ;;  %v2164_v57 = vld [vmem:[%s2381_s29 + $0x128] sm:$0xff]   ;;  %v243_v59 = vld [vmem:[%s2376_s25 + $0x10] sm:$0xff] }
  0x29   : > { %v1847_v60 = vcombine.high %v243_v59, %v243_v59  ;;  %v2168_v61 = vld [vmem:[%s2381_s29 + $0x1b0] sm:$0xff]   ;;  %v2169_v63 = vld [vmem:[%s2381_s29 + $0x178] sm:$0xff]   ;;  %v1846_v3 = vcombine.low %v243_v59, %v243_v59 }
  0x2a   : > { %2014 = vmatpush3.bf16.msra.mxu0 %v2130_v19  ;;  %v2167_v62 = vld [vmem:[%s2381_s29 + $0x130] sm:$0xff]   ;;  %v2173_v0 = vld [vmem:[%s2381_s29 + $0x1b8] sm:$0xff]  }
  0x2b   : > { %2036 = vmatpush3.bf16.msra.mxu1 %v2131_v20  ;;  %2015 = vmatprep.subr.bf16.mxu0 %v2132_v21  ;;  %v2170_v1 = vld [vmem:[%s2381_s29 + $0x138] sm:$0xff]   ;;  %v2181_v33 = vld [vmem:[%s2798_s3 + $0x64] ss:$48 sps:$4 sm:$0xff] (!%p1905_p6)  }
  0x2c   : > { %2037 = vmatprep.subr.bf16.mxu1 %v2133_v22  ;;  %v2174_v2 = vld [vmem:[%s2376_s25 + $0x18] ss:$0 sps:$4 sm:$0xff]   ;;  %v2183_v34 = vld [vmem:[%s2798_s3 + $0x6c] ss:$48 sps:$4 sm:$0xff] (!%p1905_p6)  }
  0x2d   : > { %v2186_v36 = vld [vmem:[%s2798_s3 + $0x68] ss:$48 sps:$4 sm:$0xff] (!%p1905_p6)   ;;  %v2189_v38 = vld [vmem:[%s2798_s3 + $0xcc] ss:$48 sps:$4 sm:$0xff] (!%p1905_p6)  }
  0x2e   : > { %2016 = vmatpush3.bf16.msra.mxu0 %v2134_v23  ;;  %v2216_v59 = vld [vmem:[%s2798_s3 + $0x248] ss:$48 sps:$4 sm:$0xff] (!%p1905_p6)  }
  0x2f   : > { %2038 = vmatpush3.bf16.msra.mxu1 %v2135_v24  ;;  %2017 = vmatprep.subr.bf16.mxu0 %v2136_v25  ;;  %v240_v25 = vld [vmem:[#allocation2] sm:$0xff] }
  0x30   : > { %2039 = vmatprep.subr.bf16.mxu1 %v2137_v26 }
  0x32   : > { %2018 = vmatpush3.bf16.msra.mxu0 %v2138_v27 }
  0x33   : > { %2040 = vmatpush3.bf16.msra.mxu1 %v2139_v28  ;;  %2019 = vmatprep.subr.bf16.mxu0 %v2140_v29  ;;  %v2175_v28 = vld [vmem:[%s2798_s3 + $0x4] ss:$48 sps:$4 sm:$0xff] (!%p1905_p6)   ;;  %v2177_v29 = vld [vmem:[%s2798_s3 + $0xc] ss:$48 sps:$4 sm:$0xff] (!%p1905_p6)  }
  0x34   : > { %2041 = vmatprep.subr.bf16.mxu1 %v2141_v30  ;;  %v2330_v30 = vmov (!%p1905_p6), 0  }
  0x36   : > { %2020 = vmatpush3.bf16.msra.mxu0 %v2142_v31  ;;  %v2179_v31 = vld [vmem:[%s2798_s3] ss:$48 sps:$4 sm:$0xff] (!%p1905_p6)  }
  0x37   : > { %2042 = vmatpush3.bf16.msra.mxu1 %v2143_v32  ;;  %2049 = vmatprep.subr.bf16.mxu0 %v2148_v39  ;;  %v2180_v32 = vld [vmem:[%s2798_s3 + $0x8] ss:$48 sps:$4 sm:$0xff] (!%p1905_p6)   ;;  %v2191_v39 = vld [vmem:[%s2798_s3 + $0xc0] ss:$48 sps:$4 sm:$0xff] (!%p1905_p6)  }
  0x38   : > { %2080 = vmatprep.subr.bf16.mxu1 %v2328_v41 }
  0x39   : > { %751 = vmatmul.mubr.bf16.vlgmr.msra.gmra.mrb[0].mxu0 %v1842_v35  ;;  %v2185_v35 = vld [vmem:[%s2798_s3 + $0x60] ss:$48 sps:$4 sm:$0xff] (!%p1905_p6)  }
  0x3a   : > { %791 = vmatmul.mubr.bf16.vlgmr.msra.gmra.mrb[0].mxu1 %v1844_v37  ;;  %2050 = vmatpush3.bf16.msra.mxu0 %v2149_v40  ;;  %v2187_v37 = vld [vmem:[%s2798_s3 + $0xc4] ss:$48 sps:$4 sm:$0xff] (!%p1905_p6)   ;;  %v2192_v40 = vld [vmem:[%s2798_s3 + $0xc8] ss:$48 sps:$4 sm:$0xff] (!%p1905_p6)  }
  0x3b   : > { %2081 = vmatpush3.bf16.msra.mxu1 %v2150_v42  ;;  %2051 = vmatprep.subr.bf16.mxu0 %v2151_v43  ;;  %v2195_v42 = vld [vmem:[%s2798_s3 + $0x12c] ss:$48 sps:$4 sm:$0xff] (!%p1905_p6)   ;;  %v2197_v43 = vld [vmem:[%s2798_s3 + $0x120] ss:$48 sps:$4 sm:$0xff] (!%p1905_p6)  }
  0x3c   : > { %2082 = vmatprep.subr.bf16.mxu1 %v2328_v41  ;;  %2096 = vmatprep.mubr.msk.bf16.mxu1 %vm2329_vm0, %v2328_v41 }
  0x3d   : > { %830 = vmatprep.mubr.bf16.mxu0 %v1847_v60 }
  0x3e   : > { %2052 = vmatpush3.bf16.msra.mxu0 %v2152_v44  ;;  %v2198_v44 = vld [vmem:[%s2798_s3 + $0x128] ss:$48 sps:$4 sm:$0xff] (!%p1905_p6)  }
  0x3f   : > { %2083 = vmatpush3.bf16.msra.mxu1 %v2153_v45  ;;  %2053 = vmatprep.subr.bf16.mxu0 %v2154_v46  ;;  %v2199_v45 = vld [vmem:[%s2798_s3 + $0x184] ss:$48 sps:$4 sm:$0xff] (!%p1905_p6)   ;;  %v2201_v46 = vld [vmem:[%s2798_s3 + $0x18c] ss:$48 sps:$4 sm:$0xff] (!%p1905_p6)  }
  0x40   : > { %2084 = vmatprep.subr.bf16.mxu1 %v2328_v41 }
  0x42   : > { %2054 = vmatpush3.bf16.msra.mxu0 %v2155_v48  ;;  %v2204_v48 = vld [vmem:[%s2798_s3 + $0x188] ss:$48 sps:$4 sm:$0xff] (!%p1905_p6)  }
  0x43   : > { %2085 = vmatpush3.bf16.msra.mxu1 %v2156_v47  ;;  %2055 = vmatprep.subr.bf16.mxu0 %v2157_v49  ;;  %v2203_v47 = vld [vmem:[%s2798_s3 + $0x180] ss:$48 sps:$4 sm:$0xff] (!%p1905_p6)   ;;  %v2205_v49 = vld [vmem:[%s2798_s3 + $0x1e4] ss:$48 sps:$4 sm:$0xff] (!%p1905_p6)  }
  0x44   : > { %2086 = vmatprep.subr.bf16.mxu1 %v2328_v41 }
  0x46   : > { %2056 = vmatpush3.bf16.msra.mxu0 %v2158_v51  ;;  %v2209_v51 = vld [vmem:[%s2798_s3 + $0x1e0] ss:$48 sps:$4 sm:$0xff] (!%p1905_p6)  }
  0x47   : > { %2087 = vmatpush3.bf16.msra.mxu1 %v2159_v50  ;;  %2057 = vmatprep.subr.bf16.mxu0 %v2160_v52  ;;  %v2207_v50 = vld [vmem:[%s2798_s3 + $0x1ec] ss:$48 sps:$4 sm:$0xff] (!%p1905_p6)   ;;  %v2210_v52 = vld [vmem:[%s2798_s3 + $0x1e8] ss:$48 sps:$4 sm:$0xff] (!%p1905_p6)  }
  0x48   : > { %2088 = vmatprep.subr.bf16.mxu1 %v2328_v41 }
  0x4a   : > { %2058 = vmatpush3.bf16.msra.mxu0 %v2161_v54  ;;  %v2213_v54 = vld [vmem:[%s2798_s3 + $0x24c] ss:$48 sps:$4 sm:$0xff] (!%p1905_p6)  }
  0x4b   : > { %2089 = vmatpush3.bf16.msra.mxu1 %v2162_v53  ;;  %2059 = vmatprep.subr.bf16.mxu0 %v2163_v55  ;;  %v2211_v53 = vld [vmem:[%s2798_s3 + $0x244] ss:$48 sps:$4 sm:$0xff] (!%p1905_p6)  }
  0x4c   : > { %2090 = vmatprep.subr.bf16.mxu1 %v2328_v41 }
  0x4e   : > { %2060 = vmatpush3.bf16.msra.mxu0 %v2164_v57 }
  0x4f   : > { %2091 = vmatpush3.bf16.msra.mxu1 %v2165_v56  ;;  %2061 = vmatprep.subr.bf16.mxu0 %v2166_v58  ;;  %v1906_v56 = vld [vmem:[%s2797_s2] ss:$0 sm:$0xff] (!%p1905_p6) }
  0x50   : > { %2092 = vmatprep.subr.bf16.mxu1 %v2328_v41  ;;  %v2215_v58 = vld [vmem:[%s2798_s3 + $0x240] ss:$48 sps:$4 sm:$0xff] (!%p1905_p6)  }
  0x52   : > { %2062 = vmatpush3.bf16.msra.mxu0 %v2167_v62  ;;  %v2219_v62 = vld [vmem:[%s2798_s3 + $0x2ac] ss:$48 sps:$4 sm:$0xff] (!%p1905_p6)  }
  0x53   : > { %2093 = vmatpush3.bf16.msra.mxu1 %v2168_v61  ;;  %2063 = vmatprep.subr.bf16.mxu0 %v2169_v63  ;;  %v2217_v61 = vld [vmem:[%s2798_s3 + $0x2a4] ss:$48 sps:$4 sm:$0xff] (!%p1905_p6)   ;;  %v2221_v63 = vld [vmem:[%s2798_s3 + $0x2a0] ss:$48 sps:$4 sm:$0xff] (!%p1905_p6)  }
  0x54   : > { %2094 = vmatprep.subr.bf16.mxu1 %v2328_v41  ;;  %v2193_v41 = vld [vmem:[%s2798_s3 + $0x124] ss:$48 sps:$4 sm:$0xff] (!%p1905_p6)  }
  0x56   : > { %2064 = vmatpush3.bf16.msra.mxu0 %v2170_v1 }
  0x57   : > { %2095 = vmatpush3.bf16.msra.mxu1 %v2173_v0  ;;  %1537 = vmatprep.subr.bf16.mxu0 (!%p1905_p6), %v2175_v28  ;;  %v2222_v0 = vld [vmem:[%s2798_s3 + $0x2a8] ss:$48 sps:$4 sm:$0xff] (!%p1905_p6)   ;;  %v2264_v28 = vld [vmem:[%s2798_s3 + $0x25c] ss:$48 sps:$4 sm:$0xff] (!%p1905_p6)  }
  0x58   : > { %1578 = vmatprep.subr.bf16.mxu1 (!%p1905_p6), %v2177_v29  ;;  %v2259_v29 = vld [vmem:[%s2798_s3 + $0x250] ss:$48 sps:$4 sm:$0xff] (!%p1905_p6)  }
  0x59   : > { %831 = vmatmul.mubr.bf16.vlgmr.msra.gmra.mrb[4].mxu0 %v1846_v3  ;;  %v2228_v3 = vld [vmem:[%s2798_s3 + $0x1c] ss:$48 sps:$4 sm:$0xff] (!%p1905_p6)  }
  0x5a   : > { %2097 = vmatmul.mubr.bf16.vlgmr.msra.gmra.mrb[4].mxu1 %v2174_v2  ;;  %1569 = vmatprep.mubr.bf16.mxu0 (!%p1905_p6), %v2330_v30  ;;  %v2225_v2 = vld [vmem:[%s2798_s3 + $0x14] ss:$48 sps:$4 sm:$0xff] (!%p1905_p6)  }
  0x5b   : > { %1610 = vmatprep.mubr.bf16.mxu1 (!%p1905_p6), %v2330_v30  ;;  %1538 = vmatpush1.bf16.msra.mxu0 (!%p1905_p6), %v2179_v31  ;;  %v2262_v31 = vld [vmem:[%s2798_s3 + $0x258] ss:$48 sps:$4 sm:$0xff] (!%p1905_p6)  }
  0x5c   : > { %1579 = vmatpush1.bf16.msra.mxu1 (!%p1905_p6), %v2180_v32  ;;  %1539 = vmatprep.subr.bf16.mxu0 (!%p1905_p6), %v2181_v33  ;;  %v2267_v32 = vld [vmem:[%s2798_s3 + $0x2b4] ss:$48 sps:$4 sm:$0xff] (!%p1905_p6)   ;;  %v2270_v33 = vld [vmem:[%s2798_s3 + $0x2bc] ss:$48 sps:$4 sm:$0xff] (!%p1905_p6)  }
  0x5d   : > { %1580 = vmatprep.subr.bf16.mxu1 (!%p1905_p6), %v2183_v34  ;;  %v2265_v34 = vld [vmem:[%s2798_s3 + $0x2b0] ss:$48 sps:$4 sm:$0xff] (!%p1905_p6)  }
  0x5f   : > { %1540 = vmatpush1.bf16.msra.mxu0 (!%p1905_p6), %v2185_v35  ;;  %v2268_v35 = vld [vmem:[%s2798_s3 + $0x2b8] ss:$48 sps:$4 sm:$0xff] (!%p1905_p6)  }
  0x60   : > { %1581 = vmatpush1.bf16.msra.mxu1 (!%p1905_p6), %v2186_v36  ;;  %1541 = vmatprep.subr.bf16.mxu0 (!%p1905_p6), %v2187_v37  ;;  %v2273_v36 = vld [vmem:[%s2798_s3 + $0x24] ss:$48 sps:$4 sm:$0xff] (!%p1905_p6)   ;;  %v2276_v37 = vld [vmem:[%s2798_s3 + $0x2c] ss:$48 sps:$4 sm:$0xff] (!%p1905_p6)  }
  0x61   : > { %1582 = vmatprep.subr.bf16.mxu1 (!%p1905_p6), %v2189_v38  ;;  %v2271_v38 = vld [vmem:[%s2798_s3 + $0x20] ss:$48 sps:$4 sm:$0xff] (!%p1905_p6)  }
  0x63   : > { %1542 = vmatpush1.bf16.msra.mxu0 (!%p1905_p6), %v2191_v39  ;;  %v2274_v39 = vld [vmem:[%s2798_s3 + $0x28] ss:$48 sps:$4 sm:$0xff] (!%p1905_p6)  }
  0x64   : > { %1583 = vmatpush1.bf16.msra.mxu1 (!%p1905_p6), %v2192_v40  ;;  %1543 = vmatprep.subr.bf16.mxu0 (!%p1905_p6), %v2193_v41  ;;  %v2279_v40 = vld [vmem:[%s2798_s3 + $0x84] ss:$48 sps:$4 sm:$0xff] (!%p1905_p6)   ;;  %v2282_v41 = vld [vmem:[%s2798_s3 + $0x8c] ss:$48 sps:$4 sm:$0xff] (!%p1905_p6)  }
  0x65   : > { %1584 = vmatprep.subr.bf16.mxu1 (!%p1905_p6), %v2195_v42  ;;  %v2277_v42 = vld [vmem:[%s2798_s3 + $0x80] ss:$48 sps:$4 sm:$0xff] (!%p1905_p6)  }
  0x67   : > { %1544 = vmatpush1.bf16.msra.mxu0 (!%p1905_p6), %v2197_v43  ;;  %v2280_v43 = vld [vmem:[%s2798_s3 + $0x88] ss:$48 sps:$4 sm:$0xff] (!%p1905_p6)  }
  0x68   : > { %1585 = vmatpush1.bf16.msra.mxu1 (!%p1905_p6), %v2198_v44  ;;  %1545 = vmatprep.subr.bf16.mxu0 (!%p1905_p6), %v2199_v45  ;;  %v2285_v44 = vld [vmem:[%s2798_s3 + $0xe4] ss:$48 sps:$4 sm:$0xff] (!%p1905_p6)   ;;  %v2288_v45 = vld [vmem:[%s2798_s3 + $0xec] ss:$48 sps:$4 sm:$0xff] (!%p1905_p6)  }
  0x69   : > { %1586 = vmatprep.subr.bf16.mxu1 (!%p1905_p6), %v2201_v46  ;;  %v2283_v46 = vld [vmem:[%s2798_s3 + $0xe0] ss:$48 sps:$4 sm:$0xff] (!%p1905_p6)  }
  0x6b   : > { %1546 = vmatpush1.bf16.msra.mxu0 (!%p1905_p6), %v2203_v47  ;;  %v2286_v47 = vld [vmem:[%s2798_s3 + $0xe8] ss:$48 sps:$4 sm:$0xff] (!%p1905_p6)  }
  0x6c   : > { %1587 = vmatpush1.bf16.msra.mxu1 (!%p1905_p6), %v2204_v48  ;;  %1547 = vmatprep.subr.bf16.mxu0 (!%p1905_p6), %v2205_v49  ;;  %v2291_v48 = vld [vmem:[%s2798_s3 + $0x144] ss:$48 sps:$4 sm:$0xff] (!%p1905_p6)   ;;  %v2289_v49 = vld [vmem:[%s2798_s3 + $0x140] ss:$48 sps:$4 sm:$0xff] (!%p1905_p6)  }
  0x6d   : > { %1588 = vmatprep.subr.bf16.mxu1 (!%p1905_p6), %v2207_v50  ;;  %v2292_v50 = vld [vmem:[%s2798_s3 + $0x148] ss:$48 sps:$4 sm:$0xff] (!%p1905_p6)  }
  0x6f   : > { %1548 = vmatpush1.bf16.msra.mxu0 (!%p1905_p6), %v2209_v51  ;;  %v2297_v51 = vld [vmem:[%s2798_s3 + $0x1a4] ss:$48 sps:$4 sm:$0xff] (!%p1905_p6)  }
  0x70   : > { %1589 = vmatpush1.bf16.msra.mxu1 (!%p1905_p6), %v2210_v52  ;;  %1549 = vmatprep.subr.bf16.mxu0 (!%p1905_p6), %v2211_v53  ;;  %v2300_v52 = vld [vmem:[%s2798_s3 + $0x1ac] ss:$48 sps:$4 sm:$0xff] (!%p1905_p6)   ;;  %v2295_v53 = vld [vmem:[%s2798_s3 + $0x1a0] ss:$48 sps:$4 sm:$0xff] (!%p1905_p6)  }
  0x71   : > { %1590 = vmatprep.subr.bf16.mxu1 (!%p1905_p6), %v2213_v54  ;;  %v2298_v54 = vld [vmem:[%s2798_s3 + $0x1a8] ss:$48 sps:$4 sm:$0xff] (!%p1905_p6)  }
  0x73   : > { %1550 = vmatpush1.bf16.msra.mxu0 (!%p1905_p6), %v2215_v58  ;;  %v2304_v58 = vld [vmem:[%s2798_s3 + $0x208] ss:$48 sps:$4 sm:$0xff] (!%p1905_p6)  }
  0x74   : > { %1591 = vmatpush1.bf16.msra.mxu1 (!%p1905_p6), %v2216_v59  ;;  %1551 = vmatprep.subr.bf16.mxu0 (!%p1905_p6), %v2217_v61  ;;  %v2309_v59 = vld [vmem:[%s2798_s3 + $0x264] ss:$48 sps:$4 sm:$0xff] (!%p1905_p6)   ;;  %v2307_v61 = vld [vmem:[%s2798_s3 + $0x260] ss:$48 sps:$4 sm:$0xff] (!%p1905_p6)  }
  0x75   : > { %1592 = vmatprep.subr.bf16.mxu1 (!%p1905_p6), %v2219_v62  ;;  %v2310_v62 = vld [vmem:[%s2798_s3 + $0x268] ss:$48 sps:$4 sm:$0xff] (!%p1905_p6)  }
  0x77   : > { %1552 = vmatpush1.bf16.msra.mxu0 (!%p1905_p6), %v2221_v63  ;;  %v2315_v63 = vld [vmem:[%s2798_s3 + $0x2c4] ss:$48 sps:$4 sm:$0xff] (!%p1905_p6)  }
  0x78   : > { %1593 = vmatpush1.bf16.msra.mxu1 (!%p1905_p6), %v2222_v0  ;;  %1619 = vmatprep.subr.bf16.mxu0 (!%p1905_p6), %v2225_v2  ;;  %v2318_v0 = vld [vmem:[%s2798_s3 + $0x2cc] ss:$48 sps:$4 sm:$0xff] (!%p1905_p6)   ;;  %v2316_v2 = vld [vmem:[%s2798_s3 + $0x2c8] ss:$48 sps:$4 sm:$0xff] (!%p1905_p6)  }
  0x79   : > { %1660 = vmatprep.subr.bf16.mxu1 (!%p1905_p6), %v2228_v3  ;;  %v997_v3 = vlaneseq (!%p1905_p6) }
 0x10c   : > { %v2021_v4 = vpop.f32.mrb[0].mxu0 }
 0x10d   : > { %v2043_v5 = vpop.f32.mrb[0].mxu1  ;;  %v2022_v6 = vpop.f32.mrb[1].mxu0 }
 0x10e   : > { %v2044_v7 = vpop.f32.mrb[1].mxu1  ;;  %v2023_v8 = vadd.f32 %v2022_v6, %v2021_v4  ;;  %v2024_v10 = vpop.f32.mrb[2].mxu0  ;;  %v2226_v6 = vld [vmem:[%s2798_s3 + $0x18] ss:$48 sps:$4 sm:$0xff] (!%p1905_p6)  }
 0x10f   : > { %v2045_v9 = vadd.f32 %v2044_v7, %v2043_v5  ;;  %v2046_v11 = vpop.f32.mrb[2].mxu1  ;;  %v2025_v12 = vpop.f32.mrb[3].mxu0  ;;  %v2223_v5 = vld [vmem:[%s2798_s3 + $0x10] ss:$48 sps:$4 sm:$0xff] (!%p1905_p6)   ;;  %v2231_v7 = vld [vmem:[%s2798_s3 + $0x74] ss:$48 sps:$4 sm:$0xff] (!%p1905_p6)  }
 0x110   : > { %v2047_v13 = vpop.f32.mrb[3].mxu1  ;;  %v2232_v10 = vld [vmem:[%s2798_s3 + $0x78] ss:$48 sps:$4 sm:$0xff] (!%p1905_p6)   ;;  %v2237_v11 = vld [vmem:[%s2798_s3 + $0xd4] ss:$48 sps:$4 sm:$0xff] (!%p1905_p6)  }
 0x111   : > { %v793_v14 = vadd.f32 %v2045_v9, %v2023_v8  ;;  %v2234_v8 = vld [vmem:[%s2798_s3 + $0x7c] ss:$48 sps:$4 sm:$0xff] (!%p1905_p6)   ;;  %v2229_v9 = vld [vmem:[%s2798_s3 + $0x70] ss:$48 sps:$4 sm:$0xff] (!%p1905_p6)  }
 0x112   : > { %v2240_v12 = vld [vmem:[%s2798_s3 + $0xdc] ss:$48 sps:$4 sm:$0xff] (!%p1905_p6)   ;;  %v2235_v13 = vld [vmem:[%s2798_s3 + $0xd0] ss:$48 sps:$4 sm:$0xff] (!%p1905_p6)  }
 0x12c   : > { %v2065_v16 = vpop.f32.mrb[4].mxu0 }
 0x12d   : > { %v872_v15 = vpop.f32.mrb[4].mxu1  ;;  %v2066_v18 = vpop.f32.mrb[5].mxu0 }
 0x12e   : > { %v2098_v17 = vpop.f32.mrb[5].mxu1  ;;  %v2067_v20 = vadd.f32 %v2066_v18, %v2065_v16  ;;  %v2068_v21 = vpop.f32.mrb[6].mxu0  ;;  %v2246_v16 = vld [vmem:[%s2798_s3 + $0x13c] ss:$48 sps:$4 sm:$0xff] (!%p1905_p6)   ;;  %v2244_v18 = vld [vmem:[%s2798_s3 + $0x138] ss:$48 sps:$4 sm:$0xff] (!%p1905_p6)  }
 0x12f   : > { %v875_v19 = vpop.f32.mrb[6].mxu1  ;;  %v2069_v23 = vpop.f32.mrb[7].mxu0  ;;  %v2241_v17 = vld [vmem:[%s2798_s3 + $0x130] ss:$48 sps:$4 sm:$0xff] (!%p1905_p6)  }
 0x130   : > { %v2099_v22 = vpop.f32.mrb[7].mxu1  ;;  %v833_v24 = vadd.f32 %v2067_v20, %v793_v14  ;;  %883 = sbr.rel (%p1905_p6) target bundleno = 605 (0x25d), region = 48  ;;  %v2238_v14 = vld [vmem:[%s2798_s3 + $0xd8] ss:$48 sps:$4 sm:$0xff] (!%p1905_p6)   ;;  %v2249_v19 = vld [vmem:[%s2798_s3 + $0x194] ss:$48 sps:$4 sm:$0xff] (!%p1905_p6)  }
 0x131   : > { %v2252_v20 = vld [vmem:[%s2798_s3 + $0x19c] ss:$48 sps:$4 sm:$0xff] (!%p1905_p6)   ;;  %v2247_v21 = vld [vmem:[%s2798_s3 + $0x190] ss:$48 sps:$4 sm:$0xff] (!%p1905_p6)   ;;  %v2250_v22 = vld [vmem:[%s2798_s3 + $0x198] ss:$48 sps:$4 sm:$0xff] (!%p1905_p6)  }
 0x132   : > { %v873_v26 = vadd.f32 %v872_v15, %v833_v24  ;;  %v2243_v15 = vld [vmem:[%s2798_s3 + $0x134] ss:$48 sps:$4 sm:$0xff] (!%p1905_p6)   ;;  %v2258_v24 = vld [vmem:[%s2798_s3 + $0x1fc] ss:$48 sps:$4 sm:$0xff] (!%p1905_p6)  }
 0x133   : > { %v2255_v23 = vld [vmem:[%s2798_s3 + $0x1f4] ss:$48 sps:$4 sm:$0xff] (!%p1905_p6)  }
 0x134   : > { %v878_v27 = vadd.f32 %v873_v26, %v240_v25  ;;  %v2253_v25 = vld [vmem:[%s2798_s3 + $0x1f0] ss:$48 sps:$4 sm:$0xff] (!%p1905_p6)   ;;  %v2256_v26 = vld [vmem:[%s2798_s3 + $0x1f8] ss:$48 sps:$4 sm:$0xff] (!%p1905_p6)  }
 0x136   : > { %879 = vst [vmem:[#allocation2] sm:$0xff] %v878_v27  ;;  %v2261_v27 = vld [vmem:[%s2798_s3 + $0x254] ss:$48 sps:$4 sm:$0xff] (!%p1905_p6)  }
 0x13d   : > { %v884_v55 = vld [vmem:[#allocation2] sm:$0xff] }
 0x13e   : > { %v892_v57 = vadd.f32 %v1906_v56, %v884_v55  ;;  %v2303_v55 = vld [vmem:[%s2798_s3 + $0x204] ss:$48 sps:$4 sm:$0xff]   ;;  %v2306_v56 = vld [vmem:[%s2798_s3 + $0x20c] ss:$48 sps:$4 sm:$0xff]  }
 0x140   : > { %v894_v60 = vmul.f32 0.1, %v892_v57  ;;  %vm893_vm1 = vcmp.gt.f32.partialorder %v892_v57, 0.0 }
 0x142   : > { %v895_v1 = vsel %vm893_vm1, %v892_v57, %v894_v60  ;;  %v2301_v57 = vld [vmem:[%s2798_s3 + $0x200] ss:$48 sps:$4 sm:$0xff]   ;;  %v2312_v60 = vld [vmem:[%s2798_s3 + $0x26c] ss:$48 sps:$4 sm:$0xff]  }
 0x143   : > { %v2552_v4 = vpack.c.bf16 %v895_v1, %v895_v1  ;;  %v2313_v1 = vld [vmem:[%s2798_s3 + $0x2c0] ss:$48 sps:$4 sm:$0xff]  }
 0x145   : > { %1570 = vmatmul.mubr.bf16.vlgmr.msra.gmra.mrb[0].mxu0 %v2552_v4  ;;  %1611 = vmatmul.mubr.bf16.vlgmr.msra.gmra.mrb[0].mxu1 %v2552_v4 }
 0x146   : > { %1620 = vmatpush1.bf16.msra.mxu0 %v2223_v5  ;;  %1661 = vmatpush1.bf16.msra.mxu1 %v2226_v6  ;;  %v998_v5 = vshrl.u32 %v997_v3, 7 }
 0x147   : > { %1621 = vmatprep.subr.bf16.mxu0 %v2231_v7  ;;  %1662 = vmatprep.subr.bf16.mxu1 %v2234_v8  ;;  %v993_v8 = vld [vmem:[%s2799_s4] sm:$0xff] }
 0x148   : > { %1651 = vmatprep.mubr.bf16.mxu0 %v2330_v30  ;;  %1692 = vmatprep.mubr.bf16.mxu1 %v2330_v30  ;;  %v999_v6 = vsub.s32 0, %v998_v5  ;;  %v1007_v7 = vsub.s32 2, %v998_v5 }
 0x14a   : > { %1622 = vmatpush1.bf16.msra.mxu0 %v2229_v9  ;;  %1663 = vmatpush1.bf16.msra.mxu1 %v2232_v10  ;;  %v1003_v9 = vsub.s32 1, %v998_v5  ;;  %v1011_v10 = vsub.s32 3, %v998_v5 }
 0x14b   : > { %1623 = vmatprep.subr.bf16.mxu0 %v2237_v11  ;;  %1664 = vmatprep.subr.bf16.mxu1 %v2240_v12  ;;  %v1000_v11 = vrot.slane %v993_v8, %v999_v6  ;;  %v1008_v12 = vrot.slane %v993_v8, %v1007_v7 }
 0x14e   : > { %1624 = vmatpush1.bf16.msra.mxu0 %v2235_v13  ;;  %1665 = vmatpush1.bf16.msra.mxu1 %v2238_v14  ;;  %v1004_v13 = vrot.slane %v993_v8, %v1003_v9  ;;  %v1012_v14 = vrot.slane %v993_v8, %v1011_v10 }
 0x14f   : > { %1625 = vmatprep.subr.bf16.mxu0 %v2243_v15  ;;  %1666 = vmatprep.subr.bf16.mxu1 %v2246_v16 }
 0x152   : > { %1626 = vmatpush1.bf16.msra.mxu0 %v2241_v17  ;;  %1667 = vmatpush1.bf16.msra.mxu1 %v2244_v18 }
 0x153   : > { %1627 = vmatprep.subr.bf16.mxu0 %v2249_v19  ;;  %1668 = vmatprep.subr.bf16.mxu1 %v2252_v20 }
 0x156   : > { %1628 = vmatpush1.bf16.msra.mxu0 %v2247_v21  ;;  %1669 = vmatpush1.bf16.msra.mxu1 %v2250_v22 }
 0x157   : > { %1629 = vmatprep.subr.bf16.mxu0 %v2255_v23  ;;  %1670 = vmatprep.subr.bf16.mxu1 %v2258_v24 }
 0x15a   : > { %1630 = vmatpush1.bf16.msra.mxu0 %v2253_v25  ;;  %1671 = vmatpush1.bf16.msra.mxu1 %v2256_v26  ;;  %v1015_v26 = vsub.s32 4, %v998_v5 }
 0x15b   : > { %1631 = vmatprep.subr.bf16.mxu0 %v2261_v27  ;;  %1672 = vmatprep.subr.bf16.mxu1 %v2264_v28  ;;  %v1023_v27 = vsub.s32 6, %v998_v5  ;;  %v1019_v28 = vsub.s32 5, %v998_v5 }
 0x15e   : > { %1632 = vmatpush1.bf16.msra.mxu0 %v2259_v29  ;;  %1673 = vmatpush1.bf16.msra.mxu1 %v2262_v31  ;;  %v1027_v29 = vsub.s32 7, %v998_v5  ;;  %v1016_v31 = vrot.slane %v993_v8, %v1015_v26 }
 0x15f   : > { %1633 = vmatprep.subr.bf16.mxu0 %v2267_v32  ;;  %1674 = vmatprep.subr.bf16.mxu1 %v2270_v33  ;;  %v1024_v32 = vrot.slane %v993_v8, %v1023_v27  ;;  %v1020_v33 = vrot.slane %v993_v8, %v1019_v28 }
 0x162   : > { %1634 = vmatpush1.bf16.msra.mxu0 %v2265_v34  ;;  %1675 = vmatpush1.bf16.msra.mxu1 %v2268_v35  ;;  %v1028_v34 = vrot.slane %v993_v8, %v1027_v29 }
 0x163   : > { %1701 = vmatprep.subr.bf16.mxu0 %v2273_v36  ;;  %1742 = vmatprep.subr.bf16.mxu1 %v2276_v37 }
 0x165   : > { %1652 = vmatmul.mubr.bf16.vlgmr.msra.gmra.mrb[4].mxu0 %v2552_v4  ;;  %1693 = vmatmul.mubr.bf16.vlgmr.msra.gmra.mrb[4].mxu1 %v2552_v4 }
 0x166   : > { %1702 = vmatpush1.bf16.msra.mxu0 %v2271_v38  ;;  %1743 = vmatpush1.bf16.msra.mxu1 %v2274_v39 }
 0x167   : > { %1703 = vmatprep.subr.bf16.mxu0 %v2279_v40  ;;  %1744 = vmatprep.subr.bf16.mxu1 %v2282_v41 }
 0x168   : > { %1733 = vmatprep.mubr.bf16.mxu0 %v2330_v30  ;;  %1774 = vmatprep.mubr.bf16.mxu1 %v2330_v30  ;;  %v2294_v30 = vld [vmem:[%s2798_s3 + $0x14c] ss:$48 sps:$4 sm:$0xff]  }
 0x16a   : > { %1704 = vmatpush1.bf16.msra.mxu0 %v2277_v42  ;;  %1745 = vmatpush1.bf16.msra.mxu1 %v2280_v43 }
 0x16b   : > { %1705 = vmatprep.subr.bf16.mxu0 %v2285_v44  ;;  %1746 = vmatprep.subr.bf16.mxu1 %v2288_v45 }
 0x16e   : > { %1706 = vmatpush1.bf16.msra.mxu0 %v2283_v46  ;;  %1747 = vmatpush1.bf16.msra.mxu1 %v2286_v47  ;;  %v994_v47 = vld [vmem:[%s2799_s4 + $0x8] sm:$0xf] }
 0x16f   : > { %1707 = vmatprep.subr.bf16.mxu0 %v2291_v48  ;;  %1748 = vmatprep.subr.bf16.mxu1 %v2294_v30  ;;  %v1032_v48 = vrot.slane %v994_v47, %v999_v6  ;;  %v1040_v30 = vrot.slane %v994_v47, %v1007_v7 }
 0x172   : > { %1708 = vmatpush1.bf16.msra.mxu0 %v2289_v49  ;;  %1749 = vmatpush1.bf16.msra.mxu1 %v2292_v50  ;;  %v1036_v49 = vrot.slane %v994_v47, %v1003_v9  ;;  %v1044_v50 = vrot.slane %v994_v47, %v1011_v10 }
 0x173   : > { %1709 = vmatprep.subr.bf16.mxu0 %v2297_v51  ;;  %1750 = vmatprep.subr.bf16.mxu1 %v2300_v52 }
 0x176   : > { %1710 = vmatpush1.bf16.msra.mxu0 %v2295_v53  ;;  %1751 = vmatpush1.bf16.msra.mxu1 %v2298_v54 }
 0x177   : > { %1711 = vmatprep.subr.bf16.mxu0 %v2303_v55  ;;  %1752 = vmatprep.subr.bf16.mxu1 %v2306_v56 }
 0x17a   : > { %1712 = vmatpush1.bf16.msra.mxu0 %v2301_v57  ;;  %1753 = vmatpush1.bf16.msra.mxu1 %v2304_v58 }
 0x17b   : > { %1713 = vmatprep.subr.bf16.mxu0 %v2309_v59  ;;  %1754 = vmatprep.subr.bf16.mxu1 %v2312_v60 }
 0x17e   : > { %1714 = vmatpush1.bf16.msra.mxu0 %v2307_v61  ;;  %1755 = vmatpush1.bf16.msra.mxu1 %v2310_v62 }
 0x17f   : > { %1715 = vmatprep.subr.bf16.mxu0 %v2315_v63  ;;  %1756 = vmatprep.subr.bf16.mxu1 %v2318_v0 }
 0x182   : > { %1716 = vmatpush1.bf16.msra.mxu0 %v2313_v1  ;;  %1757 = vmatpush1.bf16.msra.mxu1 %v2316_v2 }
 0x185   : > { %1734 = vmatmul.mubr.bf16.vlgmr.msra.gmra.mrb[8].mxu0 %v2552_v4  ;;  %1775 = vmatmul.mubr.bf16.vlgmr.msra.gmra.mrb[8].mxu1 %v2552_v4 }
 0x218   : > { %v1571_v15 = vpop.f32.mrb[0].mxu0  ;;  %v1612_v16 = vpop.f32.mrb[0].mxu1 }
 0x219   : > { %v1572_v17 = vadd.f32 %v1571_v15, %v1000_v11  ;;  %v1613_v18 = vadd.f32 %v1612_v16, %v1008_v12  ;;  %v1573_v19 = vpop.f32.mrb[1].mxu0  ;;  %v1614_v4 = vpop.f32.mrb[1].mxu1 }
 0x21a   : > { %v1574_v20 = vadd.f32 %v1573_v19, %v1004_v13  ;;  %v1615_v21 = vadd.f32 %v1614_v4, %v1012_v14  ;;  %v1575_v22 = vpop.f32.mrb[2].mxu0  ;;  %v1616_v23 = vpop.f32.mrb[2].mxu1 }
 0x21b   : > { %1783 = vst [vmem:[%s2800_s5] sm:$0xff] %v1572_v17  ;;  %1785 = vst [vmem:[%s2800_s5 + $0x10] sm:$0xff] %v1613_v18  ;;  %v1576_v24 = vpop.f32.mrb[3].mxu0  ;;  %v1617_v25 = vpop.f32.mrb[3].mxu1 }
 0x21c   : > { %1784 = vst [vmem:[%s2800_s5 + $0x8] sm:$0xff] %v1574_v20  ;;  %1786 = vst [vmem:[%s2800_s5 + $0x18] sm:$0xff] %v1615_v21 }
 0x238   : > { %v1653_v35 = vpop.f32.mrb[4].mxu0  ;;  %v1694_v36 = vpop.f32.mrb[4].mxu1 }
 0x239   : > { %v1654_v37 = vadd.f32 %v1653_v35, %v1016_v31  ;;  %v1695_v38 = vadd.f32 %v1694_v36, %v1024_v32  ;;  %v1655_v39 = vpop.f32.mrb[5].mxu0  ;;  %v1696_v40 = vpop.f32.mrb[5].mxu1 }
 0x23a   : > { %v1656_v41 = vadd.f32 %v1655_v39, %v1020_v33  ;;  %v1697_v42 = vadd.f32 %v1696_v40, %v1028_v34  ;;  %v1657_v43 = vpop.f32.mrb[6].mxu0  ;;  %v1698_v44 = vpop.f32.mrb[6].mxu1 }
 0x23b   : > { %1787 = vst [vmem:[%s2800_s5 + $0x20] sm:$0xff] %v1654_v37  ;;  %1789 = vst [vmem:[%s2800_s5 + $0x30] sm:$0xff] %v1695_v38  ;;  %v1658_v45 = vpop.f32.mrb[7].mxu0  ;;  %v1699_v46 = vpop.f32.mrb[7].mxu1 }
 0x23c   : > { %1788 = vst [vmem:[%s2800_s5 + $0x28] sm:$0xff] %v1656_v41  ;;  %1790 = vst [vmem:[%s2800_s5 + $0x38] sm:$0xff] %v1697_v42 }
 0x258   : > { %v1735_v51 = vpop.f32.mrb[8].mxu0  ;;  %v1776_v52 = vpop.f32.mrb[8].mxu1 }
 0x259   : > { %v1736_v53 = vadd.f32 %v1735_v51, %v1032_v48  ;;  %v1777_v54 = vadd.f32 %v1776_v52, %v1040_v30  ;;  %v1737_v55 = vpop.f32.mrb[9].mxu0  ;;  %v1778_v56 = vpop.f32.mrb[9].mxu1 }
 0x25a   : > { %v1738_v57 = vadd.f32 %v1737_v55, %v1036_v49  ;;  %v1779_v58 = vadd.f32 %v1778_v56, %v1044_v50  ;;  %v1739_v59 = vpop.f32.mrb[10].mxu0  ;;  %v1780_v60 = vpop.f32.mrb[10].mxu1 }
 0x25b   : > { %1791 = vst [vmem:[%s2800_s5 + $0x40] sm:$0xff] %v1736_v53  ;;  %1793 = vst [vmem:[%s2800_s5 + $0x50] sm:$0xff] %v1777_v54  ;;  %v1740_v61 = vpop.f32.mrb[11].mxu0  ;;  %v1781_v62 = vpop.f32.mrb[11].mxu1 }
 0x25c   : > { %1792 = vst [vmem:[%s2800_s5 + $0x48] sm:$0xff] %v1738_v57  ;;  %1794 = vst [vmem:[%s2800_s5 + $0x58] sm:$0xff] %v1779_v58 }
 0x25d PF: > { %s15_s18 = sadd.s32 1, %s2325_s18  }
 0x25e   : > { %p12_p7 = scmp.ge.s32.totalorder %s15_s18, 9  }
 0x260   :  { %14 = sbr.rel (!%p12_p7) target bundleno = 1 (0x1), region = 77 }

// kernel: yolo_forward.7
= control target key start
LH: loop header
LB: loop body
LE: loop exit
PB: predicated region body
PF: predicated region fallthrough
CT: control target
= control target key end

     0   :  { %s2206_s12 = smov 0   ;;  %s2208_s13 = smov 0   ;;  %s2549_s0 = inlined_call_operand.vmem [shape: f32[2,9,9,128], index: 0, kind: input, shape index: {}]   ;;  %s2550_s1 = inlined_call_operand.vmem [shape: bf16[1152,128], index: 1, kind: input, shape index: {}]   ;;  %s2551_s2 = inlined_call_operand.vmem [shape: f32[1,128], index: 2, kind: input, shape index: {}]   ;;  %s2552_s3 = inlined_call_operand.vmem [shape: f32[2,49,128], index: 3, kind: output, shape index: {}]  }
   0x1   :  { %s2210_s14 = smov 0  }
   0x2 LB: > { %s25_s15 = sadd.s32 1, %s2180_s13  ;;  %p1714_p0 = scmp.ge.s32.totalorder %s2184_s14, 1  ;;  %s2184_s14 = sphi %s2210_s14, %s13_s14   ;;  %s2180_s13 = sphi %s2208_s13, %s2554_s13   ;;  %s2176_s12 = sphi %s2206_s12, %s2553_s12  }
   0x3   : > { %p27_p1 = scmp.ge.s32.totalorder %s25_s15, 2  ;;  %p168_p2 = scmp.lt.s32.totalorder %s2184_s14, 3 }
   0x5   : > { %s2556_s15 = smov (%p27_p1, %s25_s15), 0  ;;  %p169_p3 = pnand %p1714_p0, %p168_p2 }
   0x6   : > { %v2090_v0 = vld [vmem:[%s2550_s1 + $0x40] sm:$0xff] (!%p169_p3)   ;;  %v2094_v4 = vld [vmem:[%s2550_s1 + $0x48] sm:$0xff] (!%p169_p3)   ;;  %v2098_v8 = vld [vmem:[%s2550_s1 + $0x50] sm:$0xff] (!%p169_p3)   ;;  %p202_p4 = scmp.lt.s32.totalorder (!%p169_p3), %s2176_s12, 1 }
   0x7   : > { %172 = sbr.rel (%p169_p3) target bundleno = 340 (0x154), region = 32  ;;  %v2091_v1 = vld [vmem:[%s2550_s1 + $0xc0] sm:$0xff] (!%p169_p3)   ;;  %1852 = vmatprep.subr.bf16.mxu0 (!%p169_p3), %v2090_v0  ;;  %v2095_v5 = vld [vmem:[%s2550_s1 + $0xc8] sm:$0xff] (!%p169_p3)   ;;  %v2099_v9 = vld [vmem:[%s2550_s1 + $0xd0] sm:$0xff] (!%p169_p3)  }
   0x8   : > { %v2092_v2 = vld [vmem:[%s2550_s1] sm:$0xff] (!%p169_p3)   ;;  %1892 = vmatprep.subr.bf16.mxu1 (!%p169_p3), %v2091_v1  ;;  %v2096_v6 = vld [vmem:[%s2550_s1 + $0x8] sm:$0xff] (!%p169_p3)   ;;  %v2100_v10 = vld [vmem:[%s2550_s1 + $0x10] sm:$0xff] (!%p169_p3)  }
   0x9   : > { %v2093_v3 = vld [vmem:[%s2550_s1 + $0x80] sm:$0xff] (!%p169_p3)   ;;  %1853 = vmatpush3.bf16.msra.mxu0 (!%p169_p3), %v2092_v2  ;;  %v2097_v7 = vld [vmem:[%s2550_s1 + $0x88] sm:$0xff] (!%p169_p3)   ;;  %v2101_v11 = vld [vmem:[%s2550_s1 + $0x90] sm:$0xff] (!%p169_p3)  }
   0xa   : > { %1893 = vmatpush3.bf16.msra.mxu1 (!%p169_p3), %v2093_v3  ;;  %1854 = vmatprep.subr.bf16.mxu0 (!%p169_p3), %v2094_v4  ;;  %v2102_v12 = vld [vmem:[%s2550_s1 + $0x58] sm:$0xff] (!%p169_p3)   ;;  %v2106_v16 = vld [vmem:[%s2550_s1 + $0x60] sm:$0xff] (!%p169_p3)   ;;  %v2110_v20 = vld [vmem:[%s2550_s1 + $0x68] sm:$0xff] (!%p169_p3)  }
   0xb   : > { %1894 = vmatprep.subr.bf16.mxu1 (!%p169_p3), %v2095_v5  ;;  %v2103_v13 = vld [vmem:[%s2550_s1 + $0xd8] sm:$0xff] (!%p169_p3)   ;;  %v2107_v17 = vld [vmem:[%s2550_s1 + $0xe0] sm:$0xff] (!%p169_p3)   ;;  %v2111_v21 = vld [vmem:[%s2550_s1 + $0xe8] sm:$0xff] (!%p169_p3)  }
   0xc   : > { %v2104_v14 = vld [vmem:[%s2550_s1 + $0x18] sm:$0xff] (!%p169_p3)   ;;  %v2108_v18 = vld [vmem:[%s2550_s1 + $0x20] sm:$0xff] (!%p169_p3)   ;;  %v2112_v22 = vld [vmem:[%s2550_s1 + $0x28] sm:$0xff] (!%p169_p3)  }
   0xd   : > { %1855 = vmatpush3.bf16.msra.mxu0 (!%p169_p3), %v2096_v6  ;;  %v2105_v15 = vld [vmem:[%s2550_s1 + $0x98] sm:$0xff] (!%p169_p3)   ;;  %v2109_v19 = vld [vmem:[%s2550_s1 + $0xa0] sm:$0xff] (!%p169_p3)   ;;  %v2113_v23 = vld [vmem:[%s2550_s1 + $0xa8] sm:$0xff] (!%p169_p3)  }
   0xe   : > { %1895 = vmatpush3.bf16.msra.mxu1 %v2097_v7  ;;  %1856 = vmatprep.subr.bf16.mxu0 %v2098_v8  ;;  %s2558_s12 = smov (!%p202_p4, %s2176_s12), 1  ;;  %v2114_v24 = vld [vmem:[%s2550_s1 + $0x70] sm:$0xff]   ;;  %v2118_v28 = vld [vmem:[%s2550_s1 + $0x78] sm:$0xff]   ;;  %v2122_v42 = vld [vmem:[%s2550_s1 + $0x140] sm:$0xff]  }
   0xf   : > { %1896 = vmatprep.subr.bf16.mxu1 %v2099_v9  ;;  %v2115_v25 = vld [vmem:[%s2550_s1 + $0xf0] sm:$0xff]   ;;  %s2064_s22 = smul.u32 144, %s2558_s12  ;;  %v2119_v29 = vld [vmem:[%s2550_s1 + $0xf8] sm:$0xff]   ;;  %v2123_v46 = vld [vmem:[%s2550_s1 + $0x1c0] sm:$0xff]  }
  0x10   : > { %v2116_v26 = vld [vmem:[%s2550_s1 + $0x30] sm:$0xff]   ;;  %v2120_v30 = vld [vmem:[%s2550_s1 + $0x38] sm:$0xff]   ;;  %v2124_v58 = vld [vmem:[%s2550_s1 + $0x100] sm:$0xff]   ;;  %s2065_s30 = smul.u32 56, %s2558_s12 }
  0x11   : > { %1857 = vmatpush3.bf16.msra.mxu0 %v2100_v10  ;;  %v2117_v27 = vld [vmem:[%s2550_s1 + $0xb0] sm:$0xff]   ;;  %s2324_s6 = scalar_lea.vmem %s2549_s0, %s2064_s22  ;;  %v2121_v31 = vld [vmem:[%s2550_s1 + $0xb8] sm:$0xff]   ;;  %v2126_v60 = vld [vmem:[%s2550_s1 + $0x148] sm:$0xff]  }
  0x12   : > { %1897 = vmatpush3.bf16.msra.mxu1 %v2101_v11  ;;  %1858 = vmatprep.subr.bf16.mxu0 %v2102_v12  ;;  %v267_v32 = vld [vmem:[%s2324_s6 + $0x1] sm:$0x7f]  ;;  %v1723_v33 = vld [vmem:[%s2324_s6 + $0x11] sm:$0x7f]  ;;  %v2127_v3 = vld [vmem:[%s2550_s1 + $0x1c8] sm:$0xff]   ;;  %s2530_s7 = scalar_lea.vmem %s2552_s3, %s2065_s30 }
  0x13   : > { %1898 = vmatprep.subr.bf16.mxu1 %v2103_v13  ;;  %v1724_v34 = vld [vmem:[%s2324_s6 + $0x21] sm:$0x7f]  ;;  %268 = vst [vmem:[#allocation2 + $0x8] sm:$0x7f] %v267_v32  ;;  %v271_v35 = vrot.slane %v1723_v33, 1  ;;  %v2128_v5 = vld [vmem:[%s2550_s1 + $0x108] sm:$0xff]  }
  0x14   : > { %v277_v36 = vrot.slane %v1724_v34, 2  ;;  %v1735_v37 = vld [vmem:[%s2324_s6 + $0x10] sm:$0x7f]  ;;  %v1736_v38 = vld [vmem:[%s2324_s6 + $0x20] sm:$0x7f]  ;;  %v2129_v13 = vld [vmem:[%s2550_s1 + $0x188] sm:$0xff]  }
  0x15   : > { %1859 = vmatpush3.bf16.msra.mxu0 %v2104_v14  ;;  %344 = vst [vmem:[#allocation2 + $0x18] sm:$0x7f] %v1735_v37  ;;  %v347_v39 = vrot.slane %v1736_v38, 1  ;;  %v1737_v40 = vld [vmem:[%s2324_s6 + $0x30] sm:$0x7f]  ;;  %v2125_v0 = vld [vmem:[%s2550_s1 + $0x180] sm:$0xff]  }
  0x16   : > { %1899 = vmatpush3.bf16.msra.mxu1 %v2105_v15  ;;  %1860 = vmatprep.subr.bf16.mxu0 %v2106_v16  ;;  %v223_v41 = vld [vmem:[%s2324_s6] sm:$0x7f]  ;;  %273 = vst [vmem:[#allocation2 + $0x8] sm:$0x80] %v271_v35  ;;  %274 = vst [vmem:[#allocation2 + $0x50] sm:$0x3f] %v271_v35 }
  0x17   : > { %1900 = vmatprep.subr.bf16.mxu1 %v2107_v17  ;;  %279 = vst [vmem:[#allocation2 + $0x50] sm:$0xc0] %v277_v36  ;;  %280 = vst [vmem:[#allocation2 + $0x98] sm:$0x1f] %v277_v36  ;;  %v353_v43 = vrot.slane %v1737_v40, 2 }
  0x18   : > { %224 = vst [vmem:[#allocation2] sm:$0x7f] %v223_v41  ;;  %v1717_v44 = vld [vmem:[%s2324_s6 + $0x10] sm:$0x7f]  ;;  %v1718_v45 = vld [vmem:[%s2324_s6 + $0x20] sm:$0x7f] }
  0x19   : > { %1861 = vmatpush3.bf16.msra.mxu0 %v2108_v18  ;;  %349 = vst [vmem:[#allocation2 + $0x18] sm:$0x80] %v347_v39  ;;  %350 = vst [vmem:[#allocation2 + $0x60] sm:$0x3f] %v347_v39  ;;  %v228_v47 = vrot.slane %v1717_v44, 1  ;;  %v235_v48 = vrot.slane %v1718_v45, 2 }
  0x1a   : > { %1901 = vmatpush3.bf16.msra.mxu1 %v2109_v19  ;;  %1862 = vmatprep.subr.bf16.mxu0 %v2110_v20  ;;  %v305_v49 = vld [vmem:[%s2324_s6 + $0x2] sm:$0x7f]  ;;  %v1729_v50 = vld [vmem:[%s2324_s6 + $0x12] sm:$0x7f]  ;;  %355 = vst [vmem:[#allocation2 + $0x60] sm:$0xc0] %v353_v43 }
  0x1b   : > { %1902 = vmatprep.subr.bf16.mxu1 %v2111_v21  ;;  %356 = vst [vmem:[#allocation2 + $0xa8] sm:$0x1f] %v353_v43  ;;  %306 = vst [vmem:[#allocation2 + $0x10] sm:$0x7f] %v305_v49  ;;  %v309_v51 = vrot.slane %v1729_v50, 1  ;;  %v2136_v41 = vld [vmem:[%s2550_s1 + $0x118] sm:$0xff]  }
  0x1c   : > { %v1730_v52 = vld [vmem:[%s2324_s6 + $0x22] sm:$0x7f]  ;;  %230 = vst [vmem:[#allocation2] sm:$0x80] %v228_v47  ;;  %231 = vst [vmem:[#allocation2 + $0x48] sm:$0x3f] %v228_v47 }
  0x1d   : > { %1863 = vmatpush3.bf16.msra.mxu0 %v2112_v22  ;;  %237 = vst [vmem:[#allocation2 + $0x48] sm:$0xc0] %v235_v48  ;;  %238 = vst [vmem:[#allocation2 + $0x90] sm:$0x1f] %v235_v48  ;;  %v315_v53 = vrot.slane %v1730_v52, 2  ;;  %v574_v54 = vld [vmem:[#allocation2 + $0x8] sm:$0xff] }
  0x1e   : > { %1903 = vmatpush3.bf16.msra.mxu1 %v2113_v23  ;;  %1864 = vmatprep.subr.bf16.mxu0 %v2114_v24  ;;  %311 = vst [vmem:[#allocation2 + $0x10] sm:$0x80] %v309_v51  ;;  %312 = vst [vmem:[#allocation2 + $0x58] sm:$0x3f] %v309_v51  ;;  %v583_v55 = vld [vmem:[#allocation2 + $0x50] sm:$0xff]  ;;  %v2137_v43 = vld [vmem:[%s2550_s1 + $0x198] sm:$0xff]  }
  0x1f   : > { %1904 = vmatprep.subr.bf16.mxu1 %v2115_v25  ;;  %317 = vst [vmem:[#allocation2 + $0x58] sm:$0xc0] %v315_v53  ;;  %318 = vst [vmem:[#allocation2 + $0xa0] sm:$0x1f] %v315_v53  ;;  %v637_v56 = vpack.c.bf16 %v583_v55, %v574_v54  ;;  %v1725_v6 = vld [vmem:[%s2324_s6 + $0x31] sm:$0x7f] }
  0x20   : > { %v576_v57 = vld [vmem:[#allocation2 + $0x18] sm:$0xff]  ;;  %v1726_v7 = vld [vmem:[%s2324_s6 + $0x41] sm:$0x7f]  ;;  %v283_v9 = vrot.slane %v1725_v6, 3  ;;  %v1739_v12 = vld [vmem:[%s2324_s6 + $0x50] sm:$0x7f] }
  0x21   : > { %1865 = vmatpush3.bf16.msra.mxu0 %v2116_v26  ;;  %v585_v59 = vld [vmem:[#allocation2 + $0x60] sm:$0xff]  ;;  %1287 = vmatprep.mubr.bf16.mxu0 %v637_v56  ;;  %v289_v10 = vrot.slane %v1726_v7, 4  ;;  %v365_v15 = vrot.slane %v1739_v12, 4  ;;  %v1719_v16 = vld [vmem:[%s2324_s6 + $0x30] sm:$0x7f]  ;;  %v2144_v7 = vld [vmem:[%s2550_s1 + $0x128] sm:$0xff]  }
  0x22   : > { %1905 = vmatpush3.bf16.msra.mxu1 %v2117_v27  ;;  %1866 = vmatprep.subr.bf16.mxu0 %v2118_v28  ;;  %v639_v61 = vpack.c.bf16 %v585_v59, %v576_v57  ;;  %v1738_v11 = vld [vmem:[%s2324_s6 + $0x40] sm:$0x7f]  ;;  %285 = vst [vmem:[#allocation2 + $0xe0] ss:$-68 sps:$4 sm:$0xef] %v283_v9   ;;  %v242_v18 = vrot.slane %v1719_v16, 3 }
  0x23   : > { %1906 = vmatprep.subr.bf16.mxu1 %v2119_v29  ;;  %v573_v62 = vld [vmem:[#allocation2] sm:$0xff]  ;;  %v359_v14 = vrot.slane %v1738_v11, 3  ;;  %291 = vst [vmem:[#allocation2 + $0x128] ss:$-68 sps:$4 sm:$0xf7] %v289_v10   ;;  %v2130_v24 = vld [vmem:[%s2550_s1 + $0x150] sm:$0xff]  }
  0x24   : > { %v582_v63 = vld [vmem:[#allocation2 + $0x48] sm:$0xff]  ;;  %1351 = vmatprep.mubr.bf16.mxu1 %v639_v61  ;;  %v1720_v17 = vld [vmem:[%s2324_s6 + $0x40] sm:$0x7f]  ;;  %v1731_v20 = vld [vmem:[%s2324_s6 + $0x32] sm:$0x7f] }
  0x25   : > { %1867 = vmatpush3.bf16.msra.mxu0 %v2120_v30  ;;  %v636_v1 = vpack.c.bf16 %v582_v63, %v573_v62  ;;  %v575_v2 = vld [vmem:[#allocation2 + $0x10] sm:$0xff]  ;;  %v249_v19 = vrot.slane %v1720_v17, 4  ;;  %v1732_v21 = vld [vmem:[%s2324_s6 + $0x42] sm:$0x7f]  ;;  %v321_v22 = vrot.slane %v1731_v20, 3  ;;  %v2134_v28 = vld [vmem:[%s2550_s1 + $0x158] sm:$0xff]  }
  0x26   : > { %1907 = vmatpush3.bf16.msra.mxu1 %v2121_v31  ;;  %1932 = vmatprep.subr.bf16.mxu0 %v2122_v42  ;;  %v584_v4 = vld [vmem:[#allocation2 + $0x58] sm:$0xff]  ;;  %361 = vst [vmem:[#allocation2 + $0xf0] ss:$-68 sps:$4 sm:$0xef] %v359_v14   ;;  %v327_v23 = vrot.slane %v1732_v21, 4  ;;  %v2131_v25 = vld [vmem:[%s2550_s1 + $0x1d0] sm:$0xff]  }
  0x27   : > { %1972 = vmatprep.subr.bf16.mxu1 %v2123_v46  ;;  %v638_v8 = vpack.c.bf16 %v584_v4, %v575_v2  ;;  %367 = vst [vmem:[#allocation2 + $0x138] ss:$-68 sps:$4 sm:$0xf7] %v365_v15   ;;  %244 = vst [vmem:[#allocation2 + $0xd8] ss:$-68 sps:$4 sm:$0xef] %v242_v18  }
  0x28   : > { %1288 = vmatmul.mubr.bf16.vlgmr.msra.gmra.mrb[0].mxu0 %v636_v1  ;;  %251 = vst [vmem:[#allocation2 + $0x120] ss:$-68 sps:$4 sm:$0xf7] %v249_v19   ;;  %323 = vst [vmem:[#allocation2 + $0xe8] ss:$-68 sps:$4 sm:$0xef] %v321_v22  }
  0x29   : > { %1933 = vmatpush3.bf16.msra.mxu0 %v2124_v58  ;;  %1352 = vmatmul.mubr.bf16.vlgmr.msra.gmra.mrb[0].mxu1 %v638_v8  ;;  %329 = vst [vmem:[#allocation2 + $0x130] ss:$-68 sps:$4 sm:$0xf7] %v327_v23   ;;  %v2132_v26 = vld [vmem:[%s2550_s1 + $0x110] sm:$0xff]   ;;  %v592_v29 = vld [vmem:[#allocation2 + $0x98] sm:$0xff]  ;;  %v2138_v51 = vld [vmem:[%s2550_s1 + $0x160] sm:$0xff]  }
  0x2a   : > { %1934 = vmatprep.subr.bf16.mxu0 %v2126_v60  ;;  %1973 = vmatpush3.bf16.msra.mxu1 %v2125_v0  ;;  %v2133_v27 = vld [vmem:[%s2550_s1 + $0x190] sm:$0xff]   ;;  %v601_v30 = vld [vmem:[#allocation2 + $0xe0] sm:$0xff]  ;;  %v2135_v31 = vld [vmem:[%s2550_s1 + $0x1d8] sm:$0xff]  }
  0x2b   : > { %1974 = vmatprep.subr.bf16.mxu1 %v2127_v3  ;;  %v646_v32 = vpack.c.bf16 %v601_v30, %v592_v29  ;;  %v1727_v44 = vld [vmem:[%s2324_s6 + $0x51] sm:$0x7f]  ;;  %v1728_v45 = vld [vmem:[%s2324_s6 + $0x61] sm:$0x7f]  ;;  %v2142_v0 = vld [vmem:[%s2550_s1 + $0x168] sm:$0xff]  }
  0x2c   : > { %v1740_v46 = vld [vmem:[%s2324_s6 + $0x60] sm:$0x7f]  ;;  %v295_v47 = vrot.slane %v1727_v44, 5  ;;  %v301_v48 = vrot.slane %v1728_v45, 6  ;;  %v1741_v50 = vld [vmem:[%s2324_s6 + $0x70] sm:$0x7f] }
  0x2d   : > { %1935 = vmatpush3.bf16.msra.mxu0 %v2128_v5  ;;  %v594_v33 = vld [vmem:[#allocation2 + $0xa8] sm:$0xff]  ;;  %1295 = vmatprep.mubr.bf16.mxu0 %v646_v32  ;;  %v371_v49 = vrot.slane %v1740_v46, 5  ;;  %v378_v52 = vrot.slane %v1741_v50, 6  ;;  %v1721_v53 = vld [vmem:[%s2324_s6 + $0x50] sm:$0x7f]  ;;  %v2139_v55 = vld [vmem:[%s2550_s1 + $0x1e0] sm:$0xff]  }
  0x2e   : > { %1936 = vmatprep.subr.bf16.mxu0 %v2130_v24  ;;  %1975 = vmatpush3.bf16.msra.mxu1 %v2129_v13  ;;  %v603_v34 = vld [vmem:[#allocation2 + $0xf0] sm:$0xff]  ;;  %v1722_v54 = vld [vmem:[%s2324_s6 + $0x60] sm:$0x7f]  ;;  %297 = vst [vmem:[#allocation2 + $0x128] sm:$0xf8] %v295_v47  ;;  %v256_v56 = vrot.slane %v1721_v53, 5 }
  0x2f   : > { %1976 = vmatprep.subr.bf16.mxu1 %v2131_v25  ;;  %v648_v35 = vpack.c.bf16 %v603_v34, %v594_v33  ;;  %v591_v36 = vld [vmem:[#allocation2 + $0x90] sm:$0xff]  ;;  %v600_v37 = vld [vmem:[#allocation2 + $0xd8] sm:$0xff]  ;;  %v593_v39 = vld [vmem:[#allocation2 + $0xa0] sm:$0xff]  ;;  %298 = vst [vmem:[#allocation2 + $0x170] sm:$0x3] %v295_v47  ;;  %v263_v57 = vrot.slane %v1722_v54, 6 }
  0x30   : > { %v645_v38 = vpack.c.bf16 %v600_v37, %v591_v36  ;;  %v602_v40 = vld [vmem:[#allocation2 + $0xe8] sm:$0xff]  ;;  %303 = vst [vmem:[#allocation2 + $0x170] sm:$0xfc] %v301_v48  ;;  %304 = vst [vmem:[#allocation2 + $0x1b8] sm:$0x1] %v301_v48  ;;  %v2140_v62 = vld [vmem:[%s2550_s1 + $0x120] sm:$0xff]  }
  0x31   : > { %1937 = vmatpush3.bf16.msra.mxu0 %v2132_v26  ;;  %1359 = vmatprep.mubr.bf16.mxu1 %v648_v35  ;;  %v647_v42 = vpack.c.bf16 %v602_v40, %v593_v39  ;;  %373 = vst [vmem:[#allocation2 + $0x138] sm:$0xf8] %v371_v49  ;;  %374 = vst [vmem:[#allocation2 + $0x180] sm:$0x3] %v371_v49  ;;  %v1733_v58 = vld [vmem:[%s2324_s6 + $0x52] sm:$0x7f] }
  0x32   : > { %1938 = vmatprep.subr.bf16.mxu0 %v2134_v28  ;;  %1977 = vmatpush3.bf16.msra.mxu1 %v2133_v27  ;;  %v1734_v59 = vld [vmem:[%s2324_s6 + $0x62] sm:$0x7f]  ;;  %380 = vst [vmem:[#allocation2 + $0x180] sm:$0xfc] %v378_v52  ;;  %381 = vst [vmem:[#allocation2 + $0x1c8] sm:$0x1] %v378_v52 }
  0x33   : > { %1978 = vmatprep.subr.bf16.mxu1 %v2135_v31  ;;  %1296 = vmatmul.mubr.bf16.gmra.mrb[4].mxu0 %v645_v38  ;;  %v333_v60 = vrot.slane %v1733_v58, 5  ;;  %v339_v61 = vrot.slane %v1734_v59, 6  ;;  %258 = vst [vmem:[#allocation2 + $0x120] sm:$0xf8] %v256_v56  ;;  %259 = vst [vmem:[#allocation2 + $0x168] sm:$0x3] %v256_v56 }
  0x34   : > { %1360 = vmatmul.mubr.bf16.gmra.mrb[4].mxu1 %v647_v42  ;;  %265 = vst [vmem:[#allocation2 + $0x168] sm:$0xfc] %v263_v57  ;;  %266 = vst [vmem:[#allocation2 + $0x1b0] sm:$0x1] %v263_v57  ;;  %v2141_v63 = vld [vmem:[%s2550_s1 + $0x1a0] sm:$0xff]   ;;  %v2143_v1 = vld [vmem:[%s2550_s1 + $0x1e8] sm:$0xff]  }
  0x35   : > { %1939 = vmatpush3.bf16.msra.mxu0 %v2136_v41  ;;  %335 = vst [vmem:[#allocation2 + $0x130] sm:$0xf8] %v333_v60  ;;  %336 = vst [vmem:[#allocation2 + $0x178] sm:$0x3] %v333_v60  ;;  %v610_v2 = vld [vmem:[#allocation2 + $0x128] sm:$0xff]  ;;  %v2146_v22 = vld [vmem:[%s2550_s1 + $0x170] sm:$0xff]  }
  0x36   : > { %1979 = vmatpush3.bf16.msra.mxu1 %v2137_v43  ;;  %1940 = vmatprep.subr.bf16.mxu0 %v2138_v51  ;;  %341 = vst [vmem:[#allocation2 + $0x178] sm:$0xfc] %v339_v61  ;;  %342 = vst [vmem:[#allocation2 + $0x1c0] sm:$0x1] %v339_v61  ;;  %v2145_v15 = vld [vmem:[%s2550_s1 + $0x1a8] sm:$0xff]   ;;  %v2147_v23 = vld [vmem:[%s2550_s1 + $0x1f0] sm:$0xff]  }
  0x37   : > { %1980 = vmatprep.subr.bf16.mxu1 %v2139_v55  ;;  %v619_v3 = vld [vmem:[#allocation2 + $0x170] sm:$0xff]  ;;  %v628_v16 = vld [vmem:[#allocation2 + $0x1b8] sm:$0x1]  ;;  %v1750_v33 = vld [vmem:[%s2324_s6 + $0x22] sm:$0x7f] }
  0x38   : > { %v612_v4 = vld [vmem:[#allocation2 + $0x138] sm:$0xff]  ;;  %v655_v5 = vpack.c.bf16 %v619_v3, %v610_v2  ;;  %v664_v18 = vpack.c.bf16 %v628_v16, %v628_v16  ;;  %v2148_v24 = vld [vmem:[%s2550_s1 + $0x130] sm:$0xff]   ;;  %v1763_v35 = vld [vmem:[%s2324_s6 + $0x21] sm:$0x7f]  ;;  %v424_v36 = vrot.slane %v1750_v33, 1 }
  0x39   : > { %1941 = vmatpush3.bf16.msra.mxu0 %v2140_v62  ;;  %v621_v6 = vld [vmem:[#allocation2 + $0x180] sm:$0xff]  ;;  %v630_v17 = vld [vmem:[#allocation2 + $0x1c8] sm:$0x1]  ;;  %v2149_v26 = vld [vmem:[%s2550_s1 + $0x1b0] sm:$0xff]   ;;  %498 = vst [vmem:[#allocation2 + $0x38] sm:$0x7f] %v1763_v35 }
  0x3a   : > { %1981 = vmatpush3.bf16.msra.mxu1 %v2141_v63  ;;  %1942 = vmatprep.subr.bf16.mxu0 %v2142_v0  ;;  %v657_v8 = vpack.c.bf16 %v621_v6, %v612_v4  ;;  %v609_v9 = vld [vmem:[#allocation2 + $0x120] sm:$0xff]  ;;  %v666_v19 = vpack.c.bf16 %v630_v17, %v630_v17  ;;  %v2150_v28 = vld [vmem:[%s2550_s1 + $0x178] sm:$0xff]   ;;  %v1764_v38 = vld [vmem:[%s2324_s6 + $0x31] sm:$0x7f]  ;;  %426 = vst [vmem:[#allocation2 + $0x28] sm:$0x80] %v424_v36 }
  0x3b   : > { %1982 = vmatprep.subr.bf16.mxu1 %v2143_v1  ;;  %v618_v10 = vld [vmem:[#allocation2 + $0x168] sm:$0xff]  ;;  %1303 = vmatprep.mubr.bf16.mxu0 %v655_v5  ;;  %v627_v20 = vld [vmem:[#allocation2 + $0x1b0] sm:$0x1]  ;;  %v2151_v29 = vld [vmem:[%s2550_s1 + $0x1f8] sm:$0xff]   ;;  %v501_v40 = vrot.slane %v1764_v38, 1 }
  0x3c   : > { %v654_v11 = vpack.c.bf16 %v618_v10, %v609_v9  ;;  %v611_v12 = vld [vmem:[#allocation2 + $0x130] sm:$0xff]  ;;  %1367 = vmatprep.mubr.bf16.mxu1 %v657_v8  ;;  %v663_v25 = vpack.c.bf16 %v627_v20, %v627_v20  ;;  %v2152_v30 = vld [vmem:[%s2550_s1 + $0x138] sm:$0xff]   ;;  %v1765_v39 = vld [vmem:[%s2324_s6 + $0x41] sm:$0x7f]  ;;  %427 = vst [vmem:[#allocation2 + $0x70] sm:$0x3f] %v424_v36 }
  0x3d   : > { %v620_v13 = vld [vmem:[#allocation2 + $0x178] sm:$0xff]  ;;  %1943 = vmatpush3.bf16.msra.mxu0 %v2144_v7  ;;  %v629_v21 = vld [vmem:[#allocation2 + $0x1c0] sm:$0x1]  ;;  %v507_v41 = vrot.slane %v1765_v39, 2  ;;  %v1742_v42 = vld [vmem:[%s2324_s6 + $0x11] sm:$0x7f] }
  0x3e   : > { %v656_v14 = vpack.c.bf16 %v620_v13, %v611_v12  ;;  %1304 = vmatmul.mubr.bf16.gmra.mrb[8].mxu0 %v654_v11  ;;  %1983 = vmatpush3.bf16.msra.mxu1 %v2145_v15  ;;  %v665_v27 = vpack.c.bf16 %v629_v21, %v629_v21  ;;  %v2153_v31 = vld [vmem:[%s2550_s1 + $0x1b8] sm:$0xff]   ;;  %v1743_v43 = vld [vmem:[%s2324_s6 + $0x21] sm:$0x7f]  ;;  %383 = vst [vmem:[#allocation2 + $0x20] sm:$0x7f] %v1742_v42  ;;  %v2155_v13 = vld [vmem:[%s2550_s1 + $0x208] sm:$0xff]  }
  0x3f   : > { %1311 = vmatprep.mubr.bf16.mxu0 %v664_v18  ;;  %1944 = vmatprep.subr.bf16.mxu0 %v2146_v22  ;;  %v1749_v32 = vld [vmem:[%s2324_s6 + $0x12] sm:$0x7f]  ;;  %v386_v44 = vrot.slane %v1743_v43, 1  ;;  %v1756_v46 = vld [vmem:[%s2324_s6 + $0x20] sm:$0x7f] }
  0x40   : > { %1368 = vmatmul.mubr.bf16.gmra.mrb[8].mxu1 %v656_v14  ;;  %1984 = vmatprep.subr.bf16.mxu1 %v2147_v23  ;;  %421 = vst [vmem:[#allocation2 + $0x28] sm:$0x7f] %v1749_v32  ;;  %v1751_v34 = vld [vmem:[%s2324_s6 + $0x32] sm:$0x7f]  ;;  %v2469_v47 = vld [vmem:[%s2550_s1 + $0x200] sm:$0xff]  }
  0x41   : > { %1375 = vmatprep.mubr.bf16.mxu1 %v666_v19  ;;  %1945 = vmatpush3.bf16.msra.mxu0 %v2148_v24  ;;  %v430_v37 = vrot.slane %v1751_v34, 2  ;;  %v1744_v45 = vld [vmem:[%s2324_s6 + $0x31] sm:$0x7f]  ;;  %503 = vst [vmem:[#allocation2 + $0x38] sm:$0x80] %v501_v40 }
  0x42   : > { %1985 = vmatpush3.bf16.msra.mxu1 %v2149_v26  ;;  %1946 = vmatprep.subr.bf16.mxu0 %v2150_v28  ;;  %504 = vst [vmem:[#allocation2 + $0x80] sm:$0x3f] %v501_v40  ;;  %509 = vst [vmem:[#allocation2 + $0x80] sm:$0xc0] %v507_v41  ;;  %v392_v48 = vrot.slane %v1744_v45, 2  ;;  %v2156_v23 = vld [vmem:[%s2550_s1 + $0x210] sm:$0xff]  }
  0x43   : > { %1986 = vmatprep.subr.bf16.mxu1 %v2151_v29  ;;  %432 = vst [vmem:[#allocation2 + $0x70] sm:$0xc0] %v430_v37  ;;  %433 = vst [vmem:[#allocation2 + $0xb8] sm:$0x1f] %v430_v37  ;;  %v1757_v49 = vld [vmem:[%s2324_s6 + $0x30] sm:$0x7f] }
  0x44   : > { %510 = vst [vmem:[#allocation2 + $0xc8] sm:$0x1f] %v507_v41  ;;  %459 = vst [vmem:[#allocation2 + $0x30] sm:$0x7f] %v1756_v46  ;;  %v1758_v50 = vld [vmem:[%s2324_s6 + $0x40] sm:$0x7f] }
  0x45   : > { %1947 = vmatpush3.bf16.msra.mxu0 %v2152_v30  ;;  %388 = vst [vmem:[#allocation2 + $0x20] sm:$0x80] %v386_v44  ;;  %389 = vst [vmem:[#allocation2 + $0x68] sm:$0x3f] %v386_v44  ;;  %v462_v51 = vrot.slane %v1757_v49, 1  ;;  %v468_v52 = vrot.slane %v1758_v50, 2 }
  0x46   : > { %1312 = vmatmul.mubr.bf16.gmra.mrb[12].mxu0 %v663_v25  ;;  %1987 = vmatpush3.bf16.msra.mxu1 %v2153_v31  ;;  %394 = vst [vmem:[#allocation2 + $0x68] sm:$0xc0] %v392_v48  ;;  %395 = vst [vmem:[#allocation2 + $0xb0] sm:$0x1f] %v392_v48  ;;  %v1752_v53 = vld [vmem:[%s2324_s6 + $0x42] sm:$0x7f] }
  0x47   : > { %2024 = vmatprep.subr.bf16.mxu0 %v2469_v47  ;;  %2048 = vmatprep.subr.bf16.mxu1 %v2469_v47  ;;  %464 = vst [vmem:[#allocation2 + $0x30] sm:$0x80] %v462_v51  ;;  %465 = vst [vmem:[#allocation2 + $0x78] sm:$0x3f] %v462_v51  ;;  %v436_v54 = vrot.slane %v1752_v53, 3  ;;  %v578_v1 = vld [vmem:[#allocation2 + $0x28] sm:$0xff] }
  0x48   : > { %1376 = vmatmul.mubr.bf16.gmra.mrb[12].mxu1 %v665_v27  ;;  %470 = vst [vmem:[#allocation2 + $0x78] sm:$0xc0] %v468_v52  ;;  %471 = vst [vmem:[#allocation2 + $0xc0] sm:$0x1f] %v468_v52  ;;  %v1753_v55 = vld [vmem:[%s2324_s6 + $0x52] sm:$0x7f] }
  0x49   : > { %v1766_v56 = vld [vmem:[%s2324_s6 + $0x51] sm:$0x7f]  ;;  %v442_v57 = vrot.slane %v1753_v55, 4  ;;  %v1767_v59 = vld [vmem:[%s2324_s6 + $0x61] sm:$0x7f]  ;;  %v580_v7 = vld [vmem:[#allocation2 + $0x38] sm:$0xff] }
  0x4a   : > { %v513_v58 = vrot.slane %v1766_v56, 3  ;;  %v1745_v60 = vld [vmem:[%s2324_s6 + $0x41] sm:$0x7f]  ;;  %438 = vst [vmem:[#allocation2 + $0x100] ss:$-68 sps:$4 sm:$0xef] %v436_v54  }
  0x4b   : > { %v519_v61 = vrot.slane %v1767_v59, 4  ;;  %v398_v62 = vrot.slane %v1745_v60, 3  ;;  %v1746_v63 = vld [vmem:[%s2324_s6 + $0x51] sm:$0x7f]  ;;  %v1760_v5 = vld [vmem:[%s2324_s6 + $0x60] sm:$0x7f] }
  0x4c   : > { %v1759_v0 = vld [vmem:[%s2324_s6 + $0x50] sm:$0x7f]  ;;  %444 = vst [vmem:[#allocation2 + $0x148] ss:$-68 sps:$4 sm:$0xf7] %v442_v57   ;;  %v404_v3 = vrot.slane %v1746_v63, 4 }
  0x4d   : > { %v587_v2 = vld [vmem:[#allocation2 + $0x70] sm:$0xff]  ;;  %515 = vst [vmem:[#allocation2 + $0x110] ss:$-68 sps:$4 sm:$0xef] %v513_v58   ;;  %v474_v4 = vrot.slane %v1759_v0, 3  ;;  %v589_v8 = vld [vmem:[#allocation2 + $0x80] sm:$0xff] }
  0x4e   : > { %v641_v6 = vpack.c.bf16 %v587_v2, %v578_v1  ;;  %521 = vst [vmem:[#allocation2 + $0x158] ss:$-68 sps:$4 sm:$0xf7] %v519_v61   ;;  %400 = vst [vmem:[#allocation2 + $0xf8] ss:$-68 sps:$4 sm:$0xef] %v398_v62   ;;  %v643_v10 = vpack.c.bf16 %v589_v8, %v580_v7 }
  0x4f   : > { %v480_v9 = vrot.slane %v1760_v5, 4  ;;  %v577_v11 = vld [vmem:[#allocation2 + $0x20] sm:$0xff]  ;;  %406 = vst [vmem:[#allocation2 + $0x140] ss:$-68 sps:$4 sm:$0xf7] %v404_v3   ;;  %v586_v12 = vld [vmem:[#allocation2 + $0x68] sm:$0xff] }
  0x50   : > { %476 = vst [vmem:[#allocation2 + $0x108] ss:$-68 sps:$4 sm:$0xef] %v474_v4   ;;  %1415 = vmatprep.mubr.bf16.mxu0 %v641_v6  ;;  %1479 = vmatprep.mubr.bf16.mxu1 %v643_v10  ;;  %v640_v14 = vpack.c.bf16 %v586_v12, %v577_v11  ;;  %v579_v15 = vld [vmem:[#allocation2 + $0x30] sm:$0xff]  ;;  %v588_v16 = vld [vmem:[#allocation2 + $0x78] sm:$0xff]  ;;  %v2158_v53 = vld [vmem:[%s2550_s1 + $0x220] sm:$0xff]  }
  0x51   : > { %482 = vst [vmem:[#allocation2 + $0x150] ss:$-68 sps:$4 sm:$0xf7] %v480_v9   ;;  %v1754_v17 = vld [vmem:[%s2324_s6 + $0x62] sm:$0x7f]  ;;  %v642_v18 = vpack.c.bf16 %v588_v16, %v579_v15  ;;  %v596_v22 = vld [vmem:[#allocation2 + $0xb8] sm:$0xff] }
  0x52   : > { %v448_v19 = vrot.slane %v1754_v17, 5  ;;  %v1755_v20 = vld [vmem:[%s2324_s6 + $0x72] sm:$0x7f]  ;;  %1416 = vmatmul.mubr.bf16.vlgmr.msra.gmra.mrb[16].mxu0 %v640_v14  ;;  %v1769_v26 = vld [vmem:[%s2324_s6 + $0x81] sm:$0x7f]  ;;  %v2159_v9 = vld [vmem:[%s2550_s1 + $0x228] sm:$0xff]  }
  0x53   : > { %v1768_v21 = vld [vmem:[%s2324_s6 + $0x71] sm:$0x7f]  ;;  %v454_v24 = vrot.slane %v1755_v20, 6  ;;  %1480 = vmatmul.mubr.bf16.vlgmr.msra.gmra.mrb[16].mxu1 %v642_v18  ;;  %2025 = vmatpush3.bf16.msra.mxu0 %v2469_v47  ;;  %v605_v27 = vld [vmem:[#allocation2 + $0x100] sm:$0xff]  ;;  %v531_v29 = vrot.slane %v1769_v26, 6  ;;  %v2157_v46 = vld [vmem:[%s2550_s1 + $0x218] sm:$0xff]  }
  0x54   : > { %v525_v25 = vrot.slane %v1768_v21, 5  ;;  %v598_v28 = vld [vmem:[#allocation2 + $0xc8] sm:$0xff]  ;;  %450 = vst [vmem:[#allocation2 + $0x148] sm:$0xf8] %v448_v19  ;;  %451 = vst [vmem:[#allocation2 + $0x190] sm:$0x3] %v448_v19  ;;  %2056 = vmatpush3.bf16.msra.mxu1 %v2469_v47  ;;  %2026 = vmatprep.subr.bf16.mxu0 %v2155_v13  ;;  %v650_v31 = vpack.c.bf16 %v605_v27, %v596_v22 }
  0x55   : > { %v1747_v30 = vld [vmem:[%s2324_s6 + $0x61] sm:$0x7f]  ;;  %v607_v32 = vld [vmem:[#allocation2 + $0x110] sm:$0xff]  ;;  %456 = vst [vmem:[#allocation2 + $0x190] sm:$0xfc] %v454_v24  ;;  %2049 = vmatprep.subr.bf16.mxu1 %v2155_v13 }
  0x56   : > { %v595_v33 = vld [vmem:[#allocation2 + $0xb0] sm:$0xff]  ;;  %457 = vst [vmem:[#allocation2 + $0x1d8] sm:$0x1] %v454_v24  ;;  %527 = vst [vmem:[#allocation2 + $0x158] sm:$0xf8] %v525_v25  ;;  %v410_v34 = vrot.slane %v1747_v30, 5  ;;  %v652_v36 = vpack.c.bf16 %v607_v32, %v598_v28  ;;  %1423 = vmatprep.mubr.bf16.mxu0 %v650_v31 }
  0x57   : > { %528 = vst [vmem:[#allocation2 + $0x1a0] sm:$0x3] %v525_v25  ;;  %v1748_v35 = vld [vmem:[%s2324_s6 + $0x71] sm:$0x7f]  ;;  %v604_v37 = vld [vmem:[#allocation2 + $0xf8] sm:$0xff]  ;;  %v597_v38 = vld [vmem:[#allocation2 + $0xc0] sm:$0xff]  ;;  %2027 = vmatpush3.bf16.msra.mxu0 %v2155_v13 }
  0x58   : > { %533 = vst [vmem:[#allocation2 + $0x1a0] sm:$0xfc] %v531_v29  ;;  %534 = vst [vmem:[#allocation2 + $0x1e8] sm:$0x1] %v531_v29  ;;  %v416_v39 = vrot.slane %v1748_v35, 6  ;;  %v649_v41 = vpack.c.bf16 %v604_v37, %v595_v33  ;;  %v606_v42 = vld [vmem:[#allocation2 + $0x108] sm:$0xff]  ;;  %1487 = vmatprep.mubr.bf16.mxu1 %v652_v36  ;;  %2057 = vmatpush3.bf16.msra.mxu1 %v2155_v13 }
  0x59   : > { %v1761_v40 = vld [vmem:[%s2324_s6 + $0x70] sm:$0x7f]  ;;  %412 = vst [vmem:[#allocation2 + $0x140] sm:$0xf8] %v410_v34  ;;  %413 = vst [vmem:[#allocation2 + $0x188] sm:$0x3] %v410_v34  ;;  %v651_v45 = vpack.c.bf16 %v606_v42, %v597_v38  ;;  %2028 = vmatprep.subr.bf16.mxu0 %v2156_v23  ;;  %2050 = vmatprep.subr.bf16.mxu1 %v2156_v23 }
  0x5a   : > { %v486_v43 = vrot.slane %v1761_v40, 5  ;;  %v1762_v44 = vld [vmem:[%s2324_s6 + $0x80] sm:$0x7f]  ;;  %418 = vst [vmem:[#allocation2 + $0x188] sm:$0xfc] %v416_v39  ;;  %1424 = vmatmul.mubr.bf16.gmra.mrb[20].mxu0 %v649_v41  ;;  %v2160_v17 = vld [vmem:[%s2550_s1 + $0x230] sm:$0xff]  }
  0x5b   : > { %419 = vst [vmem:[#allocation2 + $0x1d0] sm:$0x1] %v416_v39  ;;  %v493_v47 = vrot.slane %v1762_v44, 6  ;;  %v614_v48 = vld [vmem:[#allocation2 + $0x148] sm:$0xff]  ;;  %v1771_v50 = vld [vmem:[%s2324_s6 + $0x32] sm:$0x7f]  ;;  %1488 = vmatmul.mubr.bf16.gmra.mrb[20].mxu1 %v651_v45  ;;  %2029 = vmatpush3.bf16.msra.mxu0 %v2156_v23 }
  0x5c   : > { %488 = vst [vmem:[#allocation2 + $0x150] sm:$0xf8] %v486_v43  ;;  %489 = vst [vmem:[#allocation2 + $0x198] sm:$0x3] %v486_v43  ;;  %v1770_v49 = vld [vmem:[%s2324_s6 + $0x22] sm:$0x7f]  ;;  %2058 = vmatpush3.bf16.msra.mxu1 %v2156_v23  ;;  %2030 = vmatprep.subr.bf16.mxu0 %v2157_v46 }
  0x5d   : > { %495 = vst [vmem:[#allocation2 + $0x198] sm:$0xfc] %v493_v47  ;;  %496 = vst [vmem:[#allocation2 + $0x1e0] sm:$0x1] %v493_v47  ;;  %v623_v51 = vld [vmem:[#allocation2 + $0x190] sm:$0xff]  ;;  %v616_v52 = vld [vmem:[#allocation2 + $0x158] sm:$0xff]  ;;  %2051 = vmatprep.subr.bf16.mxu1 %v2157_v46 }
  0x5e   : > { %536 = vst [vmem:[#allocation2 + $0x40] sm:$0x7f] %v1770_v49  ;;  %v539_v54 = vrot.slane %v1771_v50, 1  ;;  %v659_v55 = vpack.c.bf16 %v623_v51, %v614_v48  ;;  %v632_v57 = vld [vmem:[#allocation2 + $0x1d8] sm:$0x1] }
  0x5f   : > { %v625_v56 = vld [vmem:[#allocation2 + $0x1a0] sm:$0xff]  ;;  %v1775_v63 = vld [vmem:[%s2324_s6 + $0x72] sm:$0x7f]  ;;  %v634_v1 = vld [vmem:[#allocation2 + $0x1e8] sm:$0x1]  ;;  %2031 = vmatpush3.bf16.msra.mxu0 %v2157_v46  ;;  %v668_v13 = vpack.c.bf16 %v632_v57, %v632_v57 }
  0x60   : > { %v1772_v58 = vld [vmem:[%s2324_s6 + $0x42] sm:$0x7f]  ;;  %v661_v59 = vpack.c.bf16 %v625_v56, %v616_v52  ;;  %541 = vst [vmem:[#allocation2 + $0x40] sm:$0x80] %v539_v54  ;;  %542 = vst [vmem:[#allocation2 + $0x88] sm:$0x3f] %v539_v54  ;;  %1431 = vmatprep.mubr.bf16.mxu0 %v659_v55  ;;  %2059 = vmatpush3.bf16.msra.mxu1 %v2157_v46  ;;  %v670_v14 = vpack.c.bf16 %v634_v1, %v634_v1 }
  0x61   : > { %v613_v60 = vld [vmem:[#allocation2 + $0x140] sm:$0xff]  ;;  %v545_v61 = vrot.slane %v1772_v58, 2  ;;  %v622_v0 = vld [vmem:[#allocation2 + $0x188] sm:$0xff]  ;;  %v563_v3 = vrot.slane %v1775_v63, 5  ;;  %v1773_v7 = vld [vmem:[%s2324_s6 + $0x52] sm:$0x7f]  ;;  %2032 = vmatprep.subr.bf16.mxu0 %v2158_v53  ;;  %2052 = vmatprep.subr.bf16.mxu1 %v2158_v53 }
  0x62   : > { %v1774_v62 = vld [vmem:[%s2324_s6 + $0x62] sm:$0x7f]  ;;  %1495 = vmatprep.mubr.bf16.mxu1 %v661_v59  ;;  %v658_v4 = vpack.c.bf16 %v622_v0, %v613_v60  ;;  %v551_v11 = vrot.slane %v1773_v7, 3  ;;  %v631_v15 = vld [vmem:[#allocation2 + $0x1d0] sm:$0x1]  ;;  %v2161_v23 = vld [vmem:[%s2550_s1 + $0x238] sm:$0xff]  }
  0x63   : > { %v557_v2 = vrot.slane %v1774_v62, 4  ;;  %v615_v5 = vld [vmem:[#allocation2 + $0x150] sm:$0xff]  ;;  %547 = vst [vmem:[#allocation2 + $0x88] sm:$0xc0] %v545_v61  ;;  %548 = vst [vmem:[#allocation2 + $0xd0] sm:$0x1f] %v545_v61  ;;  %2033 = vmatpush3.bf16.msra.mxu0 %v2158_v53  ;;  %v667_v18 = vpack.c.bf16 %v631_v15, %v631_v15 }
  0x64   : > { %v1776_v6 = vld [vmem:[%s2324_s6 + $0x82] sm:$0x7f]  ;;  %v624_v8 = vld [vmem:[#allocation2 + $0x198] sm:$0xff]  ;;  %565 = vst [vmem:[#allocation2 + $0x160] sm:$0xf8] %v563_v3  ;;  %1432 = vmatmul.mubr.bf16.gmra.mrb[24].mxu0 %v658_v4  ;;  %2060 = vmatpush3.bf16.msra.mxu1 %v2158_v53 }
  0x65   : > { %559 = vst [vmem:[#allocation2 + $0x160] ss:$-68 sps:$4 sm:$0xf7] %v557_v2   ;;  %566 = vst [vmem:[#allocation2 + $0x1a8] sm:$0x3] %v563_v3  ;;  %v569_v10 = vrot.slane %v1776_v6, 6  ;;  %v660_v12 = vpack.c.bf16 %v624_v8, %v615_v5  ;;  %2034 = vmatprep.subr.bf16.mxu0 %v2159_v9  ;;  %2053 = vmatprep.subr.bf16.mxu1 %v2159_v9 }
  0x66   : > { %553 = vst [vmem:[#allocation2 + $0x118] ss:$-68 sps:$4 sm:$0xef] %v551_v11   ;;  %v633_v16 = vld [vmem:[#allocation2 + $0x1e0] sm:$0x1]  ;;  %1439 = vmatprep.mubr.bf16.mxu0 %v668_v13 }
  0x67   : > { %571 = vst [vmem:[#allocation2 + $0x1a8] sm:$0xfc] %v569_v10  ;;  %572 = vst [vmem:[#allocation2 + $0x1f0] sm:$0x1] %v569_v10  ;;  %1496 = vmatmul.mubr.bf16.gmra.mrb[24].mxu1 %v660_v12  ;;  %v581_v19 = vld [vmem:[#allocation2 + $0x40] sm:$0xff]  ;;  %2035 = vmatpush3.bf16.msra.mxu0 %v2159_v9  ;;  %v669_v21 = vpack.c.bf16 %v633_v16, %v633_v16 }
  0x68   : > { %1503 = vmatprep.mubr.bf16.mxu1 %v670_v14  ;;  %2061 = vmatpush3.bf16.msra.mxu1 %v2159_v9  ;;  %v1777_v33 = vld [vmem:[%s2551_s2] ss:$0 sm:$0xff] }
  0x69   : > { %2036 = vmatprep.subr.bf16.mxu0 %v2160_v17  ;;  %2054 = vmatprep.subr.bf16.mxu1 %v2160_v17 }
  0x6a   : > { %v590_v20 = vld [vmem:[#allocation2 + $0x88] sm:$0xff] }
  0x6b   : > { %v644_v24 = vpack.c.bf16 %v590_v20, %v581_v19  ;;  %2037 = vmatpush3.bf16.msra.mxu0 %v2160_v17 }
  0x6c   : > { %v617_v22 = vld [vmem:[#allocation2 + $0x160] sm:$0xff]  ;;  %1440 = vmatmul.mubr.bf16.gmra.mrb[28].mxu0 %v667_v18  ;;  %2062 = vmatpush3.bf16.msra.mxu1 %v2160_v17 }
  0x6d   : > { %v599_v27 = vld [vmem:[#allocation2 + $0xd0] sm:$0xff]  ;;  %v608_v28 = vld [vmem:[#allocation2 + $0x118] sm:$0xff]  ;;  %2038 = vmatprep.subr.bf16.mxu0 %v2161_v23  ;;  %2055 = vmatprep.subr.bf16.mxu1 %v2161_v23 }
  0x6e   : > { %v626_v25 = vld [vmem:[#allocation2 + $0x1a8] sm:$0xff]  ;;  %v635_v29 = vld [vmem:[#allocation2 + $0x1f0] sm:$0x1]  ;;  %2040 = vmatprep.mubr.bf16.mxu0 %v644_v24  ;;  %v653_v30 = vpack.c.bf16 %v608_v28, %v599_v27 }
  0x6f   : > { %v662_v26 = vpack.c.bf16 %v626_v25, %v617_v22  ;;  %1504 = vmatmul.mubr.bf16.gmra.mrb[28].mxu1 %v669_v21  ;;  %2039 = vmatpush3.bf16.msra.mxu0 %v2161_v23  ;;  %v671_v31 = vpack.c.bf16 %v635_v29, %v635_v29 }
  0x70   : > { %2063 = vmatpush3.bf16.msra.mxu1 %v2161_v23 }
  0x71   : > { %2044 = vmatprep.mubr.bf16.mxu1 %v662_v26 }
  0x74   : > { %2041 = vmatmul.mubr.bf16.vlgmr.msra.gmra.mrb[32].mxu0 %v653_v30 }
  0x77   : > { %2045 = vmatmul.mubr.bf16.vlgmr.msra.gmra.mrb[32].mxu1 %v671_v31 }
  0xfb   : > { %v1868_v32 = vpop.f32.mrb[0].mxu0 }
  0xfc   : > { %v1869_v34 = vpop.f32.mrb[1].mxu0  ;;  %v1908_v35 = vpop.f32.mrb[0].mxu1 }
  0xfd   : > { %v1870_v36 = vadd.f32 %v1869_v34, %v1868_v32  ;;  %v1871_v37 = vpop.f32.mrb[2].mxu0  ;;  %v1909_v38 = vpop.f32.mrb[1].mxu1 }
  0xfe   : > { %v1872_v39 = vpop.f32.mrb[3].mxu0  ;;  %v1910_v41 = vadd.f32 %v1909_v38, %v1908_v35  ;;  %v1911_v42 = vpop.f32.mrb[2].mxu1 }
  0xff   : > { %v1290_v40 = vadd.f32 %v1870_v36, %v1777_v33  ;;  %v1873_v43 = vadd.f32 %v1872_v39, %v1871_v37  ;;  %v1912_v44 = vpop.f32.mrb[3].mxu1 }
 0x100   : > { %v1913_v47 = vadd.f32 %v1912_v44, %v1911_v42 }
 0x101   : > { %v1354_v45 = vadd.f32 %v1910_v41, %v1290_v40  ;;  %v1293_v46 = vadd.f32 %v1873_v43, %v1777_v33 }
 0x103   : > { %v1357_v48 = vadd.f32 %v1913_v47, %v1293_v46 }
 0x106   : > { %v1874_v49 = vpop.f32.mrb[4].mxu0 }
 0x107   : > { %v1914_v50 = vpop.f32.mrb[4].mxu1  ;;  %v1875_v51 = vpop.f32.mrb[5].mxu0 }
 0x108   : > { %v1876_v52 = vadd.f32 %v1875_v51, %v1874_v49  ;;  %v1915_v53 = vpop.f32.mrb[5].mxu1  ;;  %v1877_v54 = vpop.f32.mrb[6].mxu0 }
 0x109   : > { %v1916_v55 = vadd.f32 %v1915_v53, %v1914_v50  ;;  %v1917_v56 = vpop.f32.mrb[6].mxu1  ;;  %v1878_v57 = vpop.f32.mrb[7].mxu0 }
 0x10a   : > { %v1298_v58 = vadd.f32 %v1876_v52, %v1777_v33  ;;  %v1879_v59 = vadd.f32 %v1878_v57, %v1877_v54  ;;  %v1918_v60 = vpop.f32.mrb[7].mxu1 }
 0x10b   : > { %v1919_v61 = vadd.f32 %v1918_v60, %v1917_v56 }
 0x10c   : > { %v1362_v62 = vadd.f32 %v1916_v55, %v1298_v58  ;;  %v1301_v63 = vadd.f32 %v1879_v59, %v1777_v33 }
 0x10e   : > { %v1365_v0 = vadd.f32 %v1919_v61, %v1301_v63 }
 0x111   : > { %v1880_v1 = vpop.f32.mrb[8].mxu0 }
 0x112   : > { %v1881_v3 = vpop.f32.mrb[9].mxu0 }
 0x113   : > { %v1920_v2 = vpop.f32.mrb[8].mxu1  ;;  %v1882_v4 = vadd.f32 %v1881_v3, %v1880_v1  ;;  %v1883_v6 = vpop.f32.mrb[10].mxu0 }
 0x114   : > { %v1921_v5 = vpop.f32.mrb[9].mxu1  ;;  %v1884_v9 = vpop.f32.mrb[11].mxu0 }
 0x115   : > { %v1922_v7 = vadd.f32 %v1921_v5, %v1920_v2  ;;  %v1923_v8 = vpop.f32.mrb[10].mxu1  ;;  %v1306_v10 = vadd.f32 %v1882_v4, %v1777_v33  ;;  %v1885_v11 = vadd.f32 %v1884_v9, %v1883_v6 }
 0x116   : > { %v1924_v12 = vpop.f32.mrb[11].mxu1 }
 0x117   : > { %v1925_v13 = vadd.f32 %v1924_v12, %v1923_v8  ;;  %v1370_v14 = vadd.f32 %v1922_v7, %v1306_v10  ;;  %v1309_v15 = vadd.f32 %v1885_v11, %v1777_v33 }
 0x119   : > { %v1373_v16 = vadd.f32 %v1925_v13, %v1309_v15  ;;  %v1886_v17 = vpop.f32.mrb[12].mxu0 }
 0x11a   : > { %v1887_v19 = vpop.f32.mrb[13].mxu0 }
 0x11b   : > { %v1926_v18 = vpop.f32.mrb[12].mxu1  ;;  %v1888_v20 = vadd.f32 %v1887_v19, %v1886_v17  ;;  %v1889_v22 = vpop.f32.mrb[14].mxu0 }
 0x11c   : > { %v1927_v21 = vpop.f32.mrb[13].mxu1  ;;  %v1890_v25 = vpop.f32.mrb[15].mxu0 }
 0x11d   : > { %v1928_v23 = vadd.f32 %v1927_v21, %v1926_v18  ;;  %v1929_v24 = vpop.f32.mrb[14].mxu1  ;;  %v1314_v26 = vadd.f32 %v1888_v20, %v1777_v33 }
 0x11e   : > { %v1930_v27 = vpop.f32.mrb[15].mxu1 }
 0x11f   : > { %v1378_v28 = vadd.f32 %v1928_v23, %v1314_v26 }
 0x125   : > { %v1948_v29 = vpop.f32.mrb[16].mxu0 }
 0x126   : > { %v1988_v30 = vpop.f32.mrb[16].mxu1  ;;  %v1949_v31 = vpop.f32.mrb[17].mxu0 }
 0x127   : > { %v1950_v32 = vadd.f32 %v1949_v31, %v1948_v29  ;;  %v1989_v34 = vpop.f32.mrb[17].mxu1  ;;  %v1951_v35 = vpop.f32.mrb[18].mxu0 }
 0x128   : > { %v1990_v36 = vadd.f32 %v1989_v34, %v1988_v30  ;;  %v1991_v37 = vpop.f32.mrb[18].mxu1  ;;  %v1952_v38 = vpop.f32.mrb[19].mxu0 }
 0x129   : > { %v1418_v39 = vadd.f32 %v1950_v32, %v1354_v45  ;;  %v1953_v40 = vadd.f32 %v1952_v38, %v1951_v35  ;;  %v1992_v41 = vpop.f32.mrb[19].mxu1 }
 0x12a   : > { %v1993_v42 = vadd.f32 %v1992_v41, %v1991_v37 }
 0x12b   : > { %v1421_v43 = vadd.f32 %v1953_v40, %v1357_v48  ;;  %v1482_v44 = vadd.f32 %v1990_v36, %v1418_v39 }
 0x12d   : > { %v1954_v46 = vpop.f32.mrb[20].mxu0  ;;  %v2524_v47 = vadd.f32 %v1993_v42, %v1421_v43 }
 0x12e   : > { %v1994_v33 = vpop.f32.mrb[20].mxu1  ;;  %v1955_v49 = vpop.f32.mrb[21].mxu0 }
 0x12f   : > { %v1956_v50 = vadd.f32 %v1955_v49, %v1954_v46  ;;  %v1995_v51 = vpop.f32.mrb[21].mxu1  ;;  %v1957_v52 = vpop.f32.mrb[22].mxu0 }
 0x130   : > { %v1996_v53 = vadd.f32 %v1995_v51, %v1994_v33  ;;  %v1997_v54 = vpop.f32.mrb[22].mxu1  ;;  %v1958_v55 = vpop.f32.mrb[23].mxu0 }
 0x131   : > { %v1426_v56 = vadd.f32 %v1956_v50, %v1362_v62  ;;  %v1959_v57 = vadd.f32 %v1958_v55, %v1957_v52  ;;  %v1998_v58 = vpop.f32.mrb[23].mxu1 }
 0x132   : > { %v1999_v45 = vadd.f32 %v1998_v58, %v1997_v54 }
 0x133   : > { %v1429_v59 = vadd.f32 %v1959_v57, %v1365_v0  ;;  %v1490_v60 = vadd.f32 %v1996_v53, %v1426_v56 }
 0x135   : > { %v1493_v48 = vadd.f32 %v1999_v45, %v1429_v59 }
 0x137   : > { %v1960_v61 = vpop.f32.mrb[24].mxu0 }
 0x138   : > { %v1961_v1 = vpop.f32.mrb[25].mxu0 }
 0x139   : > { %v1962_v2 = vadd.f32 %v1961_v1, %v1960_v61  ;;  %v1963_v4 = vpop.f32.mrb[26].mxu0 }
 0x13a   : > { %v2000_v63 = vpop.f32.mrb[24].mxu1  ;;  %v1964_v7 = vpop.f32.mrb[27].mxu0 }
 0x13b   : > { %v2001_v3 = vpop.f32.mrb[25].mxu1  ;;  %v1434_v8 = vadd.f32 %v1962_v2, %v1370_v14  ;;  %v1965_v9 = vadd.f32 %v1964_v7, %v1963_v4 }
 0x13c   : > { %v2002_v5 = vadd.f32 %v2001_v3, %v2000_v63  ;;  %v2003_v6 = vpop.f32.mrb[26].mxu1 }
 0x13d   : > { %v2004_v10 = vpop.f32.mrb[27].mxu1  ;;  %v1437_v62 = vadd.f32 %v1965_v9, %v1373_v16 }
 0x13e   : > { %v2005_v11 = vadd.f32 %v2004_v10, %v2003_v6  ;;  %v1498_v12 = vadd.f32 %v2002_v5, %v1434_v8 }
 0x13f   : > { %v1966_v13 = vpop.f32.mrb[28].mxu0 }
 0x140   : > { %v1501_v0 = vadd.f32 %v2005_v11, %v1437_v62  ;;  %v1967_v17 = vpop.f32.mrb[29].mxu0 }
 0x141   : > { %v1968_v18 = vadd.f32 %v1967_v17, %v1966_v13  ;;  %v1969_v20 = vpop.f32.mrb[30].mxu0 }
 0x142   : > { %v2006_v15 = vpop.f32.mrb[28].mxu1  ;;  %v1970_v23 = vpop.f32.mrb[31].mxu0 }
 0x143   : > { %v2007_v19 = vpop.f32.mrb[29].mxu1  ;;  %v1442_v24 = vadd.f32 %v1968_v18, %v1378_v28 }
 0x144   : > { %v2008_v21 = vadd.f32 %v2007_v19, %v2006_v15  ;;  %v2009_v22 = vpop.f32.mrb[30].mxu1 }
 0x145   : > { %v2010_v25 = vpop.f32.mrb[31].mxu1 }
 0x146   : > { %v1506_v26 = vadd.f32 %v2008_v21, %v1442_v24 }
 0x147   : > { %v2042_v14 = vpop.f32.mrb[32].mxu0 }
 0x148   : > { %v1554_v27 = vadd.f32 %v2042_v14, %v1490_v60  ;;  %v1545_v30 = vpop.f32.mrb[33].mxu0 }
 0x149   : > { %v1546_v31 = vadd.f32 %v1545_v30, %v1482_v44  ;;  %v2043_v34 = vpop.f32.mrb[34].mxu0 }
 0x14a   : > { %v2046_v29 = vpop.f32.mrb[32].mxu1  ;;  %vm1577_vm0 = vcmp.gt.f32.partialorder %v1554_v27, 0.0  ;;  %v1584_v35 = vmul.f32 0.1, %v1554_v27  ;;  %v1557_v36 = vadd.f32 %v2043_v34, %v1493_v48  ;;  %v1548_v38 = vpop.f32.mrb[35].mxu0 }
 0x14b   : > { %v1570_v16 = vadd.f32 %v2046_v29, %v1506_v26  ;;  %v1561_v32 = vpop.f32.mrb[33].mxu1  ;;  %vm1575_vm2 = vcmp.gt.f32.partialorder %v1546_v31, 0.0  ;;  %v1582_v40 = vmul.f32 0.1, %v1546_v31  ;;  %v1549_v49 = vadd.f32 %v1548_v38, %v2524_v47 }
 0x14c   : > { %v1562_v28 = vadd.f32 %v1561_v32, %v1498_v12  ;;  %v2047_v37 = vpop.f32.mrb[34].mxu1  ;;  %v1591_v41 = vsel %vm1577_vm0, %v1554_v27, %v1584_v35  ;;  %vm1578_vm4 = vcmp.gt.f32.partialorder %v1557_v36, 0.0  ;;  %v1585_v33 = vmul.f32 0.1, %v1557_v36 }
 0x14d   : > { %vm1581_vm1 = vcmp.gt.f32.partialorder %v1570_v16, 0.0  ;;  %v1588_v39 = vmul.f32 0.1, %v1570_v16  ;;  %v1564_v43 = vpop.f32.mrb[35].mxu1  ;;  %1598 = vst [vmem:[%s2530_s7 + $0x10] sm:$0xff] %v1591_v41  ;;  %v1589_v46 = vsel %vm1575_vm2, %v1546_v31, %v1582_v40  ;;  %vm1576_vm5 = vcmp.gt.f32.partialorder %v1549_v49, 0.0 }
 0x14e   : > { %vm1579_vm3 = vcmp.gt.f32.partialorder %v1562_v28, 0.0  ;;  %v1586_v42 = vmul.f32 0.1, %v1562_v28  ;;  %1596 = vst [vmem:[%s2530_s7] sm:$0xff] %v1589_v46  ;;  %v1565_v51 = vadd.f32 %v1564_v43, %v1501_v0  ;;  %v1592_v52 = vsel %vm1578_vm4, %v1557_v36, %v1585_v33 }
 0x14f   : > { %v1595_v44 = vsel %vm1581_vm1, %v1570_v16, %v1588_v39  ;;  %v1583_v53 = vmul.f32 0.1, %v1549_v49  ;;  %1599 = vst [vmem:[%s2530_s7 + $0x18] sm:$0xff] %v1592_v52 }
 0x150   : > { %1602 = vst [vmem:[%s2530_s7 + $0x30] sm:$0x1] %v1595_v44  ;;  %v1593_v50 = vsel %vm1579_vm3, %v1562_v28, %v1586_v42  ;;  %vm1580_vm6 = vcmp.gt.f32.partialorder %v1565_v51, 0.0  ;;  %v1587_v54 = vmul.f32 0.1, %v1565_v51 }
 0x151   : > { %1600 = vst [vmem:[%s2530_s7 + $0x20] sm:$0xff] %v1593_v50  ;;  %v1590_v55 = vsel %vm1576_vm5, %v1549_v49, %v1583_v53 }
 0x152   : > { %1597 = vst [vmem:[%s2530_s7 + $0x8] sm:$0xff] %v1590_v55  ;;  %v1594_v56 = vsel %vm1580_vm6, %v1565_v51, %v1587_v54 }
 0x153   : > { %1601 = vst [vmem:[%s2530_s7 + $0x28] sm:$0xff] %v1594_v56 }
 0x154 PF: > { %s13_s14 = sadd.s32 1, %s2184_s14   ;;  %s2553_s12 = smov %s2180_s13 }
 0x155   : > { %p10_p5 = scmp.ge.s32.totalorder %s13_s14, 4   ;;  %s2554_s13 = smov %s2556_s15 }
 0x157   :  { %12 = sbr.rel (!%p10_p5) target bundleno = 2 (0x2), region = 76 }

// kernel: yolo_forward.5
= control target key start
LH: loop header
LB: loop body
LE: loop exit
PB: predicated region body
PF: predicated region fallthrough
CT: control target
= control target key end

     0   :  { %8 = vsyncpa [#allocation4], 0  ;;  %s5552_s0 = inlined_call_operand.vmem [shape: f32[2,16,16,128], index: 0, kind: input, shape index: {}]   ;;  %s5553_s1 = inlined_call_operand.hbm [shape: bf16[1152,128], index: 1, kind: input, shape index: {}]   ;;  %s5554_s2 = inlined_call_operand.hbm [shape: f32[1,128], index: 2, kind: input, shape index: {}]   ;;  %s5555_s3 = inlined_call_operand.vmem [shape: f32[2,196,128], index: 3, kind: output, shape index: {}]  }
   0x1   :  { %9 = vsyncpa [#allocation6], 0  ;;  %s4374_s12 = smov 0   ;;  %s4376_s13 = smov 0  }
   0x2   :  { %s4378_s14 = smov 0  }
   0x3 LB: > { %s3321_s15 = sadd.s32 4294967295, %s4346_s14   ;;  %s27_s16 = sadd.s32 1, %s4342_s13  ;;  %s4346_s14 = sphi %s4378_s14, %s15_s14   ;;  %s4342_s13 = sphi %s4376_s13, %s5565_s13   ;;  %s4338_s12 = sphi %s4374_s12, %s5564_s12  }
   0x4   : > { %p29_p0 = scmp.ge.s32.totalorder %s27_s16, 2  ;;  %p3323_p1 = scmp.ge.s32.totalorder %s4346_s14, 1 }
   0x5   : > { %p138_p2 = scmp.lt.s32.totalorder %s4346_s14, 3  ;;  %p4399_p4 = scmp.eq.s32.totalorder %s3321_s15, 0 }
   0x6   : > { %s5567_s16 = smov (%p29_p0, %s27_s16), 0  ;;  %s4348_s19 = smov [#allocation3]  }
   0x7   : > { %p4395_p3 = pnand %p3323_p1, %p138_p2  ;;  %s152_s20 = sshll.u32 %s4348_s19, 4  ;;  %s153_s20 = int_to_ptr.vmem [resolvable:$true] %s152_s20 }
   0x8   : > { %s5560_s18 = scalar_select %p4399_p4, 1, 0 }
   0x9   : > { %s5559_s17 = scalar_select %p4395_p3, 1, 0 }
   0xa   : > { %p4145_p5 = pneg %p4395_p3  ;;  %s4349_s22 = smov [#allocation5]  }
   0xb   : > { %s168_s23 = sshll.u32 %s4349_s22, 4  ;;  %s4260_s26 = scalar_lea.hbm %s5553_s1, 9216  ;;  %s4411_s23 = int_to_ptr.vmem [resolvable:$true] %s168_s23 }
   0xc   : > { %p4407_p6 = pnand %p4399_p4, %p4145_p5  ;;  %p4261_p7 = scmp.ne.s32.totalorder %s5553_s1, %s4260_s26 }
   0xd   : > { %p4267_p11 = scmp.lt.u32.totalorder %s4260_s26, %s5553_s1 }
   0xe   : > { %p4262_p8 = pneg %p4407_p6 }
  0x10   : > { %p4263_p9 = pnand %p4262_p8, %p4261_p7 }
  0x12   : > { %p4264_p10 = pneg %p4263_p9 }
  0x14   : > { %p4269_p12 = pnand %p4267_p11, %p4264_p10 }
  0x16   : > { %4272 = shalt.err (!%p4269_p12)
}
  0x17   : > { %s4273_s4 = scalar_lea.vmem %s153_s20, 9216  ;;  %p4281_p2 = scmp.lt.s32.totalorder %s153_s20, %s153_s20 }
  0x18   : > { %p4274_p13 = scmp.ne.s32.totalorder %s153_s20, %s4273_s4  ;;  %p4282_p5 = scmp.lt.s32.totalorder %s4273_s4, %s4273_s4 }
  0x1a   : > { %p4276_p0 = pnand %p4274_p13, %p4262_p8  ;;  %p4283_p4 = por %p4282_p5, %p4281_p2 }
  0x1c   : > { %p4277_p1 = pneg %p4276_p0 }
  0x1e   : > { %p4284_p3 = pnand %p4283_p4, %p4277_p1 }
  0x20   : > { %4287 = shalt.err (!%p4284_p3)
}
  0x21   : > { %s4350_s5 = smov 64   ;;  %s4351_s6 = smov 4  }
  0x22   : > { %4148 = dma.hbm_to_vmem [thread:$0]  (!%p4407_p6), %s5553_s1, 9216, %s153_s20, [#allocation4], %s4350_s5, %s4350_s5, %s4351_s6  }
  0x23   : > { %s4288_s11 = scalar_lea.hbm %s5554_s2, 16 }
  0x24   : > { %p4289_p7 = scmp.ne.s32.totalorder %s5554_s2, %s4288_s11  ;;  %p4295_p9 = scmp.lt.u32.totalorder %s4288_s11, %s5554_s2 }
  0x26   : > { %p4291_p3 = pnand %p4289_p7, %p4262_p8 }
  0x28   : > { %p4292_p4 = pneg %p4291_p3 }
  0x2a   : > { %p4297_p10 = pnand %p4295_p9, %p4292_p4 }
  0x2c   : > { %4300 = shalt.err (!%p4297_p10)
}
  0x2d   : > { %s4301_s20 = scalar_lea.vmem %s4411_s23, 16  ;;  %s4308_s25 = scalar_lea.vmem %s4411_s23, 32 }
  0x2e   : > { %p4302_p11 = scmp.ne.s32.totalorder %s4411_s23, %s4301_s20  ;;  %p4309_p0 = scmp.lt.s32.totalorder %s4411_s23, %s4411_s23 }
  0x2f   : > { %p4310_p1 = scmp.lt.s32.totalorder %s4308_s25, %s4301_s20 }
  0x30   : > { %p4304_p12 = pnand %p4302_p11, %p4262_p8 }
  0x31   : > { %p4311_p2 = por %p4310_p1, %p4309_p0 }
  0x32   : > { %p4305_p13 = pneg %p4304_p12 }
  0x34   : > { %p4312_p5 = pnand %p4311_p2, %p4305_p13 }
  0x36   : > { %4315 = shalt.err (!%p4312_p5)
}
  0x37   : > { %4151 = dma.hbm_to_vmem [thread:$0]  (!%p4407_p6), %s5554_s2, 16, %s4411_s23, [#allocation6]  }
  0x38   : > { %p5562_p7 = scmp.ne.s32.totalorder %s5559_s17, 0 }
  0x39   : > { %p5563_p8 = scmp.ne.s32.totalorder (!%p5562_p7), %s5560_s18, 0 }
  0x3a   : > { %189 = sbr.rel (%p5562_p7) target bundleno = 575 (0x23f), region = 32 }
  0x41   : > { %4329 = dma.done.wait (%p5563_p8), [#allocation4], 9216  }
  0x42   : > { %4331 = vsyncadd (%p5563_p8), [#allocation4], 4294958080 }
  0x43   : > { %4333 = dma.done.wait (%p5563_p8), [#allocation6], 16  }
  0x44   : > { %4335 = vsyncadd (%p5563_p8), [#allocation6], 4294967280  ;;  %v4186_v0 = vld [vmem:[#allocation3 + $0x40] sm:$0xff]   ;;  %v4188_v2 = vld [vmem:[#allocation3 + $0x48] sm:$0xff]   ;;  %p220_p6 = scmp.lt.s32.totalorder %s4338_s12, 1  ;;  %vm243_vm0 = vcmask 1045504  }
  0x45   : > { %v4187_v1 = vld [vmem:[#allocation3] sm:$0xff]   ;;  %3655 = vmatprep.subr.bf16.mxu0 %v4186_v0  ;;  %4120 = vmatprep.subr.bf16.mxu1 %v4186_v0  ;;  %v4189_v3 = vld [vmem:[#allocation3 + $0x8] sm:$0xff]   ;;  %v4190_v4 = vld [vmem:[#allocation3 + $0x50] sm:$0xff]   ;;  %vm258_vm1 = vcmask 1043456   ;;  %vm273_vm2 = vcmask 1041408   ;;  %vm4353_vm3 = vmmov 0  }
  0x46   : > { %3656 = vmatpush3.bf16.msra.mxu0 %v4187_v1  ;;  %4128 = vmatpush3.bf16.msra.mxu1 %v4187_v1  ;;  %s5569_s12 = smov (!%p220_p6, %s4338_s12), 1  ;;  %v4191_v5 = vld [vmem:[#allocation3 + $0x10] sm:$0xff]   ;;  %v4192_v6 = vld [vmem:[#allocation3 + $0x58] sm:$0xff]   ;;  %v4194_v8 = vld [vmem:[#allocation3 + $0x60] sm:$0xff]  }
  0x47   : > { %3657 = vmatprep.subr.bf16.mxu0 %v4188_v2  ;;  %4121 = vmatprep.subr.bf16.mxu1 %v4188_v2  ;;  %s3654_s17 = sshll.u32 %s5569_s12, 8  ;;  %v4193_v7 = vld [vmem:[#allocation3 + $0x18] sm:$0xff]   ;;  %v4195_v9 = vld [vmem:[#allocation3 + $0x20] sm:$0xff]   ;;  %v4196_v10 = vld [vmem:[#allocation3 + $0x68] sm:$0xff]   ;;  %s4136_s28 = smul.u32 200, %s5569_s12 }
  0x48   : > { %s4479_s23 = scalar_lea.vmem %s5552_s0, %s3654_s17  ;;  %v4197_v14 = vld [vmem:[#allocation3 + $0x28] sm:$0xff]   ;;  %v4198_v27 = vld [vmem:[#allocation3 + $0x70] sm:$0xff]   ;;  %v4200_v30 = vld [vmem:[#allocation3 + $0x78] sm:$0xff]  }
  0x49   : > { %v4482_v11 = vld [vmem:[%s4479_s23 + $0x1] sm:$0xff]  ;;  %v391_v12 = vld [vmem:[%s4479_s23 + $0x9] sm:$0x3f]  ;;  %v3359_v13 = vld [vmem:[%s4479_s23 + $0x11] sm:$0xff]  ;;  %s5493_s4 = scalar_lea.vmem %s5555_s3, %s4136_s28 }
  0x4a   : > { %3658 = vmatpush3.bf16.msra.mxu0 %v4189_v3  ;;  %4129 = vmatpush3.bf16.msra.mxu1 %v4189_v3  ;;  %393 = vst [vmem:[#allocation2 + $0x50] sm:$0x3f] %v391_v12  ;;  %v398_v15 = vrot.slane %v3359_v13, 2  ;;  %v4487_v16 = vld [vmem:[%s4479_s23 + $0x81] sm:$0xff]  ;;  %v3374_v17 = vld [vmem:[%s4479_s23 + $0x89] sm:$0x3f] }
  0x4b   : > { %3659 = vmatprep.subr.bf16.mxu0 %v4190_v4  ;;  %4122 = vmatprep.subr.bf16.mxu1 %v4190_v4  ;;  %v3375_v18 = vld [vmem:[%s4479_s23 + $0x91] sm:$0xff]  ;;  %813 = vst [vmem:[#allocation2 + $0x20] sm:$0xff] %v3359_v13  ;;  %475 = vst [vmem:[#allocation2 + $0x440] sm:$0x3f] %v3374_v17  ;;  %v4492_v20 = vld [vmem:[%s4479_s23] sm:$0xff] }
  0x4c   : > { %v480_v19 = vrot.slane %v3375_v18, 2  ;;  %v235_v21 = vld [vmem:[%s4479_s23 + $0x8] sm:$0x3f]  ;;  %v4496_v22 = vld [vmem:[%s4479_s23 + $0x10] sm:$0xff]  ;;  %404 = vst [vmem:[#allocation2 + $0x50] sm:$0xc0] %v398_v15 }
  0x4d   : > { %237 = vst [vmem:[#allocation2 + $0x48] sm:$0x3f] %v235_v21  ;;  %v244_v23 = vrot.slane %v4496_v22, 2  ;;  %v4500_v24 = vld [vmem:[%s4479_s23 + $0x80] sm:$0xff]  ;;  %v3348_v25 = vld [vmem:[%s4479_s23 + $0x88] sm:$0x3f] }
  0x4e   : > { %3660 = vmatpush3.bf16.msra.mxu0 %v4191_v5  ;;  %4130 = vmatpush3.bf16.msra.mxu1 %v4191_v5  ;;  %v4504_v26 = vld [vmem:[%s4479_s23 + $0x90] sm:$0xff]  ;;  %486 = vst [vmem:[#allocation2 + $0x440] sm:$0xc0] %v480_v19  ;;  %330 = vst [vmem:[#allocation2 + $0x438] sm:$0x3f] %v3348_v25  ;;  %v4199_v29 = vld [vmem:[#allocation3 + $0x30] sm:$0xff]  }
  0x4f   : > { %3661 = vmatprep.subr.bf16.mxu0 %v4192_v6  ;;  %4123 = vmatprep.subr.bf16.mxu1 %v4192_v6  ;;  %v336_v28 = vrot.slane %v4504_v26, 2  ;;  %250 = vst [vmem:[#allocation2 + $0x48] sm:$0xc0] %v244_v23  ;;  %v3360_v31 = vld [vmem:[%s4479_s23 + $0x19] sm:$0x3f]  ;;  %v4511_v32 = vld [vmem:[%s4479_s23 + $0x21] sm:$0xff] }
  0x50   : > { %v3376_v33 = vld [vmem:[%s4479_s23 + $0x99] sm:$0x3f]  ;;  %v4201_v34 = vld [vmem:[#allocation3 + $0x38] sm:$0xff]   ;;  %v399_v35 = vrot.slane %v3360_v31, 2  ;;  %v411_v36 = vrot.slane %v4511_v32, 4  ;;  %v4202_v40 = vld [vmem:[#allocation3 + $0x140] sm:$0xff]  }
  0x51   : > { %342 = vst [vmem:[#allocation2 + $0x438] sm:$0xc0] %v336_v28  ;;  %v481_v37 = vrot.slane %v3376_v33, 2  ;;  %v4516_v38 = vld [vmem:[%s4479_s23 + $0xa1] sm:$0xff]  ;;  %v819_v43 = vrot.slane %v4511_v32, 2  ;;  %v4206_v0 = vld [vmem:[#allocation3 + $0x148] sm:$0xff]  }
  0x52   : > { %3662 = vmatpush3.bf16.msra.mxu0 %v4193_v7  ;;  %4131 = vmatpush3.bf16.msra.mxu1 %v4193_v7  ;;  %v4204_v41 = vld [vmem:[#allocation3 + $0xc0] sm:$0xff]   ;;  %v493_v42 = vrot.slane %v4516_v38, 4  ;;  %v4522_v46 = vsel %vm243_vm0, %v398_v15, %v399_v35  ;;  %406 = vst [vmem:[#allocation2 + $0xe0] sm:$0xf] %v399_v35  ;;  %417 = vst [vmem:[#allocation2 + $0xe0] sm:$0xf0] %v411_v36 }
  0x53   : > { %3663 = vmatprep.subr.bf16.mxu0 %v4194_v8  ;;  %4124 = vmatprep.subr.bf16.mxu1 %v4194_v8  ;;  %v1522_v39 = vld [vmem:[#allocation2 + $0x50] sm:$0xff]  ;;  %v4527_v47 = vsel %vm243_vm0, %v480_v19, %v481_v37  ;;  %488 = vst [vmem:[#allocation2 + $0x4d0] sm:$0xf] %v481_v37  ;;  %v3334_v48 = vld [vmem:[%s4479_s23 + $0x18] sm:$0x3f]  ;;  %v4531_v49 = vld [vmem:[%s4479_s23 + $0x20] sm:$0xff] }
  0x54   : > { %v1738_v44 = vpack.c.bf16 %v1522_v39, %v4482_v11  ;;  %499 = vst [vmem:[#allocation2 + $0x4d0] sm:$0xf0] %v493_v42  ;;  %v245_v52 = vrot.slane %v3334_v48, 2  ;;  %v259_v53 = vrot.slane %v4531_v49, 4  ;;  %v3350_v54 = vld [vmem:[%s4479_s23 + $0x98] sm:$0x3f] }
  0x55   : > { %v1648_v45 = vld [vmem:[#allocation2 + $0x440] sm:$0xff]  ;;  %825 = vst [vmem:[#allocation2 + $0x68] sm:$0xc0] %v819_v43  ;;  %v4203_v57 = vld [vmem:[#allocation3 + $0x100] sm:$0xff]   ;;  %v337_v59 = vrot.slane %v3350_v54, 2  ;;  %v678_v2 = vrot.slane %v4531_v49, 2 }
  0x56   : > { %3664 = vmatpush3.bf16.msra.mxu0 %v4195_v9  ;;  %4132 = vmatpush3.bf16.msra.mxu1 %v4195_v9  ;;  %v1801_v50 = vpack.c.bf16 %v1648_v45, %v4487_v16  ;;  %v1521_v51 = vld [vmem:[#allocation2 + $0x48] sm:$0xff]  ;;  %v4539_v55 = vld [vmem:[%s4479_s23 + $0xa0] sm:$0xff]  ;;  %v4549_v63 = vsel %vm243_vm0, %v244_v23, %v245_v52  ;;  %252 = vst [vmem:[#allocation2 + $0xd8] sm:$0xf] %v245_v52  ;;  %265 = vst [vmem:[#allocation2 + $0xd8] sm:$0xf0] %v259_v53 }
  0x57   : > { %3665 = vmatprep.subr.bf16.mxu0 %v4196_v10  ;;  %4125 = vmatprep.subr.bf16.mxu1 %v4196_v10  ;;  %v4205_v58 = vld [vmem:[#allocation3 + $0x80] sm:$0xff]   ;;  %v350_v60 = vrot.slane %v4539_v55, 4  ;;  %v1737_v61 = vpack.c.bf16 %v1521_v51, %v4492_v20  ;;  %v4554_v1 = vsel %vm243_vm0, %v336_v28, %v337_v59  ;;  %344 = vst [vmem:[#allocation2 + $0x4c8] sm:$0xf] %v337_v59  ;;  %v4208_v3 = vld [vmem:[#allocation3 + $0xc8] sm:$0xff]   ;;  %v4210_v9 = vld [vmem:[#allocation3 + $0x150] sm:$0xff]  }
  0x58   : > { %2469 = vmatprep.mubr.bf16.mxu0 %v1738_v44  ;;  %v1647_v56 = vld [vmem:[#allocation2 + $0x438] sm:$0xff]  ;;  %2525 = vmatprep.mubr.bf16.mxu1 %v1801_v50  ;;  %v4207_v4 = vld [vmem:[#allocation3 + $0x108] sm:$0xff]   ;;  %v3362_v6 = vld [vmem:[%s4479_s23 + $0x29] sm:$0x3f]  ;;  %684 = vst [vmem:[#allocation2 + $0x60] sm:$0xc0] %v678_v2 }
  0x59   : > { %v1800_v62 = vpack.c.bf16 %v1647_v56, %v4500_v24  ;;  %356 = vst [vmem:[#allocation2 + $0x4c8] sm:$0xf0] %v350_v60  ;;  %v4209_v5 = vld [vmem:[#allocation3 + $0x88] sm:$0xff]   ;;  %v1540_v8 = vld [vmem:[#allocation2 + $0xe0] sm:$0xff]  ;;  %v412_v10 = vrot.slane %v3362_v6, 4  ;;  %v4211_v18 = vld [vmem:[#allocation3 + $0xd0] sm:$0xff]  }
  0x5a   : > { %3666 = vmatpush3.bf16.msra.mxu0 %v4197_v14  ;;  %4133 = vmatpush3.bf16.msra.mxu1 %v4197_v14  ;;  %v4561_v7 = vld [vmem:[%s4479_s23 + $0x31] sm:$0xff]  ;;  %v3378_v12 = vld [vmem:[%s4479_s23 + $0xa9] sm:$0x3f]  ;;  %v1747_v14 = vpack.c.bf16 %v1540_v8, %v4522_v46  ;;  %v4216_v46 = vld [vmem:[#allocation3 + $0x98] sm:$0xff]  }
  0x5b   : > { %3667 = vmatprep.subr.bf16.mxu0 %v4198_v27  ;;  %4126 = vmatprep.subr.bf16.mxu1 %v4198_v27  ;;  %v424_v11 = vrot.slane %v4561_v7, 6  ;;  %v4568_v13 = vld [vmem:[%s4479_s23 + $0xb1] sm:$0xff]  ;;  %v494_v16 = vrot.slane %v3378_v12, 4  ;;  %v413_v20 = vsel %vm258_vm1, %v411_v36, %v412_v10  ;;  %419 = vst [vmem:[#allocation2 + $0x170] sm:$0x3] %v412_v10  ;;  %v832_v26 = vrot.slane %v4561_v7, 4 }
  0x5c   : > { %v1666_v15 = vld [vmem:[#allocation2 + $0x4d0] sm:$0xff]  ;;  %v506_v17 = vrot.slane %v4568_v13, 6  ;;  %v4212_v24 = vld [vmem:[#allocation3 + $0x110] sm:$0xff]   ;;  %v3336_v25 = vld [vmem:[%s4479_s23 + $0x28] sm:$0x3f] }
  0x5d   : > { %v1810_v19 = vpack.c.bf16 %v1666_v15, %v4527_v47  ;;  %429 = vst [vmem:[#allocation2 + $0x170] sm:$0xfc] %v424_v11  ;;  %v1539_v21 = vld [vmem:[#allocation2 + $0xd8] sm:$0xff]  ;;  %v495_v23 = vsel %vm258_vm1, %v493_v42, %v494_v16  ;;  %501 = vst [vmem:[#allocation2 + $0x560] sm:$0x3] %v494_v16  ;;  %v3353_v36 = vld [vmem:[%s4479_s23 + $0xb0] sm:$0xff] }
  0x5e   : > { %3668 = vmatpush3.bf16.msra.mxu0 %v4199_v29  ;;  %4134 = vmatpush3.bf16.msra.mxu1 %v4199_v29  ;;  %511 = vst [vmem:[#allocation2 + $0x560] sm:$0xfc] %v506_v17  ;;  %v1746_v27 = vpack.c.bf16 %v1539_v21, %v4549_v63  ;;  %v260_v29 = vrot.slane %v3336_v25, 4  ;;  %v3352_v31 = vld [vmem:[%s4479_s23 + $0xa8] sm:$0x3f]  ;;  %v4213_v37 = vld [vmem:[#allocation3 + $0x90] sm:$0xff]  }
  0x5f   : > { %3669 = vmatprep.subr.bf16.mxu0 %v4200_v30  ;;  %4127 = vmatprep.subr.bf16.mxu1 %v4200_v30  ;;  %v4587_v30 = vld [vmem:[%s4479_s23 + $0x30] sm:$0xff]  ;;  %v351_v35 = vrot.slane %v3352_v31, 4  ;;  %838 = vst [vmem:[#allocation2 + $0xf8] sm:$0xf0] %v832_v26  ;;  %v364_v39 = vrot.slane %v3353_v36, 6  ;;  %v4215_v42 = vld [vmem:[#allocation3 + $0x158] sm:$0xff]  }
  0x60   : > { %v1665_v28 = vld [vmem:[#allocation2 + $0x4c8] sm:$0xff]  ;;  %v261_v38 = vsel %vm258_vm1, %v259_v53, %v260_v29  ;;  %267 = vst [vmem:[#allocation2 + $0x168] sm:$0x3] %v260_v29  ;;  %v691_v44 = vrot.slane %v4587_v30, 4  ;;  %v4217_v50 = vld [vmem:[#allocation3 + $0x118] sm:$0xff]  }
  0x61   : > { %v1809_v33 = vpack.c.bf16 %v1665_v28, %v4554_v1  ;;  %358 = vst [vmem:[#allocation2 + $0x558] sm:$0x3] %v351_v35  ;;  %369 = vst [vmem:[#allocation2 + $0x558] sm:$0xfc] %v364_v39  ;;  %v3364_v52 = vld [vmem:[%s4479_s23 + $0x39] sm:$0x3f] }
  0x62   : > { %3670 = vmatpush3.bf16.msra.mxu0 %v4201_v34  ;;  %4135 = vmatpush3.bf16.msra.mxu1 %v4201_v34  ;;  %v274_v34 = vrot.slane %v4587_v30, 6  ;;  %697 = vst [vmem:[#allocation2 + $0xf0] sm:$0xf0] %v691_v44  ;;  %v4606_v53 = vld [vmem:[%s4479_s23 + $0x41] sm:$0xff]  ;;  %v3380_v54 = vld [vmem:[%s4479_s23 + $0xb9] sm:$0x3f] }
  0x63   : > { %3843 = vmatprep.subr.bf16.mxu0 %v4202_v40  ;;  %3749 = vmatprep.subr.bf16.mxu1 %v4204_v41  ;;  %v4214_v40 = vld [vmem:[#allocation3 + $0xd8] sm:$0xff]   ;;  %v352_v41 = vsel %vm258_vm1, %v350_v60, %v351_v35  ;;  %v425_v55 = vrot.slane %v3364_v52, 6  ;;  %v507_v56 = vrot.slane %v3380_v54, 6  ;;  %v4219_v13 = vld [vmem:[#allocation3 + $0xa0] sm:$0xff]   ;;  %v845_v15 = vrot.slane %v4606_v53, 6  ;;  %v4224_v54 = vld [vmem:[#allocation3 + $0x168] sm:$0xff]  }
  0x64   : > { %279 = vst [vmem:[#allocation2 + $0x168] sm:$0xfc] %v274_v34  ;;  %v1558_v45 = vld [vmem:[#allocation2 + $0x170] sm:$0xff]  ;;  %v4612_v59 = vld [vmem:[%s4479_s23 + $0x40] sm:$0xff]  ;;  %v4220_v16 = vld [vmem:[#allocation3 + $0x160] sm:$0xff]  }
  0x65   : > { %2470 = vmatmul.mubr.bf16.vlgmr.msra.gmra.mrb[0].mxu0 %v1737_v61  ;;  %2526 = vmatmul.mubr.bf16.vlgmr.msra.gmra.mrb[0].mxu1 %v1800_v62  ;;  %v1756_v47 = vpack.c.bf16 %v1558_v45, %v413_v20  ;;  %v1684_v48 = vld [vmem:[#allocation2 + $0x560] sm:$0xff]  ;;  %v3354_v61 = vld [vmem:[%s4479_s23 + $0xb8] sm:$0x3f]  ;;  %v508_v1 = vsel %vm273_vm2, %v506_v17, %v507_v56  ;;  %v4221_v17 = vld [vmem:[#allocation3 + $0x120] sm:$0xff]   ;;  %850 = vst [vmem:[#allocation2 + $0x188] sm:$0xfc] %v845_v15 }
  0x66   : > { %3844 = vmatpush3.bf16.msra.mxu0 %v4203_v57  ;;  %3750 = vmatpush3.bf16.msra.mxu1 %v4205_v58  ;;  %v1819_v51 = vpack.c.bf16 %v1684_v48, %v495_v23  ;;  %v3381_v57 = vld [vmem:[%s4479_s23 + $0xc1] sm:$0xff]  ;;  %v3338_v58 = vld [vmem:[%s4479_s23 + $0x38] sm:$0x3f]  ;;  %v3382_v23 = vld [vmem:[%s4479_s23 + $0xc9] sm:$0x3f] }
  0x67   : > { %3845 = vmatprep.subr.bf16.mxu0 %v4206_v0  ;;  %3751 = vmatprep.subr.bf16.mxu1 %v4208_v3  ;;  %v275_v60 = vrot.slane %v3338_v58, 6  ;;  %v4616_v62 = vld [vmem:[%s4479_s23 + $0xc0] sm:$0xff]  ;;  %v426_v0 = vsel %vm273_vm2, %v424_v11, %v425_v55  ;;  %v365_v3 = vrot.slane %v3354_v61, 6  ;;  %v1828_v10 = vpack.c.bf16 %v3381_v57, %v508_v1  ;;  %v3368_v20 = vld [vmem:[%s4479_s23 + $0x59] sm:$0x3f]  ;;  %v4222_v45 = vld [vmem:[#allocation3 + $0xe8] sm:$0xff]  }
  0x68   : > { %2477 = vmatprep.mubr.bf16.mxu0 %v1747_v14  ;;  %2533 = vmatprep.mubr.bf16.mxu1 %v1810_v19  ;;  %v1683_v8 = vld [vmem:[#allocation2 + $0x558] sm:$0xff]  ;;  %v440_v25 = vrot.slane %v3368_v20, 2  ;;  %516 = vst [vmem:[#allocation2 + $0x638] sm:$0x3f] %v3382_v23  ;;  %v3340_v29 = vld [vmem:[%s4479_s23 + $0x48] sm:$0x3f] }
  0x69   : > { %v276_v12 = vsel %vm273_vm2, %v274_v34, %v275_v60  ;;  %v1818_v14 = vpack.c.bf16 %v1683_v8, %v352_v41  ;;  %v366_v11 = vsel %vm273_vm2, %v364_v39, %v365_v3  ;;  %v4633_v19 = vld [vmem:[%s4479_s23 + $0x51] sm:$0xff]  ;;  %285 = vst [vmem:[#allocation2 + $0x240] sm:$0x3f] %v3340_v29  ;;  %v3356_v36 = vld [vmem:[%s4479_s23 + $0xc8] sm:$0x3f]  ;;  %v4663_v1 = vld [vmem:[%s4479_s23 + $0x60] sm:$0xff] }
  0x6a   : > { %3846 = vmatpush3.bf16.msra.mxu0 %v4207_v4  ;;  %3752 = vmatpush3.bf16.msra.mxu1 %v4209_v5  ;;  %v4218_v4 = vld [vmem:[#allocation3 + $0xe0] sm:$0xff]   ;;  %v704_v5 = vrot.slane %v4612_v59, 6  ;;  %v439_v21 = vrot.slane %v4633_v19, 2  ;;  %v1764_v31 = vpack.c.bf16 %v4612_v59, %v276_v12  ;;  %v4645_v34 = vld [vmem:[%s4479_s23 + $0x50] sm:$0xff]  ;;  %v3342_v35 = vld [vmem:[%s4479_s23 + $0x58] sm:$0x3f] }
  0x6b   : > { %3847 = vmatprep.subr.bf16.mxu0 %v4210_v9  ;;  %3753 = vmatprep.subr.bf16.mxu1 %v4211_v18  ;;  %v1557_v63 = vld [vmem:[#allocation2 + $0x168] sm:$0xff]  ;;  %v1765_v9 = vpack.c.bf16 %v4606_v53, %v426_v0  ;;  %447 = vst [vmem:[#allocation2 + $0x2d8] sm:$0xf] %v440_v25  ;;  %v291_v39 = vrot.slane %v4645_v34, 2  ;;  %375 = vst [vmem:[#allocation2 + $0x630] sm:$0x3f] %v3356_v36 }
  0x6c   : > { %v1755_v6 = vpack.c.bf16 %v1557_v63, %v261_v38  ;;  %709 = vst [vmem:[#allocation2 + $0x180] sm:$0xfc] %v704_v5  ;;  %v3366_v18 = vld [vmem:[%s4479_s23 + $0x49] sm:$0x3f]  ;;  %445 = vst [vmem:[#allocation2 + $0x248] sm:$0xc0] %v439_v21  ;;  %v441_v38 = vsel %vm243_vm0, %v439_v21, %v440_v25 }
  0x6d   : > { %2478 = vmatmul.mubr.bf16.gmra.mrb[4].mxu0 %v1746_v27  ;;  %2534 = vmatmul.mubr.bf16.gmra.mrb[4].mxu1 %v1809_v33  ;;  %434 = vst [vmem:[#allocation2 + $0x248] sm:$0x3f] %v3366_v18  ;;  %v3384_v27 = vld [vmem:[%s4479_s23 + $0xd9] sm:$0x3f]  ;;  %v3357_v41 = vld [vmem:[%s4479_s23 + $0xd0] sm:$0xff]  ;;  %v4658_v56 = vld [vmem:[%s4479_s23 + $0x61] sm:$0xff] }
  0x6e   : > { %3848 = vmatpush3.bf16.msra.mxu0 %v4212_v24  ;;  %3754 = vmatpush3.bf16.msra.mxu1 %v4213_v37  ;;  %v3383_v24 = vld [vmem:[%s4479_s23 + $0xd1] sm:$0xff]  ;;  %v522_v33 = vrot.slane %v3384_v27, 2  ;;  %v1827_v37 = vpack.c.bf16 %v4616_v62, %v366_v11  ;;  %297 = vst [vmem:[#allocation2 + $0x240] sm:$0xc0] %v291_v39  ;;  %v3370_v57 = vld [vmem:[%s4479_s23 + $0x69] sm:$0x3f] }
  0x6f   : > { %3755 = vmatprep.subr.bf16.mxu1 %v4214_v40  ;;  %3849 = vmatprep.subr.bf16.mxu0 %v4215_v42  ;;  %v521_v28 = vrot.slane %v3383_v24, 2  ;;  %v292_v40 = vrot.slane %v3342_v35, 2  ;;  %v3358_v42 = vld [vmem:[%s4479_s23 + $0xd8] sm:$0x3f]  ;;  %v4225_v55 = vld [vmem:[#allocation3 + $0x128] sm:$0xff]   ;;  %v452_v60 = vrot.slane %v4658_v56, 4 }
  0x70   : > { %2485 = vmatprep.mubr.bf16.mxu0 %v1756_v47  ;;  %2541 = vmatprep.mubr.bf16.mxu1 %v1819_v51  ;;  %529 = vst [vmem:[#allocation2 + $0x6c8] sm:$0xf] %v522_v33  ;;  %v381_v47 = vrot.slane %v3357_v41, 2  ;;  %v382_v48 = vrot.slane %v3358_v42, 2  ;;  %v4223_v51 = vld [vmem:[#allocation3 + $0xa8] sm:$0xff]   ;;  %v453_v61 = vrot.slane %v3370_v57, 4 }
  0x71   : > { %527 = vst [vmem:[#allocation2 + $0x638] sm:$0xc0] %v521_v28  ;;  %299 = vst [vmem:[#allocation2 + $0x2d0] sm:$0xf] %v292_v40  ;;  %v4226_v62 = vld [vmem:[#allocation3 + $0xf0] sm:$0xff]   ;;  %v4230_v27 = vld [vmem:[#allocation3 + $0xf8] sm:$0xff]  }
  0x72   : > { %3756 = vmatpush3.bf16.msra.mxu1 %v4216_v46  ;;  %3850 = vmatpush3.bf16.msra.mxu0 %v4217_v50  ;;  %v523_v46 = vsel %vm243_vm0, %v521_v28, %v522_v33  ;;  %v293_v50 = vsel %vm243_vm0, %v291_v39, %v292_v40  ;;  %v383_v52 = vsel %vm243_vm0, %v381_v47, %v382_v48  ;;  %v3344_v3 = vld [vmem:[%s4479_s23 + $0x68] sm:$0x3f]  ;;  %v4227_v11 = vld [vmem:[#allocation3 + $0xb0] sm:$0xff]   ;;  %v4231_v28 = vld [vmem:[#allocation3 + $0xb8] sm:$0xff]  }
  0x73   : > { %3757 = vmatprep.subr.bf16.mxu1 %v4218_v4  ;;  %3851 = vmatprep.subr.bf16.mxu0 %v4220_v16  ;;  %387 = vst [vmem:[#allocation2 + $0x630] sm:$0xc0] %v381_v47  ;;  %389 = vst [vmem:[#allocation2 + $0x6c0] sm:$0xf] %v382_v48  ;;  %v860_v4 = vrot.slane %v4658_v56, 2  ;;  %v454_v8 = vsel %vm258_vm1, %v452_v60, %v453_v61  ;;  %v306_v12 = vrot.slane %v3344_v3, 4 }
  0x74   : > { %v1585_v58 = vld [vmem:[#allocation2 + $0x248] sm:$0xff]  ;;  %458 = vst [vmem:[#allocation2 + $0x2d8] sm:$0xf0] %v452_v60  ;;  %460 = vst [vmem:[#allocation2 + $0x368] sm:$0x3] %v453_v61  ;;  %v4228_v23 = vld [vmem:[#allocation3 + $0x170] sm:$0xff]  }
  0x75   : > { %2486 = vmatmul.mubr.bf16.gmra.mrb[8].mxu0 %v1755_v6  ;;  %2542 = vmatmul.mubr.bf16.gmra.mrb[8].mxu1 %v1818_v14  ;;  %v1774_v63 = vpack.c.bf16 %v441_v38, %v1585_v58  ;;  %v1584_v14 = vld [vmem:[#allocation2 + $0x240] sm:$0xff]  ;;  %866 = vst [vmem:[#allocation2 + $0x260] sm:$0xc0] %v860_v4  ;;  %313 = vst [vmem:[#allocation2 + $0x360] sm:$0x3] %v306_v12  ;;  %v4229_v25 = vld [vmem:[#allocation3 + $0x130] sm:$0xff]  }
  0x76   : > { %2493 = vmatprep.mubr.bf16.mxu0 %v1765_v9  ;;  %2549 = vmatprep.mubr.bf16.mxu1 %v1828_v10  ;;  %v305_v10 = vrot.slane %v4663_v1, 4  ;;  %v1773_v16 = vpack.c.bf16 %v293_v50, %v1584_v14  ;;  %v4676_v29 = vld [vmem:[%s4479_s23 + $0x71] sm:$0xff]  ;;  %v3372_v33 = vld [vmem:[%s4479_s23 + $0x79] sm:$0x3f]  ;;  %v4686_v41 = vld [vmem:[%s4479_s23 + $0x2] sm:$0xff] }
  0x77   : > { %3758 = vmatpush3.bf16.msra.mxu1 %v4219_v13  ;;  %3852 = vmatpush3.bf16.msra.mxu0 %v4221_v17  ;;  %v1729_v9 = vld [vmem:[#allocation2 + $0x6c8] sm:$0xf]  ;;  %v719_v13 = vrot.slane %v4663_v1, 2  ;;  %v465_v35 = vrot.slane %v4676_v29, 6  ;;  %v3412_v36 = vld [vmem:[%s4479_s23 + $0x18] sm:$0x3f] }
  0x78   : > { %3759 = vmatprep.subr.bf16.mxu1 %v4222_v45  ;;  %3853 = vmatprep.subr.bf16.mxu0 %v4224_v54  ;;  %v1711_v0 = vld [vmem:[#allocation2 + $0x638] sm:$0xff]  ;;  %v1846_v18 = vpack.c.bf16 %v1729_v9, %v1729_v9  ;;  %v307_v20 = vsel %vm258_vm1, %v305_v10, %v306_v12  ;;  %311 = vst [vmem:[#allocation2 + $0x2d0] sm:$0xf0] %v305_v10  ;;  %v466_v38 = vrot.slane %v3372_v33, 6  ;;  %673 = vst [vmem:[#allocation2 + $0x60] sm:$0x3f] %v3412_v36 }
  0x79   : > { %v1837_v6 = vpack.c.bf16 %v523_v46, %v1711_v0  ;;  %725 = vst [vmem:[#allocation2 + $0x258] sm:$0xc0] %v719_v13  ;;  %v4682_v39 = vld [vmem:[%s4479_s23 + $0x70] sm:$0xff]  ;;  %v3346_v40 = vld [vmem:[%s4479_s23 + $0x78] sm:$0x3f]  ;;  %v873_v42 = vrot.slane %v4676_v29, 4 }
  0x7a   : > { %v1710_v17 = vld [vmem:[#allocation2 + $0x630] sm:$0xff]  ;;  %v1728_v24 = vld [vmem:[#allocation2 + $0x6c0] sm:$0xf]  ;;  %470 = vst [vmem:[#allocation2 + $0x368] sm:$0xfc] %v465_v35  ;;  %v319_v47 = vrot.slane %v4682_v39, 6  ;;  %v467_v54 = vsel %vm273_vm2, %v465_v35, %v466_v38 }
  0x7b   : > { %3760 = vmatpush3.bf16.msra.mxu1 %v4223_v51  ;;  %3854 = vmatpush3.bf16.msra.mxu0 %v4225_v55  ;;  %v1836_v21 = vpack.c.bf16 %v383_v52, %v1710_v17  ;;  %v1845_v46 = vpack.c.bf16 %v1728_v24, %v1728_v24  ;;  %v320_v48 = vrot.slane %v3346_v40, 6  ;;  %v531_v50 = vld [vmem:[%s4479_s23 + $0xa] sm:$0x3f]  ;;  %v4692_v51 = vld [vmem:[%s4479_s23 + $0x12] sm:$0xff]  ;;  %v4232_v57 = vld [vmem:[#allocation3 + $0x178] sm:$0xff]   ;;  %v732_v61 = vrot.slane %v4682_v39, 4 }
  0x7c   : > { %3761 = vmatprep.subr.bf16.mxu1 %v4226_v62  ;;  %3855 = vmatprep.subr.bf16.mxu0 %v4228_v23  ;;  %533 = vst [vmem:[#allocation2 + $0x58] sm:$0x3f] %v531_v50  ;;  %v538_v55 = vrot.slane %v4692_v51, 2  ;;  %879 = vst [vmem:[#allocation2 + $0x2f0] sm:$0xf0] %v873_v42  ;;  %v4233_v60 = vld [vmem:[#allocation3 + $0x138] sm:$0xff]  }
  0x7d   : > { %2494 = vmatmul.mubr.bf16.gmra.mrb[12].mxu0 %v1764_v31  ;;  %2550 = vmatmul.mubr.bf16.gmra.mrb[12].mxu1 %v1827_v37  ;;  %v1603_v31 = vld [vmem:[#allocation2 + $0x2d8] sm:$0xff]  ;;  %v321_v58 = vsel %vm273_vm2, %v319_v47, %v320_v48  ;;  %324 = vst [vmem:[#allocation2 + $0x360] sm:$0xfc] %v319_v47  ;;  %v4234_v62 = vld [vmem:[#allocation3 + $0x1c0] sm:$0xff]   ;;  %738 = vst [vmem:[#allocation2 + $0x2e8] sm:$0xf0] %v732_v61 }
  0x7e   : > { %2501 = vmatprep.mubr.bf16.mxu0 %v1774_v63  ;;  %2557 = vmatprep.mubr.bf16.mxu1 %v1837_v6  ;;  %v1783_v37 = vpack.c.bf16 %v454_v8, %v1603_v31  ;;  %544 = vst [vmem:[#allocation2 + $0x58] sm:$0xc0] %v538_v55  ;;  %v3414_v63 = vld [vmem:[%s4479_s23 + $0x28] sm:$0x3f]  ;;  %v3468_v0 = vld [vmem:[%s4479_s23 + $0x1a] sm:$0x3f] }
  0x7f   : > { %3762 = vmatpush3.bf16.msra.mxu1 %v4227_v11  ;;  %3856 = vmatpush3.bf16.msra.mxu0 %v4229_v25  ;;  %v1602_v45 = vld [vmem:[#allocation2 + $0x2d0] sm:$0xff]  ;;  %v3469_v3 = vld [vmem:[%s4479_s23 + $0x22] sm:$0xff]  ;;  %v4352_v6 = vmov 0.0   ;;  %v679_v9 = vrot.slane %v3414_v63, 2  ;;  %954 = vst [vmem:[#allocation2 + $0x70] sm:$0x3f] %v3468_v0 }
  0x80   : > { %3763 = vmatprep.subr.bf16.mxu1 %v4230_v27  ;;  %v1782_v52 = vpack.c.bf16 %v307_v20, %v1602_v45  ;;  %3857 = vmatprep.subr.bf16.mxu0 %v4232_v57  ;;  %v1524_v8 = vld [vmem:[#allocation2 + $0x60] sm:$0xff]  ;;  %v959_v10 = vrot.slane %v3469_v3, 2  ;;  %v3386_v12 = vld [vmem:[%s4479_s23 + $0x1a] sm:$0x3f]  ;;  %v551_v14 = vrot.slane %v3469_v3, 4  ;;  %v4718_v31 = vld [vmem:[%s4479_s23 + $0x32] sm:$0xff] }
  0x81   : > { %v1621_v11 = vld [vmem:[#allocation2 + $0x368] sm:$0xff]  ;;  %v539_v17 = vrot.slane %v3386_v12, 2  ;;  %v680_v23 = vsel %vm243_vm0, %v678_v2, %v679_v9  ;;  %686 = vst [vmem:[#allocation2 + $0xf0] sm:$0xf] %v679_v9  ;;  %v3416_v24 = vld [vmem:[%s4479_s23 + $0x38] sm:$0x3f] }
  0x82   : > { %v1792_v20 = vpack.c.bf16 %v467_v54, %v1621_v11  ;;  %965 = vst [vmem:[#allocation2 + $0x70] sm:$0xc0] %v959_v10  ;;  %557 = vst [vmem:[#allocation2 + $0xe8] sm:$0xf0] %v551_v14  ;;  %v692_v27 = vrot.slane %v3416_v24, 4  ;;  %v972_v35 = vrot.slane %v4718_v31, 4 }
  0x83   : > { %3764 = vmatpush3.bf16.msra.mxu1 %v4231_v28  ;;  %3858 = vmatpush3.bf16.msra.mxu0 %v4233_v60  ;;  %546 = vst [vmem:[#allocation2 + $0xe8] sm:$0xf] %v539_v17  ;;  %v3470_v28 = vld [vmem:[%s4479_s23 + $0x2a] sm:$0x3f]  ;;  %v4237_v47 = vld [vmem:[#allocation3 + $0x1c8] sm:$0xff]   ;;  %v4745_v9 = vld [vmem:[%s4479_s23 + $0x42] sm:$0xff] }
  0x84   : > { %3937 = vmatprep.subr.bf16.mxu1 %v4234_v62  ;;  %4052 = vmatprep.subr.bf16.mxu0 %v4352_v6  ;;  %v1620_v25 = vld [vmem:[#allocation2 + $0x360] sm:$0xff]  ;;  %v960_v33 = vrot.slane %v3470_v28, 2  ;;  %v3388_v36 = vld [vmem:[%s4479_s23 + $0x2a] sm:$0x3f]  ;;  %v4727_v40 = vsel %vm258_vm1, %v691_v44, %v692_v27  ;;  %699 = vst [vmem:[#allocation2 + $0x180] sm:$0x3] %v692_v27 }
  0x85   : > { %2502 = vmatmul.mubr.bf16.gmra.mrb[16].mxu0 %v1773_v16  ;;  %2558 = vmatmul.mubr.bf16.gmra.mrb[16].mxu1 %v1836_v21  ;;  %v1740_v16 = vpack.c.bf16 %v1524_v8, %v4496_v22  ;;  %v4235_v21 = vld [vmem:[#allocation3 + $0x180] sm:$0xff]   ;;  %v4714_v22 = vsel %vm243_vm0, %v538_v55, %v539_v17  ;;  %v1791_v49 = vpack.c.bf16 %v321_v58, %v1620_v25  ;;  %v1523_v2 = vld [vmem:[#allocation2 + $0x58] sm:$0xff]  ;;  %v552_v45 = vrot.slane %v3388_v36, 4  ;;  %v4239_v24 = vld [vmem:[#allocation3 + $0x208] sm:$0xff]  }
  0x86   : > { %2565 = vmatprep.mubr.bf16.mxu1 %v1846_v18  ;;  %2509 = vmatprep.mubr.bf16.mxu0 %v1783_v37  ;;  %v3440_v18 = vld [vmem:[%s4479_s23 + $0x19] sm:$0x3f]  ;;  %v564_v37 = vrot.slane %v4718_v31, 6  ;;  %v1739_v38 = vpack.c.bf16 %v1523_v2, %v4686_v41  ;;  %v4731_v48 = vsel %vm243_vm0, %v959_v10, %v960_v33  ;;  %967 = vst [vmem:[#allocation2 + $0x100] sm:$0xf] %v960_v33  ;;  %v4238_v41 = vld [vmem:[#allocation3 + $0x188] sm:$0xff]  }
  0x87   : > { %814 = vst [vmem:[#allocation2 + $0x68] sm:$0x3f] %v3440_v18  ;;  %978 = vst [vmem:[#allocation2 + $0x100] sm:$0xf0] %v972_v35  ;;  %v4734_v30 = vsel %vm258_vm1, %v551_v14, %v552_v45  ;;  %v3472_v54 = vld [vmem:[%s4479_s23 + $0x3a] sm:$0x3f] }
  0x88   : > { %569 = vst [vmem:[#allocation2 + $0x178] sm:$0xfc] %v564_v37  ;;  %559 = vst [vmem:[#allocation2 + $0x178] sm:$0x3] %v552_v45  ;;  %v1542_v55 = vld [vmem:[#allocation2 + $0xf0] sm:$0xff]  ;;  %v4236_v60 = vld [vmem:[#allocation3 + $0x200] sm:$0xff]  }
  0x89   : > { %v1526_v57 = vld [vmem:[#allocation2 + $0x70] sm:$0xff]  ;;  %v973_v63 = vrot.slane %v3472_v54, 4  ;;  %v1749_v0 = vpack.c.bf16 %v1542_v55, %v680_v23  ;;  %v3390_v10 = vld [vmem:[%s4479_s23 + $0x3a] sm:$0x3f]  ;;  %v3477_v1 = vld [vmem:[%s4479_s23 + $0x62] sm:$0xff] }
  0x8a   : > { %v1742_v32 = vpack.c.bf16 %v1526_v57, %v4692_v51  ;;  %v1541_v3 = vld [vmem:[#allocation2 + $0xe8] sm:$0xff]  ;;  %v3444_v51 = vld [vmem:[%s4479_s23 + $0x39] sm:$0x3f] }
  0x8b   : > { %v1748_v12 = vpack.c.bf16 %v1541_v3, %v4714_v22  ;;  %v4755_v11 = vsel %vm258_vm1, %v972_v35, %v973_v63  ;;  %980 = vst [vmem:[#allocation2 + $0x190] sm:$0x3] %v973_v63  ;;  %v4240_v17 = vld [vmem:[#allocation3 + $0x1d0] sm:$0xff]   ;;  %v1560_v18 = vld [vmem:[#allocation2 + $0x180] sm:$0xff]  ;;  %v3474_v35 = vld [vmem:[%s4479_s23 + $0x4a] sm:$0x3f] }
  0x8c   : > { %v4241_v23 = vld [vmem:[#allocation3 + $0x190] sm:$0xff]   ;;  %v1758_v59 = vpack.c.bf16 %v1560_v18, %v4727_v40  ;;  %v986_v7 = vrot.slane %v3474_v35, 6  ;;  %v4243_v3 = vld [vmem:[#allocation3 + $0x1d8] sm:$0xff]   ;;  %v3400_v29 = vld [vmem:[%s4479_s23 + $0x8a] sm:$0x3f] }
  0x8d   : > { %2510 = vmatmul.mubr.bf16.gmra.mrb[20].mxu0 %v1782_v52  ;;  %2566 = vmatmul.mubr.bf16.gmra.mrb[20].mxu1 %v1845_v46  ;;  %v3442_v46 = vld [vmem:[%s4479_s23 + $0x29] sm:$0x3f]  ;;  %v3420_v31 = vld [vmem:[%s4479_s23 + $0x58] sm:$0x3f]  ;;  %615 = vst [vmem:[#allocation2 + $0x448] sm:$0x3f] %v3400_v29 }
  0x8e   : > { %2605 = vmatprep.mubr.bf16.mxu1 %v1740_v16  ;;  %2517 = vmatprep.mubr.bf16.mxu0 %v1792_v20  ;;  %v820_v50 = vrot.slane %v3442_v46, 2  ;;  %v3418_v52 = vld [vmem:[%s4479_s23 + $0x48] sm:$0x3f]  ;;  %v985_v16 = vrot.slane %v4745_v9, 6  ;;  %v565_v20 = vrot.slane %v3390_v10, 6  ;;  %v4775_v36 = vld [vmem:[%s4479_s23 + $0x52] sm:$0xff] }
  0x8f   : > { %v1525_v58 = vld [vmem:[#allocation2 + $0x68] sm:$0xff]  ;;  %v705_v62 = vrot.slane %v3418_v52, 6  ;;  %v4761_v22 = vld [vmem:[#allocation2 + $0x178] sm:$0xff]  ;;  %714 = vst [vmem:[#allocation2 + $0x258] sm:$0x3f] %v3420_v31 }
  0x90   : > { %v4739_v44 = vsel %vm243_vm0, %v819_v43, %v820_v50  ;;  %827 = vst [vmem:[#allocation2 + $0xf8] sm:$0xf] %v820_v50  ;;  %v4258_v43 = vld [vmem:[#allocation2 + $0x20] sm:$0xff]  ;;  %990 = vst [vmem:[#allocation2 + $0x190] sm:$0xfc] %v985_v16  ;;  %v4764_v27 = vsel %vm273_vm2, %v564_v37, %v565_v20 }
  0x91   : > { %v1741_v8 = vpack.c.bf16 %v1525_v58, %v4258_v43  ;;  %v4752_v14 = vsel %vm273_vm2, %v704_v5, %v705_v62  ;;  %v1544_v5 = vld [vmem:[#allocation2 + $0x100] sm:$0xff]  ;;  %v3394_v37 = vld [vmem:[%s4479_s23 + $0x5a] sm:$0x3f]  ;;  %v3446_v46 = vld [vmem:[%s4479_s23 + $0x49] sm:$0x3f]  ;;  %v1000_v58 = vrot.slane %v3477_v1, 2 }
  0x92   : > { %v1751_v25 = vpack.c.bf16 %v1544_v5, %v4731_v48  ;;  %v580_v45 = vrot.slane %v3394_v37, 2  ;;  %v4789_v48 = vsel %vm273_vm2, %v985_v16, %v986_v7  ;;  %v846_v50 = vrot.slane %v3446_v46, 6  ;;  %v3424_v52 = vld [vmem:[%s4479_s23 + $0x78] sm:$0x3f]  ;;  %v3425_v16 = vld [vmem:[%s4479_s23 + $0x80] sm:$0xff] }
  0x93   : > { %v733_v55 = vrot.slane %v3424_v52, 4  ;;  %v3476_v57 = vld [vmem:[%s4479_s23 + $0x5a] sm:$0x3f]  ;;  %1006 = vst [vmem:[#allocation2 + $0x268] sm:$0xc0] %v1000_v58  ;;  %v745_v18 = vrot.slane %v3425_v16, 6  ;;  %v1769_v31 = vpack.c.bf16 %v4775_v36, %v4789_v48 }
  0x94   : > { %587 = vst [vmem:[#allocation2 + $0x2e0] sm:$0xf] %v580_v45  ;;  %v4805_v63 = vsel %vm273_vm2, %v845_v15, %v846_v50  ;;  %995 = vst [vmem:[#allocation2 + $0x268] sm:$0x3f] %v3476_v57  ;;  %v3450_v15 = vld [vmem:[%s4479_s23 + $0x69] sm:$0x3f] }
  0x95   : > { %2518 = vmatmul.mubr.bf16.gmra.mrb[24].mxu0 %v1791_v49  ;;  %2606 = vmatmul.mubr.bf16.vlgmr.msra.gmra.mrb[24].mxu1 %v1739_v38  ;;  %v3422_v49 = vld [vmem:[%s4479_s23 + $0x68] sm:$0x3f]  ;;  %v579_v38 = vrot.slane %v4775_v36, 2  ;;  %740 = vst [vmem:[#allocation2 + $0x378] sm:$0x3] %v733_v55 }
  0x96   : > { %3938 = vmatpush3.bf16.msra.mxu1 %v4235_v21  ;;  %2613 = vmatprep.mubr.bf16.mxu1 %v1749_v0  ;;  %v833_v21 = vrot.slane %v3444_v51, 4  ;;  %v720_v33 = vrot.slane %v3422_v49, 2  ;;  %v3396_v0 = vld [vmem:[%s4479_s23 + $0x6a] sm:$0x3f]  ;;  %750 = vst [vmem:[#allocation2 + $0x378] sm:$0xfc] %v745_v18 }
  0x97   : > { %3939 = vmatprep.subr.bf16.mxu1 %v4237_v47  ;;  %2741 = vmatprep.mubr.bf16.mxu0 %v1742_v32  ;;  %v1543_v2 = vld [vmem:[#allocation2 + $0xf8] sm:$0xff]  ;;  %585 = vst [vmem:[#allocation2 + $0x250] sm:$0xc0] %v579_v38  ;;  %v4796_v54 = vsel %vm243_vm0, %v579_v38, %v580_v45  ;;  %v1562_v62 = vld [vmem:[#allocation2 + $0x190] sm:$0xff]  ;;  %v592_v32 = vrot.slane %v3477_v1, 4  ;;  %v593_v53 = vrot.slane %v3396_v0, 4 }
  0x98   : > { %v4769_v28 = vsel %vm258_vm1, %v832_v26, %v833_v21  ;;  %840 = vst [vmem:[#allocation2 + $0x188] sm:$0x3] %v833_v21  ;;  %v3392_v26 = vld [vmem:[%s4479_s23 + $0x4a] sm:$0x3f]  ;;  %v4784_v40 = vsel %vm243_vm0, %v719_v13, %v720_v33  ;;  %727 = vst [vmem:[#allocation2 + $0x2e8] sm:$0xf] %v720_v33  ;;  %v1750_v47 = vpack.c.bf16 %v1543_v2, %v4739_v44 }
  0x99   : > { %574 = vst [vmem:[#allocation2 + $0x250] sm:$0x3f] %v3392_v26  ;;  %v1757_v13 = vpack.c.bf16 %v4761_v22, %v4734_v30  ;;  %v3478_v44 = vld [vmem:[%s4479_s23 + $0x6a] sm:$0x3f]  ;;  %v1760_v43 = vpack.c.bf16 %v1562_v62, %v4755_v11  ;;  %598 = vst [vmem:[#allocation2 + $0x2e0] sm:$0xf0] %v592_v32  ;;  %v4821_v39 = vsel %vm258_vm1, %v592_v32, %v593_v53 }
  0x9a   : > { %3940 = vmatpush3.bf16.msra.mxu1 %v4238_v41  ;;  %v4242_v41 = vld [vmem:[#allocation3 + $0x210] sm:$0xff]   ;;  %v1001_v30 = vrot.slane %v3478_v44, 2  ;;  %600 = vst [vmem:[#allocation2 + $0x370] sm:$0x3] %v593_v53  ;;  %v3426_v51 = vld [vmem:[%s4479_s23 + $0x88] sm:$0x3f]  ;;  %v1766_v22 = vpack.c.bf16 %v4745_v9, %v4764_v27 }
  0x9b   : > { %3941 = vmatprep.subr.bf16.mxu1 %v4240_v17  ;;  %v1587_v17 = vld [vmem:[#allocation2 + $0x258] sm:$0xff]  ;;  %v746_v20 = vrot.slane %v3426_v51, 6  ;;  %v3429_v26 = vld [vmem:[%s4479_s23 + $0xa0] sm:$0xff]  ;;  %v3482_v46 = vld [vmem:[%s4479_s23 + $0x8a] sm:$0x3f] }
  0x9c   : > { %1008 = vst [vmem:[#allocation2 + $0x2f8] sm:$0xf] %v1001_v30  ;;  %v3479_v21 = vld [vmem:[%s4479_s23 + $0x72] sm:$0xff]  ;;  %v1776_v35 = vpack.c.bf16 %v4784_v40, %v1587_v17  ;;  %v760_v40 = vrot.slane %v3429_v26, 2  ;;  %v4862_v45 = vld [vmem:[%s4479_s23 + $0x82] sm:$0xff] }
  0x9d   : > { %2742 = vmatmul.mubr.bf16.vlgmr.msra.gmra.mrb[28].mxu0 %v1741_v8  ;;  %2614 = vmatmul.mubr.bf16.gmra.mrb[28].mxu1 %v1748_v12  ;;  %v4813_v8 = vsel %vm258_vm1, %v732_v61, %v733_v55  ;;  %v4818_v12 = vsel %vm243_vm0, %v1000_v58, %v1001_v30  ;;  %v4244_v61 = vld [vmem:[#allocation3 + $0x198] sm:$0xff]   ;;  %v1013_v5 = vrot.slane %v3479_v21, 4  ;;  %v4840_v49 = vsel %vm273_vm2, %v745_v18, %v746_v20  ;;  %v3452_v33 = vld [vmem:[%s4479_s23 + $0x79] sm:$0x3f]  ;;  %v1589_v48 = vld [vmem:[#allocation2 + $0x268] sm:$0xff] }
  0x9e   : > { %4053 = vmatpush3.bf16.msra.mxu0 %v4236_v60  ;;  %2621 = vmatprep.mubr.bf16.mxu1 %v1758_v59  ;;  %v1767_v60 = vpack.c.bf16 %v4645_v34, %v4752_v14  ;;  %v3448_v34 = vld [vmem:[%s4479_s23 + $0x59] sm:$0x3f]  ;;  %v861_v14 = vrot.slane %v3450_v15, 2  ;;  %v874_v9 = vrot.slane %v3452_v33, 4  ;;  %v1026_v50 = vrot.slane %v4862_v45, 6  ;;  %v4246_v52 = vld [vmem:[#allocation3 + $0x1e0] sm:$0xff]  }
  0x9f   : > { %2749 = vmatprep.mubr.bf16.mxu0 %v1751_v25  ;;  %4054 = vmatprep.subr.bf16.mxu0 %v4352_v6  ;;  %v1561_v10 = vld [vmem:[#allocation2 + $0x188] sm:$0xff]  ;;  %855 = vst [vmem:[#allocation2 + $0x260] sm:$0x3f] %v3448_v34  ;;  %v4245_v25 = vld [vmem:[#allocation3 + $0x218] sm:$0xff]   ;;  %1019 = vst [vmem:[#allocation2 + $0x2f8] sm:$0xf0] %v1013_v5  ;;  %v1768_v58 = vpack.c.bf16 %v4633_v19, %v4805_v63  ;;  %v1778_v32 = vpack.c.bf16 %v4818_v12, %v1589_v48 }
  0xa0   : > { %3942 = vmatpush3.bf16.msra.mxu1 %v4241_v23  ;;  %v4826_v11 = vsel %vm243_vm0, %v860_v4, %v861_v14  ;;  %868 = vst [vmem:[#allocation2 + $0x2f0] sm:$0xf] %v861_v14  ;;  %v3480_v23 = vld [vmem:[%s4479_s23 + $0x7a] sm:$0x3f]  ;;  %v1759_v59 = vpack.c.bf16 %v1561_v10, %v4769_v28  ;;  %v605_v4 = vrot.slane %v3479_v21, 6  ;;  %v4844_v28 = vld [vmem:[%s4479_s23 + $0x90] sm:$0xff]  ;;  %v4859_v38 = vsel %vm258_vm1, %v873_v42, %v874_v9 }
  0xa1   : > { %3943 = vmatprep.subr.bf16.mxu1 %v4243_v3  ;;  %v1014_v56 = vrot.slane %v3480_v23, 4  ;;  %v3428_v27 = vld [vmem:[%s4479_s23 + $0x98] sm:$0x3f]  ;;  %v1586_v37 = vld [vmem:[#allocation2 + $0x250] sm:$0xff]  ;;  %881 = vst [vmem:[#allocation2 + $0x380] sm:$0x3] %v874_v9 }
  0xa2   : > { %4055 = vmatpush3.bf16.msra.mxu0 %v4239_v24  ;;  %v3398_v24 = vld [vmem:[%s4479_s23 + $0x7a] sm:$0x3f]  ;;  %610 = vst [vmem:[#allocation2 + $0x370] sm:$0xfc] %v605_v4  ;;  %755 = vst [vmem:[#allocation2 + $0x450] sm:$0x3f] %v3428_v27  ;;  %v1775_v0 = vpack.c.bf16 %v4796_v54, %v1586_v37 }
  0xa3   : > { %4056 = vmatprep.subr.bf16.mxu0 %v4352_v6  ;;  %v606_v2 = vrot.slane %v3398_v24, 6  ;;  %v4848_v7 = vsel %vm258_vm1, %v1013_v5, %v1014_v56  ;;  %1021 = vst [vmem:[#allocation2 + $0x388] sm:$0x3] %v1014_v56  ;;  %766 = vst [vmem:[#allocation2 + $0x450] sm:$0xc0] %v760_v40  ;;  %v4868_v42 = vld [vmem:[%s4479_s23 + $0x92] sm:$0xff] }
  0xa4   : > { %3944 = vmatpush3.bf16.msra.mxu1 %v4244_v61  ;;  %v4871_v1 = vld [vmem:[%s4479_s23 + $0x81] sm:$0xff]  ;;  %1031 = vst [vmem:[#allocation2 + $0x388] sm:$0xfc] %v1026_v50  ;;  %v620_v55 = vrot.slane %v4868_v42, 2  ;;  %v3454_v57 = vld [vmem:[%s4479_s23 + $0x89] sm:$0x3f] }
  0xa5   : > { %2750 = vmatmul.mubr.bf16.gmra.mrb[32].mxu0 %v1750_v47  ;;  %2622 = vmatmul.mubr.bf16.gmra.mrb[32].mxu1 %v1757_v13  ;;  %v4852_v36 = vsel %vm273_vm2, %v605_v4, %v606_v2  ;;  %v1605_v47 = vld [vmem:[#allocation2 + $0x2e8] sm:$0xff]  ;;  %v886_v44 = vrot.slane %v4871_v1, 6  ;;  %v1294_v30 = vrot.slane %v4871_v1, 4  ;;  %v3431_v54 = vld [vmem:[%s4479_s23 + $0xb0] sm:$0xff]  ;;  %v3484_v15 = vld [vmem:[%s4479_s23 + $0x9a] sm:$0x3f] }
  0xa6   : > { %2757 = vmatprep.mubr.bf16.mxu0 %v1760_v43  ;;  %2629 = vmatprep.mubr.bf16.mxu1 %v1767_v60  ;;  %v887_v60 = vrot.slane %v3454_v57, 6  ;;  %v4247_v62 = vld [vmem:[#allocation3 + $0x1a0] sm:$0xff]   ;;  %626 = vst [vmem:[#allocation2 + $0x448] sm:$0xc0] %v620_v55  ;;  %v1785_v3 = vpack.c.bf16 %v4813_v8, %v1605_v47  ;;  %v1588_v53 = vld [vmem:[#allocation2 + $0x260] sm:$0xff]  ;;  %v773_v12 = vrot.slane %v3431_v54, 4 }
  0xa7   : > { %4057 = vmatpush3.bf16.msra.mxu0 %v4242_v41  ;;  %v1027_v41 = vrot.slane %v3482_v46, 6  ;;  %3945 = vmatprep.subr.bf16.mxu1 %v4246_v52  ;;  %891 = vst [vmem:[#allocation2 + $0x380] sm:$0xfc] %v886_v44  ;;  %v4248_v19 = vld [vmem:[#allocation3 + $0x220] sm:$0xff]   ;;  %1300 = vst [vmem:[#allocation2 + $0x308] sm:$0xf0] %v1294_v30 }
  0xa8   : > { %4058 = vmatprep.subr.bf16.mxu0 %v4352_v6  ;;  %v4886_v43 = vsel %vm273_vm2, %v886_v44, %v887_v60  ;;  %3946 = vmatpush3.bf16.msra.mxu1 %v4247_v62  ;;  %v3430_v63 = vld [vmem:[%s4479_s23 + $0xa8] sm:$0x3f]  ;;  %v1604_v8 = vld [vmem:[#allocation2 + $0x2e0] sm:$0xff]  ;;  %1036 = vst [vmem:[#allocation2 + $0x460] sm:$0x3f] %v3484_v15  ;;  %v4900_v51 = vld [vmem:[%s4479_s23 + $0x91] sm:$0xff] }
  0xa9   : > { %v4874_v13 = vsel %vm273_vm2, %v1026_v50, %v1027_v41  ;;  %v761_v34 = vrot.slane %v3430_v63, 2  ;;  %v4894_v10 = vld [vmem:[%s4479_s23 + $0xa2] sm:$0xff]  ;;  %v3402_v61 = vld [vmem:[%s4479_s23 + $0x9a] sm:$0x3f]  ;;  %779 = vst [vmem:[#allocation2 + $0x4e0] sm:$0xf0] %v773_v12 }
  0xaa   : > { %v1041_v14 = vrot.slane %v4894_v10, 2  ;;  %v633_v16 = vrot.slane %v4894_v10, 4  ;;  %v1623_v17 = vld [vmem:[#allocation2 + $0x378] sm:$0xff]  ;;  %v621_v20 = vrot.slane %v3402_v61, 2  ;;  %v3457_v23 = vld [vmem:[%s4479_s23 + $0xa1] sm:$0xff]  ;;  %v4249_v4 = vld [vmem:[#allocation3 + $0x1e8] sm:$0xff]  }
  0xab   : > { %4059 = vmatpush3.bf16.msra.mxu0 %v4245_v25  ;;  %v4903_v18 = vsel %vm243_vm0, %v760_v40, %v761_v34  ;;  %768 = vst [vmem:[#allocation2 + $0x4e0] sm:$0xf] %v761_v34  ;;  %v3456_v21 = vld [vmem:[%s4479_s23 + $0x99] sm:$0x3f]  ;;  %v901_v56 = vrot.slane %v3457_v23, 2  ;;  %1316 = vst [vmem:[#allocation2 + $0x428] sm:$0xff] %v3457_v23  ;;  %v1777_v25 = vpack.c.bf16 %v4826_v11, %v1588_v53  ;;  %3947 = vmatprep.subr.bf16.mxu1 %v4249_v4 }
  0xac   : > { %4060 = vmatprep.subr.bf16.mxu0 %v4352_v6  ;;  %v1607_v5 = vld [vmem:[#allocation2 + $0x2f8] sm:$0xff]  ;;  %1047 = vst [vmem:[#allocation2 + $0x460] sm:$0xc0] %v1041_v14  ;;  %639 = vst [vmem:[#allocation2 + $0x4d8] sm:$0xf0] %v633_v16  ;;  %v4909_v24 = vsel %vm243_vm0, %v620_v55, %v621_v20  ;;  %v1794_v27 = vpack.c.bf16 %v4840_v49, %v1623_v17  ;;  %v1622_v55 = vld [vmem:[#allocation2 + $0x370] sm:$0xff] }
  0xad   : > { %2758 = vmatmul.mubr.bf16.gmra.mrb[36].mxu0 %v1759_v59  ;;  %2630 = vmatmul.mubr.bf16.gmra.mrb[36].mxu1 %v1766_v22  ;;  %v1307_v59 = vrot.slane %v4900_v51, 6  ;;  %896 = vst [vmem:[#allocation2 + $0x458] sm:$0x3f] %v3456_v21  ;;  %628 = vst [vmem:[#allocation2 + $0x4d8] sm:$0xf] %v621_v20  ;;  %v4250_v22 = vld [vmem:[#allocation3 + $0x1a8] sm:$0xff]   ;;  %v1787_v2 = vpack.c.bf16 %v4848_v7, %v1607_v5  ;;  %v1793_v54 = vpack.c.bf16 %v4852_v36, %v1622_v55 }
  0xae   : > { %2765 = vmatprep.mubr.bf16.mxu0 %v1769_v31  ;;  %2637 = vmatprep.mubr.bf16.mxu1 %v1776_v35  ;;  %907 = vst [vmem:[#allocation2 + $0x458] sm:$0xc0] %v901_v56  ;;  %v1784_v31 = vpack.c.bf16 %v4821_v39, %v1604_v8  ;;  %v3432_v33 = vld [vmem:[%s4479_s23 + $0xb8] sm:$0x3f]  ;;  %v3433_v35 = vld [vmem:[%s4479_s23 + $0xc0] sm:$0xff]  ;;  %v1606_v57 = vld [vmem:[#allocation2 + $0x2f0] sm:$0xff] }
  0xaf   : > { %4061 = vmatpush3.bf16.msra.mxu0 %v4248_v19  ;;  %1312 = vst [vmem:[#allocation2 + $0x398] sm:$0xfc] %v1307_v59  ;;  %v3486_v9 = vld [vmem:[%s4479_s23 + $0xaa] sm:$0x3f]  ;;  %3948 = vmatpush3.bf16.msra.mxu1 %v4250_v22  ;;  %v774_v26 = vrot.slane %v3432_v33, 4  ;;  %v786_v37 = vrot.slane %v3433_v35, 6  ;;  %v1786_v15 = vpack.c.bf16 %v4859_v38, %v1606_v57 }
  0xb0   : > { %4062 = vmatprep.subr.bf16.mxu0 %v4352_v6  ;;  %v1042_v40 = vrot.slane %v3486_v9, 2  ;;  %v3487_v46 = vld [vmem:[%s4479_s23 + $0xb2] sm:$0xff]  ;;  %v3404_v11 = vld [vmem:[%s4479_s23 + $0xaa] sm:$0x3f]  ;;  %v3488_v53 = vld [vmem:[%s4479_s23 + $0xba] sm:$0x3f] }
  0xb1   : > { %v1054_v47 = vrot.slane %v3487_v46, 4  ;;  %v634_v48 = vrot.slane %v3404_v11, 4  ;;  %v646_v50 = vrot.slane %v3487_v46, 6  ;;  %v3458_v39 = vld [vmem:[%s4479_s23 + $0xa9] sm:$0x3f]  ;;  %v4925_v41 = vld [vmem:[%s4479_s23 + $0xb1] sm:$0xff]  ;;  %v4928_v7 = vsel %vm258_vm1, %v773_v12, %v774_v26 }
  0xb2   : > { %781 = vst [vmem:[#allocation2 + $0x570] sm:$0x3] %v774_v26  ;;  %791 = vst [vmem:[#allocation2 + $0x570] sm:$0xfc] %v786_v37  ;;  %v4931_v49 = vsel %vm243_vm0, %v1041_v14, %v1042_v40  ;;  %v902_v52 = vrot.slane %v3458_v39, 2  ;;  %v914_v29 = vrot.slane %v4925_v41, 4 }
  0xb3   : > { %1049 = vst [vmem:[#allocation2 + $0x4f0] sm:$0xf] %v1042_v40  ;;  %1060 = vst [vmem:[#allocation2 + $0x4f0] sm:$0xf0] %v1054_v47  ;;  %v4935_v44 = vsel %vm258_vm1, %v633_v16, %v634_v48  ;;  %v1322_v60 = vrot.slane %v4925_v41, 2  ;;  %v1625_v62 = vld [vmem:[#allocation2 + $0x388] sm:$0xff] }
  0xb4   : > { %641 = vst [vmem:[#allocation2 + $0x568] sm:$0x3] %v634_v48  ;;  %651 = vst [vmem:[#allocation2 + $0x568] sm:$0xfc] %v646_v50  ;;  %v1650_v19 = vld [vmem:[#allocation2 + $0x450] sm:$0xff]  ;;  %v4947_v34 = vld [vmem:[%s4479_s23 + $0xc2] sm:$0xff]  ;;  %v1796_v61 = vpack.c.bf16 %v4874_v13, %v1625_v62 }
  0xb5   : > { %2766 = vmatmul.mubr.bf16.gmra.mrb[40].mxu0 %v1768_v58  ;;  %2638 = vmatmul.mubr.bf16.gmra.mrb[40].mxu1 %v1775_v0  ;;  %v4251_v58 = vld [vmem:[#allocation3 + $0x228] sm:$0xff]   ;;  %v4939_v0 = vsel %vm243_vm0, %v901_v56, %v902_v52  ;;  %909 = vst [vmem:[#allocation2 + $0x4e8] sm:$0xf] %v902_v52  ;;  %920 = vst [vmem:[#allocation2 + $0x4e8] sm:$0xf0] %v914_v29  ;;  %v1055_v10 = vrot.slane %v3488_v53, 4  ;;  %v1803_v38 = vpack.c.bf16 %v1650_v19, %v4844_v28 }
  0xb6   : > { %2773 = vmatprep.mubr.bf16.mxu0 %v1778_v32  ;;  %2645 = vmatprep.mubr.bf16.mxu1 %v1785_v3  ;;  %v3434_v32 = vld [vmem:[%s4479_s23 + $0xc8] sm:$0x3f]  ;;  %v4943_v3 = vld [vmem:[%s4479_s23 + $0xd0] sm:$0xff]  ;;  %1328 = vst [vmem:[#allocation2 + $0x470] sm:$0xc0] %v1322_v60  ;;  %v1067_v8 = vrot.slane %v4947_v34, 6 }
  0xb7   : > { %4063 = vmatpush3.bf16.msra.mxu0 %v4251_v58  ;;  %v787_v63 = vrot.slane %v3434_v32, 6  ;;  %v3406_v12 = vld [vmem:[%s4479_s23 + $0xba] sm:$0x3f]  ;;  %v4962_v21 = vld [vmem:[%s4479_s23 + $0xc1] sm:$0xff]  ;;  %v4966_v23 = vsel %vm258_vm1, %v1054_v47, %v1055_v10  ;;  %1062 = vst [vmem:[#allocation2 + $0x580] sm:$0x3] %v1055_v10 }
  0xb8   : > { %v3460_v14 = vld [vmem:[%s4479_s23 + $0xb9] sm:$0x3f]  ;;  %4064 = vmatprep.subr.bf16.mxu0 %v4352_v6  ;;  %v647_v17 = vrot.slane %v3406_v12, 6  ;;  %1072 = vst [vmem:[#allocation2 + $0x580] sm:$0xfc] %v1067_v8  ;;  %v927_v5 = vrot.slane %v4962_v21, 6 }
  0xb9   : > { %v4959_v16 = vsel %vm273_vm2, %v786_v37, %v787_v63  ;;  %v915_v20 = vrot.slane %v3460_v14, 4  ;;  %v4252_v36 = vld [vmem:[#allocation3 + $0x1f0] sm:$0xff]   ;;  %v1649_v22 = vld [vmem:[#allocation2 + $0x448] sm:$0xff]  ;;  %v1668_v33 = vld [vmem:[#allocation2 + $0x4e0] sm:$0xff] }
  0xba   : > { %v4253_v13 = vld [vmem:[#allocation3 + $0x1b0] sm:$0xff]   ;;  %v4970_v56 = vsel %vm273_vm2, %v646_v50, %v647_v17  ;;  %3949 = vmatprep.subr.bf16.mxu1 %v4252_v36  ;;  %932 = vst [vmem:[#allocation2 + $0x578] sm:$0xfc] %v927_v5  ;;  %v1652_v35 = vld [vmem:[#allocation2 + $0x460] sm:$0xff]  ;;  %v3438_v9 = vld [vmem:[%s4479_s23 + $0xe8] sm:$0x3f]  ;;  %v1802_v62 = vpack.c.bf16 %v1649_v22, %v4862_v45  ;;  %v1812_v63 = vpack.c.bf16 %v1668_v33, %v4903_v18 }
  0xbb   : > { %v4973_v4 = vsel %vm258_vm1, %v914_v29, %v915_v20  ;;  %922 = vst [vmem:[#allocation2 + $0x578] sm:$0x3] %v915_v20  ;;  %v3436_v28 = vld [vmem:[%s4479_s23 + $0xd8] sm:$0x3f]  ;;  %3950 = vmatpush3.bf16.msra.mxu1 %v4253_v13  ;;  %v3490_v26 = vld [vmem:[%s4479_s23 + $0xca] sm:$0x3f]  ;;  %v1805_v32 = vpack.c.bf16 %v1652_v35, %v4868_v42 }
  0xbc   : > { %796 = vst [vmem:[#allocation2 + $0x648] sm:$0x3f] %v3436_v28  ;;  %v803_v37 = vrot.slane %v3438_v9, 2  ;;  %v1068_v40 = vrot.slane %v3490_v26, 6  ;;  %v4983_v46 = vld [vmem:[%s4479_s23 + $0xd2] sm:$0xff]  ;;  %v4255_v58 = vld [vmem:[#allocation3 + $0x1f8] sm:$0xff]  }
  0xbd   : > { %2774 = vmatmul.mubr.bf16.gmra.mrb[44].mxu0 %v1777_v25  ;;  %2646 = vmatmul.mubr.bf16.gmra.mrb[44].mxu1 %v1784_v31  ;;  %v1335_v25 = vrot.slane %v4962_v21, 4  ;;  %v1624_v31 = vld [vmem:[#allocation2 + $0x380] sm:$0xff]  ;;  %v4254_v11 = vld [vmem:[#allocation3 + $0x230] sm:$0xff]   ;;  %v3408_v48 = vld [vmem:[%s4479_s23 + $0xca] sm:$0x3f]  ;;  %v661_v29 = vrot.slane %v4983_v46, 2 }
  0xbe   : > { %2781 = vmatprep.mubr.bf16.mxu0 %v1787_v2  ;;  %2653 = vmatprep.mubr.bf16.mxu1 %v1794_v27  ;;  %v3437_v2 = vld [vmem:[%s4479_s23 + $0xe0] sm:$0xff]  ;;  %v1795_v47 = vpack.c.bf16 %v4886_v43, %v1624_v31  ;;  %v3410_v50 = vld [vmem:[%s4479_s23 + $0xda] sm:$0x3f]  ;;  %810 = vst [vmem:[#allocation2 + $0x6d8] sm:$0xf] %v803_v37  ;;  %v4992_v52 = vsel %vm273_vm2, %v1067_v8, %v1068_v40  ;;  %v4997_v43 = vld [vmem:[%s4479_s23 + $0xd1] sm:$0xff] }
  0xbf   : > { %v802_v27 = vrot.slane %v3437_v2, 2  ;;  %1341 = vst [vmem:[#allocation2 + $0x500] sm:$0xf0] %v1335_v25  ;;  %4065 = vmatpush3.bf16.msra.mxu0 %v4254_v11  ;;  %656 = vst [vmem:[#allocation2 + $0x640] sm:$0x3f] %v3408_v48  ;;  %v662_v55 = vrot.slane %v3410_v50, 2  ;;  %3951 = vmatprep.subr.bf16.mxu1 %v4255_v58 }
  0xc0   : > { %v3462_v57 = vld [vmem:[%s4479_s23 + $0xc9] sm:$0x3f]  ;;  %4066 = vmatprep.subr.bf16.mxu0 %v4352_v6  ;;  %667 = vst [vmem:[#allocation2 + $0x640] sm:$0xc0] %v661_v29  ;;  %v1348_v45 = vrot.slane %v4997_v43, 6  ;;  %v1651_v8 = vld [vmem:[#allocation2 + $0x458] sm:$0xff] }
  0xc1   : > { %808 = vst [vmem:[#allocation2 + $0x648] sm:$0xc0] %v802_v27  ;;  %v4989_v39 = vsel %vm243_vm0, %v802_v27, %v803_v37  ;;  %v928_v19 = vrot.slane %v3462_v57, 6  ;;  %v5004_v53 = vsel %vm243_vm0, %v661_v29, %v662_v55  ;;  %669 = vst [vmem:[#allocation2 + $0x6d0] sm:$0xf] %v662_v55  ;;  %v4256_v14 = vld [vmem:[#allocation3 + $0x1b8] sm:$0xff]   ;;  %v1804_v27 = vpack.c.bf16 %v1651_v8, %v4900_v51 }
  0xc2   : > { %v3494_v10 = vld [vmem:[%s4479_s23 + $0xea] sm:$0x3f]  ;;  %v3464_v17 = vld [vmem:[%s4479_s23 + $0xd9] sm:$0x3f]  ;;  %v5015_v20 = vld [vmem:[%s4479_s23 + $0xe1] sm:$0xff]  ;;  %v1488_v36 = vrot.slane %v4983_v46, 6  ;;  %3952 = vmatpush3.bf16.msra.mxu1 %v4256_v14 }
  0xc3   : > { %v5011_v42 = vsel %vm273_vm2, %v927_v5, %v928_v19  ;;  %v1083_v12 = vrot.slane %v3494_v10, 2  ;;  %1353 = vst [vmem:[#allocation2 + $0x590] sm:$0xfc] %v1348_v45  ;;  %937 = vst [vmem:[#allocation2 + $0x650] sm:$0x3f] %v3464_v17  ;;  %v942_v13 = vrot.slane %v5015_v20, 2 }
  0xc4   : > { %v3466_v5 = vld [vmem:[%s4479_s23 + $0xe9] sm:$0x3f]  ;;  %v4257_v28 = vld [vmem:[#allocation3 + $0x238] sm:$0xff]   ;;  %v1670_v22 = vld [vmem:[#allocation2 + $0x4f0] sm:$0xff]  ;;  %1493 = vst [vmem:[#allocation2 + $0x598] sm:$0xfc] %v1488_v36 }
  0xc5   : > { %2782 = vmatmul.mubr.bf16.gmra.mrb[48].mxu0 %v1786_v15  ;;  %2654 = vmatmul.mubr.bf16.gmra.mrb[48].mxu1 %v1793_v54  ;;  %v3492_v54 = vld [vmem:[%s4479_s23 + $0xda] sm:$0x3f]  ;;  %v3493_v15 = vld [vmem:[%s4479_s23 + $0xe2] sm:$0xff]  ;;  %1090 = vst [vmem:[#allocation2 + $0x6e8] sm:$0xf] %v1083_v12  ;;  %v943_v31 = vrot.slane %v3466_v5, 2  ;;  %v1814_v50 = vpack.c.bf16 %v1670_v22, %v4931_v49 }
  0xc6   : > { %2789 = vmatprep.mubr.bf16.mxu0 %v1796_v61  ;;  %2661 = vmatprep.mubr.bf16.mxu1 %v1803_v38  ;;  %1077 = vst [vmem:[#allocation2 + $0x658] sm:$0x3f] %v3492_v54  ;;  %v1082_v18 = vrot.slane %v3493_v15, 2  ;;  %v1667_v61 = vld [vmem:[#allocation2 + $0x4d8] sm:$0xff]  ;;  %v5026_v2 = vld [vmem:[%s4479_s23 + $0x21] sm:$0xff]  ;;  %v1686_v33 = vld [vmem:[#allocation2 + $0x570] sm:$0xff] }
  0xc7   : > { %948 = vst [vmem:[#allocation2 + $0x650] sm:$0xc0] %v942_v13  ;;  %4067 = vmatpush3.bf16.msra.mxu0 %v4257_v28  ;;  %v3524_v35 = vld [vmem:[%s4479_s23 + $0x29] sm:$0x3f]  ;;  %v3525_v9 = vld [vmem:[%s4479_s23 + $0x31] sm:$0xff]  ;;  %v5034_v26 = vsel %vm243_vm0, %v942_v13, %v943_v31  ;;  %v5037_v40 = vld [vmem:[%s4479_s23 + $0x20] sm:$0xff]  ;;  %v1811_v48 = vpack.c.bf16 %v1667_v61, %v4909_v24  ;;  %v1821_v57 = vpack.c.bf16 %v1686_v33, %v4928_v7 }
  0xc8   : > { %v5021_v38 = vsel %vm243_vm0, %v1082_v18, %v1083_v12  ;;  %1088 = vst [vmem:[#allocation2 + $0x658] sm:$0xc0] %v1082_v18  ;;  %950 = vst [vmem:[#allocation2 + $0x6e0] sm:$0xf] %v943_v31  ;;  %v1240_v37 = vrot.slane %v3525_v9, 2  ;;  %v3499_v19 = vld [vmem:[%s4479_s23 + $0x40] sm:$0xff] }
  0xc9   : > { %1235 = vst [vmem:[#allocation2 + $0x80] sm:$0x3f] %v3524_v35  ;;  %v3496_v11 = vld [vmem:[%s4479_s23 + $0x28] sm:$0x3f]  ;;  %v3526_v55 = vld [vmem:[%s4479_s23 + $0x39] sm:$0x3f] }
  0xca   : > { %1094 = vst [vmem:[#allocation2 + $0x78] sm:$0x3f] %v3496_v11  ;;  %1246 = vst [vmem:[#allocation2 + $0x80] sm:$0xc0] %v1240_v37  ;;  %v1241_v58 = vrot.slane %v3526_v55, 2  ;;  %v1112_v15 = vrot.slane %v3499_v19, 4 }
  0xcb   : > { %v5049_v10 = vld [vmem:[%s4479_s23 + $0x22] sm:$0xff]  ;;  %v3552_v24 = vld [vmem:[%s4479_s23 + $0x2a] sm:$0x3f]  ;;  %v3553_v18 = vld [vmem:[%s4479_s23 + $0x32] sm:$0xff] }
  0xcc   : > { %v5052_v49 = vld [vmem:[#allocation2 + $0x568] sm:$0xff]  ;;  %v5055_v8 = vsel %vm243_vm0, %v1240_v37, %v1241_v58  ;;  %1248 = vst [vmem:[#allocation2 + $0x110] sm:$0xf] %v1241_v58  ;;  %1375 = vst [vmem:[#allocation2 + $0x88] sm:$0x3f] %v3552_v24  ;;  %v1380_v14 = vrot.slane %v3553_v18, 2 }
  0xcd   : > { %2790 = vmatmul.mubr.bf16.gmra.mrb[52].mxu0 %v1795_v47  ;;  %2662 = vmatmul.mubr.bf16.gmra.mrb[52].mxu1 %v1802_v62  ;;  %v3497_v47 = vld [vmem:[%s4479_s23 + $0x30] sm:$0xff]  ;;  %v3527_v62 = vld [vmem:[%s4479_s23 + $0x41] sm:$0xff]  ;;  %1118 = vst [vmem:[#allocation2 + $0x108] sm:$0xf0] %v1112_v15  ;;  %v3528_v61 = vld [vmem:[%s4479_s23 + $0x49] sm:$0x3f] }
  0xce   : > { %2797 = vmatprep.mubr.bf16.mxu0 %v1805_v32  ;;  %2669 = vmatprep.mubr.bf16.mxu1 %v1812_v63  ;;  %v1099_v29 = vrot.slane %v3497_v47, 2  ;;  %v3498_v32 = vld [vmem:[%s4479_s23 + $0x38] sm:$0x3f]  ;;  %v1253_v63 = vrot.slane %v3527_v62, 4  ;;  %v1669_v7 = vld [vmem:[#allocation2 + $0x4e8] sm:$0xff]  ;;  %v1688_v13 = vld [vmem:[#allocation2 + $0x580] sm:$0xff] }
  0xcf   : > { %v1100_v54 = vrot.slane %v3498_v32, 2  ;;  %v3529_v17 = vld [vmem:[%s4479_s23 + $0x51] sm:$0xff]  ;;  %v3500_v5 = vld [vmem:[%s4479_s23 + $0x48] sm:$0x3f]  ;;  %v1254_v28 = vrot.slane %v3528_v61, 4  ;;  %v1813_v11 = vpack.c.bf16 %v1669_v7, %v4939_v0  ;;  %v1820_v0 = vpack.c.bf16 %v5052_v49, %v4935_v44  ;;  %v5083_v19 = vld [vmem:[%s4479_s23 + $0x60] sm:$0xff] }
  0xd0   : > { %1105 = vst [vmem:[#allocation2 + $0x78] sm:$0xc0] %v1099_v29  ;;  %1259 = vst [vmem:[#allocation2 + $0x110] sm:$0xf0] %v1253_v63  ;;  %v1266_v22 = vrot.slane %v3529_v17, 6  ;;  %v1113_v31 = vrot.slane %v3500_v5, 4  ;;  %v1823_v58 = vpack.c.bf16 %v1688_v13, %v4966_v23 }
  0xd1   : > { %v5059_v12 = vsel %vm243_vm0, %v1099_v29, %v1100_v54  ;;  %1107 = vst [vmem:[#allocation2 + $0x108] sm:$0xf] %v1100_v54  ;;  %v3501_v33 = vld [vmem:[%s4479_s23 + $0x50] sm:$0xff]  ;;  %v3555_v35 = vld [vmem:[%s4479_s23 + $0x42] sm:$0xff]  ;;  %1386 = vst [vmem:[#allocation2 + $0x88] sm:$0xc0] %v1380_v14  ;;  %v5069_v47 = vsel %vm258_vm1, %v1253_v63, %v1254_v28  ;;  %v1830_v54 = vpack.c.bf16 %v4943_v3, %v4959_v16 }
  0xd2   : > { %v1125_v9 = vrot.slane %v3501_v33, 6  ;;  %v1393_v37 = vrot.slane %v3555_v35, 4  ;;  %1261 = vst [vmem:[#allocation2 + $0x1a0] sm:$0x3] %v1254_v28  ;;  %1271 = vst [vmem:[#allocation2 + $0x1a0] sm:$0xfc] %v1266_v22 }
  0xd3   : > { %1120 = vst [vmem:[#allocation2 + $0x198] sm:$0x3] %v1113_v31  ;;  %v3530_v29 = vld [vmem:[%s4479_s23 + $0x59] sm:$0x3f]  ;;  %v5076_v55 = vld [vmem:[%s4479_s23 + $0x61] sm:$0xff]  ;;  %v3533_v61 = vld [vmem:[%s4479_s23 + $0x71] sm:$0xff] }
  0xd4   : > { %1130 = vst [vmem:[#allocation2 + $0x198] sm:$0xfc] %v1125_v9  ;;  %1399 = vst [vmem:[#allocation2 + $0x118] sm:$0xf0] %v1393_v37  ;;  %v1267_v62 = vrot.slane %v3530_v29, 6  ;;  %v3557_v23 = vld [vmem:[%s4479_s23 + $0x52] sm:$0xff] }
  0xd5   : > { %2798 = vmatmul.mubr.bf16.gmra.mrb[56].mxu0 %v1804_v27  ;;  %2670 = vmatmul.mubr.bf16.gmra.mrb[56].mxu1 %v1811_v48  ;;  %v3554_v27 = vld [vmem:[%s4479_s23 + $0x3a] sm:$0x3f]  ;;  %v5072_v48 = vsel %vm258_vm1, %v1112_v15, %v1113_v31  ;;  %v3556_v63 = vld [vmem:[%s4479_s23 + $0x4a] sm:$0x3f]  ;;  %v1406_v18 = vrot.slane %v3557_v23, 6  ;;  %v1281_v5 = vrot.slane %v3533_v61, 2  ;;  %v1829_v23 = vpack.c.bf16 %v4947_v34, %v4970_v56 }
  0xd6   : > { %2805 = vmatprep.mubr.bf16.mxu0 %v1814_v50  ;;  %2677 = vmatprep.mubr.bf16.mxu1 %v1821_v57  ;;  %v1381_v50 = vrot.slane %v3554_v27, 2  ;;  %v3502_v57 = vld [vmem:[%s4479_s23 + $0x58] sm:$0x3f]  ;;  %v1394_v44 = vrot.slane %v3556_v63, 4  ;;  %v3532_v24 = vld [vmem:[%s4479_s23 + $0x69] sm:$0x3f]  ;;  %v5094_v49 = vsel %vm273_vm2, %v1266_v22, %v1267_v62 }
  0xd7   : > { %v1126_v32 = vrot.slane %v3502_v57, 6  ;;  %1276 = vst [vmem:[#allocation2 + $0x278] sm:$0x3f] %v3532_v24  ;;  %v3534_v3 = vld [vmem:[%s4479_s23 + $0x79] sm:$0x3f]  ;;  %v3505_v13 = vld [vmem:[%s4479_s23 + $0x70] sm:$0xff]  ;;  %v1832_v24 = vpack.c.bf16 %v4983_v46, %v4992_v52 }
  0xd8   : > { %v5089_v15 = vsel %vm243_vm0, %v1380_v14, %v1381_v50  ;;  %1388 = vst [vmem:[#allocation2 + $0x118] sm:$0xf] %v1381_v50  ;;  %v3504_v16 = vld [vmem:[%s4479_s23 + $0x68] sm:$0x3f]  ;;  %v1687_v14 = vld [vmem:[#allocation2 + $0x578] sm:$0xff]  ;;  %v5103_v17 = vsel %vm258_vm1, %v1393_v37, %v1394_v44  ;;  %v1282_v28 = vrot.slane %v3534_v3, 2 }
  0xd9   : > { %v5097_v7 = vsel %vm273_vm2, %v1125_v9, %v1126_v32  ;;  %1401 = vst [vmem:[#allocation2 + $0x1a8] sm:$0x3] %v1394_v44  ;;  %1135 = vst [vmem:[#allocation2 + $0x270] sm:$0x3f] %v3504_v16  ;;  %v3506_v22 = vld [vmem:[%s4479_s23 + $0x78] sm:$0x3f] }
  0xda   : > { %1411 = vst [vmem:[#allocation2 + $0x1a8] sm:$0xfc] %v1406_v18  ;;  %v1140_v31 = vrot.slane %v3505_v13, 2  ;;  %v3558_v33 = vld [vmem:[%s4479_s23 + $0x5a] sm:$0x3f]  ;;  %v1141_v35 = vrot.slane %v3506_v22, 2  ;;  %v5113_v50 = vsel %vm243_vm0, %v1281_v5, %v1282_v28 }
  0xdb   : > { %1287 = vst [vmem:[#allocation2 + $0x278] sm:$0xc0] %v1281_v5  ;;  %v1407_v9 = vrot.slane %v3558_v33, 6  ;;  %v5109_v27 = vld [vmem:[%s4479_s23 + $0x62] sm:$0xff]  ;;  %1289 = vst [vmem:[#allocation2 + $0x308] sm:$0xf] %v1282_v28 }
  0xdc   : > { %v3536_v37 = vld [vmem:[%s4479_s23 + $0x89] sm:$0x3f]  ;;  %1146 = vst [vmem:[#allocation2 + $0x270] sm:$0xc0] %v1140_v31  ;;  %v3507_v57 = vld [vmem:[%s4479_s23 + $0x80] sm:$0xff]  ;;  %v5119_v62 = vsel %vm243_vm0, %v1140_v31, %v1141_v35  ;;  %v3561_v44 = vld [vmem:[%s4479_s23 + $0x72] sm:$0xff] }
  0xdd   : > { %2806 = vmatmul.mubr.bf16.gmra.mrb[60].mxu0 %v1813_v11  ;;  %2678 = vmatmul.mubr.bf16.gmra.mrb[60].mxu1 %v1820_v0  ;;  %v1713_v11 = vld [vmem:[#allocation2 + $0x648] sm:$0xff]  ;;  %v1295_v29 = vrot.slane %v3536_v37, 4  ;;  %1148 = vst [vmem:[#allocation2 + $0x300] sm:$0xf] %v1141_v35  ;;  %v5122_v32 = vsel %vm273_vm2, %v1406_v18, %v1407_v9  ;;  %v1153_v63 = vrot.slane %v3507_v57, 4  ;;  %v1421_v34 = vrot.slane %v3561_v44, 2 }
  0xde   : > { %2813 = vmatprep.mubr.bf16.mxu0 %v1823_v58  ;;  %2685 = vmatprep.mubr.bf16.mxu1 %v1830_v54  ;;  %v3508_v0 = vld [vmem:[%s4479_s23 + $0x88] sm:$0x3f]  ;;  %v1822_v58 = vpack.c.bf16 %v1687_v14, %v4973_v4  ;;  %v3562_v61 = vld [vmem:[%s4479_s23 + $0x7a] sm:$0x3f]  ;;  %v1839_v16 = vpack.c.bf16 %v4989_v39, %v1713_v11  ;;  %v3509_v52 = vld [vmem:[%s4479_s23 + $0x90] sm:$0xff] }
  0xdf   : > { %v3560_v54 = vld [vmem:[%s4479_s23 + $0x6a] sm:$0x3f]  ;;  %v5133_v4 = vsel %vm258_vm1, %v1294_v30, %v1295_v29  ;;  %1302 = vst [vmem:[#allocation2 + $0x398] sm:$0x3] %v1295_v29  ;;  %v1154_v18 = vrot.slane %v3508_v0, 4  ;;  %v1422_v56 = vrot.slane %v3562_v61, 2 }
  0xe0   : > { %1416 = vst [vmem:[#allocation2 + $0x280] sm:$0x3f] %v3560_v54  ;;  %v3538_v3 = vld [vmem:[%s4479_s23 + $0x99] sm:$0x3f]  ;;  %1159 = vst [vmem:[#allocation2 + $0x300] sm:$0xf0] %v1153_v63 }
  0xe1   : > { %v1308_v14 = vrot.slane %v3538_v3, 6  ;;  %v3510_v1 = vld [vmem:[%s4479_s23 + $0x98] sm:$0x3f]  ;;  %v5141_v30 = vsel %vm258_vm1, %v1153_v63, %v1154_v18  ;;  %1161 = vst [vmem:[#allocation2 + $0x390] sm:$0x3] %v1154_v18  ;;  %v1166_v5 = vrot.slane %v3509_v52, 6  ;;  %v5149_v39 = vsel %vm243_vm0, %v1421_v34, %v1422_v56 }
  0xe2   : > { %v1167_v13 = vrot.slane %v3510_v1, 6  ;;  %v3563_v28 = vld [vmem:[%s4479_s23 + $0x82] sm:$0xff]  ;;  %v3564_v22 = vld [vmem:[%s4479_s23 + $0x8a] sm:$0x3f]  ;;  %1427 = vst [vmem:[#allocation2 + $0x280] sm:$0xc0] %v1421_v34  ;;  %v1831_v3 = vpack.c.bf16 %v4997_v43, %v5011_v42 }
  0xe3   : > { %v5146_v31 = vld [vmem:[%s4479_s23 + $0xa0] sm:$0xff]  ;;  %1429 = vst [vmem:[#allocation2 + $0x310] sm:$0xf] %v1422_v56  ;;  %v5154_v33 = vsel %vm273_vm2, %v1307_v59, %v1308_v14  ;;  %v1434_v35 = vrot.slane %v3563_v28, 4  ;;  %v1435_v9 = vrot.slane %v3564_v22, 4  ;;  %v3513_v11 = vld [vmem:[%s4479_s23 + $0xb0] sm:$0xff] }
  0xe4   : > { %v3540_v37 = vld [vmem:[%s4479_s23 + $0xa9] sm:$0x3f]  ;;  %v5159_v29 = vsel %vm273_vm2, %v1166_v5, %v1167_v13  ;;  %1171 = vst [vmem:[#allocation2 + $0x390] sm:$0xfc] %v1166_v5  ;;  %v1181_v0 = vrot.slane %v3513_v11, 2  ;;  %v3565_v51 = vld [vmem:[%s4479_s23 + $0x92] sm:$0xff] }
  0xe5   : > { %2814 = vmatmul.mubr.bf16.gmra.mrb[64].mxu0 %v1822_v58  ;;  %2686 = vmatmul.mubr.bf16.gmra.mrb[64].mxu1 %v1829_v23  ;;  %1317 = vst [vmem:[#allocation2 + $0x470] sm:$0x3f] %v3540_v37  ;;  %v3512_v57 = vld [vmem:[%s4479_s23 + $0xa8] sm:$0x3f]  ;;  %v1712_v59 = vld [vmem:[#allocation2 + $0x640] sm:$0xff]  ;;  %v1715_v58 = vld [vmem:[#allocation2 + $0x658] sm:$0xff]  ;;  %v5164_v63 = vsel %vm258_vm1, %v1434_v35, %v1435_v9 }
  0xe6   : > { %2821 = vmatprep.mubr.bf16.mxu0 %v1832_v24  ;;  %2693 = vmatprep.mubr.bf16.mxu1 %v1839_v16  ;;  %1440 = vst [vmem:[#allocation2 + $0x310] sm:$0xf0] %v1434_v35  ;;  %1442 = vst [vmem:[#allocation2 + $0x3a0] sm:$0x3] %v1435_v9  ;;  %v3566_v54 = vld [vmem:[%s4479_s23 + $0x9a] sm:$0x3f]  ;;  %v1838_v52 = vpack.c.bf16 %v5004_v53, %v1712_v59  ;;  %v1841_v1 = vpack.c.bf16 %v5021_v38, %v1715_v58 }
  0xe7   : > { %1176 = vst [vmem:[#allocation2 + $0x468] sm:$0x3f] %v3512_v57  ;;  %v1447_v44 = vrot.slane %v3565_v51, 6  ;;  %v1731_v23 = vld [vmem:[#allocation2 + $0x6d8] sm:$0xf]  ;;  %v1448_v24 = vrot.slane %v3566_v54, 6 }
  0xe8   : > { %1187 = vst [vmem:[#allocation2 + $0x468] sm:$0xc0] %v1181_v0  ;;  %v3542_v18 = vld [vmem:[%s4479_s23 + $0xb9] sm:$0x3f]  ;;  %v3515_v61 = vld [vmem:[%s4479_s23 + $0xc0] sm:$0xff]  ;;  %v1848_v22 = vpack.c.bf16 %v1731_v23, %v1731_v23  ;;  %v3517_v37 = vld [vmem:[%s4479_s23 + $0xd0] sm:$0xff] }
  0xe9   : > { %1452 = vst [vmem:[#allocation2 + $0x3a0] sm:$0xfc] %v1447_v44  ;;  %v1323_v16 = vrot.slane %v3542_v18, 2  ;;  %v3514_v34 = vld [vmem:[%s4479_s23 + $0xb8] sm:$0x3f]  ;;  %v1194_v56 = vrot.slane %v3515_v61, 4  ;;  %v5178_v5 = vsel %vm273_vm2, %v1447_v44, %v1448_v24 }
  0xea   : > { %v5173_v14 = vld [vmem:[%s4479_s23 + $0xa2] sm:$0xff]  ;;  %v1182_v13 = vrot.slane %v3514_v34, 2  ;;  %v3568_v28 = vld [vmem:[%s4479_s23 + $0xaa] sm:$0x3f]  ;;  %v3569_v42 = vld [vmem:[%s4479_s23 + $0xb2] sm:$0xff]  ;;  %v1207_v59 = vrot.slane %v3517_v37, 6 }
  0xeb   : > { %v5185_v35 = vsel %vm243_vm0, %v1322_v60, %v1323_v16  ;;  %1330 = vst [vmem:[#allocation2 + $0x500] sm:$0xf] %v1323_v16  ;;  %1200 = vst [vmem:[#allocation2 + $0x4f8] sm:$0xf0] %v1194_v56  ;;  %v1462_v53 = vrot.slane %v3569_v42, 2  ;;  %v3571_v44 = vld [vmem:[%s4479_s23 + $0xc2] sm:$0xff] }
  0xec   : > { %1457 = vst [vmem:[#allocation2 + $0x478] sm:$0x3f] %v3568_v28  ;;  %v3544_v9 = vld [vmem:[%s4479_s23 + $0xc9] sm:$0x3f]  ;;  %v5191_v11 = vsel %vm243_vm0, %v1181_v0, %v1182_v13  ;;  %1189 = vst [vmem:[#allocation2 + $0x4f8] sm:$0xf] %v1182_v13 }
  0xed   : > { %v3516_v38 = vld [vmem:[%s4479_s23 + $0xc8] sm:$0x3f]  ;;  %v1336_v57 = vrot.slane %v3544_v9, 4  ;;  %v3570_v41 = vld [vmem:[%s4479_s23 + $0xba] sm:$0x3f]  ;;  %2822 = vmatmul.mubr.bf16.gmra.mrb[68].mxu0 %v1831_v3  ;;  %2694 = vmatmul.mubr.bf16.gmra.mrb[68].mxu1 %v1838_v52  ;;  %v1714_v0 = vld [vmem:[#allocation2 + $0x650] sm:$0xff] }
  0xee   : > { %v1195_v51 = vrot.slane %v3516_v38, 4  ;;  %v5194_v60 = vld [vmem:[#allocation2 + $0x6d0] sm:$0xf]  ;;  %v5196_v58 = vld [vmem:[#allocation2 + $0x6e8] sm:$0xf]  ;;  %v1463_v54 = vrot.slane %v3570_v41, 2  ;;  %2829 = vmatprep.mubr.bf16.mxu0 %v1841_v1  ;;  %2701 = vmatprep.mubr.bf16.mxu1 %v1848_v22  ;;  %v1840_v22 = vpack.c.bf16 %v5034_v26, %v1714_v0 }
  0xef   : > { %1468 = vst [vmem:[#allocation2 + $0x478] sm:$0xc0] %v1462_v53  ;;  %v5202_v23 = vsel %vm258_vm1, %v1335_v25, %v1336_v57  ;;  %1343 = vst [vmem:[#allocation2 + $0x590] sm:$0x3] %v1336_v57  ;;  %v1475_v24 = vrot.slane %v3571_v44, 4  ;;  %v5213_v25 = vld [vmem:[%s4479_s23 + $0xe0] sm:$0xff]  ;;  %v1847_v52 = vpack.c.bf16 %v5194_v60, %v5194_v60 }
  0xf0   : > { %1202 = vst [vmem:[#allocation2 + $0x588] sm:$0x3] %v1195_v51  ;;  %1212 = vst [vmem:[#allocation2 + $0x588] sm:$0xfc] %v1207_v59  ;;  %v3546_v18 = vld [vmem:[%s4479_s23 + $0xd9] sm:$0x3f]  ;;  %v5207_v3 = vsel %vm258_vm1, %v1194_v56, %v1195_v51  ;;  %v5210_v16 = vsel %vm243_vm0, %v1462_v53, %v1463_v54  ;;  %v1850_v53 = vpack.c.bf16 %v5196_v58, %v5196_v58 }
  0xf1   : > { %v3518_v61 = vld [vmem:[%s4479_s23 + $0xd8] sm:$0x3f]  ;;  %1470 = vst [vmem:[#allocation2 + $0x508] sm:$0xf] %v1463_v54  ;;  %v1349_v21 = vrot.slane %v3546_v18, 6  ;;  %v1528_v1 = vld [vmem:[#allocation2 + $0x80] sm:$0xff] }
  0xf2   : > { %v3572_v34 = vld [vmem:[%s4479_s23 + $0xca] sm:$0x3f]  ;;  %1481 = vst [vmem:[#allocation2 + $0x508] sm:$0xf0] %v1475_v24  ;;  %v1208_v13 = vrot.slane %v3518_v61, 6  ;;  %v3549_v42 = vld [vmem:[%s4479_s23 + $0xf1] sm:$0xff]  ;;  %v1744_v54 = vpack.c.bf16 %v1528_v1, %v5026_v2 }
  0xf3   : > { %v1476_v28 = vrot.slane %v3572_v34, 4  ;;  %v3548_v56 = vld [vmem:[%s4479_s23 + $0xe9] sm:$0x3f]  ;;  %v5226_v9 = vsel %vm273_vm2, %v1348_v45, %v1349_v21  ;;  %v3550_v38 = vld [vmem:[%s4479_s23 + $0xf9] sm:$0x3f]  ;;  %v1363_v37 = vrot.slane %v3549_v42, 2 }
  0xf4   : > { %1358 = vst [vmem:[#allocation2 + $0x668] sm:$0x3f] %v3548_v56  ;;  %v3520_v57 = vld [vmem:[%s4479_s23 + $0xe8] sm:$0x3f]  ;;  %v3521_v51 = vld [vmem:[%s4479_s23 + $0xf0] sm:$0xff]  ;;  %v1834_v41 = vpack.c.bf16 %v5015_v20, %v5226_v9  ;;  %v5234_v26 = vsel %vm273_vm2, %v1207_v59, %v1208_v13  ;;  %v1364_v43 = vrot.slane %v3550_v38, 2 }
  0xf5   : > { %v5237_v60 = vsel %vm258_vm1, %v1475_v24, %v1476_v28  ;;  %1483 = vst [vmem:[#allocation2 + $0x598] sm:$0x3] %v1476_v28  ;;  %1217 = vst [vmem:[#allocation2 + $0x660] sm:$0x3f] %v3520_v57  ;;  %v3522_v45 = vld [vmem:[%s4479_s23 + $0xf8] sm:$0x3f]  ;;  %v1833_v44 = vpack.c.bf16 %v5213_v25, %v5234_v26  ;;  %2830 = vmatmul.mubr.bf16.gmra.mrb[72].mxu0 %v1840_v22  ;;  %2702 = vmatmul.mubr.bf16.gmra.mrb[72].mxu1 %v1847_v52 }
  0xf6   : > { %v3574_v58 = vld [vmem:[%s4479_s23 + $0xda] sm:$0x3f]  ;;  %1369 = vst [vmem:[#allocation2 + $0x668] sm:$0xc0] %v1363_v37  ;;  %v1223_v0 = vrot.slane %v3521_v51, 2  ;;  %v1224_v18 = vrot.slane %v3522_v45, 2  ;;  %v5249_v24 = vsel %vm243_vm0, %v1363_v37, %v1364_v43  ;;  %2837 = vmatprep.mubr.bf16.mxu0 %v1850_v53  ;;  %2877 = vmatprep.mubr.bf16.mxu1 %v1744_v54 }
  0xf7   : > { %v5245_v59 = vld [vmem:[%s4479_s23 + $0xe2] sm:$0xff]  ;;  %v3576_v61 = vld [vmem:[%s4479_s23 + $0xea] sm:$0x3f]  ;;  %1371 = vst [vmem:[#allocation2 + $0x6f8] sm:$0xf] %v1364_v43  ;;  %v1489_v21 = vrot.slane %v3574_v58, 6 }
  0xf8   : > { %1498 = vst [vmem:[#allocation2 + $0x670] sm:$0x3f] %v3576_v61  ;;  %v3577_v34 = vld [vmem:[%s4479_s23 + $0xf2] sm:$0xff]  ;;  %v3578_v13 = vld [vmem:[%s4479_s23 + $0xfa] sm:$0x3f]  ;;  %v5254_v2 = vsel %vm243_vm0, %v1223_v0, %v1224_v18  ;;  %v1529_v46 = vld [vmem:[#allocation2 + $0x88] sm:$0xff]  ;;  %v1771_v61 = vpack.c.bf16 %v5076_v55, %v5094_v49  ;;  %v1772_v49 = vpack.c.bf16 %v5109_v27, %v5122_v32 }
  0xf9   : > { %1229 = vst [vmem:[#allocation2 + $0x660] sm:$0xc0] %v1223_v0  ;;  %1231 = vst [vmem:[#allocation2 + $0x6f0] sm:$0xf] %v1224_v18  ;;  %v1503_v1 = vrot.slane %v3577_v34, 2  ;;  %v1504_v28 = vrot.slane %v3578_v13, 2  ;;  %v5259_v42 = vsel %vm273_vm2, %v1488_v36, %v1489_v21  ;;  %v1745_v45 = vpack.c.bf16 %v1529_v46, %v5049_v10 }
  0xfa   : > { %v1732_v56 = vld [vmem:[#allocation2 + $0x6e0] sm:$0xf]  ;;  %v1527_v38 = vld [vmem:[#allocation2 + $0x78] sm:$0xff]  ;;  %v1835_v22 = vpack.c.bf16 %v5245_v59, %v5259_v42  ;;  %v1546_v57 = vld [vmem:[#allocation2 + $0x110] sm:$0xff]  ;;  %v1770_v21 = vpack.c.bf16 %v5083_v19, %v5097_v7 }
  0xfb   : > { %v5264_v37 = vsel %vm243_vm0, %v1503_v1, %v1504_v28  ;;  %1509 = vst [vmem:[#allocation2 + $0x670] sm:$0xc0] %v1503_v1  ;;  %1511 = vst [vmem:[#allocation2 + $0x700] sm:$0xf] %v1504_v28  ;;  %v1849_v51 = vpack.c.bf16 %v1732_v56, %v1732_v56  ;;  %v1743_v52 = vpack.c.bf16 %v1527_v38, %v5037_v40  ;;  %v1545_v36 = vld [vmem:[#allocation2 + $0x108] sm:$0xff]  ;;  %v1564_v43 = vld [vmem:[#allocation2 + $0x1a0] sm:$0xff] }
  0xfc   : > { %v1753_v53 = vpack.c.bf16 %v1546_v57, %v5055_v8  ;;  %v1752_v58 = vpack.c.bf16 %v1545_v36, %v5059_v12  ;;  %v1762_v54 = vpack.c.bf16 %v1564_v43, %v5069_v47  ;;  %v1547_v40 = vld [vmem:[#allocation2 + $0x118] sm:$0xff]  ;;  %v1565_v10 = vld [vmem:[#allocation2 + $0x1a8] sm:$0xff]  ;;  %v1592_v19 = vld [vmem:[#allocation2 + $0x280] sm:$0xff] }
  0xfd   : > { %2838 = vmatmul.mubr.bf16.gmra.mrb[76].mxu0 %v1849_v51  ;;  %2878 = vmatmul.mubr.bf16.vlgmr.msra.gmra.mrb[76].mxu1 %v1743_v52  ;;  %v1563_v8 = vld [vmem:[#allocation2 + $0x198] sm:$0xff]  ;;  %v1754_v0 = vpack.c.bf16 %v1547_v40, %v5089_v15  ;;  %v1763_v47 = vpack.c.bf16 %v1565_v10, %v5103_v17  ;;  %v1609_v55 = vld [vmem:[#allocation2 + $0x308] sm:$0xff]  ;;  %v1608_v7 = vld [vmem:[#allocation2 + $0x300] sm:$0xff]  ;;  %v1781_v13 = vpack.c.bf16 %v5149_v39, %v1592_v19 }
  0xfe   : > { %4068 = vmatprep.mubr.msk.bf16.mxu0 %vm4353_vm3, %v4352_v6  ;;  %2885 = vmatprep.mubr.bf16.mxu1 %v1753_v53  ;;  %v1761_v18 = vpack.c.bf16 %v1563_v8, %v5072_v48  ;;  %v1591_v12 = vld [vmem:[#allocation2 + $0x278] sm:$0xff]  ;;  %v1590_v48 = vld [vmem:[#allocation2 + $0x270] sm:$0xff]  ;;  %v1789_v17 = vpack.c.bf16 %v5133_v4, %v1609_v55  ;;  %v1788_v1 = vpack.c.bf16 %v5141_v30, %v1608_v7  ;;  %v4259_v38 = vld [vmem:[#allocation2 + $0x428] sm:$0xff] }
  0xff   : > { %v1780_v15 = vpack.c.bf16 %v5113_v50, %v1591_v12  ;;  %v1779_v34 = vpack.c.bf16 %v5119_v62, %v1590_v48  ;;  %v1627_v50 = vld [vmem:[#allocation2 + $0x398] sm:$0xff]  ;;  %v1610_v27 = vld [vmem:[#allocation2 + $0x310] sm:$0xff]  ;;  %v1628_v30 = vld [vmem:[#allocation2 + $0x3a0] sm:$0xff] }
 0x100   : > { %v1798_v28 = vpack.c.bf16 %v5154_v33, %v1627_v50  ;;  %v1626_v62 = vld [vmem:[#allocation2 + $0x390] sm:$0xff]  ;;  %v1790_v4 = vpack.c.bf16 %v5164_v63, %v1610_v27  ;;  %v1653_v39 = vld [vmem:[#allocation2 + $0x468] sm:$0xff]  ;;  %v1672_v33 = vld [vmem:[#allocation2 + $0x500] sm:$0xff]  ;;  %v1799_v51 = vpack.c.bf16 %v5178_v5, %v1628_v30 }
 0x101   : > { %v1654_v32 = vld [vmem:[#allocation2 + $0x470] sm:$0xff]  ;;  %v1797_v56 = vpack.c.bf16 %v5159_v29, %v1626_v62  ;;  %v1806_v52 = vpack.c.bf16 %v1653_v39, %v5146_v31  ;;  %v1816_v53 = vpack.c.bf16 %v1672_v33, %v5185_v35  ;;  %v1655_v43 = vld [vmem:[#allocation2 + $0x478] sm:$0xff]  ;;  %v1673_v55 = vld [vmem:[#allocation2 + $0x508] sm:$0xff] }
 0x102   : > { %v1807_v57 = vpack.c.bf16 %v1654_v32, %v4259_v38  ;;  %v1671_v31 = vld [vmem:[#allocation2 + $0x4f8] sm:$0xff]  ;;  %v1690_v8 = vld [vmem:[#allocation2 + $0x590] sm:$0xff]  ;;  %v1717_v30 = vld [vmem:[#allocation2 + $0x668] sm:$0xff] }
 0x103   : > { %v1815_v10 = vpack.c.bf16 %v1671_v31, %v5191_v11  ;;  %v1825_v12 = vpack.c.bf16 %v1690_v8, %v5202_v23  ;;  %v5322_v11 = vld [vmem:[#allocation5] ss:$0 sm:$0xff]  ;;  %v1843_v20 = vpack.c.bf16 %v5249_v24, %v1717_v30  ;;  %v1735_v31 = vld [vmem:[#allocation2 + $0x6f8] sm:$0xf] }
 0x105   : > { %4069 = vmatmul.mubr.bf16.vlgmr.msra.gmra.mrb[80].mxu0 %v1745_v45  ;;  %2886 = vmatmul.mubr.bf16.gmra.mrb[80].mxu1 %v1752_v58 }
 0x106   : > { %4072 = vmatprep.mubr.msk.bf16.mxu0 %vm4353_vm3, %v4352_v6  ;;  %2893 = vmatprep.mubr.bf16.mxu1 %v1762_v54 }
 0x10d   : > { %4073 = vmatmul.mubr.bf16.gmra.mrb[84].mxu0 %v1754_v0  ;;  %2894 = vmatmul.mubr.bf16.gmra.mrb[84].mxu1 %v1761_v18 }
 0x10e   : > { %4076 = vmatprep.mubr.msk.bf16.mxu0 %vm4353_vm3, %v4352_v6  ;;  %2901 = vmatprep.mubr.bf16.mxu1 %v1771_v61  ;;  %v1808_v61 = vpack.c.bf16 %v1655_v43, %v5173_v14  ;;  %v1689_v14 = vld [vmem:[#allocation2 + $0x588] sm:$0xff]  ;;  %v1716_v43 = vld [vmem:[#allocation2 + $0x660] sm:$0xff] }
 0x10f   : > { %v1824_v27 = vpack.c.bf16 %v1689_v14, %v5207_v3  ;;  %v1842_v26 = vpack.c.bf16 %v5254_v2, %v1716_v43  ;;  %v1734_v2 = vld [vmem:[#allocation2 + $0x6f0] sm:$0xf] }
 0x110   : > { %v1851_v42 = vpack.c.bf16 %v1734_v2, %v1734_v2 }
 0x115   : > { %4077 = vmatmul.mubr.bf16.gmra.mrb[88].mxu0 %v1763_v47  ;;  %2902 = vmatmul.mubr.bf16.gmra.mrb[88].mxu1 %v1770_v21 }
 0x116   : > { %4080 = vmatprep.mubr.msk.bf16.mxu0 %vm4353_vm3, %v4352_v6  ;;  %2909 = vmatprep.mubr.bf16.mxu1 %v1780_v15 }
 0x11d   : > { %4081 = vmatmul.mubr.bf16.gmra.mrb[92].mxu0 %v1772_v49  ;;  %2910 = vmatmul.mubr.bf16.gmra.mrb[92].mxu1 %v1779_v34 }
 0x11e   : > { %4084 = vmatprep.mubr.msk.bf16.mxu0 %vm4353_vm3, %v4352_v6  ;;  %2917 = vmatprep.mubr.bf16.mxu1 %v1789_v17 }
 0x125   : > { %4085 = vmatmul.mubr.bf16.gmra.mrb[96].mxu0 %v1781_v13  ;;  %2918 = vmatmul.mubr.bf16.gmra.mrb[96].mxu1 %v1788_v1 }
 0x126   : > { %4088 = vmatprep.mubr.msk.bf16.mxu0 %vm4353_vm3, %v4352_v6  ;;  %2925 = vmatprep.mubr.bf16.mxu1 %v1798_v28  ;;  %v1817_v28 = vpack.c.bf16 %v1673_v55, %v5210_v16 }
 0x12d   : > { %4089 = vmatmul.mubr.bf16.gmra.mrb[100].mxu0 %v1790_v4  ;;  %2926 = vmatmul.mubr.bf16.gmra.mrb[100].mxu1 %v1797_v56  ;;  %v1691_v4 = vld [vmem:[#allocation2 + $0x598] sm:$0xff] }
 0x12e   : > { %4092 = vmatprep.mubr.msk.bf16.mxu0 %vm4353_vm3, %v4352_v6  ;;  %2933 = vmatprep.mubr.bf16.mxu1 %v1807_v57 }
 0x135   : > { %4093 = vmatmul.mubr.bf16.gmra.mrb[104].mxu0 %v1799_v51  ;;  %2934 = vmatmul.mubr.bf16.gmra.mrb[104].mxu1 %v1806_v52  ;;  %v1826_v52 = vpack.c.bf16 %v1691_v4, %v5237_v60 }
 0x136   : > { %4096 = vmatprep.mubr.msk.bf16.mxu0 %vm4353_vm3, %v4352_v6  ;;  %2941 = vmatprep.mubr.bf16.mxu1 %v1816_v53 }
 0x138   : > { %v3671_v63 = vpop.f32.mrb[0].mxu0  ;;  %v3713_v29 = vpop.f32.mrb[0].mxu1 }
 0x139   : > { %v3672_v46 = vpop.f32.mrb[1].mxu0  ;;  %v3714_v36 = vpop.f32.mrb[1].mxu1 }
 0x13a   : > { %v5307_v45 = vadd.f32 %v3672_v46, %v3671_v63  ;;  %v3674_v58 = vpop.f32.mrb[2].mxu0  ;;  %v5309_v54 = vadd.f32 %v3714_v36, %v3713_v29  ;;  %v3716_v5 = vpop.f32.mrb[2].mxu1 }
 0x13b   : > { %v3675_v40 = vpop.f32.mrb[3].mxu0  ;;  %v3717_v35 = vpop.f32.mrb[3].mxu1 }
 0x13c   : > { %v5311_v0 = vadd.f32 %v3675_v40, %v3674_v58  ;;  %v5313_v18 = vadd.f32 %v3717_v35, %v3716_v5 }
 0x13d   : > { %4097 = vmatmul.mubr.bf16.gmra.mrb[108].mxu0 %v1808_v61  ;;  %2942 = vmatmul.mubr.bf16.gmra.mrb[108].mxu1 %v1815_v10 }
 0x13e   : > { %4100 = vmatprep.mubr.msk.bf16.mxu0 %vm4353_vm3, %v4352_v6  ;;  %2949 = vmatprep.mubr.bf16.mxu1 %v1825_v12  ;;  %v1852_v12 = vpack.c.bf16 %v1735_v31, %v1735_v31 }
 0x140   : > { %v3677_v47 = vpop.f32.mrb[4].mxu0  ;;  %v3719_v21 = vpop.f32.mrb[4].mxu1 }
 0x141   : > { %v3678_v15 = vpop.f32.mrb[5].mxu0  ;;  %v3720_v48 = vpop.f32.mrb[5].mxu1 }
 0x142   : > { %v5320_v49 = vadd.f32 %v3678_v15, %v3677_v47  ;;  %v3680_v34 = vpop.f32.mrb[6].mxu0  ;;  %v3721_v17 = vadd.f32 %v3720_v48, %v3719_v21  ;;  %v3722_v19 = vpop.f32.mrb[6].mxu1  ;;  %v1718_v21 = vld [vmem:[#allocation2 + $0x670] sm:$0xff] }
 0x143   : > { %v3681_v23 = vpop.f32.mrb[7].mxu0  ;;  %v3723_v7 = vpop.f32.mrb[7].mxu1  ;;  %v1844_v14 = vpack.c.bf16 %v5264_v37, %v1718_v21  ;;  %v1736_v37 = vld [vmem:[#allocation2 + $0x700] sm:$0xf] }
 0x144   : > { %v5325_v50 = vadd.f32 %v3721_v17, %v5322_v11  ;;  %v5327_v13 = vadd.f32 %v3681_v23, %v3680_v34  ;;  %v3724_v1 = vadd.f32 %v3723_v7, %v3722_v19 }
 0x145   : > { %4101 = vmatmul.mubr.bf16.gmra.mrb[112].mxu0 %v1817_v28  ;;  %2950 = vmatmul.mubr.bf16.gmra.mrb[112].mxu1 %v1824_v27 }
 0x146   : > { %v5332_v62 = vadd.f32 %v3724_v1, %v5322_v11  ;;  %4104 = vmatprep.mubr.msk.bf16.mxu0 %vm4353_vm3, %v4352_v6  ;;  %2957 = vmatprep.mubr.bf16.mxu1 %v1834_v41 }
 0x148   : > { %v3683_v32 = vpop.f32.mrb[8].mxu0  ;;  %v3725_v38 = vpop.f32.mrb[8].mxu1 }
 0x149   : > { %v3684_v56 = vpop.f32.mrb[9].mxu0  ;;  %v3726_v3 = vpop.f32.mrb[9].mxu1 }
 0x14a   : > { %v5339_v57 = vadd.f32 %v3684_v56, %v3683_v32  ;;  %v3686_v16 = vpop.f32.mrb[10].mxu0  ;;  %v3727_v39 = vadd.f32 %v3726_v3, %v3725_v38  ;;  %v3728_v51 = vpop.f32.mrb[10].mxu1 }
 0x14b   : > { %v3687_v33 = vpop.f32.mrb[11].mxu0  ;;  %v3729_v63 = vpop.f32.mrb[11].mxu1 }
 0x14c   : > { %v5342_v53 = vadd.f32 %v3687_v33, %v3686_v16  ;;  %v5345_v29 = vadd.f32 %v3727_v39, %v5322_v11  ;;  %v3730_v46 = vadd.f32 %v3729_v63, %v3728_v51  ;;  %v1853_v39 = vpack.c.bf16 %v1736_v37, %v1736_v37 }
 0x14d   : > { %4105 = vmatmul.mubr.bf16.gmra.mrb[116].mxu0 %v1826_v52  ;;  %2958 = vmatmul.mubr.bf16.gmra.mrb[116].mxu1 %v1833_v44 }
 0x14e   : > { %v5349_v9 = vadd.f32 %v3730_v46, %v5322_v11  ;;  %4108 = vmatprep.mubr.msk.bf16.mxu0 %vm4353_vm3, %v4352_v6  ;;  %2965 = vmatprep.mubr.bf16.mxu1 %v1843_v20 }
 0x150   : > { %v3689_v41 = vpop.f32.mrb[12].mxu0  ;;  %v3731_v36 = vpop.f32.mrb[12].mxu1 }
 0x151   : > { %v3690_v60 = vpop.f32.mrb[13].mxu0  ;;  %v3732_v24 = vpop.f32.mrb[13].mxu1 }
 0x152   : > { %v5356_v58 = vadd.f32 %v3690_v60, %v3689_v41  ;;  %v3692_v5 = vpop.f32.mrb[14].mxu0  ;;  %v3733_v40 = vadd.f32 %v3732_v24, %v3731_v36  ;;  %v3734_v8 = vpop.f32.mrb[14].mxu1  ;;  %v2472_v24 = vadd.f32 %v5307_v45, %v5322_v11  ;;  %v2480_v45 = vadd.f32 %v5320_v49, %v5322_v11 }
 0x153   : > { %v3693_v35 = vpop.f32.mrb[15].mxu0  ;;  %v3735_v25 = vpop.f32.mrb[15].mxu1 }
 0x154   : > { %v5358_v61 = vadd.f32 %v3693_v35, %v3692_v5  ;;  %v5362_v44 = vadd.f32 %v3733_v40, %v5322_v11  ;;  %v3736_v10 = vadd.f32 %v3735_v25, %v3734_v8 }
 0x155   : > { %4109 = vmatmul.mubr.bf16.gmra.mrb[120].mxu0 %v1835_v22  ;;  %2966 = vmatmul.mubr.bf16.gmra.mrb[120].mxu1 %v1842_v26  ;;  %v2475_v26 = vadd.f32 %v5311_v0, %v5322_v11  ;;  %v2483_v0 = vadd.f32 %v5327_v13, %v5322_v11 }
 0x156   : > { %v5365_v47 = vadd.f32 %v3736_v10, %v5322_v11  ;;  %4112 = vmatprep.mubr.msk.bf16.mxu0 %vm4353_vm3, %v4352_v6  ;;  %2973 = vmatprep.mubr.bf16.mxu1 %v1852_v12 }
 0x158   : > { %v3695_v15 = vpop.f32.mrb[16].mxu0  ;;  %v3737_v55 = vpop.f32.mrb[16].mxu1 }
 0x159   : > { %v3696_v48 = vpop.f32.mrb[17].mxu0  ;;  %v3738_v19 = vpop.f32.mrb[17].mxu1 }
 0x15a   : > { %v5372_v34 = vadd.f32 %v3696_v48, %v3695_v15  ;;  %v3698_v17 = vpop.f32.mrb[18].mxu0  ;;  %v3739_v23 = vadd.f32 %v3738_v19, %v3737_v55  ;;  %v3740_v59 = vpop.f32.mrb[18].mxu1 }
 0x15b   : > { %v3699_v7 = vpop.f32.mrb[19].mxu0  ;;  %v3741_v1 = vpop.f32.mrb[19].mxu1 }
 0x15c   : > { %v5375_v22 = vadd.f32 %v3699_v7, %v3698_v17  ;;  %v5378_v28 = vadd.f32 %v3739_v23, %v5322_v11  ;;  %v3742_v27 = vadd.f32 %v3741_v1, %v3740_v59 }
 0x15d   : > { %4113 = vmatmul.mubr.bf16.gmra.mrb[124].mxu0 %v1844_v14  ;;  %2974 = vmatmul.mubr.bf16.gmra.mrb[124].mxu1 %v1851_v42 }
 0x15e   : > { %v5381_v32 = vadd.f32 %v3742_v27, %v5322_v11  ;;  %4116 = vmatprep.mubr.msk.bf16.mxu0 %vm4353_vm3, %v4352_v6 }
 0x160   : > { %v3701_v4 = vpop.f32.mrb[20].mxu0  ;;  %v3743_v38 = vpop.f32.mrb[20].mxu1 }
 0x161   : > { %v3702_v56 = vpop.f32.mrb[21].mxu0  ;;  %v3744_v30 = vpop.f32.mrb[21].mxu1 }
 0x162   : > { %v5385_v16 = vadd.f32 %v3702_v56, %v3701_v4  ;;  %v3704_v3 = vpop.f32.mrb[22].mxu0  ;;  %v3745_v33 = vadd.f32 %v3744_v30, %v3743_v38  ;;  %v3746_v52 = vpop.f32.mrb[22].mxu1 }
 0x163   : > { %v3705_v51 = vpop.f32.mrb[23].mxu0  ;;  %v3747_v46 = vpop.f32.mrb[23].mxu1 }
 0x164   : > { %v5387_v63 = vadd.f32 %v3705_v51, %v3704_v3  ;;  %v5390_v20 = vadd.f32 %v3745_v33, %v5322_v11  ;;  %v2488_v51 = vadd.f32 %v5339_v57, %v5322_v11 }
 0x165   : > { %4117 = vmatmul.mubr.bf16.gmra.mrb[128].mxu0 %v1853_v39 }
 0x168   : > { %v3707_v6 = vpop.f32.mrb[24].mxu0  ;;  %v3765_v41 = vpop.f32.mrb[24].mxu1 }
 0x169   : > { %v3708_v60 = vpop.f32.mrb[25].mxu0  ;;  %v3766_v43 = vpop.f32.mrb[25].mxu1 }
 0x16a   : > { %v5392_v36 = vadd.f32 %v3708_v60, %v3707_v6  ;;  %v3710_v5 = vpop.f32.mrb[26].mxu0  ;;  %v3767_v31 = vadd.f32 %v3766_v43, %v3765_v41  ;;  %v3768_v40 = vpop.f32.mrb[26].mxu1  ;;  %v2491_v43 = vadd.f32 %v5342_v53, %v5322_v11 }
 0x16b   : > { %v3711_v35 = vpop.f32.mrb[27].mxu0  ;;  %v3769_v25 = vpop.f32.mrb[27].mxu1 }
 0x16c   : > { %v5396_v8 = vadd.f32 %v3711_v35, %v3710_v5  ;;  %v2608_v10 = vadd.f32 %v3767_v31, %v2472_v24  ;;  %v3770_v12 = vadd.f32 %v3769_v25, %v3768_v40 }
 0x16e   : > { %v2611_v21 = vadd.f32 %v3770_v12, %v2475_v26 }
 0x170   : > { %v3859_v15 = vpop.f32.mrb[28].mxu0  ;;  %v3771_v2 = vpop.f32.mrb[28].mxu1 }
 0x171   : > { %v3860_v48 = vpop.f32.mrb[29].mxu0  ;;  %v3772_v55 = vpop.f32.mrb[29].mxu1 }
 0x172   : > { %v3861_v17 = vadd.f32 %v3860_v48, %v3859_v15  ;;  %v3862_v19 = vpop.f32.mrb[30].mxu0  ;;  %v3773_v14 = vadd.f32 %v3772_v55, %v3771_v2  ;;  %v3774_v23 = vpop.f32.mrb[30].mxu1 }
 0x173   : > { %v3863_v7 = vpop.f32.mrb[31].mxu0  ;;  %v3775_v42 = vpop.f32.mrb[31].mxu1 }
 0x174   : > { %v5402_v59 = vadd.f32 %v3861_v17, %v2608_v10  ;;  %v3864_v1 = vadd.f32 %v3863_v7, %v3862_v19  ;;  %v2616_v27 = vadd.f32 %v3773_v14, %v2480_v45  ;;  %v3776_v37 = vadd.f32 %v3775_v42, %v3774_v23 }
 0x175   : > { %v2499_v19 = vadd.f32 %v5358_v61, %v5322_v11 }
 0x176   : > { %v5406_v4 = vadd.f32 %v3864_v1, %v2611_v21  ;;  %v2619_v56 = vadd.f32 %v3776_v37, %v2483_v0  ;;  %v2496_v21 = vadd.f32 %v5356_v58, %v5322_v11 }
 0x178   : > { %v3865_v38 = vpop.f32.mrb[32].mxu0  ;;  %v3777_v3 = vpop.f32.mrb[32].mxu1 }
 0x179   : > { %v3866_v30 = vpop.f32.mrb[33].mxu0  ;;  %v3778_v39 = vpop.f32.mrb[33].mxu1 }
 0x17a   : > { %v3867_v49 = vadd.f32 %v3866_v30, %v3865_v38  ;;  %v3868_v33 = vpop.f32.mrb[34].mxu0  ;;  %v3779_v52 = vadd.f32 %v3778_v39, %v3777_v3  ;;  %v3780_v46 = vpop.f32.mrb[34].mxu1 }
 0x17b   : > { %v3869_v6 = vpop.f32.mrb[35].mxu0  ;;  %v3781_v13 = vpop.f32.mrb[35].mxu1 }
 0x17c   : > { %v5410_v41 = vadd.f32 %v3867_v49, %v2616_v27  ;;  %v3870_v60 = vadd.f32 %v3869_v6, %v3868_v33  ;;  %v2624_v5 = vadd.f32 %v3779_v52, %v2488_v51  ;;  %v3782_v24 = vadd.f32 %v3781_v13, %v3780_v46 }
 0x17d   : > { %v2507_v33 = vadd.f32 %v5375_v22, %v5322_v11 }
 0x17e   : > { %v5414_v31 = vadd.f32 %v3870_v60, %v2619_v56  ;;  %v2627_v40 = vadd.f32 %v3782_v24, %v2491_v43  ;;  %v2504_v56 = vadd.f32 %v5372_v34, %v5322_v11 }
 0x180   : > { %v3871_v35 = vpop.f32.mrb[36].mxu0  ;;  %v3783_v25 = vpop.f32.mrb[36].mxu1 }
 0x181   : > { %v3872_v26 = vpop.f32.mrb[37].mxu0  ;;  %v3784_v10 = vpop.f32.mrb[37].mxu1 }
 0x182   : > { %v3873_v57 = vadd.f32 %v3872_v26, %v3871_v35  ;;  %v3874_v12 = vpop.f32.mrb[38].mxu0  ;;  %v3785_v15 = vadd.f32 %v3784_v10, %v3783_v25  ;;  %v3786_v2 = vpop.f32.mrb[38].mxu1 }
 0x183   : > { %v3875_v48 = vpop.f32.mrb[39].mxu0  ;;  %v3787_v53 = vpop.f32.mrb[39].mxu1 }
 0x184   : > { %v5418_v55 = vadd.f32 %v3873_v57, %v2624_v5  ;;  %v3876_v17 = vadd.f32 %v3875_v48, %v3874_v12  ;;  %v2632_v45 = vadd.f32 %v3785_v15, %v2496_v21  ;;  %v3788_v14 = vadd.f32 %v3787_v53, %v3786_v2 }
 0x185   : > { %v2515_v12 = vadd.f32 %v5387_v63, %v5322_v11 }
 0x186   : > { %v5422_v23 = vadd.f32 %v3876_v17, %v2627_v40  ;;  %v2635_v7 = vadd.f32 %v3788_v14, %v2499_v19  ;;  %v2512_v40 = vadd.f32 %v5385_v16, %v5322_v11 }
 0x188   : > { %v3877_v42 = vpop.f32.mrb[40].mxu0  ;;  %v3789_v1 = vpop.f32.mrb[40].mxu1 }
 0x189   : > { %v3878_v0 = vpop.f32.mrb[41].mxu0  ;;  %v3790_v27 = vpop.f32.mrb[41].mxu1 }
 0x18a   : > { %v3879_v58 = vadd.f32 %v3878_v0, %v3877_v42  ;;  %v3880_v37 = vpop.f32.mrb[42].mxu0  ;;  %v3791_v38 = vadd.f32 %v3790_v27, %v3789_v1  ;;  %v3792_v3 = vpop.f32.mrb[42].mxu1 }
 0x18b   : > { %v3881_v30 = vpop.f32.mrb[43].mxu0  ;;  %v3793_v61 = vpop.f32.mrb[43].mxu1 }
 0x18c   : > { %v5426_v39 = vadd.f32 %v3879_v58, %v2632_v45  ;;  %v3882_v49 = vadd.f32 %v3881_v30, %v3880_v37  ;;  %v2640_v51 = vadd.f32 %v3791_v38, %v2504_v56  ;;  %v3794_v52 = vadd.f32 %v3793_v61, %v3792_v3 }
 0x18d   : > { %v2523_v37 = vadd.f32 %v5396_v8, %v5322_v11 }
 0x18e   : > { %v5430_v46 = vadd.f32 %v3882_v49, %v2635_v7  ;;  %v2643_v6 = vadd.f32 %v3794_v52, %v2507_v33  ;;  %v2520_v7 = vadd.f32 %v5392_v36, %v5322_v11 }
 0x190   : > { %v3883_v13 = vpop.f32.mrb[44].mxu0  ;;  %v3795_v60 = vpop.f32.mrb[44].mxu1 }
 0x191   : > { %v3884_v43 = vpop.f32.mrb[45].mxu0  ;;  %v3796_v5 = vpop.f32.mrb[45].mxu1 }
 0x192   : > { %v3885_v34 = vadd.f32 %v3884_v43, %v3883_v13  ;;  %v3886_v24 = vpop.f32.mrb[46].mxu0  ;;  %v3797_v35 = vadd.f32 %v3796_v5, %v3795_v60  ;;  %v3798_v25 = vpop.f32.mrb[46].mxu1 }
 0x193   : > { %v3887_v26 = vpop.f32.mrb[47].mxu0  ;;  %v3799_v22 = vpop.f32.mrb[47].mxu1 }
 0x194   : > { %v5434_v10 = vadd.f32 %v3885_v34, %v2640_v51  ;;  %v3888_v57 = vadd.f32 %v3887_v26, %v3886_v24  ;;  %v2648_v21 = vadd.f32 %v3797_v35, %v2512_v40  ;;  %v3800_v15 = vadd.f32 %v3799_v22, %v3798_v25 }
 0x195   : > { %v2531_v24 = vadd.f32 %v5313_v18, %v5322_v11 }
 0x196   : > { %v5438_v2 = vadd.f32 %v3888_v57, %v2643_v6  ;;  %v2651_v48 = vadd.f32 %v3800_v15, %v2515_v12  ;;  %v2528_v6 = vadd.f32 %v5309_v54, %v5322_v11 }
 0x198   : > { %v3889_v53 = vpop.f32.mrb[48].mxu0  ;;  %v3801_v17 = vpop.f32.mrb[48].mxu1 }
 0x199   : > { %v3890_v19 = vpop.f32.mrb[49].mxu0  ;;  %v3802_v45 = vpop.f32.mrb[49].mxu1 }
 0x19a   : > { %v3891_v16 = vadd.f32 %v3890_v19, %v3889_v53  ;;  %v3892_v14 = vpop.f32.mrb[50].mxu0  ;;  %v3803_v42 = vadd.f32 %v3802_v45, %v3801_v17  ;;  %v3804_v1 = vpop.f32.mrb[50].mxu1 }
 0x19b   : > { %v3893_v0 = vpop.f32.mrb[51].mxu0  ;;  %v3805_v63 = vpop.f32.mrb[51].mxu1 }
 0x19c   : > { %v5442_v27 = vadd.f32 %v3891_v16, %v2648_v21  ;;  %v3894_v58 = vadd.f32 %v3893_v0, %v3892_v14  ;;  %v2656_v56 = vadd.f32 %v3803_v42, %v2520_v7  ;;  %v3806_v38 = vadd.f32 %v3805_v63, %v3804_v1 }
 0x19e   : > { %v5446_v3 = vadd.f32 %v3894_v58, %v2651_v48  ;;  %v2659_v30 = vadd.f32 %v3806_v38, %v2523_v37 }
 0x1a0   : > { %v3895_v61 = vpop.f32.mrb[52].mxu0  ;;  %v3807_v49 = vpop.f32.mrb[52].mxu1 }
 0x1a1   : > { %v3896_v33 = vpop.f32.mrb[53].mxu0  ;;  %v3808_v51 = vpop.f32.mrb[53].mxu1 }
 0x1a2   : > { %v3897_v36 = vadd.f32 %v3896_v33, %v3895_v61  ;;  %v3898_v52 = vpop.f32.mrb[54].mxu0  ;;  %v3809_v13 = vadd.f32 %v3808_v51, %v3807_v49  ;;  %v3810_v60 = vpop.f32.mrb[54].mxu1 }
 0x1a3   : > { %v3899_v43 = vpop.f32.mrb[55].mxu0  ;;  %v3811_v8 = vpop.f32.mrb[55].mxu1 }
 0x1a4   : > { %v5450_v5 = vadd.f32 %v3897_v36, %v2656_v56  ;;  %v3900_v34 = vadd.f32 %v3899_v43, %v3898_v52  ;;  %v2664_v40 = vadd.f32 %v3809_v13, %v2528_v6  ;;  %v3812_v35 = vadd.f32 %v3811_v8, %v3810_v60 }
 0x1a6   : > { %v5454_v25 = vadd.f32 %v3900_v34, %v2659_v30  ;;  %v2667_v26 = vadd.f32 %v3812_v35, %v2531_v24 }
 0x1a8   : > { %v3901_v22 = vpop.f32.mrb[56].mxu0  ;;  %v3813_v57 = vpop.f32.mrb[56].mxu1 }
 0x1a9   : > { %v3902_v12 = vpop.f32.mrb[57].mxu0  ;;  %v3814_v21 = vpop.f32.mrb[57].mxu1 }
 0x1aa   : > { %v3903_v54 = vadd.f32 %v3902_v12, %v3901_v22  ;;  %v3904_v15 = vpop.f32.mrb[58].mxu0  ;;  %v3815_v48 = vadd.f32 %v3814_v21, %v3813_v57  ;;  %v3816_v53 = vpop.f32.mrb[58].mxu1 }
 0x1ab   : > { %v3905_v17 = vpop.f32.mrb[59].mxu0  ;;  %v3817_v45 = vpop.f32.mrb[59].mxu1 }
 0x1ac   : > { %v5456_v19 = vadd.f32 %v3903_v54, %v2664_v40  ;;  %v3906_v16 = vadd.f32 %v3905_v17, %v3904_v15  ;;  %v2672_v18 = vadd.f32 %v3815_v48, %v5325_v50  ;;  %v3818_v11 = vadd.f32 %v3817_v45, %v3816_v53 }
 0x1ae   : > { %v5459_v14 = vadd.f32 %v3906_v16, %v2667_v26  ;;  %v2675_v7 = vadd.f32 %v3818_v11, %v5332_v62 }
 0x1b0   : > { %v3907_v42 = vpop.f32.mrb[60].mxu0  ;;  %v3819_v1 = vpop.f32.mrb[60].mxu1 }
 0x1b1   : > { %v3908_v0 = vpop.f32.mrb[61].mxu0  ;;  %v3820_v63 = vpop.f32.mrb[61].mxu1 }
 0x1b2   : > { %v3909_v58 = vadd.f32 %v3908_v0, %v3907_v42  ;;  %v3910_v37 = vpop.f32.mrb[62].mxu0  ;;  %v3821_v56 = vadd.f32 %v3820_v63, %v3819_v1  ;;  %v3822_v38 = vpop.f32.mrb[62].mxu1 }
 0x1b3   : > { %v3911_v30 = vpop.f32.mrb[63].mxu0  ;;  %v3823_v49 = vpop.f32.mrb[63].mxu1 }
 0x1b4   : > { %v5462_v61 = vadd.f32 %v3909_v58, %v2672_v18  ;;  %v3912_v33 = vadd.f32 %v3911_v30, %v3910_v37  ;;  %v2680_v50 = vadd.f32 %v3821_v56, %v5345_v29  ;;  %v3824_v51 = vadd.f32 %v3823_v49, %v3822_v38 }
 0x1b6   : > { %v5465_v36 = vadd.f32 %v3912_v33, %v2675_v7  ;;  %v2683_v62 = vadd.f32 %v3824_v51, %v5349_v9 }
 0x1b8   : > { %v3913_v52 = vpop.f32.mrb[64].mxu0  ;;  %v3825_v6 = vpop.f32.mrb[64].mxu1 }
 0x1b9   : > { %v3914_v13 = vpop.f32.mrb[65].mxu0  ;;  %v3826_v60 = vpop.f32.mrb[65].mxu1 }
 0x1ba   : > { %v3915_v43 = vadd.f32 %v3914_v13, %v3913_v52  ;;  %v3916_v8 = vpop.f32.mrb[66].mxu0  ;;  %v3827_v34 = vadd.f32 %v3826_v60, %v3825_v6  ;;  %v3828_v24 = vpop.f32.mrb[66].mxu1 }
 0x1bb   : > { %v3917_v40 = vpop.f32.mrb[67].mxu0  ;;  %v3829_v26 = vpop.f32.mrb[67].mxu1 }
 0x1bc   : > { %v5468_v35 = vadd.f32 %v3915_v43, %v2680_v50  ;;  %v3918_v22 = vadd.f32 %v3917_v40, %v3916_v8  ;;  %v2688_v29 = vadd.f32 %v3827_v34, %v5362_v44  ;;  %v3830_v57 = vadd.f32 %v3829_v26, %v3828_v24 }
 0x1be   : > { %v5471_v12 = vadd.f32 %v3918_v22, %v2683_v62  ;;  %v2691_v9 = vadd.f32 %v3830_v57, %v5365_v47 }
 0x1c0   : > { %v3919_v21 = vpop.f32.mrb[68].mxu0  ;;  %v3831_v54 = vpop.f32.mrb[68].mxu1 }
 0x1c1   : > { %v3920_v15 = vpop.f32.mrb[69].mxu0  ;;  %v3832_v48 = vpop.f32.mrb[69].mxu1 }
 0x1c2   : > { %v3921_v53 = vadd.f32 %v3920_v15, %v3919_v21  ;;  %v3922_v17 = vpop.f32.mrb[70].mxu0  ;;  %v3833_v45 = vadd.f32 %v3832_v48, %v3831_v54  ;;  %v3834_v16 = vpop.f32.mrb[70].mxu1 }
 0x1c3   : > { %v3923_v18 = vpop.f32.mrb[71].mxu0  ;;  %v3835_v7 = vpop.f32.mrb[71].mxu1 }
 0x1c4   : > { %v5474_v11 = vadd.f32 %v3921_v53, %v2688_v29  ;;  %v3924_v42 = vadd.f32 %v3923_v18, %v3922_v17  ;;  %v2696_v44 = vadd.f32 %v3833_v45, %v5378_v28  ;;  %v3836_v1 = vadd.f32 %v3835_v7, %v3834_v16 }
 0x1c6   : > { %v5477_v0 = vadd.f32 %v3924_v42, %v2691_v9  ;;  %v2699_v47 = vadd.f32 %v3836_v1, %v5381_v32 }
 0x1c8   : > { %v3925_v63 = vpop.f32.mrb[72].mxu0  ;;  %v3837_v58 = vpop.f32.mrb[72].mxu1 }
 0x1c9   : > { %v3926_v37 = vpop.f32.mrb[73].mxu0  ;;  %v3838_v56 = vpop.f32.mrb[73].mxu1 }
 0x1ca   : > { %v3927_v38 = vadd.f32 %v3926_v37, %v3925_v63  ;;  %v3928_v30 = vpop.f32.mrb[74].mxu0  ;;  %v3839_v49 = vadd.f32 %v3838_v56, %v3837_v58  ;;  %v3840_v33 = vpop.f32.mrb[74].mxu1 }
 0x1cb   : > { %v3929_v50 = vpop.f32.mrb[75].mxu0  ;;  %v3841_v52 = vpop.f32.mrb[75].mxu1 }
 0x1cc   : > { %v5480_v51 = vadd.f32 %v3927_v38, %v2696_v44  ;;  %v3930_v62 = vadd.f32 %v3929_v50, %v3928_v30  ;;  %v2704_v28 = vadd.f32 %v3839_v49, %v5390_v20 }
 0x1ce   : > { %v5483_v6 = vadd.f32 %v3930_v62, %v2699_v47 }
 0x1d0   : > { %v3931_v13 = vpop.f32.mrb[76].mxu0  ;;  %v3953_v32 = vpop.f32.mrb[76].mxu1 }
 0x1d1   : > { %v3932_v60 = vpop.f32.mrb[77].mxu0  ;;  %v3954_v8 = vpop.f32.mrb[77].mxu1 }
 0x1d2   : > { %v3933_v43 = vadd.f32 %v3932_v60, %v3931_v13  ;;  %v3934_v34 = vpop.f32.mrb[78].mxu0  ;;  %v3955_v24 = vadd.f32 %v3954_v8, %v3953_v32  ;;  %v3956_v40 = vpop.f32.mrb[78].mxu1 }
 0x1d3   : > { %v3935_v26 = vpop.f32.mrb[79].mxu0  ;;  %v3957_v29 = vpop.f32.mrb[79].mxu1 }
 0x1d4   : > { %v5485_v22 = vadd.f32 %v3933_v43, %v2704_v28  ;;  %v3958_v57 = vadd.f32 %v3957_v29, %v3956_v40  ;;  %v2880_v9 = vadd.f32 %v3955_v24, %v5402_v59 }
 0x1d6   : > { %v2883_v20 = vadd.f32 %v3958_v57, %v5406_v4 }
 0x1d8   : > { %v3015_v21 = vpop.f32.mrb[80].mxu0  ;;  %v3959_v54 = vpop.f32.mrb[80].mxu1 }
 0x1d9   : > { %v3016_v15 = vadd.f32 %v3015_v21, %v2880_v9  ;;  %v4070_v48 = vpop.f32.mrb[81].mxu0  ;;  %v3960_v53 = vpop.f32.mrb[81].mxu1 }
 0x1da   : > { %v3018_v17 = vpop.f32.mrb[82].mxu0  ;;  %v3961_v16 = vadd.f32 %v3960_v53, %v3959_v54  ;;  %v3962_v59 = vpop.f32.mrb[82].mxu1 }
 0x1db   : > { %vm3117_vm4 = vcmp.gt.f32.partialorder %v3016_v15, 0.0  ;;  %v3142_v45 = vmul.f32 0.1, %v3016_v15  ;;  %v3019_v18 = vadd.f32 %v3018_v17, %v2883_v20  ;;  %v4071_v7 = vpop.f32.mrb[83].mxu0  ;;  %v3963_v4 = vpop.f32.mrb[83].mxu1 }
 0x1dc   : > { %v3964_v1 = vadd.f32 %v3963_v4, %v3962_v59  ;;  %v2888_v47 = vadd.f32 %v3961_v16, %v5410_v41 }
 0x1dd   : > { %v3167_v42 = vsel %vm3117_vm4, %v3016_v15, %v3142_v45  ;;  %vm3118_vm5 = vcmp.gt.f32.partialorder %v3019_v18, 0.0  ;;  %v3143_v44 = vmul.f32 0.1, %v3019_v18 }
 0x1de   : > { %3192 = vst [vmem:[%s5493_s4] sm:$0xff] %v3167_v42  ;;  %v2891_v58 = vadd.f32 %v3964_v1, %v5414_v31 }
 0x1df   : > { %v3168_v63 = vsel %vm3118_vm5, %v3019_v18, %v3143_v44 }
 0x1e0   : > { %3193 = vst [vmem:[%s5493_s4 + $0x8] sm:$0xff] %v3168_v63  ;;  %v3023_v37 = vpop.f32.mrb[84].mxu0  ;;  %v3965_v56 = vpop.f32.mrb[84].mxu1 }
 0x1e1   : > { %v3024_v38 = vadd.f32 %v3023_v37, %v2888_v47  ;;  %v4074_v30 = vpop.f32.mrb[85].mxu0  ;;  %v3966_v49 = vpop.f32.mrb[85].mxu1 }
 0x1e2   : > { %v3026_v33 = vpop.f32.mrb[86].mxu0  ;;  %v3967_v62 = vadd.f32 %v3966_v49, %v3965_v56  ;;  %v3968_v52 = vpop.f32.mrb[86].mxu1 }
 0x1e3   : > { %vm3119_vm6 = vcmp.gt.f32.partialorder %v3024_v38, 0.0  ;;  %v3144_v50 = vmul.f32 0.1, %v3024_v38  ;;  %v3027_v28 = vadd.f32 %v3026_v33, %v2891_v58  ;;  %v4075_v13 = vpop.f32.mrb[87].mxu0  ;;  %v3969_v32 = vpop.f32.mrb[87].mxu1 }
 0x1e4   : > { %v3970_v31 = vadd.f32 %v3969_v32, %v3968_v52  ;;  %v2896_v43 = vadd.f32 %v3967_v62, %v5418_v55 }
 0x1e5   : > { %v3169_v41 = vsel %vm3119_vm6, %v3024_v38, %v3144_v50  ;;  %vm3120_vm7 = vcmp.gt.f32.partialorder %v3027_v28, 0.0  ;;  %v3145_v60 = vmul.f32 0.1, %v3027_v28 }
 0x1e6   : > { %3194 = vst [vmem:[%s5493_s4 + $0x10] sm:$0xff] %v3169_v41  ;;  %v2899_v34 = vadd.f32 %v3970_v31, %v5422_v23 }
 0x1e7   : > { %v3170_v8 = vsel %vm3120_vm7, %v3027_v28, %v3145_v60 }
 0x1e8   : > { %3195 = vst [vmem:[%s5493_s4 + $0x18] sm:$0xff] %v3170_v8  ;;  %v3031_v24 = vpop.f32.mrb[88].mxu0  ;;  %v3971_v40 = vpop.f32.mrb[88].mxu1 }
 0x1e9   : > { %v3032_v26 = vadd.f32 %v3031_v24, %v2896_v43  ;;  %v4078_v29 = vpop.f32.mrb[89].mxu0  ;;  %v3972_v57 = vpop.f32.mrb[89].mxu1 }
 0x1ea   : > { %v3034_v9 = vpop.f32.mrb[90].mxu0  ;;  %v3973_v21 = vadd.f32 %v3972_v57, %v3971_v40  ;;  %v3974_v54 = vpop.f32.mrb[90].mxu1 }
 0x1eb   : > { %vm3121_vm8 = vcmp.gt.f32.partialorder %v3032_v26, 0.0  ;;  %v3146_v20 = vmul.f32 0.1, %v3032_v26  ;;  %v3035_v15 = vadd.f32 %v3034_v9, %v2899_v34  ;;  %v4079_v48 = vpop.f32.mrb[91].mxu0  ;;  %v3975_v53 = vpop.f32.mrb[91].mxu1 }
 0x1ec   : > { %v3976_v23 = vadd.f32 %v3975_v53, %v3974_v54  ;;  %v2904_v45 = vadd.f32 %v3973_v21, %v5426_v39 }
 0x1ed   : > { %v3171_v55 = vsel %vm3121_vm8, %v3032_v26, %v3146_v20  ;;  %vm3122_vm9 = vcmp.gt.f32.partialorder %v3035_v15, 0.0  ;;  %v3147_v17 = vmul.f32 0.1, %v3035_v15 }
 0x1ee   : > { %3196 = vst [vmem:[%s5493_s4 + $0x20] sm:$0xff] %v3171_v55  ;;  %v2907_v59 = vadd.f32 %v3976_v23, %v5430_v46 }
 0x1ef   : > { %v3172_v16 = vsel %vm3122_vm9, %v3035_v15, %v3147_v17 }
 0x1f0   : > { %3197 = vst [vmem:[%s5493_s4 + $0x28] sm:$0xff] %v3172_v16  ;;  %v3039_v18 = vpop.f32.mrb[92].mxu0  ;;  %v3977_v7 = vpop.f32.mrb[92].mxu1 }
 0x1f1   : > { %v3040_v4 = vadd.f32 %v3039_v18, %v2904_v45  ;;  %v4082_v42 = vpop.f32.mrb[93].mxu0  ;;  %v3978_v44 = vpop.f32.mrb[93].mxu1 }
 0x1f2   : > { %v3042_v1 = vpop.f32.mrb[94].mxu0  ;;  %v3979_v63 = vadd.f32 %v3978_v44, %v3977_v7  ;;  %v3980_v58 = vpop.f32.mrb[94].mxu1 }
 0x1f3   : > { %vm3123_vm10 = vcmp.gt.f32.partialorder %v3040_v4, 0.0  ;;  %v3148_v47 = vmul.f32 0.1, %v3040_v4  ;;  %v3043_v37 = vadd.f32 %v3042_v1, %v2907_v59  ;;  %v4083_v56 = vpop.f32.mrb[95].mxu0  ;;  %v3981_v38 = vpop.f32.mrb[95].mxu1 }
 0x1f4   : > { %v3982_v46 = vadd.f32 %v3981_v38, %v3980_v58  ;;  %v2912_v49 = vadd.f32 %v3979_v63, %v5434_v10 }
 0x1f5   : > { %v3173_v39 = vsel %vm3123_vm10, %v3040_v4, %v3148_v47  ;;  %vm3124_vm11 = vcmp.gt.f32.partialorder %v3043_v37, 0.0  ;;  %v3149_v30 = vmul.f32 0.1, %v3043_v37 }
 0x1f6   : > { %3198 = vst [vmem:[%s5493_s4 + $0x30] sm:$0xff] %v3173_v39  ;;  %v2915_v50 = vadd.f32 %v3982_v46, %v5438_v2 }
 0x1f7   : > { %v3174_v33 = vsel %vm3124_vm11, %v3043_v37, %v3149_v30 }
 0x1f8   : > { %3199 = vst [vmem:[%s5493_s4 + $0x38] sm:$0xff] %v3174_v33  ;;  %v3047_v62 = vpop.f32.mrb[96].mxu0  ;;  %v3983_v52 = vpop.f32.mrb[96].mxu1 }
 0x1f9   : > { %v3048_v28 = vadd.f32 %v3047_v62, %v2912_v49  ;;  %v4086_v13 = vpop.f32.mrb[97].mxu0  ;;  %v3984_v32 = vpop.f32.mrb[97].mxu1 }
 0x1fa   : > { %v3050_v41 = vpop.f32.mrb[98].mxu0  ;;  %v3985_v31 = vadd.f32 %v3984_v32, %v3983_v52  ;;  %v3986_v43 = vpop.f32.mrb[98].mxu1 }
 0x1fb   : > { %vm3125_vm12 = vcmp.gt.f32.partialorder %v3048_v28, 0.0  ;;  %v3150_v60 = vmul.f32 0.1, %v3048_v28  ;;  %v3051_v8 = vadd.f32 %v3050_v41, %v2915_v50  ;;  %v4087_v34 = vpop.f32.mrb[99].mxu0  ;;  %v3987_v24 = vpop.f32.mrb[99].mxu1 }
 0x1fc   : > { %v3988_v2 = vadd.f32 %v3987_v24, %v3986_v43  ;;  %v2920_v26 = vadd.f32 %v3985_v31, %v5442_v27 }
 0x1fd   : > { %v3175_v10 = vsel %vm3125_vm12, %v3048_v28, %v3150_v60  ;;  %vm3126_vm13 = vcmp.gt.f32.partialorder %v3051_v8, 0.0  ;;  %v3151_v40 = vmul.f32 0.1, %v3051_v8 }
 0x1fe   : > { %3200 = vst [vmem:[%s5493_s4 + $0x40] sm:$0xff] %v3175_v10  ;;  %v2923_v57 = vadd.f32 %v3988_v2, %v5446_v3 }
 0x1ff   : > { %v3176_v29 = vsel %vm3126_vm13, %v3051_v8, %v3151_v40 }
 0x200   : > { %3201 = vst [vmem:[%s5493_s4 + $0x48] sm:$0xff] %v3176_v29  ;;  %v3055_v9 = vpop.f32.mrb[100].mxu0  ;;  %v3989_v20 = vpop.f32.mrb[100].mxu1 }
 0x201   : > { %v3056_v21 = vadd.f32 %v3055_v9, %v2920_v26  ;;  %v4090_v54 = vpop.f32.mrb[101].mxu0  ;;  %v3990_v15 = vpop.f32.mrb[101].mxu1 }
 0x202   : > { %v3058_v48 = vpop.f32.mrb[102].mxu0  ;;  %v3991_v55 = vadd.f32 %v3990_v15, %v3989_v20  ;;  %v3992_v17 = vpop.f32.mrb[102].mxu1 }
 0x203   : > { %vm3127_vm14 = vcmp.gt.f32.partialorder %v3056_v21, 0.0  ;;  %v3152_v53 = vmul.f32 0.1, %v3056_v21  ;;  %v3059_v23 = vadd.f32 %v3058_v48, %v2923_v57  ;;  %v4091_v45 = vpop.f32.mrb[103].mxu0  ;;  %v3993_v16 = vpop.f32.mrb[103].mxu1 }
 0x204   : > { %v3994_v3 = vadd.f32 %v3993_v16, %v3992_v17  ;;  %v2928_v18 = vadd.f32 %v3991_v55, %v5450_v5 }
 0x205   : > { %v3177_v27 = vsel %vm3127_vm14, %v3056_v21, %v3152_v53  ;;  %vm3128_vm15 = vcmp.gt.f32.partialorder %v3059_v23, 0.0  ;;  %v3153_v59 = vmul.f32 0.1, %v3059_v23 }
 0x206   : > { %3202 = vst [vmem:[%s5493_s4 + $0x50] sm:$0xff] %v3177_v27  ;;  %v2931_v4 = vadd.f32 %v3994_v3, %v5454_v25 }
 0x207   : > { %v3178_v7 = vsel %vm3128_vm15, %v3059_v23, %v3153_v59 }
 0x208   : > { %3203 = vst [vmem:[%s5493_s4 + $0x58] sm:$0xff] %v3178_v7  ;;  %v3063_v42 = vpop.f32.mrb[104].mxu0  ;;  %v3995_v44 = vpop.f32.mrb[104].mxu1 }
 0x209   : > { %v3064_v1 = vadd.f32 %v3063_v42, %v2928_v18  ;;  %v4094_v47 = vpop.f32.mrb[105].mxu0  ;;  %v3996_v63 = vpop.f32.mrb[105].mxu1 }
 0x20a   : > { %v3066_v58 = vpop.f32.mrb[106].mxu0  ;;  %v3997_v56 = vadd.f32 %v3996_v63, %v3995_v44  ;;  %v3998_v38 = vpop.f32.mrb[106].mxu1 }
 0x20b   : > { %vm3129_vm0 = vcmp.gt.f32.partialorder %v3064_v1, 0.0  ;;  %v3154_v37 = vmul.f32 0.1, %v3064_v1  ;;  %v3067_v39 = vadd.f32 %v3066_v58, %v2931_v4  ;;  %v4095_v30 = vpop.f32.mrb[107].mxu0  ;;  %v3999_v46 = vpop.f32.mrb[107].mxu1 }
 0x20c   : > { %v4000_v25 = vadd.f32 %v3999_v46, %v3998_v38  ;;  %v2936_v33 = vadd.f32 %v3997_v56, %v5456_v19 }
 0x20d   : > { %v3179_v5 = vsel %vm3129_vm0, %v3064_v1, %v3154_v37  ;;  %vm3130_vm1 = vcmp.gt.f32.partialorder %v3067_v39, 0.0  ;;  %v3155_v49 = vmul.f32 0.1, %v3067_v39 }
 0x20e   : > { %3204 = vst [vmem:[%s5493_s4 + $0x60] sm:$0xff] %v3179_v5  ;;  %v2939_v62 = vadd.f32 %v4000_v25, %v5459_v14 }
 0x20f   : > { %v3180_v50 = vsel %vm3130_vm1, %v3067_v39, %v3155_v49 }
 0x210   : > { %3205 = vst [vmem:[%s5493_s4 + $0x68] sm:$0xff] %v3180_v50  ;;  %v3071_v52 = vpop.f32.mrb[108].mxu0  ;;  %v4001_v28 = vpop.f32.mrb[108].mxu1 }
 0x211   : > { %v3072_v13 = vadd.f32 %v3071_v52, %v2936_v33  ;;  %v4098_v32 = vpop.f32.mrb[109].mxu0  ;;  %v4002_v41 = vpop.f32.mrb[109].mxu1 }
 0x212   : > { %v3074_v60 = vpop.f32.mrb[110].mxu0  ;;  %v4003_v43 = vadd.f32 %v4002_v41, %v4001_v28  ;;  %v4004_v8 = vpop.f32.mrb[110].mxu1 }
 0x213   : > { %vm3131_vm2 = vcmp.gt.f32.partialorder %v3072_v13, 0.0  ;;  %v3156_v31 = vmul.f32 0.1, %v3072_v13  ;;  %v3075_v34 = vadd.f32 %v3074_v60, %v2939_v62  ;;  %v4099_v24 = vpop.f32.mrb[111].mxu0  ;;  %v4005_v10 = vpop.f32.mrb[111].mxu1 }
 0x214   : > { %v4006_v14 = vadd.f32 %v4005_v10, %v4004_v8  ;;  %v2944_v2 = vadd.f32 %v4003_v43, %v5462_v61 }
 0x215   : > { %v3181_v19 = vsel %vm3131_vm2, %v3072_v13, %v3156_v31  ;;  %vm3132_vm3 = vcmp.gt.f32.partialorder %v3075_v34, 0.0  ;;  %v3157_v40 = vmul.f32 0.1, %v3075_v34 }
 0x216   : > { %3206 = vst [vmem:[%s5493_s4 + $0x70] sm:$0xff] %v3181_v19  ;;  %v2947_v29 = vadd.f32 %v4006_v14, %v5465_v36 }
 0x217   : > { %v3182_v26 = vsel %vm3132_vm3, %v3075_v34, %v3157_v40 }
 0x218   : > { %3207 = vst [vmem:[%s5493_s4 + $0x78] sm:$0xff] %v3182_v26  ;;  %v3079_v57 = vpop.f32.mrb[112].mxu0  ;;  %v4007_v9 = vpop.f32.mrb[112].mxu1 }
 0x219   : > { %v3080_v20 = vadd.f32 %v3079_v57, %v2944_v2  ;;  %v4102_v21 = vpop.f32.mrb[113].mxu0  ;;  %v4008_v54 = vpop.f32.mrb[113].mxu1 }
 0x21a   : > { %v3082_v15 = vpop.f32.mrb[114].mxu0  ;;  %v4009_v53 = vadd.f32 %v4008_v54, %v4007_v9  ;;  %v4010_v55 = vpop.f32.mrb[114].mxu1 }
 0x21b   : > { %vm3133_vm4 = vcmp.gt.f32.partialorder %v3080_v20, 0.0  ;;  %v3158_v48 = vmul.f32 0.1, %v3080_v20  ;;  %v3083_v17 = vadd.f32 %v3082_v15, %v2947_v29  ;;  %v4103_v23 = vpop.f32.mrb[115].mxu0  ;;  %v4011_v45 = vpop.f32.mrb[115].mxu1 }
 0x21c   : > { %v4012_v36 = vadd.f32 %v4011_v45, %v4010_v55  ;;  %v2952_v27 = vadd.f32 %v4009_v53, %v5468_v35 }
 0x21d   : > { %v3183_v61 = vsel %vm3133_vm4, %v3080_v20, %v3158_v48  ;;  %vm3134_vm5 = vcmp.gt.f32.partialorder %v3083_v17, 0.0  ;;  %v3159_v16 = vmul.f32 0.1, %v3083_v17 }
 0x21e   : > { %3208 = vst [vmem:[%s5493_s4 + $0x80] sm:$0xff] %v3183_v61  ;;  %v2955_v3 = vadd.f32 %v4012_v36, %v5471_v12 }
 0x21f   : > { %v3184_v59 = vsel %vm3134_vm5, %v3083_v17, %v3159_v16 }
 0x220   : > { %3209 = vst [vmem:[%s5493_s4 + $0x88] sm:$0xff] %v3184_v59  ;;  %v3087_v18 = vpop.f32.mrb[116].mxu0  ;;  %v4013_v7 = vpop.f32.mrb[116].mxu1 }
 0x221   : > { %v3088_v4 = vadd.f32 %v3087_v18, %v2952_v27  ;;  %v4106_v42 = vpop.f32.mrb[117].mxu0  ;;  %v4014_v44 = vpop.f32.mrb[117].mxu1 }
 0x222   : > { %v3090_v1 = vpop.f32.mrb[118].mxu0  ;;  %v4015_v63 = vadd.f32 %v4014_v44, %v4013_v7  ;;  %v4016_v58 = vpop.f32.mrb[118].mxu1 }
 0x223   : > { %vm3135_vm6 = vcmp.gt.f32.partialorder %v3088_v4, 0.0  ;;  %v3160_v47 = vmul.f32 0.1, %v3088_v4  ;;  %v3091_v37 = vadd.f32 %v3090_v1, %v2955_v3  ;;  %v4107_v56 = vpop.f32.mrb[119].mxu0  ;;  %v4017_v38 = vpop.f32.mrb[119].mxu1 }
 0x224   : > { %v4018_v12 = vadd.f32 %v4017_v38, %v4016_v58  ;;  %v2960_v30 = vadd.f32 %v4015_v63, %v5474_v11 }
 0x225   : > { %v3185_v35 = vsel %vm3135_vm6, %v3088_v4, %v3160_v47  ;;  %vm3136_vm7 = vcmp.gt.f32.partialorder %v3091_v37, 0.0  ;;  %v3161_v39 = vmul.f32 0.1, %v3091_v37 }
 0x226   : > { %3210 = vst [vmem:[%s5493_s4 + $0x90] sm:$0xff] %v3185_v35  ;;  %v2963_v5 = vadd.f32 %v4018_v12, %v5477_v0 }
 0x227   : > { %v3186_v46 = vsel %vm3136_vm7, %v3091_v37, %v3161_v39 }
 0x228   : > { %3211 = vst [vmem:[%s5493_s4 + $0x98] sm:$0xff] %v3186_v46  ;;  %v3095_v49 = vpop.f32.mrb[120].mxu0  ;;  %v4019_v25 = vpop.f32.mrb[120].mxu1 }
 0x229   : > { %v3096_v33 = vadd.f32 %v3095_v49, %v2960_v30  ;;  %v4110_v50 = vpop.f32.mrb[121].mxu0  ;;  %v4020_v62 = vpop.f32.mrb[121].mxu1 }
 0x22a   : > { %v3098_v52 = vpop.f32.mrb[122].mxu0  ;;  %v4021_v13 = vadd.f32 %v4020_v62, %v4019_v25  ;;  %v4022_v32 = vpop.f32.mrb[122].mxu1 }
 0x22b   : > { %vm3137_vm8 = vcmp.gt.f32.partialorder %v3096_v33, 0.0  ;;  %v3162_v28 = vmul.f32 0.1, %v3096_v33  ;;  %v3099_v41 = vadd.f32 %v3098_v52, %v2963_v5  ;;  %v4111_v60 = vpop.f32.mrb[123].mxu0  ;;  %v4023_v31 = vpop.f32.mrb[123].mxu1 }
 0x22c   : > { %v4024_v0 = vadd.f32 %v4023_v31, %v4022_v32  ;;  %v2968_v8 = vadd.f32 %v4021_v13, %v5480_v51 }
 0x22d   : > { %v3187_v11 = vsel %vm3137_vm8, %v3096_v33, %v3162_v28  ;;  %vm3138_vm9 = vcmp.gt.f32.partialorder %v3099_v41, 0.0  ;;  %v3163_v43 = vmul.f32 0.1, %v3099_v41 }
 0x22e   : > { %3212 = vst [vmem:[%s5493_s4 + $0xa0] sm:$0xff] %v3187_v11  ;;  %v2971_v24 = vadd.f32 %v4024_v0, %v5483_v6 }
 0x22f   : > { %v3188_v34 = vsel %vm3138_vm9, %v3099_v41, %v3163_v43 }
 0x230   : > { %3213 = vst [vmem:[%s5493_s4 + $0xa8] sm:$0xff] %v3188_v34  ;;  %v3103_v10 = vpop.f32.mrb[124].mxu0  ;;  %v4025_v19 = vpop.f32.mrb[124].mxu1 }
 0x231   : > { %v3104_v40 = vadd.f32 %v3103_v10, %v2968_v8  ;;  %v4114_v14 = vpop.f32.mrb[125].mxu0  ;;  %v4026_v2 = vpop.f32.mrb[125].mxu1 }
 0x232   : > { %v3106_v26 = vpop.f32.mrb[126].mxu0  ;;  %v4027_v57 = vadd.f32 %v4026_v2, %v4025_v19  ;;  %v4028_v20 = vpop.f32.mrb[126].mxu1 }
 0x233   : > { %vm3139_vm10 = vcmp.gt.f32.partialorder %v3104_v40, 0.0  ;;  %v3164_v29 = vmul.f32 0.1, %v3104_v40  ;;  %v3107_v9 = vadd.f32 %v3106_v26, %v2971_v24  ;;  %v4115_v21 = vpop.f32.mrb[127].mxu0  ;;  %v4029_v54 = vpop.f32.mrb[127].mxu1 }
 0x234   : > { %v2976_v15 = vadd.f32 %v4027_v57, %v5485_v22 }
 0x235   : > { %v3189_v51 = vsel %vm3139_vm10, %v3104_v40, %v3164_v29  ;;  %vm3140_vm11 = vcmp.gt.f32.partialorder %v3107_v9, 0.0  ;;  %v3165_v6 = vmul.f32 0.1, %v3107_v9 }
 0x236   : > { %3214 = vst [vmem:[%s5493_s4 + $0xb0] sm:$0xff] %v3189_v51 }
 0x237   : > { %v3190_v48 = vsel %vm3140_vm11, %v3107_v9, %v3165_v6 }
 0x238   : > { %3215 = vst [vmem:[%s5493_s4 + $0xb8] sm:$0xff] %v3190_v48  ;;  %v3111_v53 = vpop.f32.mrb[128].mxu0 }
 0x239   : > { %v3112_v55 = vadd.f32 %v3111_v53, %v2976_v15  ;;  %v4118_v17 = vpop.f32.mrb[129].mxu0 }
 0x23a   : > { %v3114_v23 = vpop.f32.mrb[130].mxu0 }
 0x23b   : > { %vm3141_vm12 = vcmp.gt.f32.partialorder %v3112_v55, 0.0  ;;  %v3166_v45 = vmul.f32 0.1, %v3112_v55  ;;  %v4119_v61 = vpop.f32.mrb[131].mxu0 }
 0x23d   : > { %v3191_v16 = vsel %vm3141_vm12, %v3112_v55, %v3166_v45 }
 0x23e   : > { %3216 = vst [vmem:[%s5493_s4 + $0xc0] sm:$0xf] %v3191_v16 }
 0x23f PF: > { %s15_s14 = sadd.s32 1, %s4346_s14   ;;  %s5564_s12 = smov %s4342_s13 }
 0x240   : > { %p12_p3 = scmp.ge.s32.totalorder %s15_s14, 4   ;;  %s5565_s13 = smov %s5567_s16 }
 0x242   :  { %14 = sbr.rel (!%p12_p3) target bundleno = 3 (0x3), region = 88 }
 0x249   :  { %3244 = vsyncpa [#allocation4], 1 }
 0x24a   :  { %3246 = vsyncpa [#allocation4 + $0x1], 1 }
 0x24b   :  { %3247 = vsyncpa [#allocation6], 1 }

</bundles_post_ra>
